<compile_context>
chip_gen: v7x
topology: tpu7x:2x2x1
jax: 0.10.0
libtpu: 0.0.40
codegen_flags: <defaults>
</compile_context>

<pallas_src>
import functools

import jax
import jax.numpy as jnp
from jax import lax
from jax.experimental import pallas as pl
from jax.experimental.pallas import tpu as pltpu


# --------------------------------------------------------------------------
# Fused kernel: whole Block8 for TB images per grid step.
# --------------------------------------------------------------------------
def _block8_kernel(x_ref, w0_ref, b0_ref, w1_ref, b1_ref,
                   w13_ref, b13_ref, w31_ref, b31_ref,
                   wo0_ref, wo1_ref, ob_ref, o_ref, ypad_ref,
                   *, scale, apply_relu):
    """x_ref/o_ref: (TB, H, W, 1792) NHWC block.  Weights are bf16, BN-folded:
       w0/w1: (1792, 192)   w13/w31: (3, 192, 192)   wo0/wo1: (192, 1792)
       biases are f32 row vectors.  ypad_ref: (TB, H, W+2, 192) f32 scratch
       used to produce the W-shifted taps of the (1,3) conv in-kernel."""
    TB, H, W, Cin = x_ref.shape
    Cb = w0_ref.shape[1]
    f32 = jnp.float32
    bf16 = jnp.bfloat16

    # bf16 LHS for every matmul (MXU-native on v5e/v6e/v7x); f32 accumulation.
    xb = x_ref[...].astype(bf16).reshape(-1, Cin)                 # (M, Cin)

    # branch0 1x1 conv + BN + ReLU   /   branch1 first 1x1 conv + BN + ReLU
    x0 = jnp.maximum(
        jnp.dot(xb, w0_ref[...], preferred_element_type=f32) + b0_ref[...], 0.0)
    y1 = jnp.maximum(
        jnp.dot(xb, w1_ref[...], preferred_element_type=f32) + b1_ref[...], 0.0)

    # Stage y1 into a W-zero-padded VMEM scratch so the (1,3) conv's shifted
    # taps are plain windowed loads (no wrapper copies, no HBM round trip).
    ypad_ref[...] = jnp.zeros(ypad_ref.shape, ypad_ref.dtype)
    ypad_ref[:, :, 1:W + 1, :] = y1.reshape(TB, H, W, Cb)
    ym = ypad_ref[:, :, 0:W, :].reshape(-1, Cb).astype(bf16)      # y[w-1] (0 at w=0)
    yc = y1.astype(bf16)                                          # y[w]
    yp = ypad_ref[:, :, 2:W + 2, :].reshape(-1, Cb).astype(bf16)  # y[w+1] (0 at w=W-1)

    # (1,3) conv + BN + ReLU: three per-tap channel matmuls.
    a = jnp.dot(ym, w13_ref[0], preferred_element_type=f32)
    a = a + jnp.dot(yc, w13_ref[1], preferred_element_type=f32)
    a = a + jnp.dot(yp, w13_ref[2], preferred_element_type=f32)
    a = jnp.maximum(a + b13_ref[...], 0.0)
    a4 = a.astype(bf16).reshape(TB, H, W, Cb)

    # (3,1) conv + BN + ReLU: H is a major (untiled) axis -> shifts are free.
    zrow = jnp.zeros((TB, 1, W, Cb), bf16)
    am = jnp.concatenate([zrow, a4[:, :H - 1]], axis=1).reshape(-1, Cb)   # a[h-1]
    ap = jnp.concatenate([a4[:, 1:], zrow], axis=1).reshape(-1, Cb)       # a[h+1]
    x1 = jnp.dot(am, w31_ref[0], preferred_element_type=f32)
    x1 = x1 + jnp.dot(a4.reshape(-1, Cb), w31_ref[1], preferred_element_type=f32)
    x1 = x1 + jnp.dot(ap, w31_ref[2], preferred_element_type=f32)
    x1 = jnp.maximum(x1 + b31_ref[...], 0.0)

    # Final 1x1 conv over the (virtual) concat [x0 | x1] + bias, *scale, +residual.
    out = jnp.dot(x0.astype(bf16), wo0_ref[...], preferred_element_type=f32)
    out = out + jnp.dot(x1.astype(bf16), wo1_ref[...], preferred_element_type=f32)
    out = out + ob_ref[...]
    out = out * scale + x_ref[...].astype(f32).reshape(-1, Cin)
    if apply_relu:
        out = jnp.maximum(out, 0.0)
    o_ref[...] = out.reshape(TB, H, W, Cin).astype(o_ref.dtype)


# --------------------------------------------------------------------------
# Forward wrapper
# --------------------------------------------------------------------------
def _pick_tb(batch, h, w, max_rows=512):
    """Images per grid step: keep >= 2 grid steps whenever batch >= 2 (so the
    v7x megacore uses both TensorCores) and cap the per-step row count to keep
    the VMEM working set bounded while giving the MXU a tall M dimension."""
    rows = h * w
    for cand in (32, 16, 8, 4, 2):
        if batch % cand == 0 and batch // cand >= 2 and cand * rows <= max_rows:
            return cand
    return 1


@functools.partial(jax.jit, static_argnames=("scale", "noReLU"))
def block8_forward(x, params, *, scale=1.0, noReLU=False):
    """x: (B, 1792, H, W) NCHW (PyTorch layout). Returns same shape."""
    B, Cin, H, W = x.shape
    Cb = params["pw0_w"].shape[1]
    dt = x.dtype

    # NCHW -> NHWC (channels lane-dense: 1792 = 14 * 128).
    # TODO(synk): when stacking many Block8s, keep activations NHWC across the
    # chain and hoist these two transposes to the chain boundaries.
    x_nhwc = jnp.transpose(x, (0, 2, 3, 1))

    TB = _pick_tb(B, H, W)
    grid = (B // TB,)

    n_rows = B * H * W
    w_elems = 2 * Cin * Cb + 6 * Cb * Cb + 2 * Cb * Cin
    cost = pl.CostEstimate(
        flops=2 * n_rows * w_elems,
        transcendentals=0,
        bytes_accessed=(2 * n_rows * Cin * x.dtype.itemsize      # x in, out
                        + 2 * w_elems                            # bf16 weights
                        + 4 * (3 * Cb + Cin)))                   # f32 biases

    img_spec = pl.BlockSpec((TB, H, W, Cin), lambda b: (b, 0, 0, 0))
    # Weights/biases: constant block index -> fetched once, stay resident.
    w_pw_spec = pl.BlockSpec((Cin, Cb), lambda b: (0, 0))
    b_cb_spec = pl.BlockSpec((1, Cb), lambda b: (0, 0))
    w_sp_spec = pl.BlockSpec((3, Cb, Cb), lambda b: (0, 0, 0))
    w_out_spec = pl.BlockSpec((Cb, Cin), lambda b: (0, 0))
    b_out_spec = pl.BlockSpec((1, Cin), lambda b: (0, 0))

    out_nhwc = pl.pallas_call(
        functools.partial(_block8_kernel, scale=float(scale),
                          apply_relu=not noReLU),
        out_shape=jax.ShapeDtypeStruct((B, H, W, Cin), dt),
        grid_spec=pltpu.PrefetchScalarGridSpec(
            num_scalar_prefetch=0,
            grid=grid,
            in_specs=[
                img_spec,
                w_pw_spec, b_cb_spec,                 # branch0 1x1
                w_pw_spec, b_cb_spec,                 # branch1 1x1
                w_sp_spec, b_cb_spec,                 # branch1 (1,3)
                w_sp_spec, b_cb_spec,                 # branch1 (3,1)
                w_out_spec, w_out_spec, b_out_spec,   # final 1x1 (concat-free)
            ],
            out_specs=img_spec,
            scratch_shapes=[pltpu.VMEM((TB, H, W + 2, Cb), jnp.float32)]),
        compiler_params=pltpu.CompilerParams(
            dimension_semantics=("parallel",),
            vmem_limit_bytes=48 * 1024 * 1024),
        cost_estimate=cost,
    )(x_nhwc,
      params["pw0_w"], params["pw0_b"],
      params["pw1_w"], params["pw1_b"],
      params["w13"], params["b13"],
      params["w31"], params["b31"],
      params["wo0"], params["wo1"], params["ob"])

    return jnp.transpose(out_nhwc, (0, 3, 1, 2))


# --------------------------------------------------------------------------
# Parameter construction (PyTorch layouts) and one-time kernel-layout prep
# --------------------------------------------------------------------------
_BN_EPS = 1e-3


def init_params(key):
    """Deterministic parameters in PyTorch layouts (OIHW conv weights)."""
    ks = jax.random.split(key, 10)

    def conv_w(k, o, i, kh, kw, std=0.02):
        return jax.random.normal(k, (o, i, kh, kw), jnp.float32) * std

    def bn(k, c):
        k1, k2, k3, k4 = jax.random.split(k, 4)
        gamma = jax.random.uniform(k1, (c,), minval=0.5, maxval=1.5, dtype=jnp.float32)
        beta = jax.random.normal(k2, (c,), jnp.float32) * 0.1
        mean = jax.random.normal(k3, (c,), jnp.float32) * 0.1
        var = jax.random.uniform(k4, (c,), minval=0.5, maxval=1.5, dtype=jnp.float32)
        return gamma, beta, mean, var

    p = {}
    p["b0_w"] = conv_w(ks[0], 192, 1792, 1, 1)
    p["b0_bn"] = bn(ks[1], 192)
    p["b1a_w"] = conv_w(ks[2], 192, 1792, 1, 1)
    p["b1a_bn"] = bn(ks[3], 192)
    p["b1b_w"] = conv_w(ks[4], 192, 192, 1, 3)
    p["b1b_bn"] = bn(ks[5], 192)
    p["b1c_w"] = conv_w(ks[6], 192, 192, 3, 1)
    p["b1c_bn"] = bn(ks[7], 192)
    p["conv_w"] = conv_w(ks[8], 1792, 384, 1, 1)
    p["conv_b"] = jax.random.normal(ks[9], (1792,), jnp.float32) * 0.02
    return p


def prepare_params(p, compute_dtype=jnp.bfloat16):
    """Fold BN into the conv weights (f32), transpose to matmul layouts and
    cast the matmul weights to bf16 (MXU-native); biases stay f32."""
    def fold(w, bn_p):
        gamma, beta, mean, var = bn_p
        s = gamma / jnp.sqrt(var + _BN_EPS)
        return w * s[:, None, None, None], beta - mean * s

    w0, b0 = fold(p["b0_w"], p["b0_bn"])
    w1a, b1a = fold(p["b1a_w"], p["b1a_bn"])
    w1b, b1b = fold(p["b1b_w"], p["b1b_bn"])
    w1c, b1c = fold(p["b1c_w"], p["b1c_bn"])
    cd = compute_dtype

    return {
        "pw0_w": jnp.transpose(w0[:, :, 0, 0]).astype(cd),             # (1792, 192)
        "pw0_b": b0.reshape(1, 192).astype(jnp.float32),
        "pw1_w": jnp.transpose(w1a[:, :, 0, 0]).astype(cd),            # (1792, 192)
        "pw1_b": b1a.reshape(1, 192).astype(jnp.float32),
        "w13": jnp.transpose(w1b[:, :, 0, :], (2, 1, 0)).astype(cd),   # (3, in, out)
        "b13": b1b.reshape(1, 192).astype(jnp.float32),
        "w31": jnp.transpose(w1c[:, :, :, 0], (2, 1, 0)).astype(cd),   # (3, in, out)
        "b31": b1c.reshape(1, 192).astype(jnp.float32),
        "wo0": jnp.transpose(p["conv_w"][:, :192, 0, 0]).astype(cd),   # (192, 1792)
        "wo1": jnp.transpose(p["conv_w"][:, 192:, 0, 0]).astype(cd),   # (192, 1792)
        "ob": p["conv_b"].reshape(1, 1792).astype(jnp.float32),
    }


# --------------------------------------------------------------------------
# Pure-JAX reference (NCHW, lax.conv, f32) for correctness checking
# --------------------------------------------------------------------------
def _ref_conv_bn_relu(x, w, bn_p, padding):
    gamma, beta, mean, var = bn_p
    y = lax.conv_general_dilated(x, w, window_strides=(1, 1), padding=padding,
                                 dimension_numbers=("NCHW", "OIHW", "NCHW"))
    s = gamma / jnp.sqrt(var + _BN_EPS)
    b = beta - mean * s
    return jnp.maximum(y * s[None, :, None, None] + b[None, :, None, None], 0.0)


def block8_reference(x, p, scale, noReLU):
    x0 = _ref_conv_bn_relu(x, p["b0_w"], p["b0_bn"], ((0, 0), (0, 0)))
    y = _ref_conv_bn_relu(x, p["b1a_w"], p["b1a_bn"], ((0, 0), (0, 0)))
    y = _ref_conv_bn_relu(y, p["b1b_w"], p["b1b_bn"], ((0, 0), (1, 1)))
    y = _ref_conv_bn_relu(y, p["b1c_w"], p["b1c_bn"], ((1, 1), (0, 0)))
    cat = jnp.concatenate([x0, y], axis=1)
    out = lax.conv_general_dilated(cat, p["conv_w"], (1, 1), ((0, 0), (0, 0)),
                                   dimension_numbers=("NCHW", "OIHW", "NCHW"))
    out = out + p["conv_b"][None, :, None, None]
    out = out * scale + x
    if not noReLU:
        out = jnp.maximum(out, 0.0)
    return out


# --------------------------------------------------------------------------
if __name__ == "__main__":
    key = jax.random.PRNGKey(0)
    kx, kp = jax.random.split(key)

    B, C, H, W = 2, 1792, 8, 8          # channel counts fixed by Block8
    x = jax.random.normal(kx, (B, C, H, W), dtype=jnp.float32)

    torch_style_params = init_params(kp)
    kernel_params = prepare_params(torch_style_params)

    scale = 1.0
    noReLU = False

    out = block8_forward(x, kernel_params, scale=scale, noReLU=noReLU)
    out = jax.block_until_ready(out)

    ref = block8_reference(x, torch_style_params, scale, noReLU)
    assert out.shape == x.shape, (out.shape, x.shape)
    err = jnp.abs(out.astype(jnp.float32) - ref)
    max_err = float(jnp.max(err))
    mean_err = float(jnp.mean(err))
    # bf16 matmul operands (f32 reference) -> loosened but still bug-detecting tolerance.
    assert max_err < 6e-2, f"max abs err {max_err}"
    assert mean_err < 6e-3, f"mean abs err {mean_err}"

    print("KERNEL_OK")
</pallas_src>

<mosaic_0001>
module attributes {stable_mosaic.version = 11 : i64} {
  func.func @_block8_kernel(%arg0: i32, %arg1: memref<1x8x8x1792xf32, #tpu.memory_space<vmem>>, %arg2: memref<1792x192xbf16, #tpu.memory_space<vmem>>, %arg3: memref<1x192xf32, #tpu.memory_space<vmem>>, %arg4: memref<1792x192xbf16, #tpu.memory_space<vmem>>, %arg5: memref<1x192xf32, #tpu.memory_space<vmem>>, %arg6: memref<3x192x192xbf16, #tpu.memory_space<vmem>>, %arg7: memref<1x192xf32, #tpu.memory_space<vmem>>, %arg8: memref<3x192x192xbf16, #tpu.memory_space<vmem>>, %arg9: memref<1x192xf32, #tpu.memory_space<vmem>>, %arg10: memref<192x1792xbf16, #tpu.memory_space<vmem>>, %arg11: memref<192x1792xbf16, #tpu.memory_space<vmem>>, %arg12: memref<1x1792xf32, #tpu.memory_space<vmem>>, %arg13: memref<1x8x8x1792xf32, #tpu.memory_space<vmem>>, %arg14: memref<1x8x10x192xf32, #tpu.memory_space<vmem>>) attributes {dimension_semantics = [#tpu.dimension_semantics<parallel>], iteration_bounds = array<i64: 2>, scalar_prefetch = 0 : i64, scratch_operands = 1 : i64, tpu.core_type = #tpu.core_type<tc>, window_params = [{transform_indices = @transform_0, window_bounds = array<i64: 1, 8, 8, 1792>}, {pipeline_mode = #tpu.pipeline_mode<synchronous>, transform_indices = @transform_1, window_bounds = array<i64: 1792, 192>}, {pipeline_mode = #tpu.pipeline_mode<synchronous>, transform_indices = @transform_2, window_bounds = array<i64: 1, 192>}, {pipeline_mode = #tpu.pipeline_mode<synchronous>, transform_indices = @transform_3, window_bounds = array<i64: 1792, 192>}, {pipeline_mode = #tpu.pipeline_mode<synchronous>, transform_indices = @transform_4, window_bounds = array<i64: 1, 192>}, {pipeline_mode = #tpu.pipeline_mode<synchronous>, transform_indices = @transform_5, window_bounds = array<i64: 3, 192, 192>}, {pipeline_mode = #tpu.pipeline_mode<synchronous>, transform_indices = @transform_6, window_bounds = array<i64: 1, 192>}, {pipeline_mode = #tpu.pipeline_mode<synchronous>, transform_indices = @transform_7, window_bounds = array<i64: 3, 192, 192>}, {pipeline_mode = #tpu.pipeline_mode<synchronous>, transform_indices = @transform_8, window_bounds = array<i64: 1, 192>}, {pipeline_mode = #tpu.pipeline_mode<synchronous>, transform_indices = @transform_9, window_bounds = array<i64: 192, 1792>}, {pipeline_mode = #tpu.pipeline_mode<synchronous>, transform_indices = @transform_10, window_bounds = array<i64: 192, 1792>}, {pipeline_mode = #tpu.pipeline_mode<synchronous>, transform_indices = @transform_11, window_bounds = array<i64: 1, 1792>}, {transform_indices = @transform_12, window_bounds = array<i64: 1, 8, 8, 1792>}]} {
    %c0 = arith.constant 0 : index
    %c0_0 = arith.constant 0 : index
    %c0_1 = arith.constant 0 : index
    %c0_2 = arith.constant 0 : index
    %0 = vector.load %arg1[%c0, %c0_0, %c0_1, %c0_2] : memref<1x8x8x1792xf32, #tpu.memory_space<vmem>>, vector<1x8x8x1792xf32>
    %1 = arith.truncf %0 : vector<1x8x8x1792xf32> to vector<1x8x8x1792xbf16>
    %2 = vector.shape_cast %1 : vector<1x8x8x1792xbf16> to vector<64x1792xbf16>
    %c0_3 = arith.constant 0 : index
    %c0_4 = arith.constant 0 : index
    %3 = vector.load %arg2[%c0_3, %c0_4] : memref<1792x192xbf16, #tpu.memory_space<vmem>>, vector<1792x192xbf16>
    %cst = arith.constant dense<0.000000e+00> : vector<64x192xf32>
    %4 = tpu.matmul %2, %3, %cst {dimension_numbers = #tpu.dot_dimension_numbers<[1], [0], [0], [1], [0, 0, 1, 1], [], []>} : vector<64x1792xbf16>, vector<1792x192xbf16>, vector<64x192xf32> -> vector<64x192xf32>
    %c0_5 = arith.constant 0 : index
    %c0_6 = arith.constant 0 : index
    %5 = vector.load %arg3[%c0_5, %c0_6] : memref<1x192xf32, #tpu.memory_space<vmem>>, vector<1x192xf32>
    %6 = vector.broadcast %5 : vector<1x192xf32> to vector<64x192xf32>
    %7 = arith.addf %4, %6 : vector<64x192xf32>
    %cst_7 = arith.constant 0.000000e+00 : f32
    %8 = vector.broadcast %cst_7 : f32 to vector<64x192xf32>
    %9 = arith.maximumf %7, %8 : vector<64x192xf32>
    %c0_8 = arith.constant 0 : index
    %c0_9 = arith.constant 0 : index
    %10 = vector.load %arg4[%c0_8, %c0_9] : memref<1792x192xbf16, #tpu.memory_space<vmem>>, vector<1792x192xbf16>
    %cst_10 = arith.constant dense<0.000000e+00> : vector<64x192xf32>
    %11 = tpu.matmul %2, %10, %cst_10 {dimension_numbers = #tpu.dot_dimension_numbers<[1], [0], [0], [1], [0, 0, 1, 1], [], []>} : vector<64x1792xbf16>, vector<1792x192xbf16>, vector<64x192xf32> -> vector<64x192xf32>
    %c0_11 = arith.constant 0 : index
    %c0_12 = arith.constant 0 : index
    %12 = vector.load %arg5[%c0_11, %c0_12] : memref<1x192xf32, #tpu.memory_space<vmem>>, vector<1x192xf32>
    %13 = vector.broadcast %12 : vector<1x192xf32> to vector<64x192xf32>
    %14 = arith.addf %11, %13 : vector<64x192xf32>
    %cst_13 = arith.constant 0.000000e+00 : f32
    %15 = vector.broadcast %cst_13 : f32 to vector<64x192xf32>
    %16 = arith.maximumf %14, %15 : vector<64x192xf32>
    %cst_14 = arith.constant 0.000000e+00 : f32
    %17 = vector.broadcast %cst_14 : f32 to vector<1x8x10x192xf32>
    %c0_15 = arith.constant 0 : index
    %c0_16 = arith.constant 0 : index
    %c0_17 = arith.constant 0 : index
    %c0_18 = arith.constant 0 : index
    %18 = vector.load %arg14[%c0_15, %c0_16, %c0_17, %c0_18] : memref<1x8x10x192xf32, #tpu.memory_space<vmem>>, vector<1x8x10x192xf32>
    tpu.vector_store %arg14[%c0_15, %c0_16, %c0_17, %c0_18], %17 {strides = array<i32>} : memref<1x8x10x192xf32, #tpu.memory_space<vmem>>, vector<1x8x10x192xf32>,
    %19 = vector.shape_cast %16 : vector<64x192xf32> to vector<1x8x8x192xf32>
    %c0_19 = arith.constant 0 : index
    %c0_20 = arith.constant 0 : index
    %c1 = arith.constant 1 : index
    %c0_21 = arith.constant 0 : index
    %20 = vector.load %arg14[%c0_19, %c0_20, %c1, %c0_21] : memref<1x8x10x192xf32, #tpu.memory_space<vmem>>, vector<1x8x8x192xf32>
    tpu.vector_store %arg14[%c0_19, %c0_20, %c1, %c0_21], %19 {strides = array<i32>} : memref<1x8x10x192xf32, #tpu.memory_space<vmem>>, vector<1x8x8x192xf32>,
    %c0_22 = arith.constant 0 : index
    %c0_23 = arith.constant 0 : index
    %c0_24 = arith.constant 0 : index
    %c0_25 = arith.constant 0 : index
    %21 = vector.load %arg14[%c0_22, %c0_23, %c0_24, %c0_25] : memref<1x8x10x192xf32, #tpu.memory_space<vmem>>, vector<1x8x8x192xf32>
    %22 = vector.shape_cast %21 : vector<1x8x8x192xf32> to vector<64x192xf32>
    %23 = arith.truncf %22 : vector<64x192xf32> to vector<64x192xbf16>
    %24 = arith.truncf %16 : vector<64x192xf32> to vector<64x192xbf16>
    %c0_26 = arith.constant 0 : index
    %c0_27 = arith.constant 0 : index
    %c2 = arith.constant 2 : index
    %c0_28 = arith.constant 0 : index
    %25 = vector.load %arg14[%c0_26, %c0_27, %c2, %c0_28] : memref<1x8x10x192xf32, #tpu.memory_space<vmem>>, vector<1x8x8x192xf32>
    %26 = vector.shape_cast %25 : vector<1x8x8x192xf32> to vector<64x192xf32>
    %27 = arith.truncf %26 : vector<64x192xf32> to vector<64x192xbf16>
    %c0_29 = arith.constant 0 : index
    %c0_30 = arith.constant 0 : index
    %c0_31 = arith.constant 0 : index
    %28 = vector.load %arg6[%c0_29, %c0_30, %c0_31] : memref<3x192x192xbf16, #tpu.memory_space<vmem>>, vector<1x192x192xbf16>
    %29 = vector.shape_cast %28 : vector<1x192x192xbf16> to vector<192x192xbf16>
    %cst_32 = arith.constant dense<0.000000e+00> : vector<64x192xf32>
    %30 = tpu.matmul %23, %29, %cst_32 {dimension_numbers = #tpu.dot_dimension_numbers<[1], [0], [0], [1], [0, 0, 1, 1], [], []>} : vector<64x192xbf16>, vector<192x192xbf16>, vector<64x192xf32> -> vector<64x192xf32>
    %c1_33 = arith.constant 1 : index
    %c0_34 = arith.constant 0 : index
    %c0_35 = arith.constant 0 : index
    %31 = vector.load %arg6[%c1_33, %c0_34, %c0_35] : memref<3x192x192xbf16, #tpu.memory_space<vmem>>, vector<1x192x192xbf16>
    %32 = vector.shape_cast %31 : vector<1x192x192xbf16> to vector<192x192xbf16>
    %cst_36 = arith.constant dense<0.000000e+00> : vector<64x192xf32>
    %33 = tpu.matmul %24, %32, %cst_36 {dimension_numbers = #tpu.dot_dimension_numbers<[1], [0], [0], [1], [0, 0, 1, 1], [], []>} : vector<64x192xbf16>, vector<192x192xbf16>, vector<64x192xf32> -> vector<64x192xf32>
    %34 = arith.addf %30, %33 : vector<64x192xf32>
    %c2_37 = arith.constant 2 : index
    %c0_38 = arith.constant 0 : index
    %c0_39 = arith.constant 0 : index
    %35 = vector.load %arg6[%c2_37, %c0_38, %c0_39] : memref<3x192x192xbf16, #tpu.memory_space<vmem>>, vector<1x192x192xbf16>
    %36 = vector.shape_cast %35 : vector<1x192x192xbf16> to vector<192x192xbf16>
    %cst_40 = arith.constant dense<0.000000e+00> : vector<64x192xf32>
    %37 = tpu.matmul %27, %36, %cst_40 {dimension_numbers = #tpu.dot_dimension_numbers<[1], [0], [0], [1], [0, 0, 1, 1], [], []>} : vector<64x192xbf16>, vector<192x192xbf16>, vector<64x192xf32> -> vector<64x192xf32>
    %38 = arith.addf %34, %37 : vector<64x192xf32>
    %c0_41 = arith.constant 0 : index
    %c0_42 = arith.constant 0 : index
    %39 = vector.load %arg7[%c0_41, %c0_42] : memref<1x192xf32, #tpu.memory_space<vmem>>, vector<1x192xf32>
    %40 = vector.broadcast %39 : vector<1x192xf32> to vector<64x192xf32>
    %41 = arith.addf %38, %40 : vector<64x192xf32>
    %cst_43 = arith.constant 0.000000e+00 : f32
    %42 = vector.broadcast %cst_43 : f32 to vector<64x192xf32>
    %43 = arith.maximumf %41, %42 : vector<64x192xf32>
    %44 = arith.truncf %43 : vector<64x192xf32> to vector<64x192xbf16>
    %45 = vector.shape_cast %44 : vector<64x192xbf16> to vector<1x8x8x192xbf16>
    %cst_44 = arith.constant 0.000000e+00 : bf16
    %46 = vector.broadcast %cst_44 : bf16 to vector<1x1x8x192xbf16>
    %47 = vector.extract_strided_slice %45 {offsets = [0, 0, 0, 0], sizes = [1, 7, 8, 192], strides = [1, 1, 1, 1]} : vector<1x8x8x192xbf16> to vector<1x7x8x192xbf16>
    %48 = tpu.concatenate %46, %47 in 1 : vector<1x1x8x192xbf16>, vector<1x7x8x192xbf16> -> vector<1x8x8x192xbf16>
    %49 = vector.shape_cast %48 : vector<1x8x8x192xbf16> to vector<64x192xbf16>
    %50 = vector.extract_strided_slice %45 {offsets = [0, 1, 0, 0], sizes = [1, 7, 8, 192], strides = [1, 1, 1, 1]} : vector<1x8x8x192xbf16> to vector<1x7x8x192xbf16>
    %51 = tpu.concatenate %50, %46 in 1 : vector<1x7x8x192xbf16>, vector<1x1x8x192xbf16> -> vector<1x8x8x192xbf16>
    %52 = vector.shape_cast %51 : vector<1x8x8x192xbf16> to vector<64x192xbf16>
    %c0_45 = arith.constant 0 : index
    %c0_46 = arith.constant 0 : index
    %c0_47 = arith.constant 0 : index
    %53 = vector.load %arg8[%c0_45, %c0_46, %c0_47] : memref<3x192x192xbf16, #tpu.memory_space<vmem>>, vector<1x192x192xbf16>
    %54 = vector.shape_cast %53 : vector<1x192x192xbf16> to vector<192x192xbf16>
    %cst_48 = arith.constant dense<0.000000e+00> : vector<64x192xf32>
    %55 = tpu.matmul %49, %54, %cst_48 {dimension_numbers = #tpu.dot_dimension_numbers<[1], [0], [0], [1], [0, 0, 1, 1], [], []>} : vector<64x192xbf16>, vector<192x192xbf16>, vector<64x192xf32> -> vector<64x192xf32>
    %56 = vector.shape_cast %45 : vector<1x8x8x192xbf16> to vector<64x192xbf16>
    %c1_49 = arith.constant 1 : index
    %c0_50 = arith.constant 0 : index
    %c0_51 = arith.constant 0 : index
    %57 = vector.load %arg8[%c1_49, %c0_50, %c0_51] : memref<3x192x192xbf16, #tpu.memory_space<vmem>>, vector<1x192x192xbf16>
    %58 = vector.shape_cast %57 : vector<1x192x192xbf16> to vector<192x192xbf16>
    %cst_52 = arith.constant dense<0.000000e+00> : vector<64x192xf32>
    %59 = tpu.matmul %56, %58, %cst_52 {dimension_numbers = #tpu.dot_dimension_numbers<[1], [0], [0], [1], [0, 0, 1, 1], [], []>} : vector<64x192xbf16>, vector<192x192xbf16>, vector<64x192xf32> -> vector<64x192xf32>
    %60 = arith.addf %55, %59 : vector<64x192xf32>
    %c2_53 = arith.constant 2 : index
    %c0_54 = arith.constant 0 : index
    %c0_55 = arith.constant 0 : index
    %61 = vector.load %arg8[%c2_53, %c0_54, %c0_55] : memref<3x192x192xbf16, #tpu.memory_space<vmem>>, vector<1x192x192xbf16>
    %62 = vector.shape_cast %61 : vector<1x192x192xbf16> to vector<192x192xbf16>
    %cst_56 = arith.constant dense<0.000000e+00> : vector<64x192xf32>
    %63 = tpu.matmul %52, %62, %cst_56 {dimension_numbers = #tpu.dot_dimension_numbers<[1], [0], [0], [1], [0, 0, 1, 1], [], []>} : vector<64x192xbf16>, vector<192x192xbf16>, vector<64x192xf32> -> vector<64x192xf32>
    %64 = arith.addf %60, %63 : vector<64x192xf32>
    %c0_57 = arith.constant 0 : index
    %c0_58 = arith.constant 0 : index
    %65 = vector.load %arg9[%c0_57, %c0_58] : memref<1x192xf32, #tpu.memory_space<vmem>>, vector<1x192xf32>
    %66 = vector.broadcast %65 : vector<1x192xf32> to vector<64x192xf32>
    %67 = arith.addf %64, %66 : vector<64x192xf32>
    %cst_59 = arith.constant 0.000000e+00 : f32
    %68 = vector.broadcast %cst_59 : f32 to vector<64x192xf32>
    %69 = arith.maximumf %67, %68 : vector<64x192xf32>
    %70 = arith.truncf %9 : vector<64x192xf32> to vector<64x192xbf16>
    %c0_60 = arith.constant 0 : index
    %c0_61 = arith.constant 0 : index
    %71 = vector.load %arg10[%c0_60, %c0_61] : memref<192x1792xbf16, #tpu.memory_space<vmem>>, vector<192x1792xbf16>
    %cst_62 = arith.constant dense<0.000000e+00> : vector<64x1792xf32>
    %72 = tpu.matmul %70, %71, %cst_62 {dimension_numbers = #tpu.dot_dimension_numbers<[1], [0], [0], [1], [0, 0, 1, 1], [], []>} : vector<64x192xbf16>, vector<192x1792xbf16>, vector<64x1792xf32> -> vector<64x1792xf32>
    %73 = arith.truncf %69 : vector<64x192xf32> to vector<64x192xbf16>
    %c0_63 = arith.constant 0 : index
    %c0_64 = arith.constant 0 : index
    %74 = vector.load %arg11[%c0_63, %c0_64] : memref<192x1792xbf16, #tpu.memory_space<vmem>>, vector<192x1792xbf16>
    %cst_65 = arith.constant dense<0.000000e+00> : vector<64x1792xf32>
    %75 = tpu.matmul %73, %74, %cst_65 {dimension_numbers = #tpu.dot_dimension_numbers<[1], [0], [0], [1], [0, 0, 1, 1], [], []>} : vector<64x192xbf16>, vector<192x1792xbf16>, vector<64x1792xf32> -> vector<64x1792xf32>
    %76 = arith.addf %72, %75 : vector<64x1792xf32>
    %c0_66 = arith.constant 0 : index
    %c0_67 = arith.constant 0 : index
    %77 = vector.load %arg12[%c0_66, %c0_67] : memref<1x1792xf32, #tpu.memory_space<vmem>>, vector<1x1792xf32>
    %78 = vector.broadcast %77 : vector<1x1792xf32> to vector<64x1792xf32>
    %79 = arith.addf %76, %78 : vector<64x1792xf32>
    %cst_68 = arith.constant 1.000000e+00 : f32
    %80 = vector.broadcast %cst_68 : f32 to vector<64x1792xf32>
    %81 = arith.mulf %79, %80 : vector<64x1792xf32>
    %c0_69 = arith.constant 0 : index
    %c0_70 = arith.constant 0 : index
    %c0_71 = arith.constant 0 : index
    %c0_72 = arith.constant 0 : index
    %82 = vector.load %arg1[%c0_69, %c0_70, %c0_71, %c0_72] : memref<1x8x8x1792xf32, #tpu.memory_space<vmem>>, vector<1x8x8x1792xf32>
    %83 = vector.shape_cast %82 : vector<1x8x8x1792xf32> to vector<64x1792xf32>
    %84 = arith.addf %81, %83 : vector<64x1792xf32>
    %cst_73 = arith.constant 0.000000e+00 : f32
    %85 = vector.broadcast %cst_73 : f32 to vector<64x1792xf32>
    %86 = arith.maximumf %84, %85 : vector<64x1792xf32>
    %87 = vector.shape_cast %86 : vector<64x1792xf32> to vector<1x8x8x1792xf32>
    %c0_74 = arith.constant 0 : index
    %c0_75 = arith.constant 0 : index
    %c0_76 = arith.constant 0 : index
    %c0_77 = arith.constant 0 : index
    %88 = vector.load %arg13[%c0_74, %c0_75, %c0_76, %c0_77] : memref<1x8x8x1792xf32, #tpu.memory_space<vmem>>, vector<1x8x8x1792xf32>
    tpu.vector_store %arg13[%c0_74, %c0_75, %c0_76, %c0_77], %87 {strides = array<i32>} : memref<1x8x8x1792xf32, #tpu.memory_space<vmem>>, vector<1x8x8x1792xf32>,
    return
  }
  func.func @transform_0(%arg0: i32) -> (i32, i32, i32, i32) {
    %c0_i32 = arith.constant 0 : i32
    %c0_i32_0 = arith.constant 0 : i32
    %c0_i32_1 = arith.constant 0 : i32
    %c0_i32_2 = arith.constant 0 : i32
    return %arg0, %c0_i32, %c0_i32_0, %c0_i32_1 : i32, i32, i32, i32
  }
  func.func @transform_1(%arg0: i32) -> (i32, i32) {
    %c0_i32 = arith.constant 0 : i32
    %c0_i32_0 = arith.constant 0 : i32
    %c0_i32_1 = arith.constant 0 : i32
    return %c0_i32, %c0_i32_0 : i32, i32
  }
  func.func @transform_2(%arg0: i32) -> (i32, i32) {
    %c0_i32 = arith.constant 0 : i32
    %c0_i32_0 = arith.constant 0 : i32
    %c0_i32_1 = arith.constant 0 : i32
    return %c0_i32, %c0_i32_0 : i32, i32
  }
  func.func @transform_3(%arg0: i32) -> (i32, i32) {
    %c0_i32 = arith.constant 0 : i32
    %c0_i32_0 = arith.constant 0 : i32
    %c0_i32_1 = arith.constant 0 : i32
    return %c0_i32, %c0_i32_0 : i32, i32
  }
  func.func @transform_4(%arg0: i32) -> (i32, i32) {
    %c0_i32 = arith.constant 0 : i32
    %c0_i32_0 = arith.constant 0 : i32
    %c0_i32_1 = arith.constant 0 : i32
    return %c0_i32, %c0_i32_0 : i32, i32
  }
  func.func @transform_5(%arg0: i32) -> (i32, i32, i32) {
    %c0_i32 = arith.constant 0 : i32
    %c0_i32_0 = arith.constant 0 : i32
    %c0_i32_1 = arith.constant 0 : i32
    %c0_i32_2 = arith.constant 0 : i32
    return %c0_i32, %c0_i32_0, %c0_i32_1 : i32, i32, i32
  }
  func.func @transform_6(%arg0: i32) -> (i32, i32) {
    %c0_i32 = arith.constant 0 : i32
    %c0_i32_0 = arith.constant 0 : i32
    %c0_i32_1 = arith.constant 0 : i32
    return %c0_i32, %c0_i32_0 : i32, i32
  }
  func.func @transform_7(%arg0: i32) -> (i32, i32, i32) {
    %c0_i32 = arith.constant 0 : i32
    %c0_i32_0 = arith.constant 0 : i32
    %c0_i32_1 = arith.constant 0 : i32
    %c0_i32_2 = arith.constant 0 : i32
    return %c0_i32, %c0_i32_0, %c0_i32_1 : i32, i32, i32
  }
  func.func @transform_8(%arg0: i32) -> (i32, i32) {
    %c0_i32 = arith.constant 0 : i32
    %c0_i32_0 = arith.constant 0 : i32
    %c0_i32_1 = arith.constant 0 : i32
    return %c0_i32, %c0_i32_0 : i32, i32
  }
  func.func @transform_9(%arg0: i32) -> (i32, i32) {
    %c0_i32 = arith.constant 0 : i32
    %c0_i32_0 = arith.constant 0 : i32
    %c0_i32_1 = arith.constant 0 : i32
    return %c0_i32, %c0_i32_0 : i32, i32
  }
  func.func @transform_10(%arg0: i32) -> (i32, i32) {
    %c0_i32 = arith.constant 0 : i32
    %c0_i32_0 = arith.constant 0 : i32
    %c0_i32_1 = arith.constant 0 : i32
    return %c0_i32, %c0_i32_0 : i32, i32
  }
  func.func @transform_11(%arg0: i32) -> (i32, i32) {
    %c0_i32 = arith.constant 0 : i32
    %c0_i32_0 = arith.constant 0 : i32
    %c0_i32_1 = arith.constant 0 : i32
    return %c0_i32, %c0_i32_0 : i32, i32
  }
  func.func @transform_12(%arg0: i32) -> (i32, i32, i32, i32) {
    %c0_i32 = arith.constant 0 : i32
    %c0_i32_0 = arith.constant 0 : i32
    %c0_i32_1 = arith.constant 0 : i32
    %c0_i32_2 = arith.constant 0 : i32
    return %arg0, %c0_i32, %c0_i32_0, %c0_i32_1 : i32, i32, i32, i32
  }
}

</mosaic_0001>

<bundles_post_ra>
// kernel: block8_forward.1
= control target key start
LH: loop header
LB: loop body
LE: loop exit
PB: predicated region body
PF: predicated region fallthrough
CT: control target
= control target key end

     0   :  { %17 = vsyncpa [#allocation4], 0  ;;  %s17125_s0 = inlined_call_operand.vmem [shape: f32[2,8,8,1792], index: 0, kind: input, shape index: {}]   ;;  %s17126_s1 = inlined_call_operand.vmem [shape: bf16[1792,192], index: 1, kind: input, shape index: {}]   ;;  %s17127_s2 = inlined_call_operand.vmem [shape: f32[1,192], index: 2, kind: input, shape index: {}]   ;;  %s17128_s3 = inlined_call_operand.vmem [shape: bf16[1792,192], index: 3, kind: input, shape index: {}]   ;;  %s17129_s4 = inlined_call_operand.vmem [shape: f32[1,192], index: 4, kind: input, shape index: {}]   ;;  %s17130_s5 = inlined_call_operand.hbm [shape: bf16[3,192,192], index: 5, kind: input, shape index: {}]   ;;  %s17131_s6 = inlined_call_operand.vmem [shape: f32[1,192], index: 6, kind: input, shape index: {}]   ;;  %s17132_s7 = inlined_call_operand.hbm [shape: bf16[3,192,192], index: 7, kind: input, shape index: {}]   ;;  %s17133_s8 = inlined_call_operand.vmem [shape: f32[1,192], index: 8, kind: input, shape index: {}]   ;;  %s17134_s9 = inlined_call_operand.vmem [shape: bf16[192,1792], index: 9, kind: input, shape index: {}]   ;;  %s17135_s10 = inlined_call_operand.vmem [shape: bf16[192,1792], index: 10, kind: input, shape index: {}]   ;;  %s17136_s11 = inlined_call_operand.vmem [shape: f32[1,1792], index: 11, kind: input, shape index: {}]   ;;  %s17137_s12 = inlined_call_operand.hbm [shape: f32[2,8,8,1792], index: 12, kind: output, shape index: {}]  }
   0x1   :  { %18 = vsyncpa [#allocation7], 0 }
   0x2   :  { %19 = vsyncpa [#allocation5], 0 }
   0x3   :  { %21 = vsyncpa [#allocation5 + $0x1], 0  ;;  %s13601_s21 = smov 0   ;;  %s13603_s22 = smov 0  }
   0x4   :  { %s13605_s23 = smov 0   ;;  %s13607_s24 = smov 0  }
   0x5 LB: > { %17147 = sst [smem:[#allocation12_spill]] %s13513_s21  ;;  %s13622_s25 = sadd.s32 4294967295, %s13525_s24   ;;  %s13525_s24 = sphi %s13607_s24, %s17167_s24   ;;  %s13521_s23 = sphi %s13605_s23, %s17169_s23   ;;  %s13517_s22 = sphi %s13603_s22, %s17171_s22   ;;  %s13513_s21 = sphi %s13601_s21, %s17170_s21  }
   0x6   : > { %17148 = sst [smem:[#allocation13_spill]] %s13521_s23  ;;  %s10403_s26 = sadd.s32 4294967294, %s13525_s24  }
   0x7   : > { %17149 = sst [smem:[#allocation14_spill]] %s13525_s24  ;;  %s13626_s27 = sadd.s32 1, %s13525_s24  }
   0x8   : > { %17150 = sst [smem:[#allocation15_spill]] %s13626_s27  ;;  %s291_s28 = sadd.s32 1, %s13521_s23 }
   0x9   : > { %s288_s29 = ssub.s32 %s13525_s24, %s13626_s27  ;;  %p301_p0 = scmp.ne.s32.totalorder %s13521_s23, %s13517_s22 }
   0xa   : > { %p289_p1 = scmp.eq.s32.totalorder %s288_s29, 0  ;;  %p302_p2 = scmp.eq.s32.totalorder %s13622_s25, 1 }
   0xb   : > { %p307_p3 = scmp.ne.s32.totalorder %s13517_s22, %s13513_s21  ;;  %p308_p4 = scmp.eq.s32.totalorder %s10403_s26, 1 }
   0xc   : > { %s13637_s30 = scalar_select %p289_p1, %s13521_s23, %s291_s28  }
   0xd   : > { %p13639_p5 = por %p302_p2, %p301_p0  ;;  %p13643_p6 = por %p308_p4, %p307_p3 }
   0xe   : > { %17151 = sst [smem:[#allocation16_spill]] %s13637_s30  ;;  %p10404_p7 = scmp.ge.s32.totalorder %s13525_s24, 1 }
   0xf   : > { %s17152_s13 = scalar_select %p13639_p5, 1, 0 }
  0x10   : > { %s17153_s14 = scalar_select %p13643_p6, 1, 0 }
  0x11   : > { %p315_p8 = scmp.lt.s32.totalorder %s13525_s24, 3  ;;  %p17141_p9 = scmp.eq.s32.totalorder %s13622_s25, 0 }
  0x12   : > { %17154 = sst [smem:[#allocation17_spill]] %s17153_s14  ;;  %s13527_s16 = smov [#allocation3]  }
  0x13   : > { %p13650_p10 = pnand %p10404_p7, %p315_p8  ;;  %s339_s17 = sshll.u32 %s13527_s16, 4  ;;  %s340_s17 = int_to_ptr.vmem [resolvable:$true] %s339_s17 }
  0x14   : > { %s13528_s19 = smov [#allocation6]   ;;  %s13399_s29 = scalar_lea.hbm %s17130_s5, 9216 }
  0x15   : > { %s17155_s15 = scalar_select %p13650_p10, 1, 0 }
  0x16   : > { %p11951_p11 = pneg %p13650_p10  ;;  %s355_s20 = sshll.u32 %s13528_s19, 4  ;;  %s13662_s20 = int_to_ptr.vmem [resolvable:$true] %s355_s20 }
  0x17   : > { %p13400_p13 = scmp.ne.s32.totalorder %s17130_s5, %s13399_s29  ;;  %p13406_p3 = scmp.lt.u32.totalorder %s13399_s29, %s17130_s5 }
  0x18   : > { %p13658_p12 = pnand %p17141_p9, %p11951_p11 }
  0x1a   : > { %p13401_p0 = pneg %p13658_p12 }
  0x1c   : > { %p13402_p1 = pnand %p13401_p0, %p13400_p13 }
  0x1e   : > { %p13403_p2 = pneg %p13402_p1 }
  0x20   : > { %p13408_p4 = pnand %p13406_p3, %p13403_p2 }
  0x22   : > { %13411 = shalt.err (!%p13408_p4)
}
  0x23   : > { %s13412_s19 = scalar_lea.vmem %s340_s17, 9216  ;;  %p13420_p9 = scmp.lt.s32.totalorder %s340_s17, %s340_s17 }
  0x24   : > { %p13413_p7 = scmp.ne.s32.totalorder %s340_s17, %s13412_s19  ;;  %p13421_p6 = scmp.lt.s32.totalorder %s13412_s19, %s13412_s19 }
  0x26   : > { %p13415_p8 = pnand %p13413_p7, %p13401_p0  ;;  %p13422_p5 = por %p13421_p6, %p13420_p9 }
  0x28   : > { %p13416_p11 = pneg %p13415_p8 }
  0x2a   : > { %p13423_p10 = pnand %p13422_p5, %p13416_p11 }
  0x2c   : > { %13426 = shalt.err (!%p13423_p10)
}
  0x2d   : > { %s13529_s30 = smov 128   ;;  %s13530_s26 = smov 8  }
  0x2e   : > { %11954 = dma.hbm_to_vmem [thread:$0]  (!%p13658_p12), %s17130_s5, 9216, %s340_s17, [#allocation4], %s13529_s30, %s13529_s30, %s13530_s26  }
  0x2f   : > { %s13427_s16 = scalar_lea.hbm %s17132_s7, 9216 }
  0x30   : > { %p13428_p13 = scmp.ne.s32.totalorder %s17132_s7, %s13427_s16  ;;  %p13434_p9 = scmp.lt.u32.totalorder %s13427_s16, %s17132_s7 }
  0x32   : > { %p13430_p5 = pnand %p13428_p13, %p13401_p0 }
  0x34   : > { %p13431_p6 = pneg %p13430_p5 }
  0x36   : > { %p13436_p10 = pnand %p13434_p9, %p13431_p6 }
  0x38   : > { %13439 = shalt.err (!%p13436_p10)
}
  0x39   : > { %s13440_s17 = scalar_lea.vmem %s13662_s20, 9216  ;;  %p13448_p4 = scmp.lt.s32.totalorder %s13662_s20, %s13662_s20 }
  0x3a   : > { %p13441_p1 = scmp.ne.s32.totalorder %s13662_s20, %s13440_s17  ;;  %p13449_p7 = scmp.lt.s32.totalorder %s13440_s17, %s13440_s17 }
  0x3c   : > { %p13443_p2 = pnand %p13441_p1, %p13401_p0  ;;  %p13450_p8 = por %p13449_p7, %p13448_p4 }
  0x3e   : > { %p13444_p3 = pneg %p13443_p2 }
  0x40   : > { %p13451_p11 = pnand %p13450_p8, %p13444_p3 }
  0x42   : > { %13454 = shalt.err (!%p13451_p11)
}
  0x43   : > { %11957 = dma.hbm_to_vmem [thread:$0]  (!%p13658_p12), %s17132_s7, 9216, %s13662_s20, [#allocation7], %s13529_s30, %s13529_s30, %s13530_s26  }
  0x44   : > { %p17157_p13 = scmp.ne.s32.totalorder %s17155_s15, 0 }
  0x45   : > { %p17158_p5 = scmp.eq.s32.totalorder (!%p17157_p13), %s13622_s25, 0 }
  0x46   : > { %391 = sbr.rel (%p17157_p13) target bundleno = 1955 (0x7a3), region = 68 }
  0x4d   : > { %13500 = dma.done.wait (%p17158_p5), [#allocation4], 9216   ;;  %p17159_p0 = pmov %p17158_p5 }
  0x4f   : > { %13502 = vsyncadd (%p17159_p0), [#allocation4], 4294958080  ;;  %p17160_p6 = pmov %p17159_p0 }
  0x50   : > { %p17161_p9 = pmov %p17159_p0 }
  0x51   : > { %13504 = dma.done.wait (%p17160_p6), [#allocation7], 9216  }
  0x52   : > { %13506 = vsyncadd (%p17161_p9), [#allocation7], 4294958080  ;;  %v12007_v0 = vld [vmem:[%s17126_s1 + $0x4] ss:$8 sps:$4 sm:$0xff]   ;;  %v12011_v2 = vld [vmem:[%s17126_s1] ss:$8 sps:$4 sm:$0xff]  }
  0x53   : > { %v12009_v1 = vld [vmem:[%s17128_s3 + $0x4] ss:$8 sps:$4 sm:$0xff]   ;;  %2359 = vmatprep.subr.bf16.mxu0 %v12007_v0  ;;  %v12012_v3 = vld [vmem:[%s17128_s3] ss:$8 sps:$4 sm:$0xff]   ;;  %v12013_v4 = vld [vmem:[%s17126_s1 + $0x14] ss:$8 sps:$4 sm:$0xff]  }
  0x54   : > { %4242 = vmatprep.subr.bf16.mxu1 %v12009_v1  ;;  %2360 = vmatpush1.bf16.msra.mxu0 %v12011_v2  ;;  %v12015_v5 = vld [vmem:[%s17128_s3 + $0x14] ss:$8 sps:$4 sm:$0xff]   ;;  %v12017_v6 = vld [vmem:[%s17126_s1 + $0x10] ss:$8 sps:$4 sm:$0xff]   ;;  %v12019_v8 = vld [vmem:[%s17126_s1 + $0x24] ss:$8 sps:$4 sm:$0xff]  }
  0x55   : > { %4243 = vmatpush1.bf16.msra.mxu1 %v12012_v3  ;;  %2361 = vmatprep.subr.bf16.mxu0 %v12013_v4  ;;  %v12018_v7 = vld [vmem:[%s17128_s3 + $0x10] ss:$8 sps:$4 sm:$0xff]   ;;  %v12021_v9 = vld [vmem:[%s17128_s3 + $0x24] ss:$8 sps:$4 sm:$0xff]   ;;  %v12023_v10 = vld [vmem:[%s17126_s1 + $0x20] ss:$8 sps:$4 sm:$0xff]  }
  0x56   : > { %4244 = vmatprep.subr.bf16.mxu1 %v12015_v5  ;;  %v12024_v11 = vld [vmem:[%s17128_s3 + $0x20] ss:$8 sps:$4 sm:$0xff]   ;;  %v12025_v12 = vld [vmem:[%s17126_s1 + $0x34] ss:$8 sps:$4 sm:$0xff]   ;;  %v12029_v14 = vld [vmem:[%s17126_s1 + $0x30] ss:$8 sps:$4 sm:$0xff]  }
  0x57   : > { %v12027_v13 = vld [vmem:[%s17128_s3 + $0x34] ss:$8 sps:$4 sm:$0xff]   ;;  %v12030_v15 = vld [vmem:[%s17128_s3 + $0x30] ss:$8 sps:$4 sm:$0xff]   ;;  %v12031_v16 = vld [vmem:[%s17126_s1 + $0x44] ss:$8 sps:$4 sm:$0xff]  }
  0x58   : > { %2362 = vmatpush1.bf16.msra.mxu0 %v12017_v6  ;;  %v12033_v17 = vld [vmem:[%s17128_s3 + $0x44] ss:$8 sps:$4 sm:$0xff]   ;;  %v12035_v18 = vld [vmem:[%s17126_s1 + $0x40] ss:$8 sps:$4 sm:$0xff]   ;;  %v12037_v20 = vld [vmem:[%s17126_s1 + $0x54] ss:$8 sps:$4 sm:$0xff]  }
  0x59   : > { %4245 = vmatpush1.bf16.msra.mxu1 %v12018_v7  ;;  %2363 = vmatprep.subr.bf16.mxu0 %v12019_v8  ;;  %v12036_v19 = vld [vmem:[%s17128_s3 + $0x40] ss:$8 sps:$4 sm:$0xff]   ;;  %v12039_v21 = vld [vmem:[%s17128_s3 + $0x54] ss:$8 sps:$4 sm:$0xff]   ;;  %v12041_v22 = vld [vmem:[%s17126_s1 + $0x50] ss:$8 sps:$4 sm:$0xff]  }
  0x5a   : > { %4246 = vmatprep.subr.bf16.mxu1 %v12021_v9  ;;  %v12042_v23 = vld [vmem:[%s17128_s3 + $0x50] ss:$8 sps:$4 sm:$0xff]   ;;  %v12043_v24 = vld [vmem:[%s17126_s1 + $0x64] ss:$8 sps:$4 sm:$0xff]   ;;  %v12047_v26 = vld [vmem:[%s17126_s1 + $0x60] ss:$8 sps:$4 sm:$0xff]  }
  0x5b   : > { %v12045_v25 = vld [vmem:[%s17128_s3 + $0x64] ss:$8 sps:$4 sm:$0xff]   ;;  %v12048_v27 = vld [vmem:[%s17128_s3 + $0x60] ss:$8 sps:$4 sm:$0xff]   ;;  %v12049_v28 = vld [vmem:[%s17126_s1 + $0x74] ss:$8 sps:$4 sm:$0xff]  }
  0x5c   : > { %2364 = vmatpush1.bf16.msra.mxu0 %v12023_v10  ;;  %v12051_v29 = vld [vmem:[%s17128_s3 + $0x74] ss:$8 sps:$4 sm:$0xff]   ;;  %v12053_v30 = vld [vmem:[%s17126_s1 + $0x70] ss:$8 sps:$4 sm:$0xff]   ;;  %p437_p12 = scmp.lt.s32.totalorder %s13622_s25, 1  ;;  %vm4770_vm0 = vcmask 523264  }
  0x5d   : > { %4247 = vmatpush1.bf16.msra.mxu1 %v12024_v11  ;;  %2365 = vmatprep.subr.bf16.mxu0 %v12025_v12  ;;  %v12054_v31 = vld [vmem:[%s17128_s3 + $0x70] ss:$8 sps:$4 sm:$0xff]   ;;  %v12055_v32 = vld [vmem:[%s17126_s1 + $0x84] ss:$8 sps:$4 sm:$0xff]   ;;  %v12059_v34 = vld [vmem:[%s17126_s1 + $0x80] ss:$8 sps:$4 sm:$0xff]  }
  0x5e   : > { %4248 = vmatprep.subr.bf16.mxu1 %v12027_v13  ;;  %v12057_v33 = vld [vmem:[%s17128_s3 + $0x84] ss:$8 sps:$4 sm:$0xff]   ;;  %v12060_v35 = vld [vmem:[%s17128_s3 + $0x80] ss:$8 sps:$4 sm:$0xff]   ;;  %s438_s17 = scalar_select %p437_p12, %s13622_s25, 1  ;;  %vm4773_vm1 = vcmask 517120  }
  0x5f   : > { %v12061_v36 = vld [vmem:[%s17126_s1 + $0x94] ss:$8 sps:$4 sm:$0xff]   ;;  %v12065_v38 = vld [vmem:[%s17126_s1 + $0x90] ss:$8 sps:$4 sm:$0xff]   ;;  %v12067_v40 = vld [vmem:[%s17126_s1 + $0xa4] ss:$8 sps:$4 sm:$0xff]  }
  0x60   : > { %2366 = vmatpush1.bf16.msra.mxu0 %v12029_v14  ;;  %v12063_v37 = vld [vmem:[%s17128_s3 + $0x94] ss:$8 sps:$4 sm:$0xff]   ;;  %s11939_s15 = smul.u32 896, %s438_s17  ;;  %v12066_v39 = vld [vmem:[%s17128_s3 + $0x90] ss:$8 sps:$4 sm:$0xff]   ;;  %vm4852_vm2 = vcmask 523265  }
  0x61   : > { %4249 = vmatpush1.bf16.msra.mxu1 %v12030_v15  ;;  %2367 = vmatprep.subr.bf16.mxu0 %v12031_v16  ;;  %v12069_v41 = vld [vmem:[%s17128_s3 + $0xa4] ss:$8 sps:$4 sm:$0xff]   ;;  %v12071_v42 = vld [vmem:[%s17126_s1 + $0xa0] ss:$8 sps:$4 sm:$0xff]   ;;  %v12073_v44 = vld [vmem:[%s17126_s1 + $0xb4] ss:$8 sps:$4 sm:$0xff]  }
  0x62   : > { %4250 = vmatprep.subr.bf16.mxu1 %v12033_v17  ;;  %v12072_v43 = vld [vmem:[%s17128_s3 + $0xa0] ss:$8 sps:$4 sm:$0xff]   ;;  %s13858_s20 = scalar_lea.vmem %s17125_s0, %s11939_s15  ;;  %v12075_v45 = vld [vmem:[%s17128_s3 + $0xb4] ss:$8 sps:$4 sm:$0xff]   ;;  %v12077_v48 = vld [vmem:[%s17126_s1 + $0xb0] ss:$8 sps:$4 sm:$0xff]  }
  0x63   : > { %v444_v46 = vld [vmem:[%s13858_s20 + $0x8] sm:$0xff]  ;;  %v458_v47 = vld [vmem:[%s13858_s20 + $0x78] sm:$0xff]  ;;  %v443_v4 = vld [vmem:[%s13858_s20] sm:$0xff]  ;;  %vm4855_vm3 = vcmask 516096   ;;  %vm4981_vm4 = vcmask 1045504   ;;  %s434_s29 = sand.u32 1, %s13517_s22  }
  0x64   : > { %2368 = vmatpush1.bf16.msra.mxu0 %v12035_v18  ;;  %v12078_v49 = vld [vmem:[%s17128_s3 + $0xb0] ss:$8 sps:$4 sm:$0xff]   ;;  %v11483_v50 = vpack.c.bf16 %v458_v47, %v444_v46  ;;  %v12079_v51 = vld [vmem:[%s17126_s1 + $0xc4] ss:$8 sps:$4 sm:$0xff]   ;;  %v12083_v53 = vld [vmem:[%s17126_s1 + $0xc0] ss:$8 sps:$4 sm:$0xff]  }
  0x65   : > { %4251 = vmatpush1.bf16.msra.mxu1 %v12036_v19  ;;  %2369 = vmatprep.subr.bf16.mxu0 %v12037_v20  ;;  %v12081_v52 = vld [vmem:[%s17128_s3 + $0xc4] ss:$8 sps:$4 sm:$0xff]   ;;  %v12084_v54 = vld [vmem:[%s17128_s3 + $0xc0] ss:$8 sps:$4 sm:$0xff]   ;;  %v12085_v55 = vld [vmem:[%s17126_s1 + $0xd4] ss:$8 sps:$4 sm:$0xff]  }
  0x66   : > { %4252 = vmatprep.subr.bf16.mxu1 %v12039_v21  ;;  %2391 = vmatprep.mubr.bf16.mxu0 %v11483_v50  ;;  %v12087_v56 = vld [vmem:[%s17128_s3 + $0xd4] ss:$8 sps:$4 sm:$0xff]   ;;  %v12089_v57 = vld [vmem:[%s17126_s1 + $0xd0] ss:$8 sps:$4 sm:$0xff]   ;;  %v12091_v59 = vld [vmem:[%s17126_s1 + $0xe4] ss:$8 sps:$4 sm:$0xff]  }
  0x67   : > { %4274 = vmatprep.mubr.bf16.mxu1 %v11483_v50  ;;  %v12090_v58 = vld [vmem:[%s17128_s3 + $0xd0] ss:$8 sps:$4 sm:$0xff]   ;;  %v12093_v60 = vld [vmem:[%s17128_s3 + $0xe4] ss:$8 sps:$4 sm:$0xff]   ;;  %v12095_v61 = vld [vmem:[%s17126_s1 + $0xe0] ss:$8 sps:$4 sm:$0xff]  }
  0x68   : > { %2370 = vmatpush1.bf16.msra.mxu0 %v12041_v22  ;;  %v12096_v62 = vld [vmem:[%s17128_s3 + $0xe0] ss:$8 sps:$4 sm:$0xff]   ;;  %v12097_v63 = vld [vmem:[%s17126_s1 + $0xf4] ss:$8 sps:$4 sm:$0xff]   ;;  %v12101_v1 = vld [vmem:[%s17126_s1 + $0xf0] ss:$8 sps:$4 sm:$0xff]  }
  0x69   : > { %4253 = vmatpush1.bf16.msra.mxu1 %v12042_v23  ;;  %2371 = vmatprep.subr.bf16.mxu0 %v12043_v24  ;;  %v12099_v0 = vld [vmem:[%s17128_s3 + $0xf4] ss:$8 sps:$4 sm:$0xff]   ;;  %v12102_v2 = vld [vmem:[%s17128_s3 + $0xf0] ss:$8 sps:$4 sm:$0xff]   ;;  %v12105_v3 = vld [vmem:[%s17126_s1 + $0x104] ss:$8 sps:$4 sm:$0xff]  }
  0x6a   : > { %4254 = vmatprep.subr.bf16.mxu1 %v12045_v25  ;;  %v457_v5 = vld [vmem:[%s13858_s20 + $0x70] sm:$0xff]  ;;  %v12108_v6 = vld [vmem:[%s17128_s3 + $0x104] ss:$8 sps:$4 sm:$0xff]   ;;  %v12103_v7 = vld [vmem:[%s17126_s1 + $0x100] ss:$8 sps:$4 sm:$0xff]   ;;  %s11938_s16 = smul.u32 896, %s434_s29 }
  0x6b   : > { %v12106_v8 = vld [vmem:[%s17128_s3 + $0x100] ss:$8 sps:$4 sm:$0xff]   ;;  %v11482_v9 = vpack.c.bf16 %v457_v5, %v443_v4  ;;  %v12111_v10 = vld [vmem:[%s17126_s1 + $0x114] ss:$8 sps:$4 sm:$0xff]   ;;  %v12109_v12 = vld [vmem:[%s17126_s1 + $0x110] ss:$8 sps:$4 sm:$0xff]  }
  0x6c   : > { %2372 = vmatpush1.bf16.msra.mxu0 %v12047_v26  ;;  %v12114_v11 = vld [vmem:[%s17128_s3 + $0x114] ss:$8 sps:$4 sm:$0xff]   ;;  %v12112_v13 = vld [vmem:[%s17128_s3 + $0x110] ss:$8 sps:$4 sm:$0xff]   ;;  %v12117_v14 = vld [vmem:[%s17126_s1 + $0x124] ss:$8 sps:$4 sm:$0xff]  }
  0x6d   : > { %4255 = vmatpush1.bf16.msra.mxu1 %v12048_v27  ;;  %2373 = vmatprep.subr.bf16.mxu0 %v12049_v28  ;;  %v12120_v15 = vld [vmem:[%s17128_s3 + $0x124] ss:$8 sps:$4 sm:$0xff]   ;;  %v486_v17 = vld [vmem:[%s13858_s20 + $0x158] sm:$0xff]  ;;  %v12115_v18 = vld [vmem:[%s17126_s1 + $0x120] ss:$8 sps:$4 sm:$0xff]   ;;  %s16681_s19 = scalar_lea.vmem [#allocation8], %s11938_s16 }
  0x6e   : > { %4256 = vmatprep.subr.bf16.mxu1 %v12051_v29  ;;  %v472_v16 = vld [vmem:[%s13858_s20 + $0xe8] sm:$0xff]  ;;  %v12123_v21 = vld [vmem:[%s17126_s1 + $0x134] ss:$8 sps:$4 sm:$0xff]   ;;  %v471_v23 = vld [vmem:[%s13858_s20 + $0xe0] sm:$0xff]  ;;  %s11940_s24 = smul.u32 14336, %s13622_s25  ;;  %s10319_s14 = sshll.u32 %s16681_s19, 4  ;;  %s17078_s14 = int_to_ptr.vmem [resolvable:$true] %s10319_s14 }
  0x6f   : > { %v12118_v19 = vld [vmem:[%s17128_s3 + $0x120] ss:$8 sps:$4 sm:$0xff]   ;;  %v11497_v20 = vpack.c.bf16 %v486_v17, %v472_v16  ;;  %v12126_v22 = vld [vmem:[%s17128_s3 + $0x134] ss:$8 sps:$4 sm:$0xff]   ;;  %v12121_v25 = vld [vmem:[%s17126_s1 + $0x130] ss:$8 sps:$4 sm:$0xff]  }
  0x70   : > { %2374 = vmatpush1.bf16.msra.mxu0 %v12053_v30  ;;  %v485_v24 = vld [vmem:[%s13858_s20 + $0x150] sm:$0xff]  ;;  %v12129_v28 = vld [vmem:[%s17126_s1 + $0x144] ss:$8 sps:$4 sm:$0xff]   ;;  %v12139_v47 = vld [vmem:[%s17126_s1 + $0x160] ss:$8 sps:$4 sm:$0xff]   ;;  %s17075_s26 = scalar_lea.hbm %s17137_s12, %s11940_s24  ;;  %s17084_s25 = scalar_lea.sflag [#allocation5], %s434_s29 }
  0x71   : > { %4257 = vmatpush1.bf16.msra.mxu1 %v12054_v31  ;;  %2375 = vmatprep.subr.bf16.mxu0 %v12055_v32  ;;  %v12124_v26 = vld [vmem:[%s17128_s3 + $0x130] ss:$8 sps:$4 sm:$0xff]   ;;  %v11496_v27 = vpack.c.bf16 %v485_v24, %v471_v23  ;;  %v12132_v29 = vld [vmem:[%s17128_s3 + $0x144] ss:$8 sps:$4 sm:$0xff]   ;;  %v12127_v32 = vld [vmem:[%s17126_s1 + $0x140] ss:$8 sps:$4 sm:$0xff]  }
  0x72   : > { %4258 = vmatprep.subr.bf16.mxu1 %v12057_v33  ;;  %v500_v30 = vld [vmem:[%s13858_s20 + $0x1c8] sm:$0xff]  ;;  %v514_v31 = vld [vmem:[%s13858_s20 + $0x238] sm:$0xff]  ;;  %v541_v50 = vld [vmem:[%s13858_s20 + $0x310] sm:$0xff]  ;;  %p17162_p1 = scmp.ne.s32.totalorder %s17152_s13, 0  ;;  %s13533_s23 = smov [#allocation8]  }
  0x73   : > { %v11511_v33 = vpack.c.bf16 %v514_v31, %v500_v30  ;;  %v12168_v4 = vld [vmem:[%s17128_s3 + $0x1a4] ss:$8 sps:$4 sm:$0xff]   ;;  %v12163_v5 = vld [vmem:[%s17126_s1 + $0x1a0] ss:$8 sps:$4 sm:$0xff]   ;;  %v12186_v16 = vld [vmem:[%s17128_s3 + $0x1d4] ss:$8 sps:$4 sm:$0xff]  }
  0x74   : > { %2376 = vmatpush1.bf16.msra.mxu0 %v12059_v34  ;;  %v12130_v34 = vld [vmem:[%s17128_s3 + $0x140] ss:$8 sps:$4 sm:$0xff]   ;;  %v12181_v17 = vld [vmem:[%s17126_s1 + $0x1d0] ss:$8 sps:$4 sm:$0xff]   ;;  %v12195_v23 = vld [vmem:[%s17126_s1 + $0x1f4] ss:$8 sps:$4 sm:$0xff]  }
  0x75   : > { %4259 = vmatpush1.bf16.msra.mxu1 %v12060_v35  ;;  %2377 = vmatprep.subr.bf16.mxu0 %v12061_v36  ;;  %v12135_v35 = vld [vmem:[%s17126_s1 + $0x154] ss:$8 sps:$4 sm:$0xff]   ;;  %v12204_v30 = vld [vmem:[%s17128_s3 + $0x204] ss:$8 sps:$4 sm:$0xff]   ;;  %s13459_s27 = sshll.u32 %s13533_s23, 4  ;;  %s13460_s27 = int_to_ptr.vmem [resolvable:$false] %s13459_s27 }
  0x76   : > { %4260 = vmatprep.subr.bf16.mxu1 %v12063_v37  ;;  %v12138_v36 = vld [vmem:[%s17128_s3 + $0x154] ss:$8 sps:$4 sm:$0xff]   ;;  %v499_v37 = vld [vmem:[%s13858_s20 + $0x1c0] sm:$0xff]  ;;  %s13461_s15 = scalar_lea.vmem %s13460_s27, 28672  ;;  %p13462_p4 = scmp.lt.s32.totalorder %s17078_s14, %s13460_s27 }
  0x77   : > { %v12198_v24 = vld [vmem:[%s17128_s3 + $0x1f4] ss:$8 sps:$4 sm:$0xff]  }
  0x78   : > { %2378 = vmatpush1.bf16.msra.mxu0 %v12065_v38  ;;  %v513_v38 = vld [vmem:[%s13858_s20 + $0x230] sm:$0xff]  ;;  %v474_v31 = vld [vmem:[%s13858_s20 + $0xf8] sm:$0xff] }
  0x79   : > { %4261 = vmatpush1.bf16.msra.mxu1 %v12066_v39  ;;  %2379 = vmatprep.subr.bf16.mxu0 %v12067_v40  ;;  %v11510_v39 = vpack.c.bf16 %v513_v38, %v499_v37  ;;  %v12133_v40 = vld [vmem:[%s17126_s1 + $0x150] ss:$8 sps:$4 sm:$0xff]   ;;  %v12210_v37 = vld [vmem:[%s17128_s3 + $0x214] ss:$8 sps:$4 sm:$0xff]  }
  0x7a   : > { %4262 = vmatprep.subr.bf16.mxu1 %v12069_v41  ;;  %v12136_v41 = vld [vmem:[%s17128_s3 + $0x150] ss:$8 sps:$4 sm:$0xff]  }
  0x7c   : > { %2380 = vmatpush1.bf16.msra.mxu0 %v12071_v42  ;;  %v528_v42 = vld [vmem:[%s13858_s20 + $0x2a8] sm:$0xff] }
  0x7d   : > { %4263 = vmatpush1.bf16.msra.mxu1 %v12072_v43  ;;  %2381 = vmatprep.subr.bf16.mxu0 %v12073_v44  ;;  %v542_v43 = vld [vmem:[%s13858_s20 + $0x318] sm:$0xff]  ;;  %v12141_v44 = vld [vmem:[%s17126_s1 + $0x164] ss:$8 sps:$4 sm:$0xff]  }
  0x7e   : > { %4264 = vmatprep.subr.bf16.mxu1 %v12075_v45  ;;  %v12144_v45 = vld [vmem:[%s17128_s3 + $0x164] ss:$8 sps:$4 sm:$0xff]   ;;  %v11525_v46 = vpack.c.bf16 %v542_v43, %v528_v42 }
  0x7f   : > { %v487_v42 = vld [vmem:[%s13858_s20 + $0x160] sm:$0xff] }
  0x80   : > { %2382 = vmatpush1.bf16.msra.mxu0 %v12077_v48  ;;  %v12142_v48 = vld [vmem:[%s17128_s3 + $0x160] ss:$8 sps:$4 sm:$0xff]   ;;  %v12213_v43 = vld [vmem:[%s17126_s1 + $0x224] ss:$8 sps:$4 sm:$0xff]  }
  0x81   : > { %4265 = vmatpush1.bf16.msra.mxu1 %v12078_v49  ;;  %2383 = vmatprep.subr.bf16.mxu0 %v12079_v51  ;;  %v527_v49 = vld [vmem:[%s13858_s20 + $0x2a0] sm:$0xff]  ;;  %v12147_v51 = vld [vmem:[%s17126_s1 + $0x174] ss:$8 sps:$4 sm:$0xff]  }
  0x82   : > { %4266 = vmatprep.subr.bf16.mxu1 %v12081_v52  ;;  %v12150_v52 = vld [vmem:[%s17128_s3 + $0x174] ss:$8 sps:$4 sm:$0xff]  }
  0x84   : > { %2384 = vmatpush1.bf16.msra.mxu0 %v12083_v53  ;;  %v11524_v53 = vpack.c.bf16 %v541_v50, %v527_v49  ;;  %v516_v49 = vld [vmem:[%s13858_s20 + $0x248] sm:$0xff]  ;;  %v12219_v50 = vld [vmem:[%s17126_s1 + $0x234] ss:$8 sps:$4 sm:$0xff]  }
  0x85   : > { %4267 = vmatpush1.bf16.msra.mxu1 %v12084_v54  ;;  %2385 = vmatprep.subr.bf16.mxu0 %v12085_v55  ;;  %v446_v54 = vld [vmem:[%s13858_s20 + $0x18] sm:$0xff]  ;;  %v460_v55 = vld [vmem:[%s13858_s20 + $0x88] sm:$0xff] }
  0x86   : > { %4268 = vmatprep.subr.bf16.mxu1 %v12087_v56  ;;  %v12145_v56 = vld [vmem:[%s17126_s1 + $0x170] ss:$8 sps:$4 sm:$0xff]  }
  0x88   : > { %2386 = vmatpush1.bf16.msra.mxu0 %v12089_v57  ;;  %v12148_v57 = vld [vmem:[%s17128_s3 + $0x170] ss:$8 sps:$4 sm:$0xff]  }
  0x89   : > { %4269 = vmatpush1.bf16.msra.mxu1 %v12090_v58  ;;  %2387 = vmatprep.subr.bf16.mxu0 %v12091_v59  ;;  %v11485_v58 = vpack.c.bf16 %v460_v55, %v446_v54  ;;  %v12153_v59 = vld [vmem:[%s17126_s1 + $0x184] ss:$8 sps:$4 sm:$0xff]   ;;  %v12220_v54 = vld [vmem:[%s17128_s3 + $0x230] ss:$8 sps:$4 sm:$0xff]  }
  0x8a   : > { %4270 = vmatprep.subr.bf16.mxu1 %v12093_v60  ;;  %v12156_v60 = vld [vmem:[%s17128_s3 + $0x184] ss:$8 sps:$4 sm:$0xff]   ;;  %v501_v55 = vld [vmem:[%s13858_s20 + $0x1d0] sm:$0xff] }
  0x8c   : > { %2388 = vmatpush1.bf16.msra.mxu0 %v12095_v61  ;;  %v12151_v61 = vld [vmem:[%s17126_s1 + $0x180] ss:$8 sps:$4 sm:$0xff]  }
  0x8d   : > { %4271 = vmatpush1.bf16.msra.mxu1 %v12096_v62  ;;  %2389 = vmatprep.subr.bf16.mxu0 %v12097_v63  ;;  %v12154_v62 = vld [vmem:[%s17128_s3 + $0x180] ss:$8 sps:$4 sm:$0xff]   ;;  %v12159_v63 = vld [vmem:[%s17126_s1 + $0x194] ss:$8 sps:$4 sm:$0xff]  }
  0x8e   : > { %4272 = vmatprep.subr.bf16.mxu1 %v12099_v0  ;;  %v12162_v0 = vld [vmem:[%s17128_s3 + $0x194] ss:$8 sps:$4 sm:$0xff]  }
  0x90   : > { %2390 = vmatpush1.bf16.msra.mxu0 %v12101_v1  ;;  %v12157_v1 = vld [vmem:[%s17126_s1 + $0x190] ss:$8 sps:$4 sm:$0xff]  }
  0x91   : > { %4273 = vmatpush1.bf16.msra.mxu1 %v12102_v2  ;;  %2432 = vmatprep.subr.bf16.mxu0 %v12105_v3  ;;  %v12160_v2 = vld [vmem:[%s17128_s3 + $0x190] ss:$8 sps:$4 sm:$0xff]   ;;  %v12165_v3 = vld [vmem:[%s17126_s1 + $0x1a4] ss:$8 sps:$4 sm:$0xff]  }
  0x92   : > { %4315 = vmatprep.subr.bf16.mxu1 %v12108_v6  ;;  %v12166_v6 = vld [vmem:[%s17128_s3 + $0x1a0] ss:$8 sps:$4 sm:$0xff]  }
  0x93   : > { %2392 = vmatmul.mubr.bf16.vlgmr.msra.gmra.mrb[0].mxu0 %v11482_v9 }
  0x94   : > { %4275 = vmatmul.mubr.bf16.vlgmr.msra.gmra.mrb[0].mxu1 %v11482_v9  ;;  %2433 = vmatpush1.bf16.msra.mxu0 %v12103_v7  ;;  %v12171_v7 = vld [vmem:[%s17126_s1 + $0x1b4] ss:$8 sps:$4 sm:$0xff]   ;;  %v12169_v9 = vld [vmem:[%s17126_s1 + $0x1b0] ss:$8 sps:$4 sm:$0xff]  }
  0x95   : > { %4316 = vmatpush1.bf16.msra.mxu1 %v12106_v8  ;;  %2434 = vmatprep.subr.bf16.mxu0 %v12111_v10  ;;  %v12174_v8 = vld [vmem:[%s17128_s3 + $0x1b4] ss:$8 sps:$4 sm:$0xff]   ;;  %v12172_v10 = vld [vmem:[%s17128_s3 + $0x1b0] ss:$8 sps:$4 sm:$0xff]  }
  0x96   : > { %4317 = vmatprep.subr.bf16.mxu1 %v12114_v11  ;;  %2401 = vmatprep.mubr.bf16.mxu0 %v11497_v20  ;;  %v12177_v11 = vld [vmem:[%s17126_s1 + $0x1c4] ss:$8 sps:$4 sm:$0xff]  }
  0x97   : > { %4284 = vmatprep.mubr.bf16.mxu1 %v11497_v20  ;;  %v12192_v20 = vld [vmem:[%s17128_s3 + $0x1e4] ss:$8 sps:$4 sm:$0xff]  }
  0x98   : > { %2435 = vmatpush1.bf16.msra.mxu0 %v12109_v12  ;;  %v12180_v12 = vld [vmem:[%s17128_s3 + $0x1c4] ss:$8 sps:$4 sm:$0xff]  }
  0x99   : > { %4318 = vmatpush1.bf16.msra.mxu1 %v12112_v13  ;;  %2436 = vmatprep.subr.bf16.mxu0 %v12117_v14  ;;  %v12175_v13 = vld [vmem:[%s17126_s1 + $0x1c0] ss:$8 sps:$4 sm:$0xff]  }
  0x9a   : > { %4319 = vmatprep.subr.bf16.mxu1 %v12120_v15  ;;  %v12178_v14 = vld [vmem:[%s17128_s3 + $0x1c0] ss:$8 sps:$4 sm:$0xff]   ;;  %v12183_v15 = vld [vmem:[%s17126_s1 + $0x1d4] ss:$8 sps:$4 sm:$0xff]  }
  0x9b   : > { %2402 = vmatmul.mubr.bf16.gmra.mrb[4].mxu0 %v11496_v27 }
  0x9c   : > { %2437 = vmatpush1.bf16.msra.mxu0 %v12115_v18  ;;  %4285 = vmatmul.mubr.bf16.gmra.mrb[4].mxu1 %v11496_v27  ;;  %v12184_v18 = vld [vmem:[%s17128_s3 + $0x1d0] ss:$8 sps:$4 sm:$0xff]  }
  0x9d   : > { %4320 = vmatpush1.bf16.msra.mxu1 %v12118_v19  ;;  %2438 = vmatprep.subr.bf16.mxu0 %v12123_v21  ;;  %v12189_v19 = vld [vmem:[%s17126_s1 + $0x1e4] ss:$8 sps:$4 sm:$0xff]   ;;  %v12187_v21 = vld [vmem:[%s17126_s1 + $0x1e0] ss:$8 sps:$4 sm:$0xff]   ;;  %v445_v27 = vld [vmem:[%s13858_s20 + $0x10] sm:$0xff] }
  0x9e   : > { %4321 = vmatprep.subr.bf16.mxu1 %v12126_v22  ;;  %2411 = vmatprep.mubr.bf16.mxu0 %v11511_v33  ;;  %v12190_v22 = vld [vmem:[%s17128_s3 + $0x1e0] ss:$8 sps:$4 sm:$0xff]  }
  0x9f   : > { %4294 = vmatprep.mubr.bf16.mxu1 %v11511_v33  ;;  %v488_v33 = vld [vmem:[%s13858_s20 + $0x168] sm:$0xff] }
  0xa0   : > { %2439 = vmatpush1.bf16.msra.mxu0 %v12121_v25  ;;  %v12193_v25 = vld [vmem:[%s17126_s1 + $0x1f0] ss:$8 sps:$4 sm:$0xff]   ;;  %v11499_v38 = vpack.c.bf16 %v488_v33, %v474_v31  ;;  %v12267_v31 = vld [vmem:[%s17126_s1 + $0x2b4] ss:$8 sps:$4 sm:$0xff]  }
  0xa1   : > { %4322 = vmatpush1.bf16.msra.mxu1 %v12124_v26  ;;  %2440 = vmatprep.subr.bf16.mxu0 %v12129_v28  ;;  %v12196_v26 = vld [vmem:[%s17128_s3 + $0x1f0] ss:$8 sps:$4 sm:$0xff]   ;;  %v459_v28 = vld [vmem:[%s13858_s20 + $0x80] sm:$0xff] }
  0xa2   : > { %4323 = vmatprep.subr.bf16.mxu1 %v12132_v29  ;;  %v12201_v29 = vld [vmem:[%s17126_s1 + $0x204] ss:$8 sps:$4 sm:$0xff]   ;;  %v12265_v33 = vld [vmem:[%s17126_s1 + $0x2b0] ss:$8 sps:$4 sm:$0xff]  }
  0xa3   : > { %2412 = vmatmul.mubr.bf16.gmra.mrb[8].mxu0 %v11510_v39 }
  0xa4   : > { %2441 = vmatpush1.bf16.msra.mxu0 %v12127_v32  ;;  %4295 = vmatmul.mubr.bf16.gmra.mrb[8].mxu1 %v11510_v39  ;;  %v11484_v32 = vpack.c.bf16 %v459_v28, %v445_v27  ;;  %v12205_v39 = vld [vmem:[%s17126_s1 + $0x210] ss:$8 sps:$4 sm:$0xff]   ;;  %v12261_v27 = vld [vmem:[%s17126_s1 + $0x2a4] ss:$8 sps:$4 sm:$0xff]  }
  0xa5   : > { %4324 = vmatpush1.bf16.msra.mxu1 %v12130_v34  ;;  %2442 = vmatprep.subr.bf16.mxu0 %v12135_v35  ;;  %v12199_v34 = vld [vmem:[%s17126_s1 + $0x200] ss:$8 sps:$4 sm:$0xff]   ;;  %v12264_v28 = vld [vmem:[%s17128_s3 + $0x2a4] ss:$8 sps:$4 sm:$0xff]  }
  0xa6   : > { %4325 = vmatprep.subr.bf16.mxu1 %v12138_v36  ;;  %2421 = vmatprep.mubr.bf16.mxu0 %v11525_v46  ;;  %v12202_v35 = vld [vmem:[%s17128_s3 + $0x200] ss:$8 sps:$4 sm:$0xff]   ;;  %v12207_v36 = vld [vmem:[%s17126_s1 + $0x214] ss:$8 sps:$4 sm:$0xff]  }
  0xa7   : > { %4304 = vmatprep.mubr.bf16.mxu1 %v11525_v46  ;;  %v12214_v46 = vld [vmem:[%s17128_s3 + $0x220] ss:$8 sps:$4 sm:$0xff]  }
  0xa8   : > { %2443 = vmatpush1.bf16.msra.mxu0 %v12133_v40  ;;  %v12208_v40 = vld [vmem:[%s17128_s3 + $0x210] ss:$8 sps:$4 sm:$0xff]  }
  0xa9   : > { %4326 = vmatpush1.bf16.msra.mxu1 %v12136_v41  ;;  %2444 = vmatprep.subr.bf16.mxu0 %v12141_v44  ;;  %v473_v41 = vld [vmem:[%s13858_s20 + $0xf0] sm:$0xff]  ;;  %v12216_v44 = vld [vmem:[%s17128_s3 + $0x224] ss:$8 sps:$4 sm:$0xff]  }
  0xaa   : > { %4327 = vmatprep.subr.bf16.mxu1 %v12144_v45  ;;  %v12211_v45 = vld [vmem:[%s17126_s1 + $0x220] ss:$8 sps:$4 sm:$0xff]  }
  0xab   : > { %2422 = vmatmul.mubr.bf16.gmra.mrb[12].mxu0 %v11524_v53 }
  0xac   : > { %2445 = vmatpush1.bf16.msra.mxu0 %v12139_v47  ;;  %4305 = vmatmul.mubr.bf16.gmra.mrb[12].mxu1 %v11524_v53  ;;  %v11498_v47 = vpack.c.bf16 %v487_v42, %v473_v41  ;;  %v12277_v41 = vld [vmem:[%s17126_s1 + $0x2d0] ss:$8 sps:$4 sm:$0xff]  }
  0xad   : > { %4328 = vmatpush1.bf16.msra.mxu1 %v12142_v48  ;;  %2446 = vmatprep.subr.bf16.mxu0 %v12147_v51  ;;  %v502_v48 = vld [vmem:[%s13858_s20 + $0x1d8] sm:$0xff] }
  0xae   : > { %4329 = vmatprep.subr.bf16.mxu1 %v12150_v52  ;;  %2464 = vmatprep.mubr.bf16.mxu0 %v11485_v58  ;;  %v12222_v51 = vld [vmem:[%s17128_s3 + $0x234] ss:$8 sps:$4 sm:$0xff]   ;;  %v12217_v52 = vld [vmem:[%s17126_s1 + $0x230] ss:$8 sps:$4 sm:$0xff]   ;;  %v11513_v53 = vpack.c.bf16 %v516_v49, %v502_v48 }
  0xaf   : > { %4347 = vmatprep.mubr.bf16.mxu1 %v11485_v58  ;;  %v12228_v58 = vld [vmem:[%s17128_s3 + $0x244] ss:$8 sps:$4 sm:$0xff]   ;;  %v12280_v42 = vld [vmem:[%s17128_s3 + $0x2d0] ss:$8 sps:$4 sm:$0xff]   ;;  %v12294_v48 = vld [vmem:[%s17128_s3 + $0x2f4] ss:$8 sps:$4 sm:$0xff]  }
  0xb0   : > { %2447 = vmatpush1.bf16.msra.mxu0 %v12145_v56  ;;  %v515_v56 = vld [vmem:[%s13858_s20 + $0x240] sm:$0xff]  ;;  %v12289_v49 = vld [vmem:[%s17126_s1 + $0x2f0] ss:$8 sps:$4 sm:$0xff]  }
  0xb1   : > { %4330 = vmatpush1.bf16.msra.mxu1 %v12148_v57  ;;  %2448 = vmatprep.subr.bf16.mxu0 %v12153_v59  ;;  %v12225_v57 = vld [vmem:[%s17126_s1 + $0x244] ss:$8 sps:$4 sm:$0xff]   ;;  %v12223_v59 = vld [vmem:[%s17126_s1 + $0x240] ss:$8 sps:$4 sm:$0xff]  }
  0xb2   : > { %4331 = vmatprep.subr.bf16.mxu1 %v12156_v60  ;;  %v12226_v60 = vld [vmem:[%s17128_s3 + $0x240] ss:$8 sps:$4 sm:$0xff]  }
  0xb4   : > { %2449 = vmatpush1.bf16.msra.mxu0 %v12151_v61  ;;  %v11512_v61 = vpack.c.bf16 %v515_v56, %v501_v55  ;;  %v12295_v55 = vld [vmem:[%s17126_s1 + $0x300] ss:$8 sps:$4 sm:$0xff]  }
  0xb5   : > { %4332 = vmatpush1.bf16.msra.mxu1 %v12154_v62  ;;  %2450 = vmatprep.subr.bf16.mxu0 %v12159_v63  ;;  %v530_v62 = vld [vmem:[%s13858_s20 + $0x2b8] sm:$0xff]  ;;  %v544_v63 = vld [vmem:[%s13858_s20 + $0x328] sm:$0xff] }
  0xb6   : > { %4333 = vmatprep.subr.bf16.mxu1 %v12162_v0  ;;  %v12231_v0 = vld [vmem:[%s17126_s1 + $0x254] ss:$8 sps:$4 sm:$0xff]   ;;  %v12298_v56 = vld [vmem:[%s17128_s3 + $0x300] ss:$8 sps:$4 sm:$0xff]  }
  0xb8   : > { %2451 = vmatpush1.bf16.msra.mxu0 %v12157_v1  ;;  %v12234_v1 = vld [vmem:[%s17128_s3 + $0x254] ss:$8 sps:$4 sm:$0xff]  }
  0xb9   : > { %4334 = vmatpush1.bf16.msra.mxu1 %v12160_v2  ;;  %2452 = vmatprep.subr.bf16.mxu0 %v12165_v3  ;;  %v12229_v2 = vld [vmem:[%s17126_s1 + $0x250] ss:$8 sps:$4 sm:$0xff]  }
  0xba   : > { %4335 = vmatprep.subr.bf16.mxu1 %v12168_v4  ;;  %v12232_v3 = vld [vmem:[%s17128_s3 + $0x250] ss:$8 sps:$4 sm:$0xff]   ;;  %v11527_v4 = vpack.c.bf16 %v544_v63, %v530_v62 }
  0xbb   : > { %v12301_v62 = vld [vmem:[%s17126_s1 + $0x310] ss:$8 sps:$4 sm:$0xff]  }
  0xbc   : > { %2453 = vmatpush1.bf16.msra.mxu0 %v12163_v5  ;;  %v12237_v5 = vld [vmem:[%s17126_s1 + $0x264] ss:$8 sps:$4 sm:$0xff]   ;;  %v12304_v63 = vld [vmem:[%s17128_s3 + $0x310] ss:$8 sps:$4 sm:$0xff]  }
  0xbd   : > { %4336 = vmatpush1.bf16.msra.mxu1 %v12166_v6  ;;  %2454 = vmatprep.subr.bf16.mxu0 %v12171_v7  ;;  %v529_v6 = vld [vmem:[%s13858_s20 + $0x2b0] sm:$0xff]  ;;  %v543_v7 = vld [vmem:[%s13858_s20 + $0x320] sm:$0xff] }
  0xbe   : > { %4337 = vmatprep.subr.bf16.mxu1 %v12174_v8  ;;  %v12240_v8 = vld [vmem:[%s17128_s3 + $0x264] ss:$8 sps:$4 sm:$0xff]  }
  0xc0   : > { %2455 = vmatpush1.bf16.msra.mxu0 %v12169_v9  ;;  %v12235_v9 = vld [vmem:[%s17126_s1 + $0x260] ss:$8 sps:$4 sm:$0xff]  }
  0xc1   : > { %4338 = vmatpush1.bf16.msra.mxu1 %v12172_v10  ;;  %2456 = vmatprep.subr.bf16.mxu0 %v12177_v11  ;;  %v12238_v10 = vld [vmem:[%s17128_s3 + $0x260] ss:$8 sps:$4 sm:$0xff]   ;;  %v11526_v11 = vpack.c.bf16 %v543_v7, %v529_v6 }
  0xc2   : > { %4339 = vmatprep.subr.bf16.mxu1 %v12180_v12  ;;  %v448_v12 = vld [vmem:[%s13858_s20 + $0x28] sm:$0xff] }
  0xc3   : > { %v12310_v6 = vld [vmem:[%s17128_s3 + $0x320] ss:$8 sps:$4 sm:$0xff]  }
  0xc4   : > { %2457 = vmatpush1.bf16.msra.mxu0 %v12175_v13  ;;  %v462_v13 = vld [vmem:[%s13858_s20 + $0x98] sm:$0xff] }
  0xc5   : > { %4340 = vmatpush1.bf16.msra.mxu1 %v12178_v14  ;;  %2458 = vmatprep.subr.bf16.mxu0 %v12183_v15  ;;  %v12243_v14 = vld [vmem:[%s17126_s1 + $0x274] ss:$8 sps:$4 sm:$0xff]  }
  0xc6   : > { %4341 = vmatprep.subr.bf16.mxu1 %v12186_v16  ;;  %v12246_v15 = vld [vmem:[%s17128_s3 + $0x274] ss:$8 sps:$4 sm:$0xff]   ;;  %v11487_v16 = vpack.c.bf16 %v462_v13, %v448_v12  ;;  %v12313_v12 = vld [vmem:[%s17126_s1 + $0x330] ss:$8 sps:$4 sm:$0xff]  }
  0xc7   : > { %v12316_v13 = vld [vmem:[%s17128_s3 + $0x330] ss:$8 sps:$4 sm:$0xff]  }
  0xc8   : > { %2459 = vmatpush1.bf16.msra.mxu0 %v12181_v17  ;;  %v12241_v17 = vld [vmem:[%s17126_s1 + $0x270] ss:$8 sps:$4 sm:$0xff]  }
  0xc9   : > { %4342 = vmatpush1.bf16.msra.mxu1 %v12184_v18  ;;  %2460 = vmatprep.subr.bf16.mxu0 %v12189_v19  ;;  %v12244_v18 = vld [vmem:[%s17128_s3 + $0x270] ss:$8 sps:$4 sm:$0xff]   ;;  %v12249_v19 = vld [vmem:[%s17126_s1 + $0x284] ss:$8 sps:$4 sm:$0xff]  }
  0xca   : > { %4343 = vmatprep.subr.bf16.mxu1 %v12192_v20  ;;  %v12252_v20 = vld [vmem:[%s17128_s3 + $0x284] ss:$8 sps:$4 sm:$0xff]  }
  0xcc   : > { %2461 = vmatpush1.bf16.msra.mxu0 %v12187_v21  ;;  %v12247_v21 = vld [vmem:[%s17126_s1 + $0x280] ss:$8 sps:$4 sm:$0xff]  }
  0xcd   : > { %4344 = vmatpush1.bf16.msra.mxu1 %v12190_v22  ;;  %2462 = vmatprep.subr.bf16.mxu0 %v12195_v23  ;;  %v12250_v22 = vld [vmem:[%s17128_s3 + $0x280] ss:$8 sps:$4 sm:$0xff]   ;;  %v12255_v23 = vld [vmem:[%s17126_s1 + $0x294] ss:$8 sps:$4 sm:$0xff]  }
  0xce   : > { %4345 = vmatprep.subr.bf16.mxu1 %v12198_v24  ;;  %v12258_v24 = vld [vmem:[%s17128_s3 + $0x294] ss:$8 sps:$4 sm:$0xff]  }
  0xd0   : > { %2463 = vmatpush1.bf16.msra.mxu0 %v12193_v25  ;;  %v12253_v25 = vld [vmem:[%s17126_s1 + $0x290] ss:$8 sps:$4 sm:$0xff]  }
  0xd1   : > { %4346 = vmatpush1.bf16.msra.mxu1 %v12196_v26  ;;  %2505 = vmatprep.subr.bf16.mxu0 %v12201_v29  ;;  %v12256_v26 = vld [vmem:[%s17128_s3 + $0x290] ss:$8 sps:$4 sm:$0xff]   ;;  %v12259_v29 = vld [vmem:[%s17126_s1 + $0x2a0] ss:$8 sps:$4 sm:$0xff]  }
  0xd2   : > { %4388 = vmatprep.subr.bf16.mxu1 %v12204_v30  ;;  %v12262_v30 = vld [vmem:[%s17128_s3 + $0x2a0] ss:$8 sps:$4 sm:$0xff]  }
  0xd3   : > { %2465 = vmatmul.mubr.bf16.vlgmr.msra.gmra.mrb[0].mxu0 %v11484_v32 }
  0xd4   : > { %4348 = vmatmul.mubr.bf16.vlgmr.msra.gmra.mrb[0].mxu1 %v11484_v32  ;;  %2506 = vmatpush1.bf16.msra.mxu0 %v12199_v34  ;;  %v12270_v32 = vld [vmem:[%s17128_s3 + $0x2b4] ss:$8 sps:$4 sm:$0xff]   ;;  %v12268_v34 = vld [vmem:[%s17128_s3 + $0x2b0] ss:$8 sps:$4 sm:$0xff]  }
  0xd5   : > { %4389 = vmatpush1.bf16.msra.mxu1 %v12202_v35  ;;  %2507 = vmatprep.subr.bf16.mxu0 %v12207_v36  ;;  %v12273_v35 = vld [vmem:[%s17126_s1 + $0x2c4] ss:$8 sps:$4 sm:$0xff]  }
  0xd6   : > { %4390 = vmatprep.subr.bf16.mxu1 %v12210_v37  ;;  %2474 = vmatprep.mubr.bf16.mxu0 %v11499_v38  ;;  %v12276_v36 = vld [vmem:[%s17128_s3 + $0x2c4] ss:$8 sps:$4 sm:$0xff]   ;;  %v12271_v37 = vld [vmem:[%s17126_s1 + $0x2c0] ss:$8 sps:$4 sm:$0xff]  }
  0xd7   : > { %4357 = vmatprep.mubr.bf16.mxu1 %v11499_v38  ;;  %v12274_v38 = vld [vmem:[%s17128_s3 + $0x2c0] ss:$8 sps:$4 sm:$0xff]  }
  0xd8   : > { %2508 = vmatpush1.bf16.msra.mxu0 %v12205_v39  ;;  %v12279_v39 = vld [vmem:[%s17126_s1 + $0x2d4] ss:$8 sps:$4 sm:$0xff]  }
  0xd9   : > { %4391 = vmatpush1.bf16.msra.mxu1 %v12208_v40  ;;  %2509 = vmatprep.subr.bf16.mxu0 %v12213_v43  ;;  %v12282_v40 = vld [vmem:[%s17128_s3 + $0x2d4] ss:$8 sps:$4 sm:$0xff]   ;;  %v12285_v43 = vld [vmem:[%s17126_s1 + $0x2e4] ss:$8 sps:$4 sm:$0xff]  }
  0xda   : > { %4392 = vmatprep.subr.bf16.mxu1 %v12216_v44  ;;  %v12288_v44 = vld [vmem:[%s17128_s3 + $0x2e4] ss:$8 sps:$4 sm:$0xff]  }
  0xdb   : > { %2475 = vmatmul.mubr.bf16.gmra.mrb[4].mxu0 %v11498_v47 }
  0xdc   : > { %4358 = vmatmul.mubr.bf16.gmra.mrb[4].mxu1 %v11498_v47  ;;  %2510 = vmatpush1.bf16.msra.mxu0 %v12211_v45  ;;  %v12283_v45 = vld [vmem:[%s17126_s1 + $0x2e0] ss:$8 sps:$4 sm:$0xff]   ;;  %v12291_v47 = vld [vmem:[%s17126_s1 + $0x2f4] ss:$8 sps:$4 sm:$0xff]  }
  0xdd   : > { %4393 = vmatpush1.bf16.msra.mxu1 %v12214_v46  ;;  %2511 = vmatprep.subr.bf16.mxu0 %v12219_v50  ;;  %v12286_v46 = vld [vmem:[%s17128_s3 + $0x2e0] ss:$8 sps:$4 sm:$0xff]   ;;  %v12292_v50 = vld [vmem:[%s17128_s3 + $0x2f0] ss:$8 sps:$4 sm:$0xff]  }
  0xde   : > { %4394 = vmatprep.subr.bf16.mxu1 %v12222_v51  ;;  %2484 = vmatprep.mubr.bf16.mxu0 %v11513_v53  ;;  %v447_v51 = vld [vmem:[%s13858_s20 + $0x20] sm:$0xff] }
  0xdf   : > { %4367 = vmatprep.mubr.bf16.mxu1 %v11513_v53  ;;  %v12297_v53 = vld [vmem:[%s17126_s1 + $0x304] ss:$8 sps:$4 sm:$0xff]  }
  0xe0   : > { %2512 = vmatpush1.bf16.msra.mxu0 %v12217_v52  ;;  %v461_v52 = vld [vmem:[%s13858_s20 + $0x90] sm:$0xff] }
  0xe1   : > { %4395 = vmatpush1.bf16.msra.mxu1 %v12220_v54  ;;  %2513 = vmatprep.subr.bf16.mxu0 %v12225_v57  ;;  %v12300_v54 = vld [vmem:[%s17128_s3 + $0x304] ss:$8 sps:$4 sm:$0xff]   ;;  %v11486_v57 = vpack.c.bf16 %v461_v52, %v447_v51 }
  0xe2   : > { %4396 = vmatprep.subr.bf16.mxu1 %v12228_v58  ;;  %v476_v58 = vld [vmem:[%s13858_s20 + $0x108] sm:$0xff] }
  0xe3   : > { %2485 = vmatmul.mubr.bf16.gmra.mrb[8].mxu0 %v11512_v61  ;;  %v12357_v51 = vld [vmem:[%s17126_s1 + $0x3a4] ss:$8 sps:$4 sm:$0xff]  }
  0xe4   : > { %4368 = vmatmul.mubr.bf16.gmra.mrb[8].mxu1 %v11512_v61  ;;  %2514 = vmatpush1.bf16.msra.mxu0 %v12223_v59  ;;  %v490_v59 = vld [vmem:[%s13858_s20 + $0x178] sm:$0xff]  ;;  %v12360_v52 = vld [vmem:[%s17128_s3 + $0x3a4] ss:$8 sps:$4 sm:$0xff]  }
  0xe5   : > { %4397 = vmatpush1.bf16.msra.mxu1 %v12226_v60  ;;  %2515 = vmatprep.subr.bf16.mxu0 %v12231_v0  ;;  %v12303_v60 = vld [vmem:[%s17126_s1 + $0x314] ss:$8 sps:$4 sm:$0xff]   ;;  %v11501_v0 = vpack.c.bf16 %v490_v59, %v476_v58  ;;  %v12364_v58 = vld [vmem:[%s17128_s3 + $0x3b0] ss:$8 sps:$4 sm:$0xff]   ;;  %v12369_v59 = vld [vmem:[%s17126_s1 + $0x3c4] ss:$8 sps:$4 sm:$0xff]  }
  0xe6   : > { %4398 = vmatprep.subr.bf16.mxu1 %v12234_v1  ;;  %2494 = vmatprep.mubr.bf16.mxu0 %v11527_v4  ;;  %v12306_v61 = vld [vmem:[%s17128_s3 + $0x314] ss:$8 sps:$4 sm:$0xff]   ;;  %v12309_v1 = vld [vmem:[%s17126_s1 + $0x324] ss:$8 sps:$4 sm:$0xff]  }
  0xe7   : > { %4377 = vmatprep.mubr.bf16.mxu1 %v11527_v4  ;;  %v12312_v4 = vld [vmem:[%s17128_s3 + $0x324] ss:$8 sps:$4 sm:$0xff]  }
  0xe8   : > { %2516 = vmatpush1.bf16.msra.mxu0 %v12229_v2  ;;  %v475_v2 = vld [vmem:[%s13858_s20 + $0x100] sm:$0xff] }
  0xe9   : > { %4399 = vmatpush1.bf16.msra.mxu1 %v12232_v3  ;;  %2517 = vmatprep.subr.bf16.mxu0 %v12237_v5  ;;  %v489_v3 = vld [vmem:[%s13858_s20 + $0x170] sm:$0xff]  ;;  %v12307_v5 = vld [vmem:[%s17126_s1 + $0x320] ss:$8 sps:$4 sm:$0xff]  }
  0xea   : > { %4400 = vmatprep.subr.bf16.mxu1 %v12240_v8  ;;  %v11500_v7 = vpack.c.bf16 %v489_v3, %v475_v2  ;;  %v504_v8 = vld [vmem:[%s13858_s20 + $0x1e8] sm:$0xff]  ;;  %v12376_v2 = vld [vmem:[%s17128_s3 + $0x3d0] ss:$8 sps:$4 sm:$0xff]  }
  0xeb   : > { %2495 = vmatmul.mubr.bf16.gmra.mrb[12].mxu0 %v11526_v11  ;;  %v12381_v3 = vld [vmem:[%s17126_s1 + $0x3e4] ss:$8 sps:$4 sm:$0xff]  }
  0xec   : > { %4378 = vmatmul.mubr.bf16.gmra.mrb[12].mxu1 %v11526_v11  ;;  %2518 = vmatpush1.bf16.msra.mxu0 %v12235_v9  ;;  %v518_v9 = vld [vmem:[%s13858_s20 + $0x258] sm:$0xff] }
  0xed   : > { %4401 = vmatpush1.bf16.msra.mxu1 %v12238_v10  ;;  %2519 = vmatprep.subr.bf16.mxu0 %v12243_v14  ;;  %v12315_v10 = vld [vmem:[%s17126_s1 + $0x334] ss:$8 sps:$4 sm:$0xff]   ;;  %v11515_v14 = vpack.c.bf16 %v518_v9, %v504_v8  ;;  %v12385_v9 = vld [vmem:[%s17126_s1 + $0x3f0] ss:$8 sps:$4 sm:$0xff]  }
  0xee   : > { %4402 = vmatprep.subr.bf16.mxu1 %v12246_v15  ;;  %2537 = vmatprep.mubr.bf16.mxu0 %v11487_v16  ;;  %v12318_v11 = vld [vmem:[%s17128_s3 + $0x334] ss:$8 sps:$4 sm:$0xff]   ;;  %v12321_v15 = vld [vmem:[%s17126_s1 + $0x344] ss:$8 sps:$4 sm:$0xff]  }
  0xef   : > { %4420 = vmatprep.mubr.bf16.mxu1 %v11487_v16  ;;  %v503_v16 = vld [vmem:[%s13858_s20 + $0x1e0] sm:$0xff]  ;;  %v12390_v8 = vld [vmem:[%s17128_s3 + $0x3f4] ss:$8 sps:$4 sm:$0xff]  }
  0xf0   : > { %2520 = vmatpush1.bf16.msra.mxu0 %v12241_v17  ;;  %v517_v17 = vld [vmem:[%s13858_s20 + $0x250] sm:$0xff] }
  0xf1   : > { %4403 = vmatpush1.bf16.msra.mxu1 %v12244_v18  ;;  %2521 = vmatprep.subr.bf16.mxu0 %v12249_v19  ;;  %v12324_v18 = vld [vmem:[%s17128_s3 + $0x344] ss:$8 sps:$4 sm:$0xff]   ;;  %v12319_v19 = vld [vmem:[%s17126_s1 + $0x340] ss:$8 sps:$4 sm:$0xff]  }
  0xf2   : > { %4404 = vmatprep.subr.bf16.mxu1 %v12252_v20  ;;  %v12322_v20 = vld [vmem:[%s17128_s3 + $0x340] ss:$8 sps:$4 sm:$0xff]  }
  0xf4   : > { %2522 = vmatpush1.bf16.msra.mxu0 %v12247_v21  ;;  %v11514_v21 = vpack.c.bf16 %v517_v17, %v503_v16  ;;  %v12394_v16 = vld [vmem:[%s17128_s3 + $0x400] ss:$8 sps:$4 sm:$0xff]  }
  0xf5   : > { %4405 = vmatpush1.bf16.msra.mxu1 %v12250_v22  ;;  %2523 = vmatprep.subr.bf16.mxu0 %v12255_v23  ;;  %v532_v22 = vld [vmem:[%s13858_s20 + $0x2c8] sm:$0xff]  ;;  %v546_v23 = vld [vmem:[%s13858_s20 + $0x338] sm:$0xff] }
  0xf6   : > { %4406 = vmatprep.subr.bf16.mxu1 %v12258_v24  ;;  %v12327_v24 = vld [vmem:[%s17126_s1 + $0x354] ss:$8 sps:$4 sm:$0xff]  }
  0xf8   : > { %2524 = vmatpush1.bf16.msra.mxu0 %v12253_v25  ;;  %v12330_v25 = vld [vmem:[%s17128_s3 + $0x354] ss:$8 sps:$4 sm:$0xff]  }
  0xf9   : > { %4407 = vmatpush1.bf16.msra.mxu1 %v12256_v26  ;;  %2525 = vmatprep.subr.bf16.mxu0 %v12261_v27  ;;  %v12325_v26 = vld [vmem:[%s17126_s1 + $0x350] ss:$8 sps:$4 sm:$0xff]  }
  0xfa   : > { %4408 = vmatprep.subr.bf16.mxu1 %v12264_v28  ;;  %v12328_v27 = vld [vmem:[%s17128_s3 + $0x350] ss:$8 sps:$4 sm:$0xff]   ;;  %v11529_v28 = vpack.c.bf16 %v546_v23, %v532_v22 }
  0xfb   : > { %v12397_v22 = vld [vmem:[%s17126_s1 + $0x410] ss:$8 sps:$4 sm:$0xff]  }
  0xfc   : > { %2526 = vmatpush1.bf16.msra.mxu0 %v12259_v29  ;;  %v12333_v29 = vld [vmem:[%s17126_s1 + $0x364] ss:$8 sps:$4 sm:$0xff]   ;;  %v12400_v23 = vld [vmem:[%s17128_s3 + $0x410] ss:$8 sps:$4 sm:$0xff]  }
  0xfd   : > { %4409 = vmatpush1.bf16.msra.mxu1 %v12262_v30  ;;  %2527 = vmatprep.subr.bf16.mxu0 %v12267_v31  ;;  %v531_v30 = vld [vmem:[%s13858_s20 + $0x2c0] sm:$0xff]  ;;  %v545_v31 = vld [vmem:[%s13858_s20 + $0x330] sm:$0xff] }
  0xfe   : > { %4410 = vmatprep.subr.bf16.mxu1 %v12270_v32  ;;  %v12336_v32 = vld [vmem:[%s17128_s3 + $0x364] ss:$8 sps:$4 sm:$0xff]  }
 0x100   : > { %2528 = vmatpush1.bf16.msra.mxu0 %v12265_v33  ;;  %v450_v33 = vld [vmem:[%s13858_s20 + $0x38] sm:$0xff] }
 0x101   : > { %4411 = vmatpush1.bf16.msra.mxu1 %v12268_v34  ;;  %2529 = vmatprep.subr.bf16.mxu0 %v12273_v35  ;;  %v11528_v34 = vpack.c.bf16 %v545_v31, %v531_v30  ;;  %v464_v35 = vld [vmem:[%s13858_s20 + $0xa8] sm:$0xff] }
 0x102   : > { %4412 = vmatprep.subr.bf16.mxu1 %v12276_v36  ;;  %v12331_v36 = vld [vmem:[%s17126_s1 + $0x360] ss:$8 sps:$4 sm:$0xff]  }
 0x103   : > { %v520_v31 = vld [vmem:[%s13858_s20 + $0x268] sm:$0xff] }
 0x104   : > { %2530 = vmatpush1.bf16.msra.mxu0 %v12271_v37  ;;  %v12334_v37 = vld [vmem:[%s17128_s3 + $0x360] ss:$8 sps:$4 sm:$0xff]  }
 0x105   : > { %4413 = vmatpush1.bf16.msra.mxu1 %v12274_v38  ;;  %2531 = vmatprep.subr.bf16.mxu0 %v12279_v39  ;;  %v12339_v38 = vld [vmem:[%s17126_s1 + $0x374] ss:$8 sps:$4 sm:$0xff]  }
 0x106   : > { %4414 = vmatprep.subr.bf16.mxu1 %v12282_v40  ;;  %v12342_v39 = vld [vmem:[%s17128_s3 + $0x374] ss:$8 sps:$4 sm:$0xff]   ;;  %v11489_v40 = vpack.c.bf16 %v464_v35, %v450_v33  ;;  %v12406_v33 = vld [vmem:[%s17128_s3 + $0x420] ss:$8 sps:$4 sm:$0xff]  }
 0x107   : > { %v12414_v35 = vld [vmem:[%s17128_s3 + $0x434] ss:$8 sps:$4 sm:$0xff]  }
 0x108   : > { %2532 = vmatpush1.bf16.msra.mxu0 %v12277_v41  ;;  %v12337_v41 = vld [vmem:[%s17126_s1 + $0x370] ss:$8 sps:$4 sm:$0xff]  }
 0x109   : > { %4415 = vmatpush1.bf16.msra.mxu1 %v12280_v42  ;;  %2533 = vmatprep.subr.bf16.mxu0 %v12285_v43  ;;  %v12340_v42 = vld [vmem:[%s17128_s3 + $0x370] ss:$8 sps:$4 sm:$0xff]   ;;  %v12345_v43 = vld [vmem:[%s17126_s1 + $0x384] ss:$8 sps:$4 sm:$0xff]  }
 0x10a   : > { %4416 = vmatprep.subr.bf16.mxu1 %v12288_v44  ;;  %v12348_v44 = vld [vmem:[%s17128_s3 + $0x384] ss:$8 sps:$4 sm:$0xff]  }
 0x10c   : > { %2534 = vmatpush1.bf16.msra.mxu0 %v12283_v45  ;;  %v12343_v45 = vld [vmem:[%s17126_s1 + $0x380] ss:$8 sps:$4 sm:$0xff]  }
 0x10d   : > { %4417 = vmatpush1.bf16.msra.mxu1 %v12286_v46  ;;  %2535 = vmatprep.subr.bf16.mxu0 %v12291_v47  ;;  %v12346_v46 = vld [vmem:[%s17128_s3 + $0x380] ss:$8 sps:$4 sm:$0xff]   ;;  %v12351_v47 = vld [vmem:[%s17126_s1 + $0x394] ss:$8 sps:$4 sm:$0xff]  }
 0x10e   : > { %4418 = vmatprep.subr.bf16.mxu1 %v12294_v48  ;;  %v12354_v48 = vld [vmem:[%s17128_s3 + $0x394] ss:$8 sps:$4 sm:$0xff]  }
 0x110   : > { %2536 = vmatpush1.bf16.msra.mxu0 %v12289_v49  ;;  %v12349_v49 = vld [vmem:[%s17126_s1 + $0x390] ss:$8 sps:$4 sm:$0xff]  }
 0x111   : > { %4419 = vmatpush1.bf16.msra.mxu1 %v12292_v50  ;;  %2578 = vmatprep.subr.bf16.mxu0 %v12297_v53  ;;  %v12352_v50 = vld [vmem:[%s17128_s3 + $0x390] ss:$8 sps:$4 sm:$0xff]   ;;  %v12355_v53 = vld [vmem:[%s17126_s1 + $0x3a0] ss:$8 sps:$4 sm:$0xff]  }
 0x112   : > { %4461 = vmatprep.subr.bf16.mxu1 %v12300_v54  ;;  %v12358_v54 = vld [vmem:[%s17128_s3 + $0x3a0] ss:$8 sps:$4 sm:$0xff]  }
 0x113   : > { %2538 = vmatmul.mubr.bf16.vlgmr.msra.gmra.mrb[0].mxu0 %v11486_v57 }
 0x114   : > { %4421 = vmatmul.mubr.bf16.vlgmr.msra.gmra.mrb[0].mxu1 %v11486_v57  ;;  %2579 = vmatpush1.bf16.msra.mxu0 %v12295_v55  ;;  %v12363_v55 = vld [vmem:[%s17126_s1 + $0x3b4] ss:$8 sps:$4 sm:$0xff]   ;;  %v12361_v57 = vld [vmem:[%s17126_s1 + $0x3b0] ss:$8 sps:$4 sm:$0xff]  }
 0x115   : > { %4462 = vmatpush1.bf16.msra.mxu1 %v12298_v56  ;;  %2580 = vmatprep.subr.bf16.mxu0 %v12303_v60  ;;  %v12366_v56 = vld [vmem:[%s17128_s3 + $0x3b4] ss:$8 sps:$4 sm:$0xff]   ;;  %v12372_v60 = vld [vmem:[%s17128_s3 + $0x3c4] ss:$8 sps:$4 sm:$0xff]  }
 0x116   : > { %4463 = vmatprep.subr.bf16.mxu1 %v12306_v61  ;;  %2547 = vmatprep.mubr.bf16.mxu0 %v11501_v0  ;;  %v12367_v61 = vld [vmem:[%s17126_s1 + $0x3c0] ss:$8 sps:$4 sm:$0xff]  }
 0x117   : > { %4430 = vmatprep.mubr.bf16.mxu1 %v11501_v0  ;;  %v12378_v0 = vld [vmem:[%s17128_s3 + $0x3d4] ss:$8 sps:$4 sm:$0xff]  }
 0x118   : > { %2581 = vmatpush1.bf16.msra.mxu0 %v12301_v62  ;;  %v12370_v62 = vld [vmem:[%s17128_s3 + $0x3c0] ss:$8 sps:$4 sm:$0xff]  }
 0x119   : > { %4464 = vmatpush1.bf16.msra.mxu1 %v12304_v63  ;;  %2582 = vmatprep.subr.bf16.mxu0 %v12309_v1  ;;  %v12375_v63 = vld [vmem:[%s17126_s1 + $0x3d4] ss:$8 sps:$4 sm:$0xff]   ;;  %v12373_v1 = vld [vmem:[%s17126_s1 + $0x3d0] ss:$8 sps:$4 sm:$0xff]  }
 0x11a   : > { %4465 = vmatprep.subr.bf16.mxu1 %v12312_v4  ;;  %v12384_v4 = vld [vmem:[%s17128_s3 + $0x3e4] ss:$8 sps:$4 sm:$0xff]  }
 0x11b   : > { %2548 = vmatmul.mubr.bf16.gmra.mrb[4].mxu0 %v11500_v7 }
 0x11c   : > { %4431 = vmatmul.mubr.bf16.gmra.mrb[4].mxu1 %v11500_v7  ;;  %2583 = vmatpush1.bf16.msra.mxu0 %v12307_v5  ;;  %v12379_v5 = vld [vmem:[%s17126_s1 + $0x3e0] ss:$8 sps:$4 sm:$0xff]   ;;  %v12387_v7 = vld [vmem:[%s17126_s1 + $0x3f4] ss:$8 sps:$4 sm:$0xff]  }
 0x11d   : > { %4466 = vmatpush1.bf16.msra.mxu1 %v12310_v6  ;;  %2584 = vmatprep.subr.bf16.mxu0 %v12315_v10  ;;  %v12382_v6 = vld [vmem:[%s17128_s3 + $0x3e0] ss:$8 sps:$4 sm:$0xff]   ;;  %v12388_v10 = vld [vmem:[%s17128_s3 + $0x3f0] ss:$8 sps:$4 sm:$0xff]  }
 0x11e   : > { %4467 = vmatprep.subr.bf16.mxu1 %v12318_v11  ;;  %2557 = vmatprep.mubr.bf16.mxu0 %v11515_v14  ;;  %v12393_v11 = vld [vmem:[%s17126_s1 + $0x404] ss:$8 sps:$4 sm:$0xff]  }
 0x11f   : > { %4440 = vmatprep.mubr.bf16.mxu1 %v11515_v14  ;;  %v12396_v14 = vld [vmem:[%s17128_s3 + $0x404] ss:$8 sps:$4 sm:$0xff]  }
 0x120   : > { %2585 = vmatpush1.bf16.msra.mxu0 %v12313_v12  ;;  %v449_v12 = vld [vmem:[%s13858_s20 + $0x30] sm:$0xff] }
 0x121   : > { %4468 = vmatpush1.bf16.msra.mxu1 %v12316_v13  ;;  %2586 = vmatprep.subr.bf16.mxu0 %v12321_v15  ;;  %v463_v13 = vld [vmem:[%s13858_s20 + $0xa0] sm:$0xff] }
 0x122   : > { %4469 = vmatprep.subr.bf16.mxu1 %v12324_v18  ;;  %v12391_v15 = vld [vmem:[%s17126_s1 + $0x400] ss:$8 sps:$4 sm:$0xff]   ;;  %v11488_v17 = vpack.c.bf16 %v463_v13, %v449_v12  ;;  %v478_v18 = vld [vmem:[%s13858_s20 + $0x118] sm:$0xff]  ;;  %v12456_v12 = vld [vmem:[%s17128_s3 + $0x4a4] ss:$8 sps:$4 sm:$0xff]  }
 0x123   : > { %2558 = vmatmul.mubr.bf16.gmra.mrb[8].mxu0 %v11514_v21  ;;  %v12451_v13 = vld [vmem:[%s17126_s1 + $0x4a0] ss:$8 sps:$4 sm:$0xff]  }
 0x124   : > { %4441 = vmatmul.mubr.bf16.gmra.mrb[8].mxu1 %v11514_v21  ;;  %2587 = vmatpush1.bf16.msra.mxu0 %v12319_v19  ;;  %v492_v19 = vld [vmem:[%s13858_s20 + $0x188] sm:$0xff]  ;;  %v12402_v21 = vld [vmem:[%s17128_s3 + $0x414] ss:$8 sps:$4 sm:$0xff]  }
 0x125   : > { %4470 = vmatpush1.bf16.msra.mxu1 %v12322_v20  ;;  %2588 = vmatprep.subr.bf16.mxu0 %v12327_v24  ;;  %v12399_v20 = vld [vmem:[%s17126_s1 + $0x414] ss:$8 sps:$4 sm:$0xff]   ;;  %v11503_v24 = vpack.c.bf16 %v492_v19, %v478_v18  ;;  %v12460_v18 = vld [vmem:[%s17128_s3 + $0x4b0] ss:$8 sps:$4 sm:$0xff]   ;;  %v12465_v19 = vld [vmem:[%s17126_s1 + $0x4c4] ss:$8 sps:$4 sm:$0xff]  }
 0x126   : > { %4471 = vmatprep.subr.bf16.mxu1 %v12330_v25  ;;  %2567 = vmatprep.mubr.bf16.mxu0 %v11529_v28  ;;  %v12405_v25 = vld [vmem:[%s17126_s1 + $0x424] ss:$8 sps:$4 sm:$0xff]  }
 0x127   : > { %4450 = vmatprep.mubr.bf16.mxu1 %v11529_v28  ;;  %v12408_v28 = vld [vmem:[%s17128_s3 + $0x424] ss:$8 sps:$4 sm:$0xff]  }
 0x128   : > { %2589 = vmatpush1.bf16.msra.mxu0 %v12325_v26  ;;  %v477_v26 = vld [vmem:[%s13858_s20 + $0x110] sm:$0xff] }
 0x129   : > { %4472 = vmatpush1.bf16.msra.mxu1 %v12328_v27  ;;  %2590 = vmatprep.subr.bf16.mxu0 %v12333_v29  ;;  %v491_v27 = vld [vmem:[%s13858_s20 + $0x180] sm:$0xff]  ;;  %v506_v29 = vld [vmem:[%s13858_s20 + $0x1f8] sm:$0xff] }
 0x12a   : > { %4473 = vmatprep.subr.bf16.mxu1 %v12336_v32  ;;  %v11502_v30 = vpack.c.bf16 %v491_v27, %v477_v26  ;;  %v12403_v32 = vld [vmem:[%s17126_s1 + $0x420] ss:$8 sps:$4 sm:$0xff]   ;;  %v12472_v26 = vld [vmem:[%s17128_s3 + $0x4d0] ss:$8 sps:$4 sm:$0xff]   ;;  %v12477_v27 = vld [vmem:[%s17126_s1 + $0x4e4] ss:$8 sps:$4 sm:$0xff]  }
 0x12b   : > { %2568 = vmatmul.mubr.bf16.gmra.mrb[12].mxu0 %v11528_v34 }
 0x12c   : > { %4451 = vmatmul.mubr.bf16.gmra.mrb[12].mxu1 %v11528_v34  ;;  %2591 = vmatpush1.bf16.msra.mxu0 %v12331_v36  ;;  %v12411_v34 = vld [vmem:[%s17126_s1 + $0x434] ss:$8 sps:$4 sm:$0xff]   ;;  %v12409_v36 = vld [vmem:[%s17126_s1 + $0x430] ss:$8 sps:$4 sm:$0xff]  }
 0x12d   : > { %4474 = vmatpush1.bf16.msra.mxu1 %v12334_v37  ;;  %2592 = vmatprep.subr.bf16.mxu0 %v12339_v38  ;;  %v11517_v37 = vpack.c.bf16 %v520_v31, %v506_v29  ;;  %v12412_v38 = vld [vmem:[%s17128_s3 + $0x430] ss:$8 sps:$4 sm:$0xff]   ;;  %v12475_v29 = vld [vmem:[%s17126_s1 + $0x4e0] ss:$8 sps:$4 sm:$0xff]   ;;  %v12483_v31 = vld [vmem:[%s17126_s1 + $0x4f4] ss:$8 sps:$4 sm:$0xff]  }
 0x12e   : > { %4475 = vmatprep.subr.bf16.mxu1 %v12342_v39  ;;  %2610 = vmatprep.mubr.bf16.mxu0 %v11489_v40  ;;  %v505_v39 = vld [vmem:[%s13858_s20 + $0x1f0] sm:$0xff] }
 0x12f   : > { %4493 = vmatprep.mubr.bf16.mxu1 %v11489_v40  ;;  %v519_v40 = vld [vmem:[%s13858_s20 + $0x260] sm:$0xff] }
 0x130   : > { %2593 = vmatpush1.bf16.msra.mxu0 %v12337_v41  ;;  %v12417_v41 = vld [vmem:[%s17126_s1 + $0x444] ss:$8 sps:$4 sm:$0xff]  }
 0x131   : > { %4476 = vmatpush1.bf16.msra.mxu1 %v12340_v42  ;;  %2594 = vmatprep.subr.bf16.mxu0 %v12345_v43  ;;  %v12420_v42 = vld [vmem:[%s17128_s3 + $0x444] ss:$8 sps:$4 sm:$0xff]   ;;  %v534_v43 = vld [vmem:[%s13858_s20 + $0x2d8] sm:$0xff] }
 0x132   : > { %4477 = vmatprep.subr.bf16.mxu1 %v12348_v44  ;;  %v11516_v44 = vpack.c.bf16 %v519_v40, %v505_v39  ;;  %v12487_v39 = vld [vmem:[%s17126_s1 + $0x500] ss:$8 sps:$4 sm:$0xff]  }
 0x133   : > { %v12490_v40 = vld [vmem:[%s17128_s3 + $0x500] ss:$8 sps:$4 sm:$0xff]  }
 0x134   : > { %2595 = vmatpush1.bf16.msra.mxu0 %v12343_v45  ;;  %v548_v45 = vld [vmem:[%s13858_s20 + $0x348] sm:$0xff] }
 0x135   : > { %4478 = vmatpush1.bf16.msra.mxu1 %v12346_v46  ;;  %2596 = vmatprep.subr.bf16.mxu0 %v12351_v47  ;;  %v12415_v46 = vld [vmem:[%s17126_s1 + $0x440] ss:$8 sps:$4 sm:$0xff]  }
 0x136   : > { %4479 = vmatprep.subr.bf16.mxu1 %v12354_v48  ;;  %v12418_v47 = vld [vmem:[%s17128_s3 + $0x440] ss:$8 sps:$4 sm:$0xff]   ;;  %v12423_v48 = vld [vmem:[%s17126_s1 + $0x454] ss:$8 sps:$4 sm:$0xff]  }
 0x138   : > { %2597 = vmatpush1.bf16.msra.mxu0 %v12349_v49  ;;  %v12426_v49 = vld [vmem:[%s17128_s3 + $0x454] ss:$8 sps:$4 sm:$0xff]  }
 0x139   : > { %4480 = vmatpush1.bf16.msra.mxu1 %v12352_v50  ;;  %2598 = vmatprep.subr.bf16.mxu0 %v12357_v51  ;;  %v11531_v50 = vpack.c.bf16 %v548_v45, %v534_v43  ;;  %v12421_v51 = vld [vmem:[%s17126_s1 + $0x450] ss:$8 sps:$4 sm:$0xff]   ;;  %v12498_v45 = vld [vmem:[%s17128_s3 + $0x514] ss:$8 sps:$4 sm:$0xff]  }
 0x13a   : > { %4481 = vmatprep.subr.bf16.mxu1 %v12360_v52  ;;  %v12424_v52 = vld [vmem:[%s17128_s3 + $0x450] ss:$8 sps:$4 sm:$0xff]  }
 0x13b   : > { %v494_v43 = vld [vmem:[%s13858_s20 + $0x198] sm:$0xff] }
 0x13c   : > { %2599 = vmatpush1.bf16.msra.mxu0 %v12355_v53  ;;  %v533_v53 = vld [vmem:[%s13858_s20 + $0x2d0] sm:$0xff] }
 0x13d   : > { %4482 = vmatpush1.bf16.msra.mxu1 %v12358_v54  ;;  %2600 = vmatprep.subr.bf16.mxu0 %v12363_v55  ;;  %v547_v54 = vld [vmem:[%s13858_s20 + $0x340] sm:$0xff] }
 0x13e   : > { %4483 = vmatprep.subr.bf16.mxu1 %v12366_v56  ;;  %v12429_v55 = vld [vmem:[%s17126_s1 + $0x464] ss:$8 sps:$4 sm:$0xff]  }
 0x13f   : > { %v12432_v56 = vld [vmem:[%s17128_s3 + $0x464] ss:$8 sps:$4 sm:$0xff]  }
 0x140   : > { %2601 = vmatpush1.bf16.msra.mxu0 %v12361_v57  ;;  %v12427_v57 = vld [vmem:[%s17126_s1 + $0x460] ss:$8 sps:$4 sm:$0xff]  }
 0x141   : > { %4484 = vmatpush1.bf16.msra.mxu1 %v12364_v58  ;;  %2602 = vmatprep.subr.bf16.mxu0 %v12369_v59  ;;  %v12430_v58 = vld [vmem:[%s17128_s3 + $0x460] ss:$8 sps:$4 sm:$0xff]   ;;  %v11530_v59 = vpack.c.bf16 %v547_v54, %v533_v53 }
 0x142   : > { %4485 = vmatprep.subr.bf16.mxu1 %v12372_v60  ;;  %v452_v60 = vld [vmem:[%s13858_s20 + $0x48] sm:$0xff] }
 0x143   : > { %v12499_v53 = vld [vmem:[%s17126_s1 + $0x520] ss:$8 sps:$4 sm:$0xff]  }
 0x144   : > { %2603 = vmatpush1.bf16.msra.mxu0 %v12367_v61  ;;  %v466_v61 = vld [vmem:[%s13858_s20 + $0xb8] sm:$0xff]  ;;  %v12502_v54 = vld [vmem:[%s17128_s3 + $0x520] ss:$8 sps:$4 sm:$0xff]  }
 0x145   : > { %4486 = vmatpush1.bf16.msra.mxu1 %v12370_v62  ;;  %2604 = vmatprep.subr.bf16.mxu0 %v12375_v63  ;;  %v12435_v62 = vld [vmem:[%s17126_s1 + $0x474] ss:$8 sps:$4 sm:$0xff]  }
 0x146   : > { %4487 = vmatprep.subr.bf16.mxu1 %v12378_v0  ;;  %v12438_v63 = vld [vmem:[%s17128_s3 + $0x474] ss:$8 sps:$4 sm:$0xff]   ;;  %v11491_v0 = vpack.c.bf16 %v466_v61, %v452_v60  ;;  %v12505_v61 = vld [vmem:[%s17126_s1 + $0x530] ss:$8 sps:$4 sm:$0xff]  }
 0x148   : > { %2605 = vmatpush1.bf16.msra.mxu0 %v12373_v1  ;;  %v12433_v1 = vld [vmem:[%s17126_s1 + $0x470] ss:$8 sps:$4 sm:$0xff]  }
 0x149   : > { %4488 = vmatpush1.bf16.msra.mxu1 %v12376_v2  ;;  %2606 = vmatprep.subr.bf16.mxu0 %v12381_v3  ;;  %v12436_v2 = vld [vmem:[%s17128_s3 + $0x470] ss:$8 sps:$4 sm:$0xff]   ;;  %v12441_v3 = vld [vmem:[%s17126_s1 + $0x484] ss:$8 sps:$4 sm:$0xff]  }
 0x14a   : > { %4489 = vmatprep.subr.bf16.mxu1 %v12384_v4  ;;  %v12444_v4 = vld [vmem:[%s17128_s3 + $0x484] ss:$8 sps:$4 sm:$0xff]  }
 0x14c   : > { %2607 = vmatpush1.bf16.msra.mxu0 %v12379_v5  ;;  %v12439_v5 = vld [vmem:[%s17126_s1 + $0x480] ss:$8 sps:$4 sm:$0xff]  }
 0x14d   : > { %4490 = vmatpush1.bf16.msra.mxu1 %v12382_v6  ;;  %2608 = vmatprep.subr.bf16.mxu0 %v12387_v7  ;;  %v12442_v6 = vld [vmem:[%s17128_s3 + $0x480] ss:$8 sps:$4 sm:$0xff]   ;;  %v12447_v7 = vld [vmem:[%s17126_s1 + $0x494] ss:$8 sps:$4 sm:$0xff]  }
 0x14e   : > { %4491 = vmatprep.subr.bf16.mxu1 %v12390_v8  ;;  %v12450_v8 = vld [vmem:[%s17128_s3 + $0x494] ss:$8 sps:$4 sm:$0xff]  }
 0x150   : > { %2609 = vmatpush1.bf16.msra.mxu0 %v12385_v9  ;;  %v12445_v9 = vld [vmem:[%s17126_s1 + $0x490] ss:$8 sps:$4 sm:$0xff]  }
 0x151   : > { %4492 = vmatpush1.bf16.msra.mxu1 %v12388_v10  ;;  %2651 = vmatprep.subr.bf16.mxu0 %v12393_v11  ;;  %v12448_v10 = vld [vmem:[%s17128_s3 + $0x490] ss:$8 sps:$4 sm:$0xff]   ;;  %v12453_v11 = vld [vmem:[%s17126_s1 + $0x4a4] ss:$8 sps:$4 sm:$0xff]  }
 0x152   : > { %4534 = vmatprep.subr.bf16.mxu1 %v12396_v14  ;;  %v12454_v14 = vld [vmem:[%s17128_s3 + $0x4a0] ss:$8 sps:$4 sm:$0xff]  }
 0x153   : > { %2611 = vmatmul.mubr.bf16.vlgmr.msra.gmra.mrb[0].mxu0 %v11488_v17 }
 0x154   : > { %4494 = vmatmul.mubr.bf16.vlgmr.msra.gmra.mrb[0].mxu1 %v11488_v17  ;;  %2652 = vmatpush1.bf16.msra.mxu0 %v12391_v15  ;;  %v12459_v15 = vld [vmem:[%s17126_s1 + $0x4b4] ss:$8 sps:$4 sm:$0xff]   ;;  %v12457_v17 = vld [vmem:[%s17126_s1 + $0x4b0] ss:$8 sps:$4 sm:$0xff]  }
 0x155   : > { %4535 = vmatpush1.bf16.msra.mxu1 %v12394_v16  ;;  %2653 = vmatprep.subr.bf16.mxu0 %v12399_v20  ;;  %v12462_v16 = vld [vmem:[%s17128_s3 + $0x4b4] ss:$8 sps:$4 sm:$0xff]   ;;  %v12468_v20 = vld [vmem:[%s17128_s3 + $0x4c4] ss:$8 sps:$4 sm:$0xff]  }
 0x156   : > { %4536 = vmatprep.subr.bf16.mxu1 %v12402_v21  ;;  %2620 = vmatprep.mubr.bf16.mxu0 %v11503_v24  ;;  %v12463_v21 = vld [vmem:[%s17126_s1 + $0x4c0] ss:$8 sps:$4 sm:$0xff]  }
 0x157   : > { %4503 = vmatprep.mubr.bf16.mxu1 %v11503_v24  ;;  %v12474_v24 = vld [vmem:[%s17128_s3 + $0x4d4] ss:$8 sps:$4 sm:$0xff]  }
 0x158   : > { %2654 = vmatpush1.bf16.msra.mxu0 %v12397_v22  ;;  %v12466_v22 = vld [vmem:[%s17128_s3 + $0x4c0] ss:$8 sps:$4 sm:$0xff]  }
 0x159   : > { %4537 = vmatpush1.bf16.msra.mxu1 %v12400_v23  ;;  %2655 = vmatprep.subr.bf16.mxu0 %v12405_v25  ;;  %v12471_v23 = vld [vmem:[%s17126_s1 + $0x4d4] ss:$8 sps:$4 sm:$0xff]   ;;  %v12469_v25 = vld [vmem:[%s17126_s1 + $0x4d0] ss:$8 sps:$4 sm:$0xff]  }
 0x15a   : > { %4538 = vmatprep.subr.bf16.mxu1 %v12408_v28  ;;  %v12480_v28 = vld [vmem:[%s17128_s3 + $0x4e4] ss:$8 sps:$4 sm:$0xff]  }
 0x15b   : > { %2621 = vmatmul.mubr.bf16.gmra.mrb[4].mxu0 %v11502_v30 }
 0x15c   : > { %4504 = vmatmul.mubr.bf16.gmra.mrb[4].mxu1 %v11502_v30  ;;  %2656 = vmatpush1.bf16.msra.mxu0 %v12403_v32  ;;  %v12478_v30 = vld [vmem:[%s17128_s3 + $0x4e0] ss:$8 sps:$4 sm:$0xff]   ;;  %v12486_v32 = vld [vmem:[%s17128_s3 + $0x4f4] ss:$8 sps:$4 sm:$0xff]  }
 0x15d   : > { %4539 = vmatpush1.bf16.msra.mxu1 %v12406_v33  ;;  %2657 = vmatprep.subr.bf16.mxu0 %v12411_v34  ;;  %v12481_v33 = vld [vmem:[%s17126_s1 + $0x4f0] ss:$8 sps:$4 sm:$0xff]  }
 0x15e   : > { %4540 = vmatprep.subr.bf16.mxu1 %v12414_v35  ;;  %2630 = vmatprep.mubr.bf16.mxu0 %v11517_v37  ;;  %v12484_v34 = vld [vmem:[%s17128_s3 + $0x4f0] ss:$8 sps:$4 sm:$0xff]   ;;  %v451_v35 = vld [vmem:[%s13858_s20 + $0x40] sm:$0xff] }
 0x15f   : > { %4513 = vmatprep.mubr.bf16.mxu1 %v11517_v37  ;;  %v12489_v37 = vld [vmem:[%s17126_s1 + $0x504] ss:$8 sps:$4 sm:$0xff]  }
 0x160   : > { %2658 = vmatpush1.bf16.msra.mxu0 %v12409_v36  ;;  %v465_v36 = vld [vmem:[%s13858_s20 + $0xb0] sm:$0xff] }
 0x161   : > { %4541 = vmatpush1.bf16.msra.mxu1 %v12412_v38  ;;  %2659 = vmatprep.subr.bf16.mxu0 %v12417_v41  ;;  %v12492_v38 = vld [vmem:[%s17128_s3 + $0x504] ss:$8 sps:$4 sm:$0xff]   ;;  %v11490_v41 = vpack.c.bf16 %v465_v36, %v451_v35 }
 0x162   : > { %4542 = vmatprep.subr.bf16.mxu1 %v12420_v42  ;;  %v480_v42 = vld [vmem:[%s13858_s20 + $0x128] sm:$0xff] }
 0x163   : > { %2631 = vmatmul.mubr.bf16.gmra.mrb[8].mxu0 %v11516_v44  ;;  %v12549_v35 = vld [vmem:[%s17126_s1 + $0x5a4] ss:$8 sps:$4 sm:$0xff]  }
 0x164   : > { %4514 = vmatmul.mubr.bf16.gmra.mrb[8].mxu1 %v11516_v44  ;;  %2660 = vmatpush1.bf16.msra.mxu0 %v12415_v46  ;;  %v12495_v44 = vld [vmem:[%s17126_s1 + $0x514] ss:$8 sps:$4 sm:$0xff]   ;;  %v11505_v46 = vpack.c.bf16 %v494_v43, %v480_v42  ;;  %v12552_v36 = vld [vmem:[%s17128_s3 + $0x5a4] ss:$8 sps:$4 sm:$0xff]   ;;  %v12556_v42 = vld [vmem:[%s17128_s3 + $0x5b0] ss:$8 sps:$4 sm:$0xff]  }
 0x165   : > { %4543 = vmatpush1.bf16.msra.mxu1 %v12418_v47  ;;  %2661 = vmatprep.subr.bf16.mxu0 %v12423_v48  ;;  %v12493_v47 = vld [vmem:[%s17126_s1 + $0x510] ss:$8 sps:$4 sm:$0xff]   ;;  %v12561_v43 = vld [vmem:[%s17126_s1 + $0x5c4] ss:$8 sps:$4 sm:$0xff]  }
 0x166   : > { %4544 = vmatprep.subr.bf16.mxu1 %v12426_v49  ;;  %2640 = vmatprep.mubr.bf16.mxu0 %v11531_v50  ;;  %v12496_v48 = vld [vmem:[%s17128_s3 + $0x510] ss:$8 sps:$4 sm:$0xff]   ;;  %v12501_v49 = vld [vmem:[%s17126_s1 + $0x524] ss:$8 sps:$4 sm:$0xff]  }
 0x167   : > { %4523 = vmatprep.mubr.bf16.mxu1 %v11531_v50  ;;  %v479_v50 = vld [vmem:[%s13858_s20 + $0x120] sm:$0xff] }
 0x168   : > { %2662 = vmatpush1.bf16.msra.mxu0 %v12421_v51  ;;  %v493_v51 = vld [vmem:[%s13858_s20 + $0x190] sm:$0xff] }
 0x169   : > { %4545 = vmatpush1.bf16.msra.mxu1 %v12424_v52  ;;  %2663 = vmatprep.subr.bf16.mxu0 %v12429_v55  ;;  %v12504_v52 = vld [vmem:[%s17128_s3 + $0x524] ss:$8 sps:$4 sm:$0xff]   ;;  %v11504_v55 = vpack.c.bf16 %v493_v51, %v479_v50  ;;  %v12568_v50 = vld [vmem:[%s17128_s3 + $0x5d0] ss:$8 sps:$4 sm:$0xff]  }
 0x16a   : > { %4546 = vmatprep.subr.bf16.mxu1 %v12432_v56  ;;  %v508_v56 = vld [vmem:[%s13858_s20 + $0x208] sm:$0xff] }
 0x16b   : > { %2641 = vmatmul.mubr.bf16.gmra.mrb[12].mxu0 %v11530_v59  ;;  %v12573_v51 = vld [vmem:[%s17126_s1 + $0x5e4] ss:$8 sps:$4 sm:$0xff]  }
 0x16c   : > { %4524 = vmatmul.mubr.bf16.gmra.mrb[12].mxu1 %v11530_v59  ;;  %2664 = vmatpush1.bf16.msra.mxu0 %v12427_v57  ;;  %v522_v57 = vld [vmem:[%s13858_s20 + $0x278] sm:$0xff] }
 0x16d   : > { %4547 = vmatpush1.bf16.msra.mxu1 %v12430_v58  ;;  %2665 = vmatprep.subr.bf16.mxu0 %v12435_v62  ;;  %v12507_v58 = vld [vmem:[%s17126_s1 + $0x534] ss:$8 sps:$4 sm:$0xff]   ;;  %v11519_v60 = vpack.c.bf16 %v522_v57, %v508_v56  ;;  %v12508_v62 = vld [vmem:[%s17128_s3 + $0x530] ss:$8 sps:$4 sm:$0xff]  }
 0x16e   : > { %4548 = vmatprep.subr.bf16.mxu1 %v12438_v63  ;;  %2683 = vmatprep.mubr.bf16.mxu0 %v11491_v0  ;;  %v12510_v59 = vld [vmem:[%s17128_s3 + $0x534] ss:$8 sps:$4 sm:$0xff]   ;;  %v507_v63 = vld [vmem:[%s13858_s20 + $0x200] sm:$0xff]  ;;  %v12577_v57 = vld [vmem:[%s17126_s1 + $0x5f0] ss:$8 sps:$4 sm:$0xff]  }
 0x16f   : > { %4566 = vmatprep.mubr.bf16.mxu1 %v11491_v0  ;;  %v521_v0 = vld [vmem:[%s13858_s20 + $0x270] sm:$0xff] }
 0x170   : > { %2666 = vmatpush1.bf16.msra.mxu0 %v12433_v1  ;;  %v12513_v1 = vld [vmem:[%s17126_s1 + $0x544] ss:$8 sps:$4 sm:$0xff]   ;;  %v12582_v56 = vld [vmem:[%s17128_s3 + $0x5f4] ss:$8 sps:$4 sm:$0xff]  }
 0x171   : > { %4549 = vmatpush1.bf16.msra.mxu1 %v12436_v2  ;;  %2667 = vmatprep.subr.bf16.mxu0 %v12441_v3  ;;  %v12516_v2 = vld [vmem:[%s17128_s3 + $0x544] ss:$8 sps:$4 sm:$0xff]   ;;  %v12511_v3 = vld [vmem:[%s17126_s1 + $0x540] ss:$8 sps:$4 sm:$0xff]  }
 0x172   : > { %4550 = vmatprep.subr.bf16.mxu1 %v12444_v4  ;;  %v12514_v4 = vld [vmem:[%s17128_s3 + $0x540] ss:$8 sps:$4 sm:$0xff]  }
 0x174   : > { %2668 = vmatpush1.bf16.msra.mxu0 %v12439_v5  ;;  %v536_v5 = vld [vmem:[%s13858_s20 + $0x2e8] sm:$0xff] }
 0x175   : > { %4551 = vmatpush1.bf16.msra.mxu1 %v12442_v6  ;;  %2669 = vmatprep.subr.bf16.mxu0 %v12447_v7  ;;  %v550_v6 = vld [vmem:[%s13858_s20 + $0x358] sm:$0xff] }
 0x176   : > { %4552 = vmatprep.subr.bf16.mxu1 %v12450_v8  ;;  %v12519_v7 = vld [vmem:[%s17126_s1 + $0x554] ss:$8 sps:$4 sm:$0xff]  }
 0x177   : > { %v12522_v8 = vld [vmem:[%s17128_s3 + $0x554] ss:$8 sps:$4 sm:$0xff]  }
 0x178   : > { %2670 = vmatpush1.bf16.msra.mxu0 %v12445_v9  ;;  %v11518_v9 = vpack.c.bf16 %v521_v0, %v507_v63  ;;  %v482_v63 = vld [vmem:[%s13858_s20 + $0x138] sm:$0xff]  ;;  %v496_v0 = vld [vmem:[%s13858_s20 + $0x1a8] sm:$0xff] }
 0x179   : > { %4553 = vmatpush1.bf16.msra.mxu1 %v12448_v10  ;;  %2671 = vmatprep.subr.bf16.mxu0 %v12453_v11  ;;  %v12517_v10 = vld [vmem:[%s17126_s1 + $0x550] ss:$8 sps:$4 sm:$0xff]  }
 0x17a   : > { %4554 = vmatprep.subr.bf16.mxu1 %v12456_v12  ;;  %v12520_v11 = vld [vmem:[%s17128_s3 + $0x550] ss:$8 sps:$4 sm:$0xff]   ;;  %v11533_v12 = vpack.c.bf16 %v550_v6, %v536_v5  ;;  %v12594_v5 = vld [vmem:[%s17128_s3 + $0x614] ss:$8 sps:$4 sm:$0xff]  }
 0x17b   : > { %v12589_v6 = vld [vmem:[%s17126_s1 + $0x610] ss:$8 sps:$4 sm:$0xff]  }
 0x17c   : > { %2672 = vmatpush1.bf16.msra.mxu0 %v12451_v13  ;;  %v12525_v13 = vld [vmem:[%s17126_s1 + $0x564] ss:$8 sps:$4 sm:$0xff]  }
 0x17d   : > { %4555 = vmatpush1.bf16.msra.mxu1 %v12454_v14  ;;  %2673 = vmatprep.subr.bf16.mxu0 %v12459_v15  ;;  %v12528_v14 = vld [vmem:[%s17128_s3 + $0x564] ss:$8 sps:$4 sm:$0xff]  }
 0x17e   : > { %4556 = vmatprep.subr.bf16.mxu1 %v12462_v16  ;;  %v535_v15 = vld [vmem:[%s13858_s20 + $0x2e0] sm:$0xff]  ;;  %v549_v16 = vld [vmem:[%s13858_s20 + $0x350] sm:$0xff] }
 0x180   : > { %2674 = vmatpush1.bf16.msra.mxu0 %v12457_v17  ;;  %v454_v17 = vld [vmem:[%s13858_s20 + $0x58] sm:$0xff] }
 0x181   : > { %4557 = vmatpush1.bf16.msra.mxu1 %v12460_v18  ;;  %2675 = vmatprep.subr.bf16.mxu0 %v12465_v19  ;;  %v468_v18 = vld [vmem:[%s13858_s20 + $0xc8] sm:$0xff] }
 0x182   : > { %4558 = vmatprep.subr.bf16.mxu1 %v12468_v20  ;;  %v12523_v19 = vld [vmem:[%s17126_s1 + $0x560] ss:$8 sps:$4 sm:$0xff]  }
 0x183   : > { %v12526_v20 = vld [vmem:[%s17128_s3 + $0x560] ss:$8 sps:$4 sm:$0xff]  }
 0x184   : > { %2676 = vmatpush1.bf16.msra.mxu0 %v12463_v21  ;;  %v12531_v21 = vld [vmem:[%s17126_s1 + $0x574] ss:$8 sps:$4 sm:$0xff]  }
 0x185   : > { %4559 = vmatpush1.bf16.msra.mxu1 %v12466_v22  ;;  %2677 = vmatprep.subr.bf16.mxu0 %v12471_v23  ;;  %v12534_v22 = vld [vmem:[%s17128_s3 + $0x574] ss:$8 sps:$4 sm:$0xff]   ;;  %v11532_v23 = vpack.c.bf16 %v549_v16, %v535_v15  ;;  %v12595_v15 = vld [vmem:[%s17126_s1 + $0x620] ss:$8 sps:$4 sm:$0xff]  }
 0x186   : > { %4560 = vmatprep.subr.bf16.mxu1 %v12474_v24  ;;  %v11493_v24 = vpack.c.bf16 %v468_v18, %v454_v17  ;;  %v12598_v16 = vld [vmem:[%s17128_s3 + $0x620] ss:$8 sps:$4 sm:$0xff]   ;;  %v12603_v17 = vld [vmem:[%s17126_s1 + $0x634] ss:$8 sps:$4 sm:$0xff]  }
 0x187   : > { %v12606_v18 = vld [vmem:[%s17128_s3 + $0x634] ss:$8 sps:$4 sm:$0xff]  }
 0x188   : > { %2678 = vmatpush1.bf16.msra.mxu0 %v12469_v25  ;;  %v12529_v25 = vld [vmem:[%s17126_s1 + $0x570] ss:$8 sps:$4 sm:$0xff]  }
 0x189   : > { %4561 = vmatpush1.bf16.msra.mxu1 %v12472_v26  ;;  %2679 = vmatprep.subr.bf16.mxu0 %v12477_v27  ;;  %v12532_v26 = vld [vmem:[%s17128_s3 + $0x570] ss:$8 sps:$4 sm:$0xff]   ;;  %v12537_v27 = vld [vmem:[%s17126_s1 + $0x584] ss:$8 sps:$4 sm:$0xff]  }
 0x18a   : > { %4562 = vmatprep.subr.bf16.mxu1 %v12480_v28  ;;  %v12540_v28 = vld [vmem:[%s17128_s3 + $0x584] ss:$8 sps:$4 sm:$0xff]  }
 0x18c   : > { %2680 = vmatpush1.bf16.msra.mxu0 %v12475_v29  ;;  %v12535_v29 = vld [vmem:[%s17126_s1 + $0x580] ss:$8 sps:$4 sm:$0xff]  }
 0x18d   : > { %4563 = vmatpush1.bf16.msra.mxu1 %v12478_v30  ;;  %2681 = vmatprep.subr.bf16.mxu0 %v12483_v31  ;;  %v12538_v30 = vld [vmem:[%s17128_s3 + $0x580] ss:$8 sps:$4 sm:$0xff]   ;;  %v12543_v31 = vld [vmem:[%s17126_s1 + $0x594] ss:$8 sps:$4 sm:$0xff]  }
 0x18e   : > { %4564 = vmatprep.subr.bf16.mxu1 %v12486_v32  ;;  %v12546_v32 = vld [vmem:[%s17128_s3 + $0x594] ss:$8 sps:$4 sm:$0xff]  }
 0x190   : > { %2682 = vmatpush1.bf16.msra.mxu0 %v12481_v33  ;;  %v12541_v33 = vld [vmem:[%s17126_s1 + $0x590] ss:$8 sps:$4 sm:$0xff]  }
 0x191   : > { %4565 = vmatpush1.bf16.msra.mxu1 %v12484_v34  ;;  %2724 = vmatprep.subr.bf16.mxu0 %v12489_v37  ;;  %v12544_v34 = vld [vmem:[%s17128_s3 + $0x590] ss:$8 sps:$4 sm:$0xff]   ;;  %v12547_v37 = vld [vmem:[%s17126_s1 + $0x5a0] ss:$8 sps:$4 sm:$0xff]  }
 0x192   : > { %4607 = vmatprep.subr.bf16.mxu1 %v12492_v38  ;;  %v12550_v38 = vld [vmem:[%s17128_s3 + $0x5a0] ss:$8 sps:$4 sm:$0xff]  }
 0x193   : > { %2684 = vmatmul.mubr.bf16.vlgmr.msra.gmra.mrb[0].mxu0 %v11490_v41 }
 0x194   : > { %4567 = vmatmul.mubr.bf16.vlgmr.msra.gmra.mrb[0].mxu1 %v11490_v41  ;;  %2725 = vmatpush1.bf16.msra.mxu0 %v12487_v39  ;;  %v12555_v39 = vld [vmem:[%s17126_s1 + $0x5b4] ss:$8 sps:$4 sm:$0xff]   ;;  %v12553_v41 = vld [vmem:[%s17126_s1 + $0x5b0] ss:$8 sps:$4 sm:$0xff]  }
 0x195   : > { %4608 = vmatpush1.bf16.msra.mxu1 %v12490_v40  ;;  %2726 = vmatprep.subr.bf16.mxu0 %v12495_v44  ;;  %v12558_v40 = vld [vmem:[%s17128_s3 + $0x5b4] ss:$8 sps:$4 sm:$0xff]   ;;  %v12564_v44 = vld [vmem:[%s17128_s3 + $0x5c4] ss:$8 sps:$4 sm:$0xff]  }
 0x196   : > { %4609 = vmatprep.subr.bf16.mxu1 %v12498_v45  ;;  %2693 = vmatprep.mubr.bf16.mxu0 %v11505_v46  ;;  %v12559_v45 = vld [vmem:[%s17126_s1 + $0x5c0] ss:$8 sps:$4 sm:$0xff]  }
 0x197   : > { %4576 = vmatprep.mubr.bf16.mxu1 %v11505_v46  ;;  %v12562_v46 = vld [vmem:[%s17128_s3 + $0x5c0] ss:$8 sps:$4 sm:$0xff]  }
 0x198   : > { %2727 = vmatpush1.bf16.msra.mxu0 %v12493_v47  ;;  %v12567_v47 = vld [vmem:[%s17126_s1 + $0x5d4] ss:$8 sps:$4 sm:$0xff]  }
 0x199   : > { %4610 = vmatpush1.bf16.msra.mxu1 %v12496_v48  ;;  %2728 = vmatprep.subr.bf16.mxu0 %v12501_v49  ;;  %v12570_v48 = vld [vmem:[%s17128_s3 + $0x5d4] ss:$8 sps:$4 sm:$0xff]   ;;  %v12565_v49 = vld [vmem:[%s17126_s1 + $0x5d0] ss:$8 sps:$4 sm:$0xff]  }
 0x19a   : > { %4611 = vmatprep.subr.bf16.mxu1 %v12504_v52  ;;  %v12576_v52 = vld [vmem:[%s17128_s3 + $0x5e4] ss:$8 sps:$4 sm:$0xff]  }
 0x19b   : > { %2694 = vmatmul.mubr.bf16.gmra.mrb[4].mxu0 %v11504_v55 }
 0x19c   : > { %4577 = vmatmul.mubr.bf16.gmra.mrb[4].mxu1 %v11504_v55  ;;  %2729 = vmatpush1.bf16.msra.mxu0 %v12499_v53  ;;  %v12571_v53 = vld [vmem:[%s17126_s1 + $0x5e0] ss:$8 sps:$4 sm:$0xff]   ;;  %v12579_v55 = vld [vmem:[%s17126_s1 + $0x5f4] ss:$8 sps:$4 sm:$0xff]  }
 0x19d   : > { %4612 = vmatpush1.bf16.msra.mxu1 %v12502_v54  ;;  %2730 = vmatprep.subr.bf16.mxu0 %v12507_v58  ;;  %v12574_v54 = vld [vmem:[%s17128_s3 + $0x5e0] ss:$8 sps:$4 sm:$0xff]   ;;  %v12580_v58 = vld [vmem:[%s17128_s3 + $0x5f0] ss:$8 sps:$4 sm:$0xff]  }
 0x19e   : > { %4613 = vmatprep.subr.bf16.mxu1 %v12510_v59  ;;  %2703 = vmatprep.mubr.bf16.mxu0 %v11519_v60  ;;  %v453_v59 = vld [vmem:[%s13858_s20 + $0x50] sm:$0xff] }
 0x19f   : > { %4586 = vmatprep.mubr.bf16.mxu1 %v11519_v60  ;;  %v467_v60 = vld [vmem:[%s13858_s20 + $0xc0] sm:$0xff] }
 0x1a0   : > { %2731 = vmatpush1.bf16.msra.mxu0 %v12505_v61  ;;  %v12585_v61 = vld [vmem:[%s17126_s1 + $0x604] ss:$8 sps:$4 sm:$0xff]  }
 0x1a1   : > { %4614 = vmatpush1.bf16.msra.mxu1 %v12508_v62  ;;  %2732 = vmatprep.subr.bf16.mxu0 %v12513_v1  ;;  %v12588_v62 = vld [vmem:[%s17128_s3 + $0x604] ss:$8 sps:$4 sm:$0xff]   ;;  %v12583_v1 = vld [vmem:[%s17126_s1 + $0x600] ss:$8 sps:$4 sm:$0xff]  }
 0x1a2   : > { %4615 = vmatprep.subr.bf16.mxu1 %v12516_v2  ;;  %v12586_v2 = vld [vmem:[%s17128_s3 + $0x600] ss:$8 sps:$4 sm:$0xff]  }
 0x1a3   : > { %2704 = vmatmul.mubr.bf16.gmra.mrb[8].mxu0 %v11518_v9 }
 0x1a4   : > { %4587 = vmatmul.mubr.bf16.gmra.mrb[8].mxu1 %v11518_v9  ;;  %2733 = vmatpush1.bf16.msra.mxu0 %v12511_v3  ;;  %v11492_v3 = vpack.c.bf16 %v467_v60, %v453_v59  ;;  %v481_v9 = vld [vmem:[%s13858_s20 + $0x130] sm:$0xff]  ;;  %v12645_v59 = vld [vmem:[%s17126_s1 + $0x6a4] ss:$8 sps:$4 sm:$0xff]  }
 0x1a5   : > { %4616 = vmatpush1.bf16.msra.mxu1 %v12514_v4  ;;  %2734 = vmatprep.subr.bf16.mxu0 %v12519_v7  ;;  %v12591_v4 = vld [vmem:[%s17126_s1 + $0x614] ss:$8 sps:$4 sm:$0xff]   ;;  %v12592_v7 = vld [vmem:[%s17128_s3 + $0x610] ss:$8 sps:$4 sm:$0xff]   ;;  %v12648_v60 = vld [vmem:[%s17128_s3 + $0x6a4] ss:$8 sps:$4 sm:$0xff]  }
 0x1a6   : > { %4617 = vmatprep.subr.bf16.mxu1 %v12522_v8  ;;  %2713 = vmatprep.mubr.bf16.mxu0 %v11533_v12  ;;  %v11507_v8 = vpack.c.bf16 %v496_v0, %v482_v63  ;;  %v12651_v63 = vld [vmem:[%s17126_s1 + $0x6b4] ss:$8 sps:$4 sm:$0xff]  }
 0x1a7   : > { %4596 = vmatprep.mubr.bf16.mxu1 %v11533_v12  ;;  %v12600_v12 = vld [vmem:[%s17128_s3 + $0x624] ss:$8 sps:$4 sm:$0xff]   ;;  %v12654_v0 = vld [vmem:[%s17128_s3 + $0x6b4] ss:$8 sps:$4 sm:$0xff]  }
 0x1a8   : > { %2735 = vmatpush1.bf16.msra.mxu0 %v12517_v10  ;;  %v495_v10 = vld [vmem:[%s13858_s20 + $0x1a0] sm:$0xff] }
 0x1a9   : > { %4618 = vmatpush1.bf16.msra.mxu1 %v12520_v11  ;;  %2736 = vmatprep.subr.bf16.mxu0 %v12525_v13  ;;  %v12597_v11 = vld [vmem:[%s17126_s1 + $0x624] ss:$8 sps:$4 sm:$0xff]   ;;  %v510_v13 = vld [vmem:[%s13858_s20 + $0x218] sm:$0xff] }
 0x1aa   : > { %4619 = vmatprep.subr.bf16.mxu1 %v12528_v14  ;;  %v524_v14 = vld [vmem:[%s13858_s20 + $0x288] sm:$0xff] }
 0x1ab   : > { %2714 = vmatmul.mubr.bf16.gmra.mrb[12].mxu0 %v11532_v23 }
 0x1ac   : > { %4597 = vmatmul.mubr.bf16.gmra.mrb[12].mxu1 %v11532_v23  ;;  %2737 = vmatpush1.bf16.msra.mxu0 %v12523_v19  ;;  %v11506_v19 = vpack.c.bf16 %v495_v10, %v481_v9  ;;  %v509_v23 = vld [vmem:[%s13858_s20 + $0x210] sm:$0xff] }
 0x1ad   : > { %4620 = vmatpush1.bf16.msra.mxu1 %v12526_v20  ;;  %2738 = vmatprep.subr.bf16.mxu0 %v12531_v21  ;;  %v12601_v20 = vld [vmem:[%s17126_s1 + $0x630] ss:$8 sps:$4 sm:$0xff]  }
 0x1ae   : > { %4621 = vmatprep.subr.bf16.mxu1 %v12534_v22  ;;  %2756 = vmatprep.mubr.bf16.mxu0 %v11493_v24  ;;  %v12604_v21 = vld [vmem:[%s17128_s3 + $0x630] ss:$8 sps:$4 sm:$0xff]   ;;  %v11521_v22 = vpack.c.bf16 %v524_v14, %v510_v13  ;;  %v12667_v13 = vld [vmem:[%s17126_s1 + $0x6e0] ss:$8 sps:$4 sm:$0xff]  }
 0x1af   : > { %4639 = vmatprep.mubr.bf16.mxu1 %v11493_v24  ;;  %v523_v24 = vld [vmem:[%s13858_s20 + $0x280] sm:$0xff]  ;;  %v12661_v9 = vld [vmem:[%s17126_s1 + $0x6d0] ss:$8 sps:$4 sm:$0xff]  }
 0x1b0   : > { %2739 = vmatpush1.bf16.msra.mxu0 %v12529_v25  ;;  %v12609_v25 = vld [vmem:[%s17126_s1 + $0x644] ss:$8 sps:$4 sm:$0xff]   ;;  %v12664_v10 = vld [vmem:[%s17128_s3 + $0x6d0] ss:$8 sps:$4 sm:$0xff]   ;;  %v12670_v14 = vld [vmem:[%s17128_s3 + $0x6e0] ss:$8 sps:$4 sm:$0xff]  }
 0x1b1   : > { %4622 = vmatpush1.bf16.msra.mxu1 %v12532_v26  ;;  %2740 = vmatprep.subr.bf16.mxu0 %v12537_v27  ;;  %v12612_v26 = vld [vmem:[%s17128_s3 + $0x644] ss:$8 sps:$4 sm:$0xff]   ;;  %v538_v27 = vld [vmem:[%s13858_s20 + $0x2f8] sm:$0xff] }
 0x1b2   : > { %4623 = vmatprep.subr.bf16.mxu1 %v12540_v28  ;;  %v552_v28 = vld [vmem:[%s13858_s20 + $0x368] sm:$0xff] }
 0x1b4   : > { %2741 = vmatpush1.bf16.msra.mxu0 %v12535_v29  ;;  %v12607_v29 = vld [vmem:[%s17126_s1 + $0x640] ss:$8 sps:$4 sm:$0xff]  }
 0x1b5   : > { %4624 = vmatpush1.bf16.msra.mxu1 %v12538_v30  ;;  %2742 = vmatprep.subr.bf16.mxu0 %v12543_v31  ;;  %v12610_v30 = vld [vmem:[%s17128_s3 + $0x640] ss:$8 sps:$4 sm:$0xff]   ;;  %v12615_v31 = vld [vmem:[%s17126_s1 + $0x654] ss:$8 sps:$4 sm:$0xff]  }
 0x1b6   : > { %4625 = vmatprep.subr.bf16.mxu1 %v12546_v32  ;;  %v12618_v32 = vld [vmem:[%s17128_s3 + $0x654] ss:$8 sps:$4 sm:$0xff]  }
 0x1b8   : > { %2743 = vmatpush1.bf16.msra.mxu0 %v12541_v33  ;;  %v11520_v33 = vpack.c.bf16 %v523_v24, %v509_v23  ;;  %v12681_v23 = vld [vmem:[#allocation3 + $0xc4] ss:$8 sps:$4 sm:$0xff]  }
 0x1b9   : > { %4626 = vmatpush1.bf16.msra.mxu1 %v12544_v34  ;;  %2744 = vmatprep.subr.bf16.mxu0 %v12549_v35  ;;  %v12613_v34 = vld [vmem:[%s17126_s1 + $0x650] ss:$8 sps:$4 sm:$0xff]   ;;  %v12690_v24 = vld [vmem:[#allocation3 + $0x4] ss:$8 sps:$4 sm:$0xff]  }
 0x1ba   : > { %4627 = vmatprep.subr.bf16.mxu1 %v12552_v36  ;;  %v12616_v35 = vld [vmem:[%s17128_s3 + $0x650] ss:$8 sps:$4 sm:$0xff]   ;;  %v11535_v36 = vpack.c.bf16 %v552_v28, %v538_v27  ;;  %v12688_v27 = vld [vmem:[#allocation3] ss:$8 sps:$4 sm:$0xff]  }
 0x1bc   : > { %2745 = vmatpush1.bf16.msra.mxu0 %v12547_v37  ;;  %v537_v37 = vld [vmem:[%s13858_s20 + $0x2f0] sm:$0xff] }
 0x1bd   : > { %4628 = vmatpush1.bf16.msra.mxu1 %v12550_v38  ;;  %2746 = vmatprep.subr.bf16.mxu0 %v12555_v39  ;;  %v551_v38 = vld [vmem:[%s13858_s20 + $0x360] sm:$0xff] }
 0x1be   : > { %4629 = vmatprep.subr.bf16.mxu1 %v12558_v40  ;;  %v12621_v39 = vld [vmem:[%s17126_s1 + $0x664] ss:$8 sps:$4 sm:$0xff]  }
 0x1bf   : > { %v12624_v40 = vld [vmem:[%s17128_s3 + $0x664] ss:$8 sps:$4 sm:$0xff]  }
 0x1c0   : > { %2747 = vmatpush1.bf16.msra.mxu0 %v12553_v41  ;;  %v456_v41 = vld [vmem:[%s13858_s20 + $0x68] sm:$0xff] }
 0x1c1   : > { %4630 = vmatpush1.bf16.msra.mxu1 %v12556_v42  ;;  %2748 = vmatprep.subr.bf16.mxu0 %v12561_v43  ;;  %v470_v42 = vld [vmem:[%s13858_s20 + $0xd8] sm:$0xff]  ;;  %v12619_v43 = vld [vmem:[%s17126_s1 + $0x660] ss:$8 sps:$4 sm:$0xff]  }
 0x1c2   : > { %4631 = vmatprep.subr.bf16.mxu1 %v12564_v44  ;;  %v12622_v44 = vld [vmem:[%s17128_s3 + $0x660] ss:$8 sps:$4 sm:$0xff]  }
 0x1c4   : > { %2749 = vmatpush1.bf16.msra.mxu0 %v12559_v45  ;;  %v12627_v45 = vld [vmem:[%s17126_s1 + $0x674] ss:$8 sps:$4 sm:$0xff]  }
 0x1c5   : > { %4632 = vmatpush1.bf16.msra.mxu1 %v12562_v46  ;;  %2750 = vmatprep.subr.bf16.mxu0 %v12567_v47  ;;  %v12630_v46 = vld [vmem:[%s17128_s3 + $0x674] ss:$8 sps:$4 sm:$0xff]   ;;  %v11534_v47 = vpack.c.bf16 %v551_v38, %v537_v37  ;;  %v12687_v37 = vld [vmem:[#allocation3 + $0xe4] ss:$8 sps:$4 sm:$0xff]  }
 0x1c6   : > { %4633 = vmatprep.subr.bf16.mxu1 %v12570_v48  ;;  %v12625_v48 = vld [vmem:[%s17126_s1 + $0x670] ss:$8 sps:$4 sm:$0xff]   ;;  %v12702_v38 = vld [vmem:[#allocation3 + $0x24] ss:$8 sps:$4 sm:$0xff]  }
 0x1c8   : > { %2751 = vmatpush1.bf16.msra.mxu0 %v12565_v49  ;;  %v12628_v49 = vld [vmem:[%s17128_s3 + $0x670] ss:$8 sps:$4 sm:$0xff]  }
 0x1c9   : > { %4634 = vmatpush1.bf16.msra.mxu1 %v12568_v50  ;;  %2752 = vmatprep.subr.bf16.mxu0 %v12573_v51  ;;  %v11495_v50 = vpack.c.bf16 %v470_v42, %v456_v41  ;;  %v12633_v51 = vld [vmem:[%s17126_s1 + $0x684] ss:$8 sps:$4 sm:$0xff]   ;;  %v12700_v41 = vld [vmem:[#allocation3 + $0x20] ss:$8 sps:$4 sm:$0xff]  }
 0x1ca   : > { %4635 = vmatprep.subr.bf16.mxu1 %v12576_v52  ;;  %v12636_v52 = vld [vmem:[%s17128_s3 + $0x684] ss:$8 sps:$4 sm:$0xff]  }
 0x1cc   : > { %2753 = vmatpush1.bf16.msra.mxu0 %v12571_v53  ;;  %v12631_v53 = vld [vmem:[%s17126_s1 + $0x680] ss:$8 sps:$4 sm:$0xff]  }
 0x1cd   : > { %4636 = vmatpush1.bf16.msra.mxu1 %v12574_v54  ;;  %2754 = vmatprep.subr.bf16.mxu0 %v12579_v55  ;;  %v12634_v54 = vld [vmem:[%s17128_s3 + $0x680] ss:$8 sps:$4 sm:$0xff]   ;;  %v12639_v55 = vld [vmem:[%s17126_s1 + $0x694] ss:$8 sps:$4 sm:$0xff]  }
 0x1ce   : > { %4637 = vmatprep.subr.bf16.mxu1 %v12582_v56  ;;  %v12642_v56 = vld [vmem:[%s17128_s3 + $0x694] ss:$8 sps:$4 sm:$0xff]  }
 0x1d0   : > { %2755 = vmatpush1.bf16.msra.mxu0 %v12577_v57  ;;  %v12637_v57 = vld [vmem:[%s17126_s1 + $0x690] ss:$8 sps:$4 sm:$0xff]  }
 0x1d1   : > { %4638 = vmatpush1.bf16.msra.mxu1 %v12580_v58  ;;  %2797 = vmatprep.subr.bf16.mxu0 %v12585_v61  ;;  %v12640_v58 = vld [vmem:[%s17128_s3 + $0x690] ss:$8 sps:$4 sm:$0xff]   ;;  %v12643_v61 = vld [vmem:[%s17126_s1 + $0x6a0] ss:$8 sps:$4 sm:$0xff]  }
 0x1d2   : > { %4680 = vmatprep.subr.bf16.mxu1 %v12588_v62  ;;  %v12646_v62 = vld [vmem:[%s17128_s3 + $0x6a0] ss:$8 sps:$4 sm:$0xff]  }
 0x1d3   : > { %2757 = vmatmul.mubr.bf16.vlgmr.msra.gmra.mrb[0].mxu0 %v11492_v3 }
 0x1d4   : > { %4640 = vmatmul.mubr.bf16.vlgmr.msra.gmra.mrb[0].mxu1 %v11492_v3  ;;  %2798 = vmatpush1.bf16.msra.mxu0 %v12583_v1  ;;  %v12649_v1 = vld [vmem:[%s17126_s1 + $0x6b0] ss:$8 sps:$4 sm:$0xff]   ;;  %v12657_v3 = vld [vmem:[%s17126_s1 + $0x6c4] ss:$8 sps:$4 sm:$0xff]  }
 0x1d5   : > { %4681 = vmatpush1.bf16.msra.mxu1 %v12586_v2  ;;  %2799 = vmatprep.subr.bf16.mxu0 %v12591_v4  ;;  %v12652_v2 = vld [vmem:[%s17128_s3 + $0x6b0] ss:$8 sps:$4 sm:$0xff]   ;;  %v12660_v4 = vld [vmem:[%s17128_s3 + $0x6c4] ss:$8 sps:$4 sm:$0xff]  }
 0x1d6   : > { %4682 = vmatprep.subr.bf16.mxu1 %v12594_v5  ;;  %2766 = vmatprep.mubr.bf16.mxu0 %v11507_v8  ;;  %v12655_v5 = vld [vmem:[%s17126_s1 + $0x6c0] ss:$8 sps:$4 sm:$0xff]  }
 0x1d7   : > { %4649 = vmatprep.mubr.bf16.mxu1 %v11507_v8  ;;  %v12666_v8 = vld [vmem:[%s17128_s3 + $0x6d4] ss:$8 sps:$4 sm:$0xff]  }
 0x1d8   : > { %2800 = vmatpush1.bf16.msra.mxu0 %v12589_v6  ;;  %v12658_v6 = vld [vmem:[%s17128_s3 + $0x6c0] ss:$8 sps:$4 sm:$0xff]  }
 0x1d9   : > { %4683 = vmatpush1.bf16.msra.mxu1 %v12592_v7  ;;  %2801 = vmatprep.subr.bf16.mxu0 %v12597_v11  ;;  %v12663_v7 = vld [vmem:[%s17126_s1 + $0x6d4] ss:$8 sps:$4 sm:$0xff]   ;;  %v12669_v11 = vld [vmem:[%s17126_s1 + $0x6e4] ss:$8 sps:$4 sm:$0xff]  }
 0x1da   : > { %4684 = vmatprep.subr.bf16.mxu1 %v12600_v12  ;;  %v12672_v12 = vld [vmem:[%s17128_s3 + $0x6e4] ss:$8 sps:$4 sm:$0xff]  }
 0x1db   : > { %2767 = vmatmul.mubr.bf16.gmra.mrb[4].mxu0 %v11506_v19 }
 0x1dc   : > { %4650 = vmatmul.mubr.bf16.gmra.mrb[4].mxu1 %v11506_v19  ;;  %2802 = vmatpush1.bf16.msra.mxu0 %v12595_v15  ;;  %v12675_v15 = vld [vmem:[%s17126_s1 + $0x6f4] ss:$8 sps:$4 sm:$0xff]   ;;  %v455_v19 = vld [vmem:[%s13858_s20 + $0x60] sm:$0xff] }
 0x1dd   : > { %4685 = vmatpush1.bf16.msra.mxu1 %v12598_v16  ;;  %2803 = vmatprep.subr.bf16.mxu0 %v12603_v17  ;;  %v12678_v16 = vld [vmem:[%s17128_s3 + $0x6f4] ss:$8 sps:$4 sm:$0xff]   ;;  %v12673_v17 = vld [vmem:[%s17126_s1 + $0x6f0] ss:$8 sps:$4 sm:$0xff]  }
 0x1de   : > { %4686 = vmatprep.subr.bf16.mxu1 %v12606_v18  ;;  %2776 = vmatprep.mubr.bf16.mxu0 %v11521_v22  ;;  %v12676_v18 = vld [vmem:[%s17128_s3 + $0x6f0] ss:$8 sps:$4 sm:$0xff]  }
 0x1df   : > { %4659 = vmatprep.mubr.bf16.mxu1 %v11521_v22  ;;  %v498_v22 = vld [vmem:[%s13858_s20 + $0x1b8] sm:$0xff] }
 0x1e0   : > { %2804 = vmatpush1.bf16.msra.mxu0 %v12601_v20  ;;  %v469_v20 = vld [vmem:[%s13858_s20 + $0xd0] sm:$0xff] }
 0x1e1   : > { %4687 = vmatpush1.bf16.msra.mxu1 %v12604_v21  ;;  %2805 = vmatprep.subr.bf16.mxu0 %v12609_v25  ;;  %v484_v21 = vld [vmem:[%s13858_s20 + $0x148] sm:$0xff]  ;;  %v11494_v25 = vpack.c.bf16 %v469_v20, %v455_v19  ;;  %v12744_v19 = vld [vmem:[#allocation3 + $0x94] ss:$8 sps:$4 sm:$0xff]   ;;  %v12742_v20 = vld [vmem:[#allocation3 + $0x90] ss:$8 sps:$4 sm:$0xff]  }
 0x1e2   : > { %4688 = vmatprep.subr.bf16.mxu1 %v12612_v26  ;;  %v12679_v26 = vld [vmem:[#allocation3 + $0xc0] ss:$8 sps:$4 sm:$0xff]   ;;  %v11509_v28 = vpack.c.bf16 %v498_v22, %v484_v21  ;;  %v12747_v21 = vld [vmem:[#allocation3 + $0xa4] ss:$8 sps:$4 sm:$0xff]  }
 0x1e3   : > { %2777 = vmatmul.mubr.bf16.gmra.mrb[8].mxu0 %v11520_v33  ;;  %v12745_v22 = vld [vmem:[#allocation3 + $0xa0] ss:$8 sps:$4 sm:$0xff]  }
 0x1e4   : > { %4660 = vmatmul.mubr.bf16.gmra.mrb[8].mxu1 %v11520_v33  ;;  %2806 = vmatpush1.bf16.msra.mxu0 %v12607_v29  ;;  %v12684_v29 = vld [vmem:[#allocation3 + $0xd4] ss:$8 sps:$4 sm:$0xff]   ;;  %v512_v33 = vld [vmem:[%s13858_s20 + $0x228] sm:$0xff] }
 0x1e5   : > { %4689 = vmatpush1.bf16.msra.mxu1 %v12610_v30  ;;  %2807 = vmatprep.subr.bf16.mxu0 %v12615_v31  ;;  %v12696_v30 = vld [vmem:[#allocation3 + $0x14] ss:$8 sps:$4 sm:$0xff]   ;;  %v483_v31 = vld [vmem:[%s13858_s20 + $0x140] sm:$0xff] }
 0x1e6   : > { %4690 = vmatprep.subr.bf16.mxu1 %v12618_v32  ;;  %2786 = vmatprep.mubr.bf16.mxu0 %v11535_v36  ;;  %v497_v32 = vld [vmem:[%s13858_s20 + $0x1b0] sm:$0xff] }
 0x1e7   : > { %4669 = vmatprep.mubr.bf16.mxu1 %v11535_v36  ;;  %v12694_v36 = vld [vmem:[#allocation3 + $0x10] ss:$8 sps:$4 sm:$0xff]  }
 0x1e8   : > { %2808 = vmatpush1.bf16.msra.mxu0 %v12613_v34  ;;  %v526_v34 = vld [vmem:[%s13858_s20 + $0x298] sm:$0xff] }
 0x1e9   : > { %4691 = vmatpush1.bf16.msra.mxu1 %v12616_v35  ;;  %2809 = vmatprep.subr.bf16.mxu0 %v12621_v39  ;;  %v12682_v35 = vld [vmem:[#allocation3 + $0xd0] ss:$8 sps:$4 sm:$0xff]   ;;  %v11508_v39 = vpack.c.bf16 %v497_v32, %v483_v31  ;;  %v11523_v42 = vpack.c.bf16 %v526_v34, %v512_v33 }
 0x1ea   : > { %4692 = vmatprep.subr.bf16.mxu1 %v12624_v40  ;;  %v12685_v40 = vld [vmem:[#allocation3 + $0xe0] ss:$8 sps:$4 sm:$0xff]  }
 0x1eb   : > { %2787 = vmatmul.mubr.bf16.gmra.mrb[12].mxu0 %v11534_v47 }
 0x1ec   : > { %4670 = vmatmul.mubr.bf16.gmra.mrb[12].mxu1 %v11534_v47  ;;  %2810 = vmatpush1.bf16.msra.mxu0 %v12619_v43  ;;  %v12693_v43 = vld [vmem:[#allocation3 + $0xf4] ss:$8 sps:$4 sm:$0xff]   ;;  %v540_v47 = vld [vmem:[%s13858_s20 + $0x308] sm:$0xff] }
 0x1ed   : > { %4693 = vmatpush1.bf16.msra.mxu1 %v12622_v44  ;;  %2811 = vmatprep.subr.bf16.mxu0 %v12627_v45  ;;  %v12708_v44 = vld [vmem:[#allocation3 + $0x34] ss:$8 sps:$4 sm:$0xff]   ;;  %v511_v45 = vld [vmem:[%s13858_s20 + $0x220] sm:$0xff] }
 0x1ee   : > { %4694 = vmatprep.subr.bf16.mxu1 %v12630_v46  ;;  %2829 = vmatprep.mubr.bf16.mxu0 %v11495_v50  ;;  %v525_v46 = vld [vmem:[%s13858_s20 + $0x290] sm:$0xff] }
 0x1ef   : > { %4712 = vmatprep.mubr.bf16.mxu1 %v11495_v50  ;;  %v12706_v50 = vld [vmem:[#allocation3 + $0x30] ss:$8 sps:$4 sm:$0xff]  }
 0x1f0   : > { %2812 = vmatpush1.bf16.msra.mxu0 %v12625_v48  ;;  %v554_v48 = vld [vmem:[%s13858_s20 + $0x378] sm:$0xff] }
 0x1f1   : > { %4695 = vmatpush1.bf16.msra.mxu1 %v12628_v49  ;;  %2813 = vmatprep.subr.bf16.mxu0 %v12633_v51  ;;  %v12691_v49 = vld [vmem:[#allocation3 + $0xf0] ss:$8 sps:$4 sm:$0xff]   ;;  %v12699_v51 = vld [vmem:[#allocation3 + $0x104] ss:$8 sps:$4 sm:$0xff]  }
 0x1f2   : > { %4696 = vmatprep.subr.bf16.mxu1 %v12636_v52  ;;  %v12714_v52 = vld [vmem:[#allocation3 + $0x44] ss:$8 sps:$4 sm:$0xff]  }
 0x1f4   : > { %2814 = vmatpush1.bf16.msra.mxu0 %v12631_v53  ;;  %v11522_v53 = vpack.c.bf16 %v525_v46, %v511_v45 }
 0x1f5   : > { %4697 = vmatpush1.bf16.msra.mxu1 %v12634_v54  ;;  %2815 = vmatprep.subr.bf16.mxu0 %v12639_v55  ;;  %v12697_v54 = vld [vmem:[#allocation3 + $0x100] ss:$8 sps:$4 sm:$0xff]  }
 0x1f6   : > { %4698 = vmatprep.subr.bf16.mxu1 %v12642_v56  ;;  %v12712_v55 = vld [vmem:[#allocation3 + $0x40] ss:$8 sps:$4 sm:$0xff]   ;;  %v11537_v56 = vpack.c.bf16 %v554_v48, %v540_v47 }
 0x1f8   : > { %2816 = vmatpush1.bf16.msra.mxu0 %v12637_v57  ;;  %v12705_v57 = vld [vmem:[#allocation3 + $0x114] ss:$8 sps:$4 sm:$0xff]  }
 0x1f9   : > { %4699 = vmatpush1.bf16.msra.mxu1 %v12640_v58  ;;  %2817 = vmatprep.subr.bf16.mxu0 %v12645_v59  ;;  %v12720_v58 = vld [vmem:[#allocation3 + $0x54] ss:$8 sps:$4 sm:$0xff]   ;;  %v539_v59 = vld [vmem:[%s13858_s20 + $0x300] sm:$0xff] }
 0x1fa   : > { %4700 = vmatprep.subr.bf16.mxu1 %v12648_v60  ;;  %v553_v60 = vld [vmem:[%s13858_s20 + $0x370] sm:$0xff] }
 0x1fc   : > { %2818 = vmatpush1.bf16.msra.mxu0 %v12643_v61  ;;  %v12703_v61 = vld [vmem:[#allocation3 + $0x110] ss:$8 sps:$4 sm:$0xff]  }
 0x1fd   : > { %4701 = vmatpush1.bf16.msra.mxu1 %v12646_v62  ;;  %2819 = vmatprep.subr.bf16.mxu0 %v12651_v63  ;;  %v12718_v62 = vld [vmem:[#allocation3 + $0x50] ss:$8 sps:$4 sm:$0xff]   ;;  %v12711_v63 = vld [vmem:[#allocation3 + $0x124] ss:$8 sps:$4 sm:$0xff]  }
 0x1fe   : > { %4702 = vmatprep.subr.bf16.mxu1 %v12654_v0  ;;  %v12726_v0 = vld [vmem:[#allocation3 + $0x64] ss:$8 sps:$4 sm:$0xff]  }
 0x200   : > { %2820 = vmatpush1.bf16.msra.mxu0 %v12649_v1  ;;  %v11536_v1 = vpack.c.bf16 %v553_v60, %v539_v59 }
 0x201   : > { %4703 = vmatpush1.bf16.msra.mxu1 %v12652_v2  ;;  %2821 = vmatprep.subr.bf16.mxu0 %v12657_v3  ;;  %v12709_v2 = vld [vmem:[#allocation3 + $0x120] ss:$8 sps:$4 sm:$0xff]  }
 0x202   : > { %4704 = vmatprep.subr.bf16.mxu1 %v12660_v4  ;;  %v12724_v3 = vld [vmem:[#allocation3 + $0x60] ss:$8 sps:$4 sm:$0xff]   ;;  %v12717_v4 = vld [vmem:[#allocation3 + $0x134] ss:$8 sps:$4 sm:$0xff]  }
 0x204   : > { %2822 = vmatpush1.bf16.msra.mxu0 %v12655_v5  ;;  %v12715_v5 = vld [vmem:[#allocation3 + $0x130] ss:$8 sps:$4 sm:$0xff]  }
 0x205   : > { %4705 = vmatpush1.bf16.msra.mxu1 %v12658_v6  ;;  %2823 = vmatprep.subr.bf16.mxu0 %v12663_v7  ;;  %v12723_v6 = vld [vmem:[#allocation3 + $0x144] ss:$8 sps:$4 sm:$0xff]   ;;  %v12721_v7 = vld [vmem:[#allocation3 + $0x140] ss:$8 sps:$4 sm:$0xff]  }
 0x206   : > { %4706 = vmatprep.subr.bf16.mxu1 %v12666_v8  ;;  %v12729_v8 = vld [vmem:[#allocation3 + $0x154] ss:$8 sps:$4 sm:$0xff]  }
 0x208   : > { %2824 = vmatpush1.bf16.msra.mxu0 %v12661_v9  ;;  %v12727_v9 = vld [vmem:[#allocation3 + $0x150] ss:$8 sps:$4 sm:$0xff]  }
 0x209   : > { %4707 = vmatpush1.bf16.msra.mxu1 %v12664_v10  ;;  %2825 = vmatprep.subr.bf16.mxu0 %v12669_v11  ;;  %v12732_v10 = vld [vmem:[#allocation3 + $0x74] ss:$8 sps:$4 sm:$0xff]   ;;  %v12730_v11 = vld [vmem:[#allocation3 + $0x70] ss:$8 sps:$4 sm:$0xff]  }
 0x20a   : > { %4708 = vmatprep.subr.bf16.mxu1 %v12672_v12  ;;  %v12735_v12 = vld [vmem:[#allocation3 + $0x164] ss:$8 sps:$4 sm:$0xff]  }
 0x20c   : > { %2826 = vmatpush1.bf16.msra.mxu0 %v12667_v13  ;;  %v12733_v13 = vld [vmem:[#allocation3 + $0x160] ss:$8 sps:$4 sm:$0xff]  }
 0x20d   : > { %4709 = vmatpush1.bf16.msra.mxu1 %v12670_v14  ;;  %2827 = vmatprep.subr.bf16.mxu0 %v12675_v15  ;;  %v12738_v14 = vld [vmem:[#allocation3 + $0x84] ss:$8 sps:$4 sm:$0xff]   ;;  %v12736_v15 = vld [vmem:[#allocation3 + $0x80] ss:$8 sps:$4 sm:$0xff]  }
 0x20e   : > { %4710 = vmatprep.subr.bf16.mxu1 %v12678_v16  ;;  %v13531_v16 = vmov 0.0  }
 0x20f   : > { %4769 = vst [vmem:[#allocation2] sm:$0xff] %v13531_v16  ;;  %4772 = vst [vmem:[#allocation2 + $0x10] sm:$0x3] %v13531_v16 }
 0x210   : > { %2828 = vmatpush1.bf16.msra.mxu0 %v12673_v17  ;;  %4775 = vst [vmem:[#allocation2 + $0x20] sm:$0xff] %v13531_v16  ;;  %4777 = vst [vmem:[#allocation2 + $0x30] sm:$0x3] %v13531_v16  ;;  %v12741_v17 = vld [vmem:[#allocation3 + $0x174] ss:$8 sps:$4 sm:$0xff]  }
 0x211   : > { %4711 = vmatpush1.bf16.msra.mxu1 %v12676_v18  ;;  %5440 = vmatprep.subr.bf16.mxu0 %v12690_v24  ;;  %4779 = vst [vmem:[#allocation2 + $0x40] sm:$0xff] %v13531_v16  ;;  %4781 = vst [vmem:[#allocation2 + $0x50] sm:$0x3] %v13531_v16  ;;  %v12739_v18 = vld [vmem:[#allocation3 + $0x170] ss:$8 sps:$4 sm:$0xff]  }
 0x212   : > { %5235 = vmatprep.subr.bf16.mxu1 %v12681_v23  ;;  %4783 = vst [vmem:[#allocation2 + $0x60] sm:$0xff] %v13531_v16  ;;  %4785 = vst [vmem:[#allocation2 + $0x70] sm:$0x3] %v13531_v16  ;;  %v12750_v23 = vld [vmem:[#allocation3 + $0xb4] ss:$8 sps:$4 sm:$0xff]  }
 0x213   : > { %2830 = vmatmul.mubr.bf16.vlgmr.msra.gmra.mrb[0].mxu0 %v11494_v25  ;;  %4787 = vst [vmem:[#allocation2 + $0x80] sm:$0xff] %v13531_v16  ;;  %4789 = vst [vmem:[#allocation2 + $0x90] sm:$0x3] %v13531_v16  ;;  %v12748_v24 = vld [vmem:[#allocation3 + $0xb0] ss:$8 sps:$4 sm:$0xff]  }
 0x214   : > { %4713 = vmatmul.mubr.bf16.vlgmr.msra.gmra.mrb[0].mxu1 %v11494_v25  ;;  %2839 = vmatprep.mubr.bf16.mxu0 %v11509_v28  ;;  %4791 = vst [vmem:[#allocation2 + $0xa0] sm:$0xff] %v13531_v16  ;;  %4793 = vst [vmem:[#allocation2 + $0xb0] sm:$0x3] %v13531_v16  ;;  %v12753_v25 = vld [vmem:[#allocation3 + $0x184] ss:$8 sps:$4 sm:$0xff]  }
 0x215   : > { %4722 = vmatprep.mubr.bf16.mxu1 %v11509_v28  ;;  %5236 = vmatpush1.bf16.msra.mxu1 %v12679_v26  ;;  %4795 = vst [vmem:[#allocation2 + $0xc0] sm:$0xff] %v13531_v16  ;;  %4797 = vst [vmem:[#allocation2 + $0xd0] sm:$0x3] %v13531_v16  ;;  %v1117_v26 = vlaneseq }
 0x216   : > { %5441 = vmatpush1.bf16.msra.mxu0 %v12688_v27  ;;  %5237 = vmatprep.subr.bf16.mxu1 %v12684_v29  ;;  %4799 = vst [vmem:[#allocation2 + $0xe0] sm:$0xff] %v13531_v16  ;;  %4801 = vst [vmem:[#allocation2 + $0xf0] sm:$0x3] %v13531_v16  ;;  %v1115_v29 = vld [vmem:[%s17127_s2] sm:$0x3] }
 0x217   : > { %5442 = vmatprep.subr.bf16.mxu0 %v12696_v30  ;;  %4771 = vst.msk [vmem:[#allocation2 + $0x8] sm:$0xff] %vm4770_vm0, %v13531_v16  ;;  %4776 = vst.msk [vmem:[#allocation2 + $0x28] sm:$0xff] %vm4770_vm0, %v13531_v16  ;;  %v15200_v27 = vshrl.u32 %v1117_v26, 7  ;;  %v3110_v30 = vld [vmem:[%s17129_s4] sm:$0x3] }
 0x218   : > { %4774 = vst.msk [vmem:[#allocation2 + $0x18] sm:$0x3] %vm4773_vm1, %v13531_v16  ;;  %4778 = vst.msk [vmem:[#allocation2 + $0x38] sm:$0x3] %vm4773_vm1, %v13531_v16 }
 0x219   : > { %5238 = vmatpush1.bf16.msra.mxu1 %v12682_v35  ;;  %4780 = vst.msk [vmem:[#allocation2 + $0x48] sm:$0xff] %vm4770_vm0, %v13531_v16  ;;  %4784 = vst.msk [vmem:[#allocation2 + $0x68] sm:$0xff] %vm4770_vm0, %v13531_v16  ;;  %v15203_v28 = vsub.s32 0, %v15200_v27  ;;  %v15212_v31 = vsub.s32 1, %v15200_v27 }
 0x21a   : > { %5443 = vmatpush1.bf16.msra.mxu0 %v12694_v36  ;;  %5239 = vmatprep.subr.bf16.mxu1 %v12687_v37  ;;  %4782 = vst.msk [vmem:[#allocation2 + $0x58] sm:$0x3] %vm4773_vm1, %v13531_v16  ;;  %4786 = vst.msk [vmem:[#allocation2 + $0x78] sm:$0x3] %vm4773_vm1, %v13531_v16 }
 0x21b   : > { %5444 = vmatprep.subr.bf16.mxu0 %v12702_v38  ;;  %2840 = vmatmul.mubr.bf16.gmra.mrb[4].mxu0 %v11508_v39  ;;  %4788 = vst.msk [vmem:[#allocation2 + $0x88] sm:$0xff] %vm4770_vm0, %v13531_v16  ;;  %4792 = vst.msk [vmem:[#allocation2 + $0xa8] sm:$0xff] %vm4770_vm0, %v13531_v16  ;;  %v15215_v32 = vrot.slane %v1115_v29, %v15203_v28  ;;  %v15218_v33 = vrot.slane %v3110_v30, %v15203_v28 }
 0x21c   : > { %4723 = vmatmul.mubr.bf16.gmra.mrb[4].mxu1 %v11508_v39  ;;  %2849 = vmatprep.mubr.bf16.mxu0 %v11523_v42  ;;  %4790 = vst.msk [vmem:[#allocation2 + $0x98] sm:$0x3] %vm4773_vm1, %v13531_v16  ;;  %4794 = vst.msk [vmem:[#allocation2 + $0xb8] sm:$0x3] %vm4773_vm1, %v13531_v16  ;;  %v15221_v34 = vrot.slane %v1115_v29, %v15212_v31  ;;  %v15224_v35 = vrot.slane %v3110_v30, %v15212_v31 }
 0x21d   : > { %4732 = vmatprep.mubr.bf16.mxu1 %v11523_v42  ;;  %5240 = vmatpush1.bf16.msra.mxu1 %v12685_v40  ;;  %4796 = vst.msk [vmem:[#allocation2 + $0xc8] sm:$0xff] %vm4770_vm0, %v13531_v16  ;;  %4800 = vst.msk [vmem:[#allocation2 + $0xe8] sm:$0xff] %vm4770_vm0, %v13531_v16 }
 0x21e   : > { %5445 = vmatpush1.bf16.msra.mxu0 %v12700_v41  ;;  %5241 = vmatprep.subr.bf16.mxu1 %v12693_v43  ;;  %4798 = vst.msk [vmem:[#allocation2 + $0xd8] sm:$0x3] %vm4773_vm1, %v13531_v16  ;;  %4802 = vst.msk [vmem:[#allocation2 + $0xf8] sm:$0x3] %vm4773_vm1, %v13531_v16 }
 0x21f   : > { %5446 = vmatprep.subr.bf16.mxu0 %v12708_v44 }
 0x221   : > { %5242 = vmatpush1.bf16.msra.mxu1 %v12691_v49 }
 0x222   : > { %5447 = vmatpush1.bf16.msra.mxu0 %v12706_v50  ;;  %5243 = vmatprep.subr.bf16.mxu1 %v12699_v51 }
 0x223   : > { %5448 = vmatprep.subr.bf16.mxu0 %v12714_v52  ;;  %2850 = vmatmul.mubr.bf16.gmra.mrb[8].mxu0 %v11522_v53 }
 0x224   : > { %4733 = vmatmul.mubr.bf16.gmra.mrb[8].mxu1 %v11522_v53  ;;  %2859 = vmatprep.mubr.bf16.mxu0 %v11537_v56 }
 0x225   : > { %4742 = vmatprep.mubr.bf16.mxu1 %v11537_v56  ;;  %5244 = vmatpush1.bf16.msra.mxu1 %v12697_v54 }
 0x226   : > { %5449 = vmatpush1.bf16.msra.mxu0 %v12712_v55  ;;  %5245 = vmatprep.subr.bf16.mxu1 %v12705_v57 }
 0x227   : > { %5450 = vmatprep.subr.bf16.mxu0 %v12720_v58 }
 0x229   : > { %5246 = vmatpush1.bf16.msra.mxu1 %v12703_v61 }
 0x22a   : > { %5451 = vmatpush1.bf16.msra.mxu0 %v12718_v62  ;;  %5247 = vmatprep.subr.bf16.mxu1 %v12711_v63 }
 0x22b   : > { %5452 = vmatprep.subr.bf16.mxu0 %v12726_v0  ;;  %2860 = vmatmul.mubr.bf16.gmra.mrb[12].mxu0 %v11536_v1 }
 0x22c   : > { %4743 = vmatmul.mubr.bf16.gmra.mrb[12].mxu1 %v11536_v1 }
 0x22d   : > { %5248 = vmatpush1.bf16.msra.mxu1 %v12709_v2 }
 0x22e   : > { %5453 = vmatpush1.bf16.msra.mxu0 %v12724_v3  ;;  %5249 = vmatprep.subr.bf16.mxu1 %v12717_v4 }
 0x22f   : > { %5454 = vmatprep.subr.bf16.mxu0 %v12732_v10 }
 0x231   : > { %5250 = vmatpush1.bf16.msra.mxu1 %v12715_v5 }
 0x232   : > { %5251 = vmatprep.subr.bf16.mxu1 %v12723_v6  ;;  %5455 = vmatpush1.bf16.msra.mxu0 %v12730_v11 }
 0x233   : > { %5456 = vmatprep.subr.bf16.mxu0 %v12738_v14 }
 0x235   : > { %5252 = vmatpush1.bf16.msra.mxu1 %v12721_v7 }
 0x236   : > { %5253 = vmatprep.subr.bf16.mxu1 %v12729_v8  ;;  %5457 = vmatpush1.bf16.msra.mxu0 %v12736_v15 }
 0x237   : > { %5458 = vmatprep.subr.bf16.mxu0 %v12744_v19 }
 0x239   : > { %5254 = vmatpush1.bf16.msra.mxu1 %v12727_v9 }
 0x23a   : > { %5255 = vmatprep.subr.bf16.mxu1 %v12735_v12  ;;  %5459 = vmatpush1.bf16.msra.mxu0 %v12742_v20 }
 0x23b   : > { %5460 = vmatprep.subr.bf16.mxu0 %v12747_v21 }
 0x23d   : > { %5256 = vmatpush1.bf16.msra.mxu1 %v12733_v13 }
 0x23e   : > { %5257 = vmatprep.subr.bf16.mxu1 %v12741_v17  ;;  %5461 = vmatpush1.bf16.msra.mxu0 %v12745_v22 }
 0x23f   : > { %5462 = vmatprep.subr.bf16.mxu0 %v12750_v23 }
 0x241   : > { %5258 = vmatpush1.bf16.msra.mxu1 %v12739_v18 }
 0x242   : > { %5463 = vmatpush1.bf16.msra.mxu0 %v12748_v24 }
 0x243   : > { %5670 = vmatprep.subr.bf16.mxu0 %v12753_v25 }
 0x2e6   : > { %v2831_v36 = vpop.f32.mrb[0].mxu0 }
 0x2e7   : > { %v4714_v37 = vpop.f32.mrb[0].mxu1  ;;  %v11538_v38 = vadd.f32 %v2831_v36, %v15215_v32  ;;  %v2833_v40 = vpop.f32.mrb[1].mxu0 }
 0x2e8   : > { %v11554_v39 = vadd.f32 %v4714_v37, %v15218_v33  ;;  %v4716_v41 = vpop.f32.mrb[1].mxu1  ;;  %v11539_v42 = vadd.f32 %v2833_v40, %v15221_v34  ;;  %v2835_v44 = vpop.f32.mrb[2].mxu0 }
 0x2e9   : > { %v11555_v43 = vadd.f32 %v4716_v41, %v15224_v35  ;;  %v4718_v45 = vpop.f32.mrb[2].mxu1  ;;  %v11540_v47 = vadd.f32 %v2835_v44, %v15215_v32  ;;  %v2837_v49 = vpop.f32.mrb[3].mxu0  ;;  %v2870_v54 = vmax.f32 %v11538_v38, 0.0 }
 0x2ea   : > { %v4753_v46 = vmax.f32 %v11554_v39, 0.0  ;;  %v11556_v48 = vadd.f32 %v4718_v45, %v15218_v33  ;;  %v4720_v50 = vpop.f32.mrb[3].mxu1  ;;  %v11541_v52 = vadd.f32 %v2837_v49, %v15221_v34  ;;  %v2871_v58 = vmax.f32 %v11539_v42, 0.0 }
 0x2eb   : > { %v4754_v51 = vmax.f32 %v11555_v43, 0.0  ;;  %v11557_v53 = vadd.f32 %v4720_v50, %v15224_v35  ;;  %v2872_v56 = vmax.f32 %v11540_v47, 0.0 }
 0x2ec   : > { %v4819_v55 = vrot.slane %v4753_v46, 7  ;;  %v4755_v57 = vmax.f32 %v11556_v48, 0.0  ;;  %v2873_v60 = vmax.f32 %v11541_v52, 0.0 }
 0x2ed   : > { %v4820_v59 = vrot.slane %v4754_v51, 7  ;;  %v4756_v61 = vmax.f32 %v11557_v53, 0.0  ;;  %v15234_v62 = vpack.c.bf16 %v2872_v56, %v2870_v54 }
 0x2ee   : > { %4851 = vst [vmem:[#allocation2] sm:$0xfe] %v4819_v55  ;;  %4854 = vst [vmem:[#allocation2 + $0x10] sm:$0x1] %v4819_v55  ;;  %v4821_v63 = vrot.slane %v4755_v57, 7  ;;  %v4909_v0 = vpack.c.bf16 %v4755_v57, %v4753_v46  ;;  %v15238_v1 = vpack.c.bf16 %v2873_v60, %v2871_v58  ;;  %v2841_v4 = vpop.f32.mrb[4].mxu0 }
 0x2ef   : > { %4853 = vst.msk [vmem:[#allocation2 + $0x8] sm:$0xfe] %vm4852_vm2, %v4820_v59  ;;  %v4822_v2 = vrot.slane %v4756_v61, 7  ;;  %v4910_v3 = vpack.c.bf16 %v4756_v61, %v4754_v51  ;;  %v4724_v5 = vpop.f32.mrb[4].mxu1  ;;  %v11542_v6 = vadd.f32 %v2841_v4, %v15215_v32  ;;  %v2843_v8 = vpop.f32.mrb[5].mxu0 }
 0x2f0   : > { %4856 = vst.msk [vmem:[#allocation2 + $0x18] sm:$0x1] %vm4855_vm3, %v4820_v59  ;;  %4857 = vst [vmem:[#allocation2 + $0x20] sm:$0xfe] %v4821_v63  ;;  %v11558_v7 = vadd.f32 %v4724_v5, %v15218_v33  ;;  %v4726_v9 = vpop.f32.mrb[5].mxu1  ;;  %v11543_v10 = vadd.f32 %v2843_v8, %v15221_v34  ;;  %v2845_v12 = vpop.f32.mrb[6].mxu0 }
 0x2f1   : > { %4859 = vst [vmem:[#allocation2 + $0x30] sm:$0x1] %v4821_v63  ;;  %4858 = vst.msk [vmem:[#allocation2 + $0x28] sm:$0xfe] %vm4852_vm2, %v4822_v2  ;;  %v11559_v11 = vadd.f32 %v4726_v9, %v15224_v35  ;;  %v4728_v13 = vpop.f32.mrb[6].mxu1  ;;  %10940 = vmatprep.mubr.msk.bf16.mxu1 %vm4770_vm0, %v4910_v3  ;;  %v11544_v15 = vadd.f32 %v2845_v12, %v15215_v32  ;;  %v2847_v17 = vpop.f32.mrb[7].mxu0 }
 0x2f2   : > { %4860 = vst.msk [vmem:[#allocation2 + $0x38] sm:$0x1] %vm4855_vm3, %v4822_v2  ;;  %v4757_v14 = vmax.f32 %v11558_v7, 0.0  ;;  %v11560_v16 = vadd.f32 %v4728_v13, %v15218_v33  ;;  %v4730_v18 = vpop.f32.mrb[7].mxu1  ;;  %5268 = vmatmul.mubr.bf16.vlgmr.msra.gmra.mrb[16].mxu1 %v4909_v0  ;;  %v11545_v20 = vadd.f32 %v2847_v17, %v15221_v34  ;;  %v2874_v22 = vmax.f32 %v11542_v6, 0.0 }
 0x2f3   : > { %v4758_v19 = vmax.f32 %v11559_v11, 0.0  ;;  %v11561_v21 = vadd.f32 %v4730_v18, %v15224_v35  ;;  %v2876_v24 = vmax.f32 %v11544_v15, 0.0  ;;  %v2875_v26 = vmax.f32 %v11543_v10, 0.0  ;;  %v12751_v57 = vld [vmem:[#allocation3 + $0x180] ss:$8 sps:$4 sm:$0xff]  }
 0x2f4   : > { %v4823_v23 = vrot.slane %v4757_v14, 7  ;;  %v4759_v25 = vmax.f32 %v11560_v16, 0.0  ;;  %v2877_v30 = vmax.f32 %v11545_v20, 0.0  ;;  %v12756_v3 = vld [vmem:[#allocation3 + $0x194] ss:$8 sps:$4 sm:$0xff]  }
 0x2f5   : > { %v4824_v29 = vrot.slane %v4758_v19, 7  ;;  %v4760_v36 = vmax.f32 %v11561_v21, 0.0  ;;  %v15251_v37 = vpack.c.bf16 %v2876_v24, %v2874_v22  ;;  %v4885_v58 = vld [vmem:[#allocation2] sm:$0xff]  ;;  %v12754_v15 = vld [vmem:[#allocation3 + $0x190] ss:$8 sps:$4 sm:$0xff]  }
 0x2f6   : > { %4861 = vst [vmem:[#allocation2 + $0x40] sm:$0xfe] %v4823_v23  ;;  %4863 = vst [vmem:[#allocation2 + $0x50] sm:$0x1] %v4823_v23  ;;  %v4825_v38 = vrot.slane %v4759_v25, 7  ;;  %v4911_v39 = vpack.c.bf16 %v4759_v25, %v4757_v14  ;;  %v15255_v40 = vpack.c.bf16 %v2877_v30, %v2875_v26  ;;  %v2851_v43 = vpop.f32.mrb[8].mxu0 }
 0x2f7   : > { %4862 = vst.msk [vmem:[#allocation2 + $0x48] sm:$0xfe] %vm4852_vm2, %v4824_v29  ;;  %v4826_v41 = vrot.slane %v4760_v36, 7  ;;  %v4912_v42 = vpack.c.bf16 %v4760_v36, %v4758_v19  ;;  %v4734_v44 = vpop.f32.mrb[8].mxu1  ;;  %v4887_v45 = vld [vmem:[#allocation2 + $0x20] sm:$0xff]  ;;  %v11546_v46 = vadd.f32 %v2851_v43, %v15215_v32  ;;  %v2853_v48 = vpop.f32.mrb[9].mxu0 }
 0x2f8   : > { %4864 = vst.msk [vmem:[#allocation2 + $0x58] sm:$0x1] %vm4855_vm3, %v4824_v29  ;;  %4865 = vst [vmem:[#allocation2 + $0x60] sm:$0xfe] %v4825_v38  ;;  %v11562_v47 = vadd.f32 %v4734_v44, %v15218_v33  ;;  %v4736_v49 = vpop.f32.mrb[9].mxu1  ;;  %v4886_v50 = vld [vmem:[#allocation2 + $0x8] sm:$0xff]  ;;  %v11547_v52 = vadd.f32 %v2853_v48, %v15221_v34  ;;  %v4901_v2 = vpack.c.bf16 %v4887_v45, %v4885_v58 }
 0x2f9   : > { %4867 = vst [vmem:[#allocation2 + $0x70] sm:$0x1] %v4825_v38  ;;  %v4888_v51 = vld [vmem:[#allocation2 + $0x28] sm:$0xff]  ;;  %4866 = vst.msk [vmem:[#allocation2 + $0x68] sm:$0xfe] %vm4852_vm2, %v4826_v41  ;;  %v11563_v53 = vadd.f32 %v4736_v49, %v15224_v35  ;;  %v2855_v54 = vpop.f32.mrb[10].mxu0  ;;  %10941 = vmatprep.mubr.msk.bf16.mxu1 %vm4770_vm0, %v4912_v42 }
 0x2fa   : > { %4868 = vst.msk [vmem:[#allocation2 + $0x78] sm:$0x1] %vm4855_vm3, %v4826_v41  ;;  %v4738_v55 = vpop.f32.mrb[10].mxu1  ;;  %v4902_v56 = vpack.c.bf16 %v4888_v51, %v4886_v50  ;;  %v4761_v59 = vmax.f32 %v11562_v47, 0.0  ;;  %v11548_v60 = vadd.f32 %v2855_v54, %v15215_v32  ;;  %v2857_v63 = vpop.f32.mrb[11].mxu0  ;;  %5278 = vmatmul.mubr.bf16.gmra.mrb[20].mxu1 %v4911_v39  ;;  %v2878_v7 = vmax.f32 %v11546_v46, 0.0 }
 0x2fb   : > { %v11564_v61 = vadd.f32 %v4738_v55, %v15218_v33  ;;  %v4740_v0 = vpop.f32.mrb[11].mxu1  ;;  %v4762_v4 = vmax.f32 %v11563_v53, 0.0  ;;  %v11549_v5 = vadd.f32 %v2857_v63, %v15221_v34  ;;  %v2879_v11 = vmax.f32 %v11547_v52, 0.0  ;;  %v12759_v19 = vld [vmem:[#allocation3 + $0x1a4] ss:$8 sps:$4 sm:$0xff]  }
 0x2fc   : > { %v11565_v6 = vadd.f32 %v4740_v0, %v15224_v35  ;;  %10968 = vmatprep.mubr.msk.bf16.mxu0 %vm4770_vm0, %v4902_v56  ;;  %v4827_v8 = vrot.slane %v4761_v59, 7  ;;  %v2880_v9 = vmax.f32 %v11548_v60, 0.0  ;;  %v12757_v46 = vld [vmem:[#allocation3 + $0x1a0] ss:$8 sps:$4 sm:$0xff]   ;;  %v12762_v54 = vld [vmem:[#allocation3 + $0x1b4] ss:$8 sps:$4 sm:$0xff]  }
 0x2fd   : > { %v4763_v10 = vmax.f32 %v11564_v61, 0.0  ;;  %5473 = vmatmul.mubr.bf16.vlgmr.msra.gmra.mrb[16].mxu0 %v4901_v2  ;;  %v4828_v12 = vrot.slane %v4762_v4, 7  ;;  %v2881_v13 = vmax.f32 %v11549_v5, 0.0  ;;  %v4889_v47 = vld [vmem:[#allocation2 + $0x40] sm:$0xff]  ;;  %v12760_v2 = vld [vmem:[#allocation3 + $0x1b0] ss:$8 sps:$4 sm:$0xff]  }
 0x2fe   : > { %v4764_v14 = vmax.f32 %v11565_v6, 0.0  ;;  %5671 = vmatpush1.bf16.msra.mxu0 %v12751_v57  ;;  %4869 = vst [vmem:[#allocation2 + $0x80] sm:$0xfe] %v4827_v8  ;;  %4871 = vst [vmem:[#allocation2 + $0x90] sm:$0x1] %v4827_v8  ;;  %v15269_v16 = vpack.c.bf16 %v2880_v9, %v2878_v7  ;;  %v2861_v23 = vpop.f32.mrb[12].mxu0 }
 0x2ff   : > { %v4829_v17 = vrot.slane %v4763_v10, 7  ;;  %v4913_v18 = vpack.c.bf16 %v4763_v10, %v4761_v59  ;;  %5672 = vmatprep.subr.bf16.mxu0 %v12756_v3  ;;  %4870 = vst.msk [vmem:[#allocation2 + $0x88] sm:$0xfe] %vm4852_vm2, %v4828_v12  ;;  %v15273_v20 = vpack.c.bf16 %v2881_v13, %v2879_v11  ;;  %v4744_v24 = vpop.f32.mrb[12].mxu1  ;;  %v4891_v25 = vld [vmem:[#allocation2 + $0x60] sm:$0xff]  ;;  %v11550_v26 = vadd.f32 %v2861_v23, %v15215_v32  ;;  %v2863_v30 = vpop.f32.mrb[13].mxu0 }
 0x300   : > { %4872 = vst.msk [vmem:[#allocation2 + $0x98] sm:$0x1] %vm4855_vm3, %v4828_v12  ;;  %v4830_v21 = vrot.slane %v4764_v14, 7  ;;  %v4914_v22 = vpack.c.bf16 %v4764_v14, %v4762_v4  ;;  %v11566_v29 = vadd.f32 %v4744_v24, %v15218_v33  ;;  %v4746_v36 = vpop.f32.mrb[13].mxu1  ;;  %v4890_v38 = vld [vmem:[#allocation2 + $0x48] sm:$0xff]  ;;  %v11551_v41 = vadd.f32 %v2863_v30, %v15221_v34  ;;  %v2865_v43 = vpop.f32.mrb[14].mxu0 }
 0x301   : > { %4873 = vst [vmem:[#allocation2 + $0xa0] sm:$0xfe] %v4829_v17  ;;  %4875 = vst [vmem:[#allocation2 + $0xb0] sm:$0x1] %v4829_v17  ;;  %v4892_v39 = vld [vmem:[#allocation2 + $0x68] sm:$0xff]  ;;  %v11567_v42 = vadd.f32 %v4746_v36, %v15224_v35  ;;  %v4748_v44 = vpop.f32.mrb[14].mxu1  ;;  %v11552_v49 = vadd.f32 %v2865_v43, %v15215_v32  ;;  %v4903_v53 = vpack.c.bf16 %v4891_v25, %v4889_v47 }
 0x302   : > { %4874 = vst.msk [vmem:[#allocation2 + $0xa8] sm:$0xfe] %vm4852_vm2, %v4830_v21  ;;  %5673 = vmatpush1.bf16.msra.mxu0 %v12754_v15  ;;  %10942 = vmatprep.mubr.msk.bf16.mxu1 %vm4770_vm0, %v4914_v22  ;;  %v4904_v45 = vpack.c.bf16 %v4892_v39, %v4890_v38  ;;  %v4765_v48 = vmax.f32 %v11566_v29, 0.0  ;;  %v11568_v50 = vadd.f32 %v4748_v44, %v15218_v33  ;;  %v2867_v51 = vpop.f32.mrb[15].mxu0  ;;  %v4750_v52 = vpop.f32.mrb[15].mxu1  ;;  %v2882_v58 = vmax.f32 %v11550_v26, 0.0 }
 0x303   : > { %4876 = vst.msk [vmem:[#allocation2 + $0xb8] sm:$0x1] %vm4855_vm3, %v4830_v21  ;;  %5288 = vmatmul.mubr.bf16.gmra.mrb[24].mxu1 %v4913_v18  ;;  %5674 = vmatprep.subr.bf16.mxu0 %v12759_v19  ;;  %v4766_v55 = vmax.f32 %v11567_v42, 0.0  ;;  %v11553_v56 = vadd.f32 %v2867_v51, %v15221_v34  ;;  %v11569_v57 = vadd.f32 %v4750_v52, %v15224_v35  ;;  %v2884_v60 = vmax.f32 %v11552_v49, 0.0  ;;  %v12765_v35 = vld [vmem:[#allocation3 + $0x1c4] ss:$8 sps:$4 sm:$0xff]  }
 0x304   : > { %10969 = vmatprep.mubr.msk.bf16.mxu0 %vm4770_vm0, %v4904_v45  ;;  %v4831_v59 = vrot.slane %v4765_v48, 7  ;;  %v4767_v61 = vmax.f32 %v11568_v50, 0.0  ;;  %v2883_v32 = vmax.f32 %v11551_v41, 0.0  ;;  %v12763_v11 = vld [vmem:[#allocation3 + $0x1c0] ss:$8 sps:$4 sm:$0xff]  }
 0x305   : > { %5483 = vmatmul.mubr.bf16.gmra.mrb[20].mxu0 %v4903_v53  ;;  %v4832_v33 = vrot.slane %v4766_v55, 7  ;;  %v2885_v63 = vmax.f32 %v11553_v56, 0.0  ;;  %v4768_v0 = vmax.f32 %v11569_v57, 0.0  ;;  %v15287_v3 = vpack.c.bf16 %v2884_v60, %v2882_v58  ;;  %v4893_v13 = vld [vmem:[#allocation2 + $0x80] sm:$0xff]  ;;  %v4922_v14 = vld [vmem:[#allocation2 + $0x28] sm:$0xfc] }
 0x306   : > { %5675 = vmatpush1.bf16.msra.mxu0 %v12757_v46  ;;  %4877 = vst [vmem:[#allocation2 + $0xc0] sm:$0xfe] %v4831_v59  ;;  %4879 = vst [vmem:[#allocation2 + $0xd0] sm:$0x1] %v4831_v59  ;;  %v4833_v34 = vrot.slane %v4767_v61, 7  ;;  %v4915_v4 = vpack.c.bf16 %v4767_v61, %v4765_v48  ;;  %v4894_v9 = vld [vmem:[#allocation2 + $0x88] sm:$0xff] }
 0x307   : > { %5676 = vmatprep.subr.bf16.mxu0 %v12762_v54  ;;  %4878 = vst.msk [vmem:[#allocation2 + $0xc8] sm:$0xfe] %vm4852_vm2, %v4832_v33  ;;  %v15291_v5 = vpack.c.bf16 %v2885_v63, %v2883_v32  ;;  %v4834_v6 = vrot.slane %v4768_v0, 7  ;;  %v4916_v7 = vpack.c.bf16 %v4768_v0, %v4766_v55  ;;  %v4924_v15 = vld [vmem:[#allocation2 + $0x38] sm:$0x3]  ;;  %v4991_v22 = vrot.slane %v4922_v14, 2 }
 0x308   : > { %4880 = vst.msk [vmem:[#allocation2 + $0xd8] sm:$0x1] %vm4855_vm3, %v4832_v33  ;;  %v4895_v8 = vld [vmem:[#allocation2 + $0xa0] sm:$0xff]  ;;  %4881 = vst [vmem:[#allocation2 + $0xe0] sm:$0xfe] %v4833_v34  ;;  %v4992_v23 = vrot.slane %v4924_v15, 2 }
 0x309   : > { %4883 = vst [vmem:[#allocation2 + $0xf0] sm:$0x1] %v4833_v34  ;;  %v4896_v10 = vld [vmem:[#allocation2 + $0xa8] sm:$0xff]  ;;  %4882 = vst.msk [vmem:[#allocation2 + $0xe8] sm:$0xfe] %vm4852_vm2, %v4834_v6  ;;  %10943 = vmatprep.mubr.msk.bf16.mxu1 %vm4770_vm0, %v4916_v7  ;;  %v4905_v17 = vpack.c.bf16 %v4895_v8, %v4893_v13 }
 0x30a   : > { %4884 = vst.msk [vmem:[#allocation2 + $0xf8] sm:$0x1] %vm4855_vm3, %v4834_v6  ;;  %5677 = vmatpush1.bf16.msra.mxu0 %v12760_v2  ;;  %v4906_v12 = vpack.c.bf16 %v4896_v10, %v4894_v9  ;;  %v12768_v18 = vld [vmem:[#allocation3 + $0x1d4] ss:$8 sps:$4 sm:$0xff]   ;;  %v4918_v19 = vld [vmem:[#allocation2 + $0x8] sm:$0xfc]  ;;  %v4993_v39 = vsel %vm4981_vm4, %v4991_v22, %v4992_v23 }
 0x30b   : > { %5298 = vmatmul.mubr.bf16.gmra.mrb[28].mxu1 %v4915_v4  ;;  %5678 = vmatprep.subr.bf16.mxu0 %v12765_v35  ;;  %v4920_v21 = vld [vmem:[#allocation2 + $0x18] sm:$0x3]  ;;  %v12771_v25 = vld [vmem:[#allocation3 + $0x1e4] ss:$8 sps:$4 sm:$0xff]   ;;  %v4985_v26 = vrot.slane %v4918_v19, 2 }
 0x30c   : > { %10970 = vmatprep.mubr.msk.bf16.mxu0 %vm4770_vm0, %v4906_v12  ;;  %v12766_v24 = vld [vmem:[#allocation3 + $0x1d0] ss:$8 sps:$4 sm:$0xff]   ;;  %v4986_v29 = vrot.slane %v4920_v21, 2  ;;  %v12769_v42 = vld [vmem:[#allocation3 + $0x1e0] ss:$8 sps:$4 sm:$0xff]  }
 0x30d   : > { %5493 = vmatmul.mubr.bf16.gmra.mrb[24].mxu0 %v4905_v17  ;;  %v4897_v43 = vld [vmem:[#allocation2 + $0xc0] sm:$0xff]  ;;  %v12774_v46 = vld [vmem:[#allocation3 + $0x1f4] ss:$8 sps:$4 sm:$0xff]   ;;  %v12772_v48 = vld [vmem:[#allocation3 + $0x1f0] ss:$8 sps:$4 sm:$0xff]  }
 0x30e   : > { %5679 = vmatpush1.bf16.msra.mxu0 %v12763_v11  ;;  %v4898_v36 = vld [vmem:[#allocation2 + $0xc8] sm:$0xff]  ;;  %v4987_v45 = vsel %vm4981_vm4, %v4985_v26, %v4986_v29  ;;  %v12780_v51 = vld [vmem:[#allocation3 + $0x214] ss:$8 sps:$4 sm:$0xff]   ;;  %v12778_v52 = vld [vmem:[#allocation3 + $0x210] ss:$8 sps:$4 sm:$0xff]  }
 0x30f   : > { %5680 = vmatprep.subr.bf16.mxu0 %v12768_v18  ;;  %v4899_v30 = vld [vmem:[#allocation2 + $0xe0] sm:$0xff]  ;;  %v5047_v47 = vpack.c.bf16 %v4993_v39, %v4987_v45  ;;  %v4923_v55 = vld [vmem:[#allocation2 + $0x30] sm:$0x3]  ;;  %v4930_v57 = vld [vmem:[#allocation2 + $0x68] sm:$0xfc] }
 0x310   : > { %v4900_v38 = vld [vmem:[#allocation2 + $0xe8] sm:$0xff]  ;;  %v4907_v44 = vpack.c.bf16 %v4899_v30, %v4897_v43  ;;  %v4921_v54 = vld [vmem:[#allocation2 + $0x20] sm:$0xfc]  ;;  %v4932_v58 = vld [vmem:[#allocation2 + $0x78] sm:$0x3]  ;;  %v4989_v33 = vrot.slane %v4923_v55, 2 }
 0x311   : > { %v4908_v41 = vpack.c.bf16 %v4900_v38, %v4898_v36  ;;  %v12777_v49 = vld [vmem:[#allocation3 + $0x204] ss:$8 sps:$4 sm:$0xff]   ;;  %v12775_v50 = vld [vmem:[#allocation3 + $0x200] ss:$8 sps:$4 sm:$0xff]   ;;  %v12786_v59 = vld [vmem:[#allocation3 + $0x234] ss:$8 sps:$4 sm:$0xff]  }
 0x312   : > { %5681 = vmatpush1.bf16.msra.mxu0 %v12766_v24  ;;  %v12783_v53 = vld [vmem:[#allocation3 + $0x224] ss:$8 sps:$4 sm:$0xff]   ;;  %v12781_v56 = vld [vmem:[#allocation3 + $0x220] ss:$8 sps:$4 sm:$0xff]   ;;  %v4919_v61 = vld [vmem:[#allocation2 + $0x10] sm:$0x3] }
 0x313   : > { %5682 = vmatprep.subr.bf16.mxu0 %v12771_v25  ;;  %10971 = vmatprep.mubr.msk.bf16.mxu0 %vm4770_vm0, %v4908_v41  ;;  %v4917_v60 = vld [vmem:[#allocation2] sm:$0xfc]  ;;  %v4988_v32 = vrot.slane %v4921_v54, 2  ;;  %v4926_v63 = vld [vmem:[#allocation2 + $0x48] sm:$0xfc]  ;;  %v5003_v2 = vrot.slane %v4930_v57, 2 }
 0x314   : > { %v4928_v0 = vld [vmem:[#allocation2 + $0x58] sm:$0x3]  ;;  %v5004_v34 = vrot.slane %v4932_v58, 2  ;;  %v4982_v35 = vrot.slane %v4917_v60, 2  ;;  %v4983_v6 = vrot.slane %v4919_v61, 2  ;;  %v4997_v7 = vrot.slane %v4926_v63, 2 }
 0x315   : > { %5503 = vmatmul.mubr.bf16.gmra.mrb[28].mxu0 %v4907_v44  ;;  %v12784_v4 = vld [vmem:[#allocation3 + $0x230] ss:$8 sps:$4 sm:$0xff]   ;;  %v4998_v8 = vrot.slane %v4928_v0, 2  ;;  %v4990_v9 = vsel %vm4981_vm4, %v4988_v32, %v4989_v33  ;;  %v4929_v11 = vld [vmem:[#allocation2 + $0x60] sm:$0xfc] }
 0x316   : > { %5683 = vmatpush1.bf16.msra.mxu0 %v12769_v42  ;;  %10996 = vmatprep.mubr.msk.bf16.mxu0 %vm4770_vm0, %v5047_v47  ;;  %v5005_v10 = vsel %vm4981_vm4, %v5003_v2, %v5004_v34  ;;  %v4931_v12 = vld [vmem:[#allocation2 + $0x70] sm:$0x3]  ;;  %v4984_v13 = vsel %vm4981_vm4, %v4982_v35, %v4983_v6  ;;  %v4938_v14 = vld [vmem:[#allocation2 + $0xa8] sm:$0xfc]  ;;  %v4940_v15 = vld [vmem:[#allocation2 + $0xb8] sm:$0x3] }
 0x317   : > { %5684 = vmatprep.subr.bf16.mxu0 %v12774_v46  ;;  %v5046_v17 = vpack.c.bf16 %v4990_v9, %v4984_v13  ;;  %v4999_v18 = vsel %vm4981_vm4, %v4997_v7, %v4998_v8  ;;  %v4925_v19 = vld [vmem:[#allocation2 + $0x40] sm:$0xfc]  ;;  %v4927_v21 = vld [vmem:[#allocation2 + $0x50] sm:$0x3]  ;;  %v5000_v23 = vrot.slane %v4929_v11, 2  ;;  %v5001_v24 = vrot.slane %v4931_v12, 2 }
 0x318   : > { %v5049_v22 = vpack.c.bf16 %v5005_v10, %v4999_v18  ;;  %v4934_v25 = vld [vmem:[#allocation2 + $0x88] sm:$0xfc]  ;;  %v4936_v26 = vld [vmem:[#allocation2 + $0x98] sm:$0x3]  ;;  %v5015_v29 = vrot.slane %v4938_v14, 2  ;;  %v5016_v30 = vrot.slane %v4940_v15, 2 }
 0x319   : > { %v4994_v36 = vrot.slane %v4925_v19, 2  ;;  %v4995_v38 = vrot.slane %v4927_v21, 2  ;;  %v5009_v39 = vrot.slane %v4934_v25, 2  ;;  %v5010_v41 = vrot.slane %v4936_v26, 2  ;;  %v4937_v44 = vld [vmem:[#allocation2 + $0xa0] sm:$0xfc] }
 0x31a   : > { %5685 = vmatpush1.bf16.msra.mxu0 %v12772_v48  ;;  %v5002_v42 = vsel %vm4981_vm4, %v5000_v23, %v5001_v24  ;;  %v5017_v43 = vsel %vm4981_vm4, %v5015_v29, %v5016_v30  ;;  %v4939_v45 = vld [vmem:[#allocation2 + $0xb0] sm:$0x3]  ;;  %v4946_v47 = vld [vmem:[#allocation2 + $0xe8] sm:$0xfc]  ;;  %v4948_v48 = vld [vmem:[#allocation2 + $0xf8] sm:$0x3] }
 0x31b   : > { %5686 = vmatprep.subr.bf16.mxu0 %v12777_v49  ;;  %v4996_v46 = vsel %vm4981_vm4, %v4994_v36, %v4995_v38  ;;  %v5012_v54 = vrot.slane %v4937_v44, 2  ;;  %v5013_v55 = vrot.slane %v4939_v45, 2  ;;  %v4944_v57 = vld [vmem:[#allocation2 + $0xd8] sm:$0x3]  ;;  %v5027_v58 = vrot.slane %v4946_v47, 2 }
 0x31c   : > { %v5048_v49 = vpack.c.bf16 %v5002_v42, %v4996_v46  ;;  %v5022_v33 = vrot.slane %v4944_v57, 2  ;;  %v4945_v2 = vld [vmem:[#allocation2 + $0xe0] sm:$0xfc]  ;;  %v4947_v34 = vld [vmem:[#allocation2 + $0xf0] sm:$0x3] }
 0x31d   : > { %v5014_v63 = vsel %vm4981_vm4, %v5012_v54, %v5013_v55  ;;  %v4941_v7 = vld [vmem:[#allocation2 + $0xc0] sm:$0xfc]  ;;  %v4943_v8 = vld [vmem:[#allocation2 + $0xd0] sm:$0x3]  ;;  %v5024_v10 = vrot.slane %v4945_v2, 2  ;;  %v5025_v11 = vrot.slane %v4947_v34, 2 }
 0x31e   : > { %5687 = vmatpush1.bf16.msra.mxu0 %v12775_v50  ;;  %v5011_v50 = vsel %vm4981_vm4, %v5009_v39, %v5010_v41  ;;  %v5018_v12 = vrot.slane %v4941_v7, 2  ;;  %v5019_v13 = vrot.slane %v4943_v8, 2  ;;  %v12787_v18 = vld [vmem:[#allocation6 + $0xc0] ss:$8 sps:$4 sm:$0xff]   ;;  %v12789_v19 = vld [vmem:[#allocation6 + $0xc4] ss:$8 sps:$4 sm:$0xff]  }
 0x31f   : > { %5688 = vmatprep.subr.bf16.mxu0 %v12780_v51  ;;  %v4933_v51 = vld [vmem:[#allocation2 + $0x80] sm:$0xfc]  ;;  %v5026_v14 = vsel %vm4981_vm4, %v5024_v10, %v5025_v11  ;;  %6018 = vmatprep.subr.bf16.mxu1 %v12789_v19  ;;  %v12790_v21 = vld [vmem:[#allocation6 + $0xd0] ss:$8 sps:$4 sm:$0xff]   ;;  %v12798_v25 = vld [vmem:[#allocation6 + $0xf4] ss:$8 sps:$4 sm:$0xff]  }
 0x320   : > { %v5006_v60 = vrot.slane %v4933_v51, 2  ;;  %v5020_v15 = vsel %vm4981_vm4, %v5018_v12, %v5019_v13  ;;  %6019 = vmatpush1.bf16.msra.mxu1 %v12787_v18  ;;  %v12795_v23 = vld [vmem:[#allocation6 + $0xe4] ss:$8 sps:$4 sm:$0xff]   ;;  %v12793_v24 = vld [vmem:[#allocation6 + $0xe0] ss:$8 sps:$4 sm:$0xff]  }
 0x321   : > { %v12796_v26 = vld [vmem:[#allocation6 + $0xf0] ss:$8 sps:$4 sm:$0xff]   ;;  %v12801_v29 = vld [vmem:[#allocation6 + $0x104] ss:$8 sps:$4 sm:$0xff]   ;;  %v12799_v30 = vld [vmem:[#allocation6 + $0x100] ss:$8 sps:$4 sm:$0xff]  }
 0x322   : > { %5689 = vmatpush1.bf16.msra.mxu0 %v12778_v52  ;;  %v4935_v52 = vld [vmem:[#allocation2 + $0x90] sm:$0x3]  ;;  %v12804_v36 = vld [vmem:[#allocation6 + $0x114] ss:$8 sps:$4 sm:$0xff]   ;;  %v12807_v39 = vld [vmem:[#allocation6 + $0x124] ss:$8 sps:$4 sm:$0xff]  }
 0x323   : > { %5690 = vmatprep.subr.bf16.mxu0 %v12783_v53  ;;  %v5051_v53 = vpack.c.bf16 %v5017_v43, %v5011_v50  ;;  %v5007_v61 = vrot.slane %v4935_v52, 2  ;;  %v12802_v38 = vld [vmem:[#allocation6 + $0x110] ss:$8 sps:$4 sm:$0xff]   ;;  %v12805_v41 = vld [vmem:[#allocation6 + $0x120] ss:$8 sps:$4 sm:$0xff]  }
 0x324   : > { %v12810_v42 = vld [vmem:[#allocation6 + $0x134] ss:$8 sps:$4 sm:$0xff]   ;;  %v12808_v43 = vld [vmem:[#allocation6 + $0x130] ss:$8 sps:$4 sm:$0xff]   ;;  %v12813_v44 = vld [vmem:[#allocation6 + $0x144] ss:$8 sps:$4 sm:$0xff]  }
 0x325   : > { %v12811_v45 = vld [vmem:[#allocation6 + $0x140] ss:$8 sps:$4 sm:$0xff]   ;;  %v12814_v46 = vld [vmem:[#allocation6 + $0x150] ss:$8 sps:$4 sm:$0xff]   ;;  %v12816_v47 = vld [vmem:[#allocation6 + $0x154] ss:$8 sps:$4 sm:$0xff]  }
 0x326   : > { %5691 = vmatpush1.bf16.msra.mxu0 %v12781_v56  ;;  %v4942_v56 = vld [vmem:[#allocation2 + $0xc8] sm:$0xfc]  ;;  %v12822_v50 = vld [vmem:[#allocation6 + $0x174] ss:$8 sps:$4 sm:$0xff]   ;;  %v12820_v51 = vld [vmem:[#allocation6 + $0x170] ss:$8 sps:$4 sm:$0xff]  }
 0x327   : > { %5692 = vmatprep.subr.bf16.mxu0 %v12786_v59  ;;  %v5028_v59 = vrot.slane %v4948_v48, 2  ;;  %v5021_v32 = vrot.slane %v4942_v56, 2  ;;  %v12817_v48 = vld [vmem:[#allocation6 + $0x160] ss:$8 sps:$4 sm:$0xff]   ;;  %v12825_v52 = vld [vmem:[#allocation6 + $0x4] ss:$8 sps:$4 sm:$0xff]  }
 0x329   : > { %v5029_v0 = vsel %vm4981_vm4, %v5027_v58, %v5028_v59  ;;  %v5023_v6 = vsel %vm4981_vm4, %v5021_v32, %v5022_v33 }
 0x32a   : > { %5693 = vmatpush1.bf16.msra.mxu0 %v12784_v4  ;;  %v5008_v4 = vsel %vm4981_vm4, %v5006_v60, %v5007_v61  ;;  %v5053_v9 = vpack.c.bf16 %v5029_v0, %v5023_v6 }
 0x32b   : > { %v5050_v35 = vpack.c.bf16 %v5014_v63, %v5008_v4 }
 0x32d   : > { %5703 = vmatmul.mubr.bf16.vlgmr.msra.gmra.mrb[16].mxu0 %v5046_v17  ;;  %v5052_v17 = vpack.c.bf16 %v5026_v14, %v5020_v15 }
 0x32e   : > { %10997 = vmatprep.mubr.msk.bf16.mxu0 %vm4770_vm0, %v5049_v22  ;;  %v12792_v22 = vld [vmem:[#allocation6 + $0xd4] ss:$8 sps:$4 sm:$0xff]  }
 0x32f   : > { %6020 = vmatprep.subr.bf16.mxu1 %v12792_v22  ;;  %v12897_v22 = vld [vmem:[%s17135_s10 + $0x4] ss:$56 sps:$4 sm:$0xff]  }
 0x330   : > { %6021 = vmatpush1.bf16.msra.mxu1 %v12790_v21  ;;  %v12895_v21 = vld [vmem:[%s17135_s10] ss:$56 sps:$4 sm:$0xff]   ;;  %7797 = vmatprep.subr.bf16.mxu0 %v12897_v22 }
 0x331   : > { %6022 = vmatprep.subr.bf16.mxu1 %v12795_v23  ;;  %7798 = vmatpush1.bf16.msra.mxu0 %v12895_v21  ;;  %v12829_v21 = vld [vmem:[#allocation6 + $0x20] ss:$8 sps:$4 sm:$0xff]  }
 0x334   : > { %6023 = vmatpush1.bf16.msra.mxu1 %v12793_v24 }
 0x335   : > { %5713 = vmatmul.mubr.bf16.gmra.mrb[20].mxu0 %v5048_v49  ;;  %6024 = vmatprep.subr.bf16.mxu1 %v12798_v25  ;;  %v12819_v49 = vld [vmem:[#allocation6 + $0x164] ss:$8 sps:$4 sm:$0xff]  }
 0x336   : > { %10998 = vmatprep.mubr.msk.bf16.mxu0 %vm4770_vm0, %v5051_v53 }
 0x338   : > { %6025 = vmatpush1.bf16.msra.mxu1 %v12796_v26  ;;  %v12903_v26 = vld [vmem:[%s17135_s10 + $0x74] ss:$56 sps:$4 sm:$0xff]  }
 0x339   : > { %6026 = vmatprep.subr.bf16.mxu1 %v12801_v29  ;;  %7799 = vmatprep.subr.bf16.mxu0 %v12903_v26 }
 0x33c   : > { %6027 = vmatpush1.bf16.msra.mxu1 %v12799_v30 }
 0x33d   : > { %5723 = vmatmul.mubr.bf16.gmra.mrb[24].mxu0 %v5050_v35  ;;  %6028 = vmatprep.subr.bf16.mxu1 %v12804_v36  ;;  %v5759_v35 = vld [vmem:[%s17131_s6] sm:$0x3] }
 0x33e   : > { %10999 = vmatprep.mubr.msk.bf16.mxu0 %vm4770_vm0, %v5053_v9  ;;  %v15338_v6 = vrot.slane %v5759_v35, %v15203_v28  ;;  %v15341_v8 = vrot.slane %v5759_v35, %v15212_v31  ;;  %v12831_v35 = vld [vmem:[#allocation6 + $0x24] ss:$8 sps:$4 sm:$0xff]  }
 0x340   : > { %6029 = vmatpush1.bf16.msra.mxu1 %v12802_v38  ;;  %v12901_v38 = vld [vmem:[%s17135_s10 + $0x70] ss:$56 sps:$4 sm:$0xff]  }
 0x341   : > { %6030 = vmatprep.subr.bf16.mxu1 %v12807_v39  ;;  %7800 = vmatpush1.bf16.msra.mxu0 %v12901_v38 }
 0x344   : > { %6031 = vmatpush1.bf16.msra.mxu1 %v12805_v41 }
 0x345   : > { %5733 = vmatmul.mubr.bf16.gmra.mrb[28].mxu0 %v5052_v17  ;;  %6032 = vmatprep.subr.bf16.mxu1 %v12810_v42 }
 0x348   : > { %6033 = vmatpush1.bf16.msra.mxu1 %v12808_v43  ;;  %v12909_v43 = vld [vmem:[%s17135_s10 + $0xe4] ss:$56 sps:$4 sm:$0xff]  }
 0x349   : > { %6034 = vmatprep.subr.bf16.mxu1 %v12813_v44  ;;  %7801 = vmatprep.subr.bf16.mxu0 %v12909_v43  ;;  %v12832_v43 = vld [vmem:[#allocation6 + $0x30] ss:$8 sps:$4 sm:$0xff]  }
 0x34c   : > { %6035 = vmatpush1.bf16.msra.mxu1 %v12811_v45 }
 0x34d   : > { %6036 = vmatprep.subr.bf16.mxu1 %v12816_v47  ;;  %v12823_v47 = vld [vmem:[#allocation6] ss:$8 sps:$4 sm:$0xff]  }
 0x350   : > { %6037 = vmatpush1.bf16.msra.mxu1 %v12814_v46 }
 0x351   : > { %6038 = vmatprep.subr.bf16.mxu1 %v12819_v49 }
 0x354   : > { %6039 = vmatpush1.bf16.msra.mxu1 %v12817_v48 }
 0x355   : > { %6040 = vmatprep.subr.bf16.mxu1 %v12822_v50 }
 0x358   : > { %6041 = vmatpush1.bf16.msra.mxu1 %v12820_v51  ;;  %v12828_v51 = vld [vmem:[#allocation6 + $0x14] ss:$8 sps:$4 sm:$0xff]  }
 0x359   : > { %6235 = vmatprep.subr.bf16.mxu1 %v12825_v52 }
 0x3c5   : > { %v5269_v53 = vpop.f32.mrb[16].mxu1 }
 0x3c6   : > { %v5271_v54 = vpop.f32.mrb[17].mxu1 }
 0x3c7   : > { %v5273_v55 = vpop.f32.mrb[18].mxu1 }
 0x3c8   : > { %v5275_v56 = vpop.f32.mrb[19].mxu1 }
 0x3cd   : > { %v5279_v57 = vpop.f32.mrb[20].mxu1 }
 0x3ce   : > { %v5281_v58 = vpop.f32.mrb[21].mxu1 }
 0x3cf   : > { %v5283_v59 = vpop.f32.mrb[22].mxu1 }
 0x3d0   : > { %v5285_v60 = vpop.f32.mrb[23].mxu1 }
 0x3d6   : > { %v15318_v61 = vpop.f32.mrb[24].mxu1 }
 0x3d7   : > { %v15320_v32 = vpop.f32.mrb[25].mxu1 }
 0x3d8   : > { %v15322_v33 = vpop.f32.mrb[26].mxu1 }
 0x3d9   : > { %v15324_v63 = vpop.f32.mrb[27].mxu1 }
 0x3de   : > { %v15326_v0 = vpop.f32.mrb[28].mxu1 }
 0x3df   : > { %v15328_v2 = vpop.f32.mrb[29].mxu1 }
 0x3e0   : > { %v15330_v34 = vpop.f32.mrb[30].mxu1 }
 0x3e1   : > { %v15332_v4 = vpop.f32.mrb[31].mxu1 }
 0x400   : > { %v5704_v7 = vpop.f32.mrb[16].mxu0 }
 0x401   : > { %v11570_v9 = vadd.f32 %v5704_v7, %v5269_v53  ;;  %v5706_v10 = vpop.f32.mrb[17].mxu0 }
 0x402   : > { %v11571_v11 = vadd.f32 %v5706_v10, %v5271_v54  ;;  %v5708_v12 = vpop.f32.mrb[18].mxu0  ;;  %v12907_v54 = vld [vmem:[%s17135_s10 + $0xe0] ss:$56 sps:$4 sm:$0xff]  }
 0x403   : > { %v5771_v13 = vadd.f32 %v11570_v9, %v15338_v6  ;;  %v11572_v14 = vadd.f32 %v5708_v12, %v5273_v55  ;;  %v5710_v15 = vpop.f32.mrb[19].mxu0  ;;  %7802 = vmatpush1.bf16.msra.mxu0 %v12907_v54 }
 0x404   : > { %v5772_v17 = vadd.f32 %v11571_v11, %v15341_v8  ;;  %v11573_v18 = vadd.f32 %v5710_v15, %v5275_v56  ;;  %v12915_v56 = vld [vmem:[%s17135_s10 + $0x154] ss:$56 sps:$4 sm:$0xff]   ;;  %v12913_v11 = vld [vmem:[%s17135_s10 + $0x150] ss:$56 sps:$4 sm:$0xff]   ;;  %v12921_v15 = vld [vmem:[%s17135_s10 + $0x1c4] ss:$56 sps:$4 sm:$0xff]  }
 0x405   : > { %v5773_v19 = vadd.f32 %v11572_v14, %v15338_v6  ;;  %v5787_v24 = vmax.f32 %v5771_v13, 0.0  ;;  %7803 = vmatprep.subr.bf16.mxu0 %v12915_v56  ;;  %v12933_v56 = vld [vmem:[%s17135_s10 + $0x2a4] ss:$56 sps:$4 sm:$0xff]  }
 0x406   : > { %v5774_v23 = vadd.f32 %v11573_v18, %v15341_v8  ;;  %v5788_v29 = vmax.f32 %v5772_v17, 0.0 }
 0x407   : > { %v5789_v25 = vmax.f32 %v5773_v19, 0.0  ;;  %7804 = vmatpush1.bf16.msra.mxu0 %v12913_v11 }
 0x408   : > { %v5790_v30 = vmax.f32 %v5774_v23, 0.0  ;;  %v5714_v36 = vpop.f32.mrb[20].mxu0  ;;  %7805 = vmatprep.subr.bf16.mxu0 %v12921_v15 }
 0x409   : > { %v15359_v39 = vpack.c.bf16 %v5789_v25, %v5787_v24  ;;  %v11574_v41 = vadd.f32 %v5714_v36, %v5279_v57  ;;  %v5716_v42 = vpop.f32.mrb[21].mxu0  ;;  %v12834_v24 = vld [vmem:[#allocation6 + $0x34] ss:$8 sps:$4 sm:$0xff]  }
 0x40a   : > { %v15364_v44 = vpack.c.bf16 %v5790_v30, %v5788_v29  ;;  %v11575_v45 = vadd.f32 %v5716_v42, %v5281_v58  ;;  %v5718_v46 = vpop.f32.mrb[22].mxu0  ;;  %v12826_v58 = vld [vmem:[#allocation6 + $0x10] ss:$8 sps:$4 sm:$0xff]  }
 0x40b   : > { %v5775_v48 = vadd.f32 %v11574_v41, %v15338_v6  ;;  %v11576_v49 = vadd.f32 %v5718_v46, %v5283_v59  ;;  %v5720_v50 = vpop.f32.mrb[23].mxu0  ;;  %v5821_v25 = vunpack.c.h.b16 %v15359_v39 }
 0x40c   : > { %v5776_v52 = vadd.f32 %v11575_v45, %v15341_v8  ;;  %v11577_v53 = vadd.f32 %v5720_v50, %v5285_v60  ;;  %11024 = vmatprep.mubr.msk.bf16.mxu1 %vm4770_vm0, %v15364_v44 }
 0x40d   : > { %v5777_v55 = vadd.f32 %v11576_v49, %v15338_v6  ;;  %6051 = vmatmul.mubr.bf16.vlgmr.msra.gmra.mrb[32].mxu1 %v15359_v39  ;;  %v5791_v59 = vmax.f32 %v5775_v48, 0.0  ;;  %v12837_v48 = vld [vmem:[#allocation6 + $0x44] ss:$8 sps:$4 sm:$0xff]  }
 0x40e   : > { %v5778_v57 = vadd.f32 %v11577_v53, %v15341_v8  ;;  %6236 = vmatpush1.bf16.msra.mxu1 %v12823_v47  ;;  %v5792_v7 = vmax.f32 %v5776_v52, 0.0  ;;  %v12925_v52 = vld [vmem:[%s17135_s10 + $0x230] ss:$56 sps:$4 sm:$0xff]  }
 0x40f   : > { %v5793_v60 = vmax.f32 %v5777_v55, 0.0  ;;  %6237 = vmatprep.subr.bf16.mxu1 %v12828_v51 }
 0x410   : > { %v5794_v9 = vmax.f32 %v5778_v57, 0.0  ;;  %v5724_v10 = vpop.f32.mrb[24].mxu0 }
 0x411   : > { %v11578_v12 = vadd.f32 %v5724_v10, %v15318_v61  ;;  %v5726_v13 = vpop.f32.mrb[25].mxu0  ;;  %v15383_v14 = vpack.c.bf16 %v5793_v60, %v5791_v59  ;;  %v12835_v60 = vld [vmem:[#allocation6 + $0x40] ss:$8 sps:$4 sm:$0xff]  }
 0x412   : > { %v15388_v17 = vpack.c.bf16 %v5794_v9, %v5792_v7  ;;  %v11579_v18 = vadd.f32 %v5726_v13, %v15320_v32  ;;  %6238 = vmatpush1.bf16.msra.mxu1 %v12826_v58  ;;  %v5728_v19 = vpop.f32.mrb[26].mxu0  ;;  %v5822_v32 = vunpack.c.h.b16 %v15364_v44 }
 0x413   : > { %v5779_v22 = vadd.f32 %v11578_v12, %v15338_v6  ;;  %v11580_v23 = vadd.f32 %v5728_v19, %v15322_v33  ;;  %v5730_v61 = vpop.f32.mrb[27].mxu0  ;;  %6239 = vmatprep.subr.bf16.mxu1 %v12831_v35  ;;  %v5823_v26 = vunpack.c.l.b16 %v15383_v14  ;;  %v12919_v33 = vld [vmem:[%s17135_s10 + $0x1c0] ss:$56 sps:$4 sm:$0xff]   ;;  %v5825_v10 = vunpack.c.h.b16 %v15383_v14 }
 0x414   : > { %v5780_v29 = vadd.f32 %v11579_v18, %v15341_v8  ;;  %v11581_v30 = vadd.f32 %v5730_v61, %v15324_v63  ;;  %11025 = vmatprep.mubr.msk.bf16.mxu1 %vm4770_vm0, %v15388_v17  ;;  %v5824_v36 = vunpack.c.l.b16 %v15388_v17  ;;  %v12927_v63 = vld [vmem:[%s17135_s10 + $0x234] ss:$56 sps:$4 sm:$0xff]   ;;  %7806 = vmatpush1.bf16.msra.mxu0 %v12919_v33 }
 0x415   : > { %v5781_v38 = vadd.f32 %v11580_v23, %v15338_v6  ;;  %6061 = vmatmul.mubr.bf16.gmra.mrb[36].mxu1 %v15383_v14  ;;  %v15406_v41 = vpack.c.b16 %v5823_v26, %v5821_v25  ;;  %v5795_v46 = vmax.f32 %v5779_v22, 0.0  ;;  %7807 = vmatprep.subr.bf16.mxu0 %v12927_v63  ;;  %v12843_v61 = vld [vmem:[#allocation6 + $0x64] ss:$8 sps:$4 sm:$0xff]   ;;  %v12937_v25 = vld [vmem:[%s17135_s10 + $0x310] ss:$56 sps:$4 sm:$0xff]  }
 0x416   : > { %v5782_v42 = vadd.f32 %v11581_v30, %v15341_v8  ;;  %6240 = vmatpush1.bf16.msra.mxu1 %v12829_v21  ;;  %v15412_v45 = vpack.c.b16 %v5824_v36, %v5822_v32  ;;  %v5796_v49 = vmax.f32 %v5780_v29, 0.0  ;;  %v12841_v30 = vld [vmem:[#allocation6 + $0x60] ss:$8 sps:$4 sm:$0xff]   ;;  %v12846_v32 = vld [vmem:[#allocation6 + $0x74] ss:$8 sps:$4 sm:$0xff]  }
 0x417   : > { %v5797_v47 = vmax.f32 %v5781_v38, 0.0  ;;  %6241 = vmatprep.subr.bf16.mxu1 %v12834_v24  ;;  %v13532_v38 = vmov 0  }
 0x418   : > { %v5798_v50 = vmax.f32 %v5782_v42, 0.0  ;;  %v5734_v51 = vpop.f32.mrb[28].mxu0  ;;  %7808 = vmatpush1.bf16.msra.mxu0 %v12925_v52  ;;  %v11029_v63 = vcombine.low %v13532_v38, %v15364_v44  ;;  %v12844_v44 = vld [vmem:[#allocation6 + $0x70] ss:$8 sps:$4 sm:$0xff]   ;;  %v12847_v52 = vld [vmem:[#allocation6 + $0x80] ss:$8 sps:$4 sm:$0xff]  }
 0x419   : > { %v11582_v53 = vadd.f32 %v5734_v51, %v15326_v0  ;;  %v5736_v54 = vpop.f32.mrb[29].mxu0  ;;  %v5807_v55 = vpack.c.bf16 %v5797_v47, %v5795_v46  ;;  %v12840_v0 = vld [vmem:[#allocation6 + $0x54] ss:$8 sps:$4 sm:$0xff]   ;;  %7809 = vmatprep.subr.bf16.mxu0 %v12933_v56  ;;  %v12943_v46 = vld [vmem:[%s17135_s10 + $0x380] ss:$56 sps:$4 sm:$0xff]  }
 0x41a   : > { %v5808_v57 = vpack.c.bf16 %v5798_v50, %v5796_v49  ;;  %v11583_v58 = vadd.f32 %v5736_v54, %v15328_v2  ;;  %6242 = vmatpush1.bf16.msra.mxu1 %v12832_v43  ;;  %v5738_v59 = vpop.f32.mrb[30].mxu0  ;;  %v5826_v2 = vunpack.c.h.b16 %v15388_v17  ;;  %v12838_v17 = vld [vmem:[#allocation6 + $0x50] ss:$8 sps:$4 sm:$0xff]   ;;  %v12849_v50 = vld [vmem:[#allocation6 + $0x84] ss:$8 sps:$4 sm:$0xff]  }
 0x41b   : > { %v5783_v35 = vadd.f32 %v11582_v53, %v15338_v6  ;;  %v11584_v7 = vadd.f32 %v5738_v59, %v15330_v34  ;;  %v5740_v9 = vpop.f32.mrb[31].mxu0  ;;  %6243 = vmatprep.subr.bf16.mxu1 %v12837_v48  ;;  %v5827_v11 = vunpack.c.l.b16 %v5807_v55  ;;  %v12931_v34 = vld [vmem:[%s17135_s10 + $0x2a0] ss:$56 sps:$4 sm:$0xff]   ;;  %v5829_v36 = vunpack.c.h.b16 %v5807_v55  ;;  %v12951_v48 = vld [vmem:[%s17135_s10 + $0x3f4] ss:$56 sps:$4 sm:$0xff]  }
 0x41c   : > { %v5784_v12 = vadd.f32 %v11583_v58, %v15341_v8  ;;  %v11585_v13 = vadd.f32 %v5740_v9, %v15332_v4  ;;  %11026 = vmatprep.mubr.msk.bf16.mxu1 %vm4770_vm0, %v5808_v57  ;;  %v5828_v15 = vunpack.c.l.b16 %v5808_v57  ;;  %v12939_v4 = vld [vmem:[%s17135_s10 + $0x314] ss:$56 sps:$4 sm:$0xff]   ;;  %7810 = vmatpush1.bf16.msra.mxu0 %v12931_v34  ;;  %v5830_v42 = vunpack.c.h.b16 %v5808_v57  ;;  %v12949_v51 = vld [vmem:[%s17135_s10 + $0x3f0] ss:$56 sps:$4 sm:$0xff]  }
 0x41d   : > { %v5785_v18 = vadd.f32 %v11584_v7, %v15338_v6  ;;  %6071 = vmatmul.mubr.bf16.gmra.mrb[40].mxu1 %v5807_v55  ;;  %v15433_v19 = vpack.c.b16 %v5827_v11, %v5825_v10  ;;  %v5799_v22 = vmax.f32 %v5783_v35, 0.0  ;;  %7811 = vmatprep.subr.bf16.mxu0 %v12939_v4  ;;  %v12852_v53 = vld [vmem:[#allocation6 + $0x94] ss:$8 sps:$4 sm:$0xff]   ;;  %v12850_v54 = vld [vmem:[#allocation6 + $0x90] ss:$8 sps:$4 sm:$0xff]   ;;  %v11028_v35 = vcombine.low %v13532_v38, %v15359_v39 }
 0x41e   : > { %v5786_v14 = vadd.f32 %v11585_v13, %v15341_v8  ;;  %6244 = vmatpush1.bf16.msra.mxu1 %v12835_v60  ;;  %v15439_v21 = vpack.c.b16 %v5828_v15, %v5826_v2  ;;  %v5800_v24 = vmax.f32 %v5784_v12, 0.0  ;;  %v12945_v8 = vld [vmem:[%s17135_s10 + $0x384] ss:$56 sps:$4 sm:$0xff]   ;;  %v12853_v56 = vld [vmem:[#allocation6 + $0xa0] ss:$8 sps:$4 sm:$0xff]  }
 0x41f   : > { %v5801_v23 = vmax.f32 %v5785_v18, 0.0  ;;  %6245 = vmatprep.subr.bf16.mxu1 %v12840_v0  ;;  %v12855_v55 = vld [vmem:[#allocation6 + $0xa4] ss:$8 sps:$4 sm:$0xff]   ;;  %v12858_v57 = vld [vmem:[#allocation6 + $0xb4] ss:$8 sps:$4 sm:$0xff]  }
 0x420   : > { %v5802_v6 = vmax.f32 %v5786_v14, 0.0  ;;  %7812 = vmatpush1.bf16.msra.mxu0 %v12937_v25  ;;  %v12856_v58 = vld [vmem:[#allocation6 + $0xb0] ss:$8 sps:$4 sm:$0xff]   ;;  %v12861_v59 = vld [vmem:[#allocation6 + $0x184] ss:$8 sps:$4 sm:$0xff]  }
 0x421   : > { %v15444_v26 = vpack.c.bf16 %v5801_v23, %v5799_v22  ;;  %7813 = vmatprep.subr.bf16.mxu0 %v12945_v8  ;;  %v12859_v60 = vld [vmem:[#allocation6 + $0x180] ss:$8 sps:$4 sm:$0xff]   ;;  %v12864_v7 = vld [vmem:[#allocation6 + $0x194] ss:$8 sps:$4 sm:$0xff]   ;;  %v12862_v9 = vld [vmem:[#allocation6 + $0x190] ss:$8 sps:$4 sm:$0xff]  }
 0x422   : > { %v15449_v29 = vpack.c.bf16 %v5802_v6, %v5800_v24  ;;  %6246 = vmatpush1.bf16.msra.mxu1 %v12838_v17  ;;  %v12867_v0 = vld [vmem:[#allocation6 + $0x1a4] ss:$8 sps:$4 sm:$0xff]   ;;  %v12865_v10 = vld [vmem:[#allocation6 + $0x1a0] ss:$8 sps:$4 sm:$0xff]   ;;  %v12870_v11 = vld [vmem:[#allocation6 + $0x1b4] ss:$8 sps:$4 sm:$0xff]  }
 0x423   : > { %6247 = vmatprep.subr.bf16.mxu1 %v12843_v61  ;;  %v5831_v33 = vunpack.c.l.b16 %v15444_v26  ;;  %v12868_v39 = vld [vmem:[#allocation6 + $0x1b0] ss:$8 sps:$4 sm:$0xff]   ;;  %v12873_v12 = vld [vmem:[#allocation6 + $0x1c4] ss:$8 sps:$4 sm:$0xff]   ;;  %v12871_v13 = vld [vmem:[#allocation6 + $0x1c0] ss:$8 sps:$4 sm:$0xff]  }
 0x424   : > { %11027 = vmatprep.mubr.msk.bf16.mxu1 %vm4770_vm0, %v15449_v29  ;;  %v5832_v43 = vunpack.c.l.b16 %v15449_v29  ;;  %7814 = vmatpush1.bf16.msra.mxu0 %v12943_v46  ;;  %v12876_v2 = vld [vmem:[#allocation6 + $0x1d4] ss:$8 sps:$4 sm:$0xff]   ;;  %v12874_v15 = vld [vmem:[#allocation6 + $0x1d0] ss:$8 sps:$4 sm:$0xff]   ;;  %v12879_v34 = vld [vmem:[#allocation6 + $0x1e4] ss:$8 sps:$4 sm:$0xff]   ;;  %v11058_v46 = vcombine.high %v15449_v29, %v13532_v38 }
 0x425   : > { %6081 = vmatmul.mubr.bf16.gmra.mrb[44].mxu1 %v15444_v26  ;;  %v15461_v47 = vpack.c.b16 %v5831_v33, %v5829_v36  ;;  %7815 = vmatprep.subr.bf16.mxu0 %v12951_v48  ;;  %v12877_v18 = vld [vmem:[#allocation6 + $0x1e0] ss:$8 sps:$4 sm:$0xff]   ;;  %v12882_v4 = vld [vmem:[#allocation6 + $0x1f4] ss:$8 sps:$4 sm:$0xff]   ;;  %v12880_v14 = vld [vmem:[#allocation6 + $0x1f0] ss:$8 sps:$4 sm:$0xff]  }
 0x426   : > { %6248 = vmatpush1.bf16.msra.mxu1 %v12841_v30  ;;  %11054 = vmatprep.mubr.msk.bf16.mxu1 %vm4770_vm0, %v11029_v63  ;;  %v15467_v49 = vpack.c.b16 %v5832_v43, %v5830_v42  ;;  %v12885_v17 = vld [vmem:[#allocation6 + $0x204] ss:$8 sps:$4 sm:$0xff]   ;;  %v12883_v22 = vld [vmem:[#allocation6 + $0x200] ss:$8 sps:$4 sm:$0xff]   ;;  %v12888_v23 = vld [vmem:[#allocation6 + $0x214] ss:$8 sps:$4 sm:$0xff]  }
 0x427   : > { %6249 = vmatprep.subr.bf16.mxu1 %v12846_v32  ;;  %v12886_v61 = vld [vmem:[#allocation6 + $0x210] ss:$8 sps:$4 sm:$0xff]   ;;  %v12891_v24 = vld [vmem:[#allocation6 + $0x224] ss:$8 sps:$4 sm:$0xff]   ;;  %v12889_v6 = vld [vmem:[#allocation6 + $0x220] ss:$8 sps:$4 sm:$0xff]  }
 0x428   : > { %7816 = vmatpush1.bf16.msra.mxu0 %v12949_v51  ;;  %v12894_v25 = vld [vmem:[#allocation6 + $0x234] ss:$8 sps:$4 sm:$0xff]   ;;  %v12892_v8 = vld [vmem:[#allocation6 + $0x230] ss:$8 sps:$4 sm:$0xff]   ;;  %v12898_v30 = vld [vmem:[%s17135_s10 + $0x8] ss:$56 sps:$4 sm:$0xff]  }
 0x429   : > { %v12906_v32 = vld [vmem:[%s17135_s10 + $0x7c] ss:$56 sps:$4 sm:$0xff]   ;;  %v12904_v36 = vld [vmem:[%s17135_s10 + $0x78] ss:$56 sps:$4 sm:$0xff]   ;;  %v12912_v33 = vld [vmem:[%s17135_s10 + $0xec] ss:$56 sps:$4 sm:$0xff]  }
 0x42a   : > { %6250 = vmatpush1.bf16.msra.mxu1 %v12844_v44  ;;  %v12910_v63 = vld [vmem:[%s17135_s10 + $0xe8] ss:$56 sps:$4 sm:$0xff]   ;;  %v12924_v42 = vld [vmem:[%s17135_s10 + $0x1cc] ss:$56 sps:$4 sm:$0xff]   ;;  %v12928_v48 = vld [vmem:[%s17135_s10 + $0x238] ss:$56 sps:$4 sm:$0xff]   ;;  %v5833_v44 = vunpack.c.h.b16 %v15444_v26 }
 0x42b   : > { %6251 = vmatprep.subr.bf16.mxu1 %v12849_v50  ;;  %v12922_v43 = vld [vmem:[%s17135_s10 + $0x1c8] ss:$56 sps:$4 sm:$0xff]   ;;  %v12936_v50 = vld [vmem:[%s17135_s10 + $0x2ac] ss:$56 sps:$4 sm:$0xff]   ;;  %v12942_v51 = vld [vmem:[%s17135_s10 + $0x31c] ss:$56 sps:$4 sm:$0xff]  }
 0x42c   : > { %v12934_v29 = vld [vmem:[%s17135_s10 + $0x2a8] ss:$56 sps:$4 sm:$0xff]   ;;  %v12940_v26 = vld [vmem:[%s17135_s10 + $0x318] ss:$56 sps:$4 sm:$0xff]  }
 0x42e   : > { %6252 = vmatpush1.bf16.msra.mxu1 %v12847_v52  ;;  %v12946_v52 = vld [vmem:[%s17135_s10 + $0x388] ss:$56 sps:$4 sm:$0xff]  }
 0x42f   : > { %6253 = vmatprep.subr.bf16.mxu1 %v12852_v53  ;;  %v12954_v53 = vld [vmem:[%s17135_s10 + $0x3fc] ss:$56 sps:$4 sm:$0xff]  }
 0x432   : > { %6254 = vmatpush1.bf16.msra.mxu1 %v12850_v54  ;;  %v12952_v54 = vld [vmem:[%s17135_s10 + $0x3f8] ss:$56 sps:$4 sm:$0xff]  }
 0x433   : > { %6255 = vmatprep.subr.bf16.mxu1 %v12855_v55  ;;  %v12955_v55 = vld [vmem:[%s17135_s10 + $0x460] ss:$56 sps:$4 sm:$0xff]  }
 0x436   : > { %6256 = vmatpush1.bf16.msra.mxu1 %v12853_v56  ;;  %v12957_v56 = vld [vmem:[%s17135_s10 + $0x464] ss:$56 sps:$4 sm:$0xff]  }
 0x437   : > { %6257 = vmatprep.subr.bf16.mxu1 %v12858_v57  ;;  %v12958_v57 = vld [vmem:[%s17135_s10 + $0x468] ss:$56 sps:$4 sm:$0xff]   ;;  %7817 = vmatprep.subr.bf16.mxu0 %v12957_v56  ;;  %v12987_v56 = vld [vmem:[%s17135_s10 + $0x164] ss:$56 sps:$4 sm:$0xff]  }
 0x438   : > { %7818 = vmatpush1.bf16.msra.mxu0 %v12955_v55 }
 0x43a   : > { %6258 = vmatpush1.bf16.msra.mxu1 %v12856_v58  ;;  %v12960_v58 = vld [vmem:[%s17135_s10 + $0x46c] ss:$56 sps:$4 sm:$0xff]  }
 0x43b   : > { %6460 = vmatprep.subr.bf16.mxu1 %v12861_v59  ;;  %v12963_v59 = vld [vmem:[%s17135_s10 + $0x4d4] ss:$56 sps:$4 sm:$0xff]  }
 0x43c   : > { %7819 = vmatprep.subr.bf16.mxu0 %v12963_v59 }
 0x43d   : > { %6268 = vmatmul.mubr.bf16.vlgmr.msra.gmra.mrb[32].mxu1 %v11028_v35  ;;  %v12961_v35 = vld [vmem:[%s17135_s10 + $0x4d0] ss:$56 sps:$4 sm:$0xff]  }
 0x43e   : > { %11055 = vmatprep.mubr.msk.bf16.mxu1 %vm4770_vm0, %v15412_v45  ;;  %6461 = vmatpush1.bf16.msra.mxu1 %v12859_v60  ;;  %v12966_v60 = vld [vmem:[%s17135_s10 + $0x4dc] ss:$56 sps:$4 sm:$0xff]  }
 0x43f   : > { %6462 = vmatprep.subr.bf16.mxu1 %v12864_v7  ;;  %v12964_v7 = vld [vmem:[%s17135_s10 + $0x4d8] ss:$56 sps:$4 sm:$0xff]   ;;  %7820 = vmatpush1.bf16.msra.mxu0 %v12961_v35 }
 0x442   : > { %6463 = vmatpush1.bf16.msra.mxu1 %v12862_v9  ;;  %v12969_v9 = vld [vmem:[%s17135_s10 + $0x14] ss:$56 sps:$4 sm:$0xff]  }
 0x443   : > { %6464 = vmatprep.subr.bf16.mxu1 %v12867_v0  ;;  %v12972_v0 = vld [vmem:[%s17135_s10 + $0x1c] ss:$56 sps:$4 sm:$0xff]   ;;  %7943 = vmatprep.subr.bf16.mxu0 %v12969_v9  ;;  %v12985_v9 = vld [vmem:[%s17135_s10 + $0x160] ss:$56 sps:$4 sm:$0xff]  }
 0x445   : > { %6278 = vmatmul.mubr.bf16.gmra.mrb[36].mxu1 %v15406_v41 }
 0x446   : > { %11056 = vmatprep.mubr.msk.bf16.mxu1 %vm4770_vm0, %v15439_v21  ;;  %6465 = vmatpush1.bf16.msra.mxu1 %v12865_v10  ;;  %v6549_v10 = vld [vmem:[%s17133_s8] sm:$0x3] }
 0x447   : > { %6466 = vmatprep.subr.bf16.mxu1 %v12870_v11  ;;  %v15591_v11 = vrot.slane %v6549_v10, %v15203_v28 }
 0x44a   : > { %6467 = vmatpush1.bf16.msra.mxu1 %v12868_v39  ;;  %v15594_v39 = vrot.slane %v6549_v10, %v15212_v31 }
 0x44b   : > { %6468 = vmatprep.subr.bf16.mxu1 %v12873_v12 }
 0x44d   : > { %6288 = vmatmul.mubr.bf16.gmra.mrb[40].mxu1 %v15433_v19 }
 0x44e   : > { %11057 = vmatprep.mubr.msk.bf16.mxu1 %vm4770_vm0, %v15467_v49  ;;  %6469 = vmatpush1.bf16.msra.mxu1 %v12871_v13 }
 0x44f   : > { %6470 = vmatprep.subr.bf16.mxu1 %v12876_v2 }
 0x452   : > { %6471 = vmatpush1.bf16.msra.mxu1 %v12874_v15 }
 0x453   : > { %6472 = vmatprep.subr.bf16.mxu1 %v12879_v34 }
 0x455   : > { %6298 = vmatmul.mubr.bf16.gmra.mrb[44].mxu1 %v15461_v47 }
 0x456   : > { %6473 = vmatpush1.bf16.msra.mxu1 %v12877_v18  ;;  %11083 = vmatprep.mubr.msk.bf16.mxu1 %vm4770_vm0, %v15412_v45  ;;  %v12900_v45 = vld [vmem:[%s17135_s10 + $0xc] ss:$56 sps:$4 sm:$0xff]  }
 0x457   : > { %6474 = vmatprep.subr.bf16.mxu1 %v12882_v4 }
 0x45a   : > { %6475 = vmatpush1.bf16.msra.mxu1 %v12880_v14 }
 0x45b   : > { %6476 = vmatprep.subr.bf16.mxu1 %v12885_v17 }
 0x45e   : > { %6477 = vmatpush1.bf16.msra.mxu1 %v12883_v22 }
 0x45f   : > { %6478 = vmatprep.subr.bf16.mxu1 %v12888_v23 }
 0x462   : > { %6479 = vmatpush1.bf16.msra.mxu1 %v12886_v61 }
 0x463   : > { %6480 = vmatprep.subr.bf16.mxu1 %v12891_v24 }
 0x466   : > { %6481 = vmatpush1.bf16.msra.mxu1 %v12889_v6 }
 0x467   : > { %6482 = vmatprep.subr.bf16.mxu1 %v12894_v25 }
 0x46a   : > { %6483 = vmatpush1.bf16.msra.mxu1 %v12892_v8  ;;  %v12967_v8 = vld [vmem:[%s17135_s10 + $0x10] ss:$56 sps:$4 sm:$0xff]  }
 0x46b   : > { %7870 = vmatprep.subr.bf16.mxu1 %v12900_v45  ;;  %v12970_v45 = vld [vmem:[%s17135_s10 + $0x18] ss:$56 sps:$4 sm:$0xff]  }
 0x46d   : > { %6493 = vmatmul.mubr.bf16.vlgmr.msra.gmra.mrb[32].mxu1 %v15406_v41  ;;  %v12918_v41 = vld [vmem:[%s17135_s10 + $0x15c] ss:$56 sps:$4 sm:$0xff]  }
 0x46e   : > { %11084 = vmatprep.mubr.msk.bf16.mxu1 %vm4770_vm0, %v15439_v21  ;;  %7871 = vmatpush1.bf16.msra.mxu1 %v12898_v30  ;;  %v12916_v21 = vld [vmem:[%s17135_s10 + $0x158] ss:$56 sps:$4 sm:$0xff]  }
 0x46f   : > { %7872 = vmatprep.subr.bf16.mxu1 %v12906_v32 }
 0x472   : > { %7873 = vmatpush1.bf16.msra.mxu1 %v12904_v36  ;;  %v12975_v36 = vld [vmem:[%s17135_s10 + $0x84] ss:$56 sps:$4 sm:$0xff]  }
 0x473   : > { %7874 = vmatprep.subr.bf16.mxu1 %v12912_v33  ;;  %v12978_v33 = vld [vmem:[%s17135_s10 + $0x8c] ss:$56 sps:$4 sm:$0xff]  }
 0x475   : > { %6503 = vmatmul.mubr.bf16.gmra.mrb[36].mxu1 %v15433_v19  ;;  %v12930_v19 = vld [vmem:[%s17135_s10 + $0x23c] ss:$56 sps:$4 sm:$0xff]  }
 0x476   : > { %11085 = vmatprep.mubr.msk.bf16.mxu1 %vm4770_vm0, %v15467_v49  ;;  %7875 = vmatpush1.bf16.msra.mxu1 %v12910_v63  ;;  %v5836_v49 = vunpack.c.l.b16 %v13532_v38  ;;  %v12948_v38 = vld [vmem:[%s17135_s10 + $0x38c] ss:$56 sps:$4 sm:$0xff]  }
 0x477   : > { %7876 = vmatprep.subr.bf16.mxu1 %v12918_v41 }
 0x47a   : > { %7877 = vmatpush1.bf16.msra.mxu1 %v12916_v21 }
 0x47b   : > { %7878 = vmatprep.subr.bf16.mxu1 %v12924_v42 }
 0x47d   : > { %6513 = vmatmul.mubr.bf16.gmra.mrb[40].mxu1 %v15461_v47  ;;  %v6334_v47 = vpack.c.b16 %v5836_v49, %v5833_v44  ;;  %v12981_v49 = vld [vmem:[%s17135_s10 + $0xf4] ss:$56 sps:$4 sm:$0xff]  }
 0x47e   : > { %11086 = vmatprep.mubr.msk.bf16.mxu1 %vm4770_vm0, %v11058_v46  ;;  %7879 = vmatpush1.bf16.msra.mxu1 %v12922_v43  ;;  %v12976_v46 = vld [vmem:[%s17135_s10 + $0x88] ss:$56 sps:$4 sm:$0xff]  }
 0x47f   : > { %7880 = vmatprep.subr.bf16.mxu1 %v12930_v19  ;;  %v12973_v19 = vld [vmem:[%s17135_s10 + $0x80] ss:$56 sps:$4 sm:$0xff]  }
 0x482   : > { %7881 = vmatpush1.bf16.msra.mxu1 %v12928_v48 }
 0x483   : > { %7882 = vmatprep.subr.bf16.mxu1 %v12936_v50  ;;  %v12984_v50 = vld [vmem:[%s17135_s10 + $0xfc] ss:$56 sps:$4 sm:$0xff]  }
 0x485   : > { %6523 = vmatmul.mubr.bf16.gmra.mrb[44].mxu1 %v6334_v47 }
 0x486   : > { %7883 = vmatpush1.bf16.msra.mxu1 %v12934_v29 }
 0x487   : > { %7884 = vmatprep.subr.bf16.mxu1 %v12942_v51 }
 0x48a   : > { %7885 = vmatpush1.bf16.msra.mxu1 %v12940_v26 }
 0x48b   : > { %7886 = vmatprep.subr.bf16.mxu1 %v12948_v38 }
 0x48e   : > { %7887 = vmatpush1.bf16.msra.mxu1 %v12946_v52  ;;  %v12979_v52 = vld [vmem:[%s17135_s10 + $0xf0] ss:$56 sps:$4 sm:$0xff]  }
 0x48f   : > { %7888 = vmatprep.subr.bf16.mxu1 %v12954_v53  ;;  %v12982_v53 = vld [vmem:[%s17135_s10 + $0xf8] ss:$56 sps:$4 sm:$0xff]  }
 0x492   : > { %7889 = vmatpush1.bf16.msra.mxu1 %v12952_v54 }
 0x493   : > { %7890 = vmatprep.subr.bf16.mxu1 %v12960_v58 }
 0x496   : > { %7891 = vmatpush1.bf16.msra.mxu1 %v12958_v57  ;;  %v12990_v57 = vld [vmem:[%s17135_s10 + $0x16c] ss:$56 sps:$4 sm:$0xff]  }
 0x497   : > { %7892 = vmatprep.subr.bf16.mxu1 %v12966_v60 }
 0x49a   : > { %7893 = vmatpush1.bf16.msra.mxu1 %v12964_v7 }
 0x49b   : > { %8016 = vmatprep.subr.bf16.mxu1 %v12972_v0  ;;  %v12988_v0 = vld [vmem:[%s17135_s10 + $0x168] ss:$56 sps:$4 sm:$0xff]  }
 0x540   : > { %v6494_v12 = vpop.f32.mrb[32].mxu1 }
 0x541   : > { %v6561_v13 = vadd.f32 %v15591_v11, %v6494_v12  ;;  %v6496_v2 = vpop.f32.mrb[33].mxu1 }
 0x542   : > { %v6562_v15 = vadd.f32 %v15594_v39, %v6496_v2  ;;  %v6498_v34 = vpop.f32.mrb[34].mxu1  ;;  %v12996_v2 = vld [vmem:[%s17135_s10 + $0x1dc] ss:$56 sps:$4 sm:$0xff]  }
 0x543   : > { %v6563_v18 = vadd.f32 %v15591_v11, %v6498_v34  ;;  %v6500_v4 = vpop.f32.mrb[35].mxu1  ;;  %v6577_v17 = vmax.f32 %v6561_v13, 0.0  ;;  %v12993_v13 = vld [vmem:[%s17135_s10 + $0x1d4] ss:$56 sps:$4 sm:$0xff]  }
 0x544   : > { %v6564_v14 = vadd.f32 %v15594_v39, %v6500_v4  ;;  %v6578_v23 = vmax.f32 %v6562_v15, 0.0 }
 0x545   : > { %v6579_v22 = vmax.f32 %v6563_v18, 0.0 }
 0x546   : > { %v6580_v61 = vmax.f32 %v6564_v14, 0.0 }
 0x547   : > { %v15600_v24 = vpack.c.bf16 %v6579_v22, %v6577_v17  ;;  %v12991_v17 = vld [vmem:[%s17135_s10 + $0x1d0] ss:$56 sps:$4 sm:$0xff]  }
 0x548   : > { %v15602_v6 = vpack.c.bf16 %v6580_v61, %v6578_v23  ;;  %v6504_v25 = vpop.f32.mrb[36].mxu1  ;;  %v12994_v22 = vld [vmem:[%s17135_s10 + $0x1d8] ss:$56 sps:$4 sm:$0xff]  }
 0x549   : > { %v6565_v30 = vadd.f32 %v15591_v11, %v6504_v25  ;;  %v6506_v32 = vpop.f32.mrb[37].mxu1  ;;  %v12999_v25 = vld [vmem:[%s17135_s10 + $0x244] ss:$56 sps:$4 sm:$0xff]  }
 0x54a   : > { %v6566_v63 = vadd.f32 %v15594_v39, %v6506_v32  ;;  %v6508_v41 = vpop.f32.mrb[38].mxu1  ;;  %11255 = vmatprep.mubr.msk.bf16.mxu0 %vm4770_vm0, %v15602_v6  ;;  %11259 = vmatprep.mubr.msk.bf16.mxu1 %vm4770_vm0, %v15602_v6 }
 0x54b   : > { %v6567_v21 = vadd.f32 %v15591_v11, %v6508_v41  ;;  %v6510_v42 = vpop.f32.mrb[39].mxu1  ;;  %7830 = vmatmul.mubr.bf16.vlgmr.msra.gmra.mrb[32].mxu0 %v15600_v24  ;;  %7903 = vmatmul.mubr.bf16.vlgmr.msra.gmra.mrb[48].mxu1 %v15600_v24  ;;  %v6581_v48 = vmax.f32 %v6565_v30, 0.0  ;;  %v13000_v41 = vld [vmem:[%s17135_s10 + $0x248] ss:$56 sps:$4 sm:$0xff]  }
 0x54c   : > { %v6568_v43 = vadd.f32 %v15594_v39, %v6510_v42  ;;  %7944 = vmatpush1.bf16.msra.mxu0 %v12967_v8  ;;  %8017 = vmatpush1.bf16.msra.mxu1 %v12970_v45  ;;  %v6582_v29 = vmax.f32 %v6566_v63, 0.0  ;;  %v13002_v8 = vld [vmem:[%s17135_s10 + $0x24c] ss:$56 sps:$4 sm:$0xff]   ;;  %v12997_v63 = vld [vmem:[%s17135_s10 + $0x240] ss:$56 sps:$4 sm:$0xff]  }
 0x54d   : > { %v6583_v44 = vmax.f32 %v6567_v21, 0.0  ;;  %7945 = vmatprep.subr.bf16.mxu0 %v12975_v36  ;;  %8018 = vmatprep.subr.bf16.mxu1 %v12978_v33 }
 0x54e   : > { %v6584_v47 = vmax.f32 %v6568_v43, 0.0 }
 0x54f   : > { %v15638_v51 = vpack.c.bf16 %v6583_v44, %v6581_v48  ;;  %v13003_v44 = vld [vmem:[%s17135_s10 + $0x2b0] ss:$56 sps:$4 sm:$0xff]  }
 0x550   : > { %v15640_v26 = vpack.c.bf16 %v6584_v47, %v6582_v29  ;;  %7946 = vmatpush1.bf16.msra.mxu0 %v12973_v19  ;;  %8019 = vmatpush1.bf16.msra.mxu1 %v12976_v46  ;;  %v6514_v38 = vpop.f32.mrb[40].mxu1  ;;  %v13014_v29 = vld [vmem:[%s17135_s10 + $0x32c] ss:$56 sps:$4 sm:$0xff]   ;;  %v13009_v47 = vld [vmem:[%s17135_s10 + $0x320] ss:$56 sps:$4 sm:$0xff]  }
 0x551   : > { %v6569_v54 = vadd.f32 %v15591_v11, %v6514_v38  ;;  %v6516_v55 = vpop.f32.mrb[41].mxu1  ;;  %7947 = vmatprep.subr.bf16.mxu0 %v12981_v49  ;;  %8020 = vmatprep.subr.bf16.mxu1 %v12984_v50  ;;  %v13006_v49 = vld [vmem:[%s17135_s10 + $0x2b8] ss:$56 sps:$4 sm:$0xff]   ;;  %v13011_v50 = vld [vmem:[%s17135_s10 + $0x324] ss:$56 sps:$4 sm:$0xff]  }
 0x552   : > { %v6570_v58 = vadd.f32 %v15594_v39, %v6516_v55  ;;  %v6518_v59 = vpop.f32.mrb[42].mxu1  ;;  %11256 = vmatprep.mubr.msk.bf16.mxu0 %vm4770_vm0, %v15640_v26  ;;  %11260 = vmatprep.mubr.msk.bf16.mxu1 %vm4770_vm0, %v15640_v26  ;;  %v13012_v38 = vld [vmem:[%s17135_s10 + $0x328] ss:$56 sps:$4 sm:$0xff]   ;;  %v13018_v55 = vld [vmem:[%s17135_s10 + $0x398] ss:$56 sps:$4 sm:$0xff]  }
 0x553   : > { %v6571_v60 = vadd.f32 %v15591_v11, %v6518_v59  ;;  %v6520_v35 = vpop.f32.mrb[43].mxu1  ;;  %7840 = vmatmul.mubr.bf16.gmra.mrb[36].mxu0 %v15638_v51  ;;  %7913 = vmatmul.mubr.bf16.gmra.mrb[52].mxu1 %v15638_v51  ;;  %v6585_v10 = vmax.f32 %v6569_v54, 0.0  ;;  %v13015_v54 = vld [vmem:[%s17135_s10 + $0x390] ss:$56 sps:$4 sm:$0xff]  }
 0x554   : > { %v6572_v7 = vadd.f32 %v15594_v39, %v6520_v35  ;;  %7948 = vmatpush1.bf16.msra.mxu0 %v12979_v52  ;;  %8021 = vmatpush1.bf16.msra.mxu1 %v12982_v53  ;;  %v6586_v15 = vmax.f32 %v6570_v58, 0.0  ;;  %v13017_v52 = vld [vmem:[%s17135_s10 + $0x394] ss:$56 sps:$4 sm:$0xff]   ;;  %v13021_v58 = vld [vmem:[%s17135_s10 + $0x400] ss:$56 sps:$4 sm:$0xff]  }
 0x555   : > { %v6587_v12 = vmax.f32 %v6571_v60, 0.0  ;;  %7949 = vmatprep.subr.bf16.mxu0 %v12987_v56  ;;  %8022 = vmatprep.subr.bf16.mxu1 %v12990_v57  ;;  %v13020_v53 = vld [vmem:[%s17135_s10 + $0x39c] ss:$56 sps:$4 sm:$0xff]   ;;  %v13026_v57 = vld [vmem:[%s17135_s10 + $0x40c] ss:$56 sps:$4 sm:$0xff]  }
 0x556   : > { %v6588_v34 = vmax.f32 %v6572_v7, 0.0  ;;  %v13023_v56 = vld [vmem:[%s17135_s10 + $0x404] ss:$56 sps:$4 sm:$0xff]   ;;  %v13024_v59 = vld [vmem:[%s17135_s10 + $0x408] ss:$56 sps:$4 sm:$0xff]  }
 0x557   : > { %v15676_v18 = vpack.c.bf16 %v6587_v12, %v6585_v10  ;;  %v13029_v60 = vld [vmem:[%s17135_s10 + $0x474] ss:$56 sps:$4 sm:$0xff]   ;;  %v13027_v7 = vld [vmem:[%s17135_s10 + $0x470] ss:$56 sps:$4 sm:$0xff]   ;;  %v13033_v12 = vld [vmem:[%s17135_s10 + $0x4e0] ss:$56 sps:$4 sm:$0xff]  }
 0x558   : > { %v15678_v4 = vpack.c.bf16 %v6588_v34, %v6586_v15  ;;  %7950 = vmatpush1.bf16.msra.mxu0 %v12985_v9  ;;  %8023 = vmatpush1.bf16.msra.mxu1 %v12988_v0  ;;  %v6524_v14 = vpop.f32.mrb[44].mxu1  ;;  %v13032_v35 = vld [vmem:[%s17135_s10 + $0x47c] ss:$56 sps:$4 sm:$0xff]   ;;  %v13030_v9 = vld [vmem:[%s17135_s10 + $0x478] ss:$56 sps:$4 sm:$0xff]  }
 0x559   : > { %v6573_v23 = vadd.f32 %v15591_v11, %v6524_v14  ;;  %v6526_v61 = vpop.f32.mrb[45].mxu1  ;;  %7951 = vmatprep.subr.bf16.mxu0 %v12993_v13  ;;  %8024 = vmatprep.subr.bf16.mxu1 %v12996_v2  ;;  %v13035_v0 = vld [vmem:[%s17135_s10 + $0x4e4] ss:$56 sps:$4 sm:$0xff]   ;;  %v13036_v13 = vld [vmem:[%s17135_s10 + $0x4e8] ss:$56 sps:$4 sm:$0xff]  }
 0x55a   : > { %v6574_v45 = vadd.f32 %v15594_v39, %v6526_v61  ;;  %v6528_v30 = vpop.f32.mrb[46].mxu1  ;;  %11257 = vmatprep.mubr.msk.bf16.mxu0 %vm4770_vm0, %v15678_v4  ;;  %11261 = vmatprep.mubr.msk.bf16.mxu1 %vm4770_vm0, %v15678_v4  ;;  %v13038_v10 = vld [vmem:[%s17135_s10 + $0x4ec] ss:$56 sps:$4 sm:$0xff]   ;;  %v13039_v34 = vld [vmem:[%s17135_s10 + $0x20] ss:$56 sps:$4 sm:$0xff]  }
 0x55b   : > { %v6575_v32 = vadd.f32 %v15591_v11, %v6528_v30  ;;  %v6530_v36 = vpop.f32.mrb[47].mxu1  ;;  %7850 = vmatmul.mubr.bf16.gmra.mrb[40].mxu0 %v15676_v18  ;;  %7923 = vmatmul.mubr.bf16.gmra.mrb[56].mxu1 %v15676_v18  ;;  %v6589_v21 = vmax.f32 %v6573_v23, 0.0  ;;  %v13005_v11 = vld [vmem:[%s17135_s10 + $0x2b4] ss:$56 sps:$4 sm:$0xff]   ;;  %v13041_v2 = vld [vmem:[%s17135_s10 + $0x24] ss:$56 sps:$4 sm:$0xff]  }
 0x55c   : > { %v6576_v33 = vadd.f32 %v15594_v39, %v6530_v36  ;;  %7952 = vmatpush1.bf16.msra.mxu0 %v12991_v17  ;;  %8025 = vmatpush1.bf16.msra.mxu1 %v12994_v22  ;;  %v13008_v39 = vld [vmem:[%s17135_s10 + $0x2bc] ss:$56 sps:$4 sm:$0xff]   ;;  %v6590_v43 = vmax.f32 %v6574_v45, 0.0  ;;  %v13044_v15 = vld [vmem:[%s17135_s10 + $0x2c] ss:$56 sps:$4 sm:$0xff]  }
 0x55d   : > { %v6591_v42 = vmax.f32 %v6575_v32, 0.0  ;;  %7953 = vmatprep.subr.bf16.mxu0 %v12999_v25  ;;  %8026 = vmatprep.subr.bf16.mxu1 %v13002_v8  ;;  %v13042_v14 = vld [vmem:[%s17135_s10 + $0x28] ss:$56 sps:$4 sm:$0xff]   ;;  %v13047_v17 = vld [vmem:[%s17135_s10 + $0x94] ss:$56 sps:$4 sm:$0xff]  }
 0x55e   : > { %v6592_v19 = vmax.f32 %v6576_v33, 0.0  ;;  %v13050_v22 = vld [vmem:[%s17135_s10 + $0x9c] ss:$56 sps:$4 sm:$0xff]   ;;  %v13045_v23 = vld [vmem:[%s17135_s10 + $0x90] ss:$56 sps:$4 sm:$0xff]  }
 0x55f   : > { %v15714_v46 = vpack.c.bf16 %v6591_v42, %v6589_v21  ;;  %v13048_v61 = vld [vmem:[%s17135_s10 + $0x98] ss:$56 sps:$4 sm:$0xff]   ;;  %v13053_v25 = vld [vmem:[%s17135_s10 + $0x104] ss:$56 sps:$4 sm:$0xff]   ;;  %v13054_v30 = vld [vmem:[%s17135_s10 + $0x108] ss:$56 sps:$4 sm:$0xff]  }
 0x560   : > { %v15716_v48 = vpack.c.bf16 %v6592_v19, %v6590_v43  ;;  %7954 = vmatpush1.bf16.msra.mxu0 %v12997_v63  ;;  %8027 = vmatpush1.bf16.msra.mxu1 %v13000_v41  ;;  %v13056_v8 = vld [vmem:[%s17135_s10 + $0x10c] ss:$56 sps:$4 sm:$0xff]   ;;  %v13051_v45 = vld [vmem:[%s17135_s10 + $0x100] ss:$56 sps:$4 sm:$0xff]   ;;  %v13062_v36 = vld [vmem:[%s17135_s10 + $0x17c] ss:$56 sps:$4 sm:$0xff]  }
 0x561   : > { %7955 = vmatprep.subr.bf16.mxu0 %v13005_v11  ;;  %8028 = vmatprep.subr.bf16.mxu1 %v13008_v39  ;;  %v13059_v32 = vld [vmem:[%s17135_s10 + $0x174] ss:$56 sps:$4 sm:$0xff]   ;;  %v13057_v33 = vld [vmem:[%s17135_s10 + $0x170] ss:$56 sps:$4 sm:$0xff]   ;;  %v13065_v41 = vld [vmem:[%s17135_s10 + $0x1e4] ss:$56 sps:$4 sm:$0xff]  }
 0x562   : > { %11258 = vmatprep.mubr.msk.bf16.mxu0 %vm4770_vm0, %v15716_v48  ;;  %11262 = vmatprep.mubr.msk.bf16.mxu1 %vm4770_vm0, %v15716_v48  ;;  %v13060_v63 = vld [vmem:[%s17135_s10 + $0x178] ss:$56 sps:$4 sm:$0xff]   ;;  %v13068_v21 = vld [vmem:[%s17135_s10 + $0x1ec] ss:$56 sps:$4 sm:$0xff]   ;;  %v13066_v11 = vld [vmem:[%s17135_s10 + $0x1e8] ss:$56 sps:$4 sm:$0xff]  }
 0x563   : > { %7860 = vmatmul.mubr.bf16.gmra.mrb[44].mxu0 %v15714_v46  ;;  %7933 = vmatmul.mubr.bf16.gmra.mrb[60].mxu1 %v15714_v46  ;;  %v13063_v42 = vld [vmem:[%s17135_s10 + $0x1e0] ss:$56 sps:$4 sm:$0xff]   ;;  %v13071_v39 = vld [vmem:[%s17135_s10 + $0x254] ss:$56 sps:$4 sm:$0xff]   ;;  %v13069_v19 = vld [vmem:[%s17135_s10 + $0x250] ss:$56 sps:$4 sm:$0xff]  }
 0x564   : > { %7956 = vmatpush1.bf16.msra.mxu0 %v13003_v44  ;;  %8029 = vmatpush1.bf16.msra.mxu1 %v13006_v49  ;;  %v13074_v43 = vld [vmem:[%s17135_s10 + $0x25c] ss:$56 sps:$4 sm:$0xff]   ;;  %v13072_v44 = vld [vmem:[%s17135_s10 + $0x258] ss:$56 sps:$4 sm:$0xff]  }
 0x565   : > { %11263 = vmatprep.mubr.msk.bf16.mxu0 %vm4770_vm0, %v15602_v6  ;;  %11267 = vmatprep.mubr.msk.bf16.mxu1 %vm4770_vm0, %v15602_v6  ;;  %v13077_v49 = vld [vmem:[%s17135_s10 + $0x2c4] ss:$56 sps:$4 sm:$0xff]  }
 0x566   : > { %7957 = vmatprep.subr.bf16.mxu0 %v13011_v50  ;;  %8030 = vmatprep.subr.bf16.mxu1 %v13014_v29  ;;  %v13080_v50 = vld [vmem:[%s17135_s10 + $0x2cc] ss:$56 sps:$4 sm:$0xff]   ;;  %v13075_v29 = vld [vmem:[%s17135_s10 + $0x2c0] ss:$56 sps:$4 sm:$0xff]  }
 0x568   : > { %7958 = vmatpush1.bf16.msra.mxu0 %v13009_v47  ;;  %8031 = vmatpush1.bf16.msra.mxu1 %v13012_v38  ;;  %v13078_v47 = vld [vmem:[%s17135_s10 + $0x2c8] ss:$56 sps:$4 sm:$0xff]   ;;  %v13083_v38 = vld [vmem:[%s17135_s10 + $0x334] ss:$56 sps:$4 sm:$0xff]  }
 0x569   : > { %7959 = vmatprep.subr.bf16.mxu0 %v13017_v52  ;;  %8032 = vmatprep.subr.bf16.mxu1 %v13020_v53  ;;  %v13086_v52 = vld [vmem:[%s17135_s10 + $0x33c] ss:$56 sps:$4 sm:$0xff]   ;;  %v13081_v53 = vld [vmem:[%s17135_s10 + $0x330] ss:$56 sps:$4 sm:$0xff]  }
 0x56c   : > { %7960 = vmatpush1.bf16.msra.mxu0 %v13015_v54  ;;  %8033 = vmatpush1.bf16.msra.mxu1 %v13018_v55  ;;  %v13084_v54 = vld [vmem:[%s17135_s10 + $0x338] ss:$56 sps:$4 sm:$0xff]   ;;  %v13089_v55 = vld [vmem:[%s17135_s10 + $0x3a4] ss:$56 sps:$4 sm:$0xff]  }
 0x56d   : > { %7961 = vmatprep.subr.bf16.mxu0 %v13023_v56  ;;  %8034 = vmatprep.subr.bf16.mxu1 %v13026_v57  ;;  %v13092_v56 = vld [vmem:[%s17135_s10 + $0x3ac] ss:$56 sps:$4 sm:$0xff]   ;;  %v13087_v57 = vld [vmem:[%s17135_s10 + $0x3a0] ss:$56 sps:$4 sm:$0xff]  }
 0x570   : > { %7962 = vmatpush1.bf16.msra.mxu0 %v13021_v58  ;;  %8035 = vmatpush1.bf16.msra.mxu1 %v13024_v59  ;;  %v13090_v58 = vld [vmem:[%s17135_s10 + $0x3a8] ss:$56 sps:$4 sm:$0xff]   ;;  %v13095_v59 = vld [vmem:[%s17135_s10 + $0x414] ss:$56 sps:$4 sm:$0xff]  }
 0x571   : > { %7963 = vmatprep.subr.bf16.mxu0 %v13029_v60  ;;  %8036 = vmatprep.subr.bf16.mxu1 %v13032_v35  ;;  %v13098_v60 = vld [vmem:[%s17135_s10 + $0x41c] ss:$56 sps:$4 sm:$0xff]   ;;  %v13093_v35 = vld [vmem:[%s17135_s10 + $0x410] ss:$56 sps:$4 sm:$0xff]  }
 0x574   : > { %7964 = vmatpush1.bf16.msra.mxu0 %v13027_v7  ;;  %8037 = vmatpush1.bf16.msra.mxu1 %v13030_v9  ;;  %v13096_v7 = vld [vmem:[%s17135_s10 + $0x418] ss:$56 sps:$4 sm:$0xff]   ;;  %v13101_v9 = vld [vmem:[%s17135_s10 + $0x484] ss:$56 sps:$4 sm:$0xff]  }
 0x575   : > { %7965 = vmatprep.subr.bf16.mxu0 %v13035_v0  ;;  %8038 = vmatprep.subr.bf16.mxu1 %v13038_v10  ;;  %v13104_v0 = vld [vmem:[%s17135_s10 + $0x48c] ss:$56 sps:$4 sm:$0xff]   ;;  %v13099_v10 = vld [vmem:[%s17135_s10 + $0x480] ss:$56 sps:$4 sm:$0xff]  }
 0x578   : > { %7966 = vmatpush1.bf16.msra.mxu0 %v13033_v12  ;;  %8039 = vmatpush1.bf16.msra.mxu1 %v13036_v13  ;;  %v13102_v12 = vld [vmem:[%s17135_s10 + $0x488] ss:$56 sps:$4 sm:$0xff]   ;;  %v13107_v13 = vld [vmem:[%s17135_s10 + $0x4f4] ss:$56 sps:$4 sm:$0xff]  }
 0x579   : > { %8089 = vmatprep.subr.bf16.mxu0 %v13041_v2  ;;  %8162 = vmatprep.subr.bf16.mxu1 %v13044_v15  ;;  %v13110_v2 = vld [vmem:[%s17135_s10 + $0x4fc] ss:$56 sps:$4 sm:$0xff]   ;;  %v13105_v15 = vld [vmem:[%s17135_s10 + $0x4f0] ss:$56 sps:$4 sm:$0xff]  }
 0x57b   : > { %7976 = vmatmul.mubr.bf16.vlgmr.msra.gmra.mrb[48].mxu0 %v15600_v24  ;;  %8049 = vmatmul.mubr.bf16.vlgmr.msra.gmra.mrb[64].mxu1 %v15600_v24 }
 0x57c   : > { %11264 = vmatprep.mubr.msk.bf16.mxu0 %vm4770_vm0, %v15640_v26  ;;  %11268 = vmatprep.mubr.msk.bf16.mxu1 %vm4770_vm0, %v15640_v26 }
 0x57d   : > { %8090 = vmatpush1.bf16.msra.mxu0 %v13039_v34  ;;  %8163 = vmatpush1.bf16.msra.mxu1 %v13042_v14  ;;  %v13108_v34 = vld [vmem:[%s17135_s10 + $0x4f8] ss:$56 sps:$4 sm:$0xff]   ;;  %v13113_v14 = vld [vmem:[%s17135_s10 + $0x34] ss:$56 sps:$4 sm:$0xff]  }
 0x57e   : > { %8091 = vmatprep.subr.bf16.mxu0 %v13047_v17  ;;  %8164 = vmatprep.subr.bf16.mxu1 %v13050_v22  ;;  %v13116_v17 = vld [vmem:[%s17134_s9 + $0xc] ss:$56 sps:$4 sm:$0xff]   ;;  %v13111_v22 = vld [vmem:[%s17135_s10 + $0x30] ss:$56 sps:$4 sm:$0xff]  }
 0x581   : > { %8092 = vmatpush1.bf16.msra.mxu0 %v13045_v23  ;;  %8165 = vmatpush1.bf16.msra.mxu1 %v13048_v61  ;;  %v13114_v23 = vld [vmem:[%s17134_s9 + $0x8] ss:$56 sps:$4 sm:$0xff]   ;;  %v13119_v61 = vld [vmem:[%s17135_s10 + $0xa4] ss:$56 sps:$4 sm:$0xff]  }
 0x582   : > { %8093 = vmatprep.subr.bf16.mxu0 %v13053_v25  ;;  %8166 = vmatprep.subr.bf16.mxu1 %v13056_v8  ;;  %v13122_v25 = vld [vmem:[%s17134_s9 + $0x7c] ss:$56 sps:$4 sm:$0xff]   ;;  %v13117_v8 = vld [vmem:[%s17135_s10 + $0xa0] ss:$56 sps:$4 sm:$0xff]  }
 0x583   : > { %7986 = vmatmul.mubr.bf16.gmra.mrb[52].mxu0 %v15638_v51  ;;  %8059 = vmatmul.mubr.bf16.gmra.mrb[68].mxu1 %v15638_v51 }
 0x584   : > { %11265 = vmatprep.mubr.msk.bf16.mxu0 %vm4770_vm0, %v15678_v4  ;;  %11269 = vmatprep.mubr.msk.bf16.mxu1 %vm4770_vm0, %v15678_v4 }
 0x585   : > { %8094 = vmatpush1.bf16.msra.mxu0 %v13051_v45  ;;  %8167 = vmatpush1.bf16.msra.mxu1 %v13054_v30  ;;  %v13120_v45 = vld [vmem:[%s17134_s9 + $0x78] ss:$56 sps:$4 sm:$0xff]   ;;  %v13125_v30 = vld [vmem:[%s17135_s10 + $0x114] ss:$56 sps:$4 sm:$0xff]  }
 0x586   : > { %8095 = vmatprep.subr.bf16.mxu0 %v13059_v32  ;;  %8168 = vmatprep.subr.bf16.mxu1 %v13062_v36  ;;  %v13128_v32 = vld [vmem:[%s17134_s9 + $0xec] ss:$56 sps:$4 sm:$0xff]   ;;  %v13123_v36 = vld [vmem:[%s17135_s10 + $0x110] ss:$56 sps:$4 sm:$0xff]  }
 0x589   : > { %8096 = vmatpush1.bf16.msra.mxu0 %v13057_v33  ;;  %8169 = vmatpush1.bf16.msra.mxu1 %v13060_v63  ;;  %v13126_v33 = vld [vmem:[%s17134_s9 + $0xe8] ss:$56 sps:$4 sm:$0xff]   ;;  %v13131_v63 = vld [vmem:[%s17135_s10 + $0x184] ss:$56 sps:$4 sm:$0xff]  }
 0x58a   : > { %8097 = vmatprep.subr.bf16.mxu0 %v13065_v41  ;;  %8170 = vmatprep.subr.bf16.mxu1 %v13068_v21  ;;  %v13134_v41 = vld [vmem:[%s17134_s9 + $0x15c] ss:$56 sps:$4 sm:$0xff]   ;;  %v13129_v21 = vld [vmem:[%s17135_s10 + $0x180] ss:$56 sps:$4 sm:$0xff]  }
 0x58b   : > { %7996 = vmatmul.mubr.bf16.gmra.mrb[56].mxu0 %v15676_v18  ;;  %8069 = vmatmul.mubr.bf16.gmra.mrb[72].mxu1 %v15676_v18 }
 0x58c   : > { %11266 = vmatprep.mubr.msk.bf16.mxu0 %vm4770_vm0, %v15716_v48  ;;  %11270 = vmatprep.mubr.msk.bf16.mxu1 %vm4770_vm0, %v15716_v48 }
 0x58d   : > { %8098 = vmatpush1.bf16.msra.mxu0 %v13063_v42  ;;  %8171 = vmatpush1.bf16.msra.mxu1 %v13066_v11  ;;  %v13132_v42 = vld [vmem:[%s17134_s9 + $0x158] ss:$56 sps:$4 sm:$0xff]   ;;  %v13137_v11 = vld [vmem:[%s17135_s10 + $0x1f4] ss:$56 sps:$4 sm:$0xff]  }
 0x58e   : > { %8099 = vmatprep.subr.bf16.mxu0 %v13071_v39  ;;  %8172 = vmatprep.subr.bf16.mxu1 %v13074_v43  ;;  %v13140_v39 = vld [vmem:[%s17134_s9 + $0x1cc] ss:$56 sps:$4 sm:$0xff]   ;;  %v13135_v43 = vld [vmem:[%s17135_s10 + $0x1f0] ss:$56 sps:$4 sm:$0xff]  }
 0x591   : > { %8100 = vmatpush1.bf16.msra.mxu0 %v13069_v19  ;;  %8173 = vmatpush1.bf16.msra.mxu1 %v13072_v44  ;;  %v13138_v19 = vld [vmem:[%s17134_s9 + $0x1c8] ss:$56 sps:$4 sm:$0xff]   ;;  %v13143_v44 = vld [vmem:[%s17135_s10 + $0x264] ss:$56 sps:$4 sm:$0xff]  }
 0x592   : > { %8101 = vmatprep.subr.bf16.mxu0 %v13077_v49  ;;  %8174 = vmatprep.subr.bf16.mxu1 %v13080_v50  ;;  %v13146_v49 = vld [vmem:[%s17134_s9 + $0x23c] ss:$56 sps:$4 sm:$0xff]   ;;  %v13141_v50 = vld [vmem:[%s17135_s10 + $0x260] ss:$56 sps:$4 sm:$0xff]  }
 0x593   : > { %8006 = vmatmul.mubr.bf16.gmra.mrb[60].mxu0 %v15714_v46  ;;  %8079 = vmatmul.mubr.bf16.gmra.mrb[76].mxu1 %v15714_v46 }
 0x594   : > { %11271 = vmatprep.mubr.msk.bf16.mxu0 %vm4770_vm0, %v15602_v6  ;;  %11275 = vmatprep.mubr.msk.bf16.mxu1 %vm4770_vm0, %v15602_v6 }
 0x595   : > { %8102 = vmatpush1.bf16.msra.mxu0 %v13075_v29  ;;  %8175 = vmatpush1.bf16.msra.mxu1 %v13078_v47  ;;  %v13144_v29 = vld [vmem:[%s17134_s9 + $0x238] ss:$56 sps:$4 sm:$0xff]   ;;  %v13149_v47 = vld [vmem:[%s17135_s10 + $0x2d4] ss:$56 sps:$4 sm:$0xff]  }
 0x596   : > { %8103 = vmatprep.subr.bf16.mxu0 %v13083_v38  ;;  %8176 = vmatprep.subr.bf16.mxu1 %v13086_v52  ;;  %v13152_v38 = vld [vmem:[%s17134_s9 + $0x2ac] ss:$56 sps:$4 sm:$0xff]   ;;  %v13147_v52 = vld [vmem:[%s17135_s10 + $0x2d0] ss:$56 sps:$4 sm:$0xff]  }
 0x599   : > { %8104 = vmatpush1.bf16.msra.mxu0 %v13081_v53  ;;  %8177 = vmatpush1.bf16.msra.mxu1 %v13084_v54  ;;  %v13150_v53 = vld [vmem:[%s17134_s9 + $0x2a8] ss:$56 sps:$4 sm:$0xff]   ;;  %v13155_v54 = vld [vmem:[%s17135_s10 + $0x344] ss:$56 sps:$4 sm:$0xff]  }
 0x59a   : > { %8105 = vmatprep.subr.bf16.mxu0 %v13089_v55  ;;  %8178 = vmatprep.subr.bf16.mxu1 %v13092_v56  ;;  %v13158_v55 = vld [vmem:[%s17134_s9 + $0x31c] ss:$56 sps:$4 sm:$0xff]   ;;  %v13153_v56 = vld [vmem:[%s17135_s10 + $0x340] ss:$56 sps:$4 sm:$0xff]  }
 0x59d   : > { %8106 = vmatpush1.bf16.msra.mxu0 %v13087_v57  ;;  %8179 = vmatpush1.bf16.msra.mxu1 %v13090_v58  ;;  %v13156_v57 = vld [vmem:[%s17134_s9 + $0x318] ss:$56 sps:$4 sm:$0xff]   ;;  %v13161_v58 = vld [vmem:[%s17135_s10 + $0x3b4] ss:$56 sps:$4 sm:$0xff]  }
 0x59e   : > { %8107 = vmatprep.subr.bf16.mxu0 %v13095_v59  ;;  %8180 = vmatprep.subr.bf16.mxu1 %v13098_v60  ;;  %v13159_v59 = vld [vmem:[%s17135_s10 + $0x3b0] ss:$56 sps:$4 sm:$0xff]  }
 0x59f   : > { %v13162_v60 = vld [vmem:[%s17134_s9 + $0x388] ss:$56 sps:$4 sm:$0xff]  }
 0x5a1   : > { %8108 = vmatpush1.bf16.msra.mxu0 %v13093_v35  ;;  %8181 = vmatpush1.bf16.msra.mxu1 %v13096_v7  ;;  %v13167_v35 = vld [vmem:[%s17135_s10 + $0x424] ss:$56 sps:$4 sm:$0xff]  }
 0x5a2   : > { %8109 = vmatprep.subr.bf16.mxu0 %v13101_v9  ;;  %8182 = vmatprep.subr.bf16.mxu1 %v13104_v0  ;;  %v13170_v7 = vld [vmem:[%s17134_s9 + $0x3fc] ss:$56 sps:$4 sm:$0xff]   ;;  %v13165_v9 = vld [vmem:[%s17135_s10 + $0x420] ss:$56 sps:$4 sm:$0xff]  }
 0x5a3   : > { %v13168_v0 = vld [vmem:[%s17134_s9 + $0x3f8] ss:$56 sps:$4 sm:$0xff]  }
 0x5a5   : > { %8110 = vmatpush1.bf16.msra.mxu0 %v13099_v10  ;;  %8183 = vmatpush1.bf16.msra.mxu1 %v13102_v12  ;;  %v13173_v10 = vld [vmem:[%s17135_s10 + $0x494] ss:$56 sps:$4 sm:$0xff]  }
 0x5a6   : > { %8111 = vmatprep.subr.bf16.mxu0 %v13107_v13  ;;  %8184 = vmatprep.subr.bf16.mxu1 %v13110_v2  ;;  %v13176_v12 = vld [vmem:[%s17134_s9 + $0x46c] ss:$56 sps:$4 sm:$0xff]   ;;  %v13171_v13 = vld [vmem:[%s17135_s10 + $0x490] ss:$56 sps:$4 sm:$0xff]  }
 0x5a7   : > { %v13174_v2 = vld [vmem:[%s17134_s9 + $0x468] ss:$56 sps:$4 sm:$0xff]  }
 0x5a9   : > { %8112 = vmatpush1.bf16.msra.mxu0 %v13105_v15  ;;  %8185 = vmatpush1.bf16.msra.mxu1 %v13108_v34  ;;  %v13179_v15 = vld [vmem:[%s17135_s10 + $0x504] ss:$56 sps:$4 sm:$0xff]  }
 0x5aa   : > { %8235 = vmatprep.subr.bf16.mxu0 %v13113_v14  ;;  %9233 = vmatprep.subr.bf16.mxu1 %v13116_v17  ;;  %v13182_v34 = vld [vmem:[%s17134_s9 + $0x4dc] ss:$56 sps:$4 sm:$0xff]   ;;  %v13177_v14 = vld [vmem:[%s17135_s10 + $0x500] ss:$56 sps:$4 sm:$0xff]  }
 0x5ab   : > { %v13180_v17 = vld [vmem:[%s17134_s9 + $0x4d8] ss:$56 sps:$4 sm:$0xff]  }
 0x5ac   : > { %8122 = vmatmul.mubr.bf16.vlgmr.msra.gmra.mrb[64].mxu0 %v15600_v24  ;;  %8195 = vmatmul.mubr.bf16.vlgmr.msra.gmra.mrb[80].mxu1 %v15600_v24 }
 0x5ad   : > { %11272 = vmatprep.mubr.msk.bf16.mxu0 %vm4770_vm0, %v15640_v26  ;;  %11276 = vmatprep.mubr.msk.bf16.mxu1 %vm4770_vm0, %v15640_v26 }
 0x5ae   : > { %8236 = vmatpush1.bf16.msra.mxu0 %v13111_v22  ;;  %9234 = vmatpush1.bf16.msra.mxu1 %v13114_v23  ;;  %v13185_v22 = vld [vmem:[%s17134_s9 + $0x4] ss:$56 sps:$4 sm:$0xff]  }
 0x5af   : > { %8237 = vmatprep.subr.bf16.mxu0 %v13119_v61  ;;  %9235 = vmatprep.subr.bf16.mxu1 %v13122_v25  ;;  %v13188_v23 = vld [vmem:[%s17134_s9 + $0x1c] ss:$56 sps:$4 sm:$0xff]   ;;  %v13183_v61 = vld [vmem:[%s17134_s9] ss:$56 sps:$4 sm:$0xff]  }
 0x5b0   : > { %v13186_v25 = vld [vmem:[%s17134_s9 + $0x18] ss:$56 sps:$4 sm:$0xff]  }
 0x5b2   : > { %8238 = vmatpush1.bf16.msra.mxu0 %v13117_v8  ;;  %9236 = vmatpush1.bf16.msra.mxu1 %v13120_v45  ;;  %v13191_v8 = vld [vmem:[%s17134_s9 + $0x74] ss:$56 sps:$4 sm:$0xff]  }
 0x5b3   : > { %8239 = vmatprep.subr.bf16.mxu0 %v13125_v30  ;;  %9237 = vmatprep.subr.bf16.mxu1 %v13128_v32  ;;  %v13194_v45 = vld [vmem:[%s17134_s9 + $0x8c] ss:$56 sps:$4 sm:$0xff]   ;;  %v13189_v30 = vld [vmem:[%s17134_s9 + $0x70] ss:$56 sps:$4 sm:$0xff]  }
 0x5b4   : > { %8132 = vmatmul.mubr.bf16.gmra.mrb[68].mxu0 %v15638_v51  ;;  %8205 = vmatmul.mubr.bf16.gmra.mrb[84].mxu1 %v15638_v51  ;;  %v13192_v32 = vld [vmem:[%s17134_s9 + $0x88] ss:$56 sps:$4 sm:$0xff]  }
 0x5b5   : > { %11273 = vmatprep.mubr.msk.bf16.mxu0 %vm4770_vm0, %v15678_v4  ;;  %11277 = vmatprep.mubr.msk.bf16.mxu1 %vm4770_vm0, %v15678_v4 }
 0x5b6   : > { %8240 = vmatpush1.bf16.msra.mxu0 %v13123_v36  ;;  %9238 = vmatpush1.bf16.msra.mxu1 %v13126_v33  ;;  %v13195_v36 = vld [vmem:[%s17134_s9 + $0xe0] ss:$56 sps:$4 sm:$0xff]  }
 0x5b7   : > { %8241 = vmatprep.subr.bf16.mxu0 %v13131_v63  ;;  %9239 = vmatprep.subr.bf16.mxu1 %v13134_v41  ;;  %v13198_v33 = vld [vmem:[%s17134_s9 + $0xf8] ss:$56 sps:$4 sm:$0xff]   ;;  %v13203_v63 = vld [vmem:[%s17134_s9 + $0x154] ss:$56 sps:$4 sm:$0xff]  }
 0x5b8   : > { %v13206_v41 = vld [vmem:[%s17134_s9 + $0x16c] ss:$56 sps:$4 sm:$0xff]  }
 0x5ba   : > { %8242 = vmatpush1.bf16.msra.mxu0 %v13129_v21  ;;  %9240 = vmatpush1.bf16.msra.mxu1 %v13132_v42  ;;  %v13201_v21 = vld [vmem:[%s17134_s9 + $0x150] ss:$56 sps:$4 sm:$0xff]  }
 0x5bb   : > { %8243 = vmatprep.subr.bf16.mxu0 %v13137_v11  ;;  %9241 = vmatprep.subr.bf16.mxu1 %v13140_v39  ;;  %v13204_v42 = vld [vmem:[%s17134_s9 + $0x168] ss:$56 sps:$4 sm:$0xff]   ;;  %v13210_v39 = vld [vmem:[%s17134_s9 + $0x1d8] ss:$56 sps:$4 sm:$0xff]  }
 0x5bc   : > { %8142 = vmatmul.mubr.bf16.gmra.mrb[72].mxu0 %v15676_v18  ;;  %8215 = vmatmul.mubr.bf16.gmra.mrb[88].mxu1 %v15676_v18  ;;  %v13207_v11 = vld [vmem:[%s17134_s9 + $0x1c0] ss:$56 sps:$4 sm:$0xff]  }
 0x5bd   : > { %11274 = vmatprep.mubr.msk.bf16.mxu0 %vm4770_vm0, %v15716_v48  ;;  %11278 = vmatprep.mubr.msk.bf16.mxu1 %vm4770_vm0, %v15716_v48 }
 0x5be   : > { %8244 = vmatpush1.bf16.msra.mxu0 %v13135_v43  ;;  %9242 = vmatpush1.bf16.msra.mxu1 %v13138_v19  ;;  %v13215_v43 = vld [vmem:[%s17134_s9 + $0x234] ss:$56 sps:$4 sm:$0xff]  }
 0x5bf   : > { %8245 = vmatprep.subr.bf16.mxu0 %v13143_v44  ;;  %9243 = vmatprep.subr.bf16.mxu1 %v13146_v49  ;;  %v13218_v19 = vld [vmem:[%s17134_s9 + $0x24c] ss:$56 sps:$4 sm:$0xff]   ;;  %v13213_v44 = vld [vmem:[%s17134_s9 + $0x230] ss:$56 sps:$4 sm:$0xff]  }
 0x5c0   : > { %v13216_v49 = vld [vmem:[%s17134_s9 + $0x248] ss:$56 sps:$4 sm:$0xff]  }
 0x5c2   : > { %8246 = vmatpush1.bf16.msra.mxu0 %v13141_v50  ;;  %9244 = vmatpush1.bf16.msra.mxu1 %v13144_v29  ;;  %v13219_v50 = vld [vmem:[%s17134_s9 + $0x2a0] ss:$56 sps:$4 sm:$0xff]  }
 0x5c3   : > { %8247 = vmatprep.subr.bf16.mxu0 %v13149_v47  ;;  %9245 = vmatprep.subr.bf16.mxu1 %v13152_v38  ;;  %v13222_v29 = vld [vmem:[%s17134_s9 + $0x2b8] ss:$56 sps:$4 sm:$0xff]   ;;  %v13227_v47 = vld [vmem:[%s17134_s9 + $0x314] ss:$56 sps:$4 sm:$0xff]  }
 0x5c4   : > { %8152 = vmatmul.mubr.bf16.gmra.mrb[76].mxu0 %v15714_v46  ;;  %8225 = vmatmul.mubr.bf16.gmra.mrb[92].mxu1 %v15714_v46  ;;  %v13230_v38 = vld [vmem:[%s17134_s9 + $0x32c] ss:$56 sps:$4 sm:$0xff]  }
 0x5c5   : > { %11279 = vmatprep.mubr.msk.bf16.mxu0 %vm4770_vm0, %v15602_v6  ;;  %11455 = vmatprep.mubr.msk.bf16.mxu1 %vm4770_vm0, %v15238_v1  ;;  %v13164_v6 = vld [vmem:[%s17134_s9 + $0x38c] ss:$56 sps:$4 sm:$0xff]  }
 0x5c6   : > { %8248 = vmatpush1.bf16.msra.mxu0 %v13147_v52  ;;  %9246 = vmatpush1.bf16.msra.mxu1 %v13150_v53  ;;  %v13225_v52 = vld [vmem:[%s17134_s9 + $0x310] ss:$56 sps:$4 sm:$0xff]  }
 0x5c7   : > { %8249 = vmatprep.subr.bf16.mxu0 %v13155_v54  ;;  %9247 = vmatprep.subr.bf16.mxu1 %v13158_v55  ;;  %v13228_v53 = vld [vmem:[%s17134_s9 + $0x328] ss:$56 sps:$4 sm:$0xff]   ;;  %v13236_v54 = vld [vmem:[%s17134_s9 + $0x39c] ss:$56 sps:$4 sm:$0xff]  }
 0x5c8   : > { %v13231_v55 = vld [vmem:[%s17134_s9 + $0x380] ss:$56 sps:$4 sm:$0xff]  }
 0x5ca   : > { %8250 = vmatpush1.bf16.msra.mxu0 %v13153_v56  ;;  %9248 = vmatpush1.bf16.msra.mxu1 %v13156_v57  ;;  %v13234_v56 = vld [vmem:[%s17134_s9 + $0x398] ss:$56 sps:$4 sm:$0xff]   ;;  %v13239_v57 = vld [vmem:[%s17134_s9 + $0x3f4] ss:$56 sps:$4 sm:$0xff]  }
 0x5cb   : > { %8251 = vmatprep.subr.bf16.mxu0 %v13161_v58  ;;  %9249 = vmatprep.subr.bf16.mxu1 %v13164_v6  ;;  %v13242_v58 = vld [vmem:[%s17134_s9 + $0x40c] ss:$56 sps:$4 sm:$0xff]   ;;  %v13237_v6 = vld [vmem:[%s17134_s9 + $0x3f0] ss:$56 sps:$4 sm:$0xff]  }
 0x5ce   : > { %8252 = vmatpush1.bf16.msra.mxu0 %v13159_v59  ;;  %9250 = vmatpush1.bf16.msra.mxu1 %v13162_v60  ;;  %v13240_v59 = vld [vmem:[%s17134_s9 + $0x408] ss:$56 sps:$4 sm:$0xff]   ;;  %v13245_v60 = vld [vmem:[%s17134_s9 + $0x464] ss:$56 sps:$4 sm:$0xff]  }
 0x5cf   : > { %8253 = vmatprep.subr.bf16.mxu0 %v13167_v35  ;;  %9251 = vmatprep.subr.bf16.mxu1 %v13170_v7  ;;  %v13248_v35 = vld [vmem:[%s17134_s9 + $0x47c] ss:$56 sps:$4 sm:$0xff]   ;;  %v13243_v7 = vld [vmem:[%s17134_s9 + $0x460] ss:$56 sps:$4 sm:$0xff]  }
 0x5d2   : > { %8254 = vmatpush1.bf16.msra.mxu0 %v13165_v9  ;;  %9252 = vmatpush1.bf16.msra.mxu1 %v13168_v0  ;;  %v13246_v9 = vld [vmem:[%s17134_s9 + $0x478] ss:$56 sps:$4 sm:$0xff]   ;;  %v13251_v0 = vld [vmem:[%s17134_s9 + $0x4d4] ss:$56 sps:$4 sm:$0xff]  }
 0x5d3   : > { %8255 = vmatprep.subr.bf16.mxu0 %v13173_v10  ;;  %9253 = vmatprep.subr.bf16.mxu1 %v13176_v12  ;;  %v13254_v10 = vld [vmem:[%s17134_s9 + $0x4ec] ss:$56 sps:$4 sm:$0xff]   ;;  %v13249_v12 = vld [vmem:[%s17134_s9 + $0x4d0] ss:$56 sps:$4 sm:$0xff]  }
 0x5d6   : > { %8256 = vmatpush1.bf16.msra.mxu0 %v13171_v13  ;;  %9254 = vmatpush1.bf16.msra.mxu1 %v13174_v2  ;;  %v13252_v13 = vld [vmem:[%s17134_s9 + $0x4e8] ss:$56 sps:$4 sm:$0xff]   ;;  %v13257_v2 = vld [vmem:[%s17134_s9 + $0x14] ss:$56 sps:$4 sm:$0xff]  }
 0x5d7   : > { %8257 = vmatprep.subr.bf16.mxu0 %v13179_v15  ;;  %9255 = vmatprep.subr.bf16.mxu1 %v13182_v34  ;;  %v13260_v15 = vld [vmem:[%s17134_s9 + $0x2c] ss:$56 sps:$4 sm:$0xff]   ;;  %v13255_v34 = vld [vmem:[%s17134_s9 + $0x10] ss:$56 sps:$4 sm:$0xff]  }
 0x5da   : > { %8258 = vmatpush1.bf16.msra.mxu0 %v13177_v14  ;;  %9256 = vmatpush1.bf16.msra.mxu1 %v13180_v17  ;;  %v13258_v14 = vld [vmem:[%s17134_s9 + $0x28] ss:$56 sps:$4 sm:$0xff]   ;;  %v13263_v17 = vld [vmem:[%s17134_s9 + $0x84] ss:$56 sps:$4 sm:$0xff]  }
 0x5db   : > { %9160 = vmatprep.subr.bf16.mxu0 %v13185_v22  ;;  %9379 = vmatprep.subr.bf16.mxu1 %v13188_v23  ;;  %v13266_v22 = vld [vmem:[%s17134_s9 + $0x9c] ss:$56 sps:$4 sm:$0xff]   ;;  %v13261_v23 = vld [vmem:[%s17134_s9 + $0x80] ss:$56 sps:$4 sm:$0xff]  }
 0x5dd   : > { %8268 = vmatmul.mubr.bf16.vlgmr.msra.gmra.mrb[80].mxu0 %v15600_v24  ;;  %9266 = vmatmul.mubr.bf16.vlgmr.msra.gmra.mrb[48].mxu1 %v15234_v62  ;;  %v13197_v24 = vld [vmem:[%s17134_s9 + $0xe4] ss:$56 sps:$4 sm:$0xff]  }
 0x5de   : > { %11280 = vmatprep.mubr.msk.bf16.mxu0 %vm4770_vm0, %v15640_v26  ;;  %9161 = vmatpush1.bf16.msra.mxu0 %v13183_v61  ;;  %v13200_v26 = vld [vmem:[%s17134_s9 + $0xfc] ss:$56 sps:$4 sm:$0xff]   ;;  %v13264_v61 = vld [vmem:[%s17134_s9 + $0x98] ss:$56 sps:$4 sm:$0xff]  }
 0x5df   : > { %11456 = vmatprep.mubr.msk.bf16.mxu1 %vm4770_vm0, %v15255_v40  ;;  %9380 = vmatpush1.bf16.msra.mxu1 %v13186_v25  ;;  %v13269_v25 = vld [vmem:[%s17134_s9 + $0xf4] ss:$56 sps:$4 sm:$0xff]  }
 0x5e0   : > { %9162 = vmatprep.subr.bf16.mxu0 %v13191_v8  ;;  %9381 = vmatprep.subr.bf16.mxu1 %v13194_v45  ;;  %v13272_v8 = vld [vmem:[%s17134_s9 + $0x10c] ss:$56 sps:$4 sm:$0xff]   ;;  %v13267_v45 = vld [vmem:[%s17134_s9 + $0xf0] ss:$56 sps:$4 sm:$0xff]  }
 0x5e2   : > { %9163 = vmatpush1.bf16.msra.mxu0 %v13189_v30  ;;  %v13270_v30 = vld [vmem:[%s17134_s9 + $0x108] ss:$56 sps:$4 sm:$0xff]  }
 0x5e3   : > { %9382 = vmatpush1.bf16.msra.mxu1 %v13192_v32  ;;  %9164 = vmatprep.subr.bf16.mxu0 %v13197_v24  ;;  %v13275_v32 = vld [vmem:[%s17134_s9 + $0x164] ss:$56 sps:$4 sm:$0xff]  }
 0x5e4   : > { %9383 = vmatprep.subr.bf16.mxu1 %v13200_v26  ;;  %v13278_v24 = vld [vmem:[%s17134_s9 + $0x17c] ss:$56 sps:$4 sm:$0xff]   ;;  %v13273_v26 = vld [vmem:[%s17134_s9 + $0x160] ss:$56 sps:$4 sm:$0xff]  }
 0x5e5   : > { %8278 = vmatmul.mubr.bf16.gmra.mrb[84].mxu0 %v15638_v51  ;;  %9276 = vmatmul.mubr.bf16.gmra.mrb[52].mxu1 %v15251_v37  ;;  %v13209_v51 = vld [vmem:[%s17134_s9 + $0x1c4] ss:$56 sps:$4 sm:$0xff]  }
 0x5e6   : > { %11281 = vmatprep.mubr.msk.bf16.mxu0 %vm4770_vm0, %v15678_v4  ;;  %9165 = vmatpush1.bf16.msra.mxu0 %v13195_v36  ;;  %v13212_v4 = vld [vmem:[%s17134_s9 + $0x1dc] ss:$56 sps:$4 sm:$0xff]   ;;  %v13276_v36 = vld [vmem:[%s17134_s9 + $0x178] ss:$56 sps:$4 sm:$0xff]  }
 0x5e7   : > { %11457 = vmatprep.mubr.msk.bf16.mxu1 %vm4770_vm0, %v15273_v20  ;;  %9384 = vmatpush1.bf16.msra.mxu1 %v13198_v33  ;;  %v13281_v33 = vld [vmem:[%s17134_s9 + $0x1d4] ss:$56 sps:$4 sm:$0xff]  }
 0x5e8   : > { %9166 = vmatprep.subr.bf16.mxu0 %v13203_v63  ;;  %9385 = vmatprep.subr.bf16.mxu1 %v13206_v41  ;;  %v13284_v63 = vld [vmem:[%s17134_s9 + $0x1ec] ss:$56 sps:$4 sm:$0xff]   ;;  %v13279_v41 = vld [vmem:[%s17134_s9 + $0x1d0] ss:$56 sps:$4 sm:$0xff]  }
 0x5ea   : > { %9167 = vmatpush1.bf16.msra.mxu0 %v13201_v21  ;;  %v13282_v21 = vld [vmem:[%s17134_s9 + $0x1e8] ss:$56 sps:$4 sm:$0xff]  }
 0x5eb   : > { %9386 = vmatpush1.bf16.msra.mxu1 %v13204_v42  ;;  %9168 = vmatprep.subr.bf16.mxu0 %v13209_v51  ;;  %v13287_v42 = vld [vmem:[%s17134_s9 + $0x244] ss:$56 sps:$4 sm:$0xff]  }
 0x5ec   : > { %9387 = vmatprep.subr.bf16.mxu1 %v13212_v4  ;;  %v13290_v51 = vld [vmem:[%s17134_s9 + $0x25c] ss:$56 sps:$4 sm:$0xff]   ;;  %v13285_v4 = vld [vmem:[%s17134_s9 + $0x240] ss:$56 sps:$4 sm:$0xff]  }
 0x5ed   : > { %8288 = vmatmul.mubr.bf16.gmra.mrb[88].mxu0 %v15676_v18  ;;  %9286 = vmatmul.mubr.bf16.gmra.mrb[56].mxu1 %v15269_v16  ;;  %v13221_v18 = vld [vmem:[%s17134_s9 + $0x2a4] ss:$56 sps:$4 sm:$0xff]  }
 0x5ee   : > { %11282 = vmatprep.mubr.msk.bf16.mxu0 %vm4770_vm0, %v15716_v48  ;;  %9169 = vmatpush1.bf16.msra.mxu0 %v13207_v11  ;;  %v13224_v48 = vld [vmem:[%s17134_s9 + $0x2bc] ss:$56 sps:$4 sm:$0xff]   ;;  %v13288_v11 = vld [vmem:[%s17134_s9 + $0x258] ss:$56 sps:$4 sm:$0xff]  }
 0x5ef   : > { %11458 = vmatprep.mubr.msk.bf16.mxu1 %vm4770_vm0, %v15291_v5  ;;  %9388 = vmatpush1.bf16.msra.mxu1 %v13210_v39  ;;  %v13293_v39 = vld [vmem:[%s17134_s9 + $0x2b4] ss:$56 sps:$4 sm:$0xff]  }
 0x5f0   : > { %9170 = vmatprep.subr.bf16.mxu0 %v13215_v43  ;;  %9389 = vmatprep.subr.bf16.mxu1 %v13218_v19  ;;  %v13296_v43 = vld [vmem:[%s17134_s9 + $0x2cc] ss:$56 sps:$4 sm:$0xff]   ;;  %v13291_v19 = vld [vmem:[%s17134_s9 + $0x2b0] ss:$56 sps:$4 sm:$0xff]  }
 0x5f2   : > { %9171 = vmatpush1.bf16.msra.mxu0 %v13213_v44  ;;  %v13294_v44 = vld [vmem:[%s17134_s9 + $0x2c8] ss:$56 sps:$4 sm:$0xff]  }
 0x5f3   : > { %9390 = vmatpush1.bf16.msra.mxu1 %v13216_v49  ;;  %9172 = vmatprep.subr.bf16.mxu0 %v13221_v18  ;;  %v13299_v49 = vld [vmem:[%s17134_s9 + $0x324] ss:$56 sps:$4 sm:$0xff]  }
 0x5f4   : > { %9391 = vmatprep.subr.bf16.mxu1 %v13224_v48  ;;  %v13302_v18 = vld [vmem:[%s17134_s9 + $0x33c] ss:$56 sps:$4 sm:$0xff]   ;;  %v13297_v48 = vld [vmem:[%s17134_s9 + $0x320] ss:$56 sps:$4 sm:$0xff]  }
 0x5f5   : > { %8298 = vmatmul.mubr.bf16.gmra.mrb[92].mxu0 %v15714_v46  ;;  %9296 = vmatmul.mubr.bf16.gmra.mrb[60].mxu1 %v15287_v3  ;;  %v13233_v46 = vld [vmem:[%s17134_s9 + $0x384] ss:$56 sps:$4 sm:$0xff]  }
 0x5f6   : > { %9173 = vmatpush1.bf16.msra.mxu0 %v13219_v50  ;;  %11451 = vmatprep.mubr.msk.bf16.mxu0 %vm4770_vm0, %v15238_v1  ;;  %v13300_v50 = vld [vmem:[%s17134_s9 + $0x338] ss:$56 sps:$4 sm:$0xff]  }
 0x5f7   : > { %9392 = vmatpush1.bf16.msra.mxu1 %v13222_v29  ;;  %11463 = vmatprep.mubr.msk.bf16.mxu1 %vm4770_vm0, %v15238_v1  ;;  %v13305_v29 = vld [vmem:[%s17134_s9 + $0x394] ss:$56 sps:$4 sm:$0xff]  }
 0x5f8   : > { %9174 = vmatprep.subr.bf16.mxu0 %v13227_v47  ;;  %9393 = vmatprep.subr.bf16.mxu1 %v13230_v38  ;;  %v13308_v47 = vld [vmem:[%s17134_s9 + $0x3ac] ss:$56 sps:$4 sm:$0xff]   ;;  %v13303_v38 = vld [vmem:[%s17134_s9 + $0x390] ss:$56 sps:$4 sm:$0xff]  }
 0x5fa   : > { %9175 = vmatpush1.bf16.msra.mxu0 %v13225_v52  ;;  %v13306_v52 = vld [vmem:[%s17134_s9 + $0x3a8] ss:$56 sps:$4 sm:$0xff]  }
 0x5fb   : > { %9394 = vmatpush1.bf16.msra.mxu1 %v13228_v53  ;;  %9176 = vmatprep.subr.bf16.mxu0 %v13233_v46  ;;  %v13311_v53 = vld [vmem:[%s17134_s9 + $0x404] ss:$56 sps:$4 sm:$0xff]  }
 0x5fc   : > { %9395 = vmatprep.subr.bf16.mxu1 %v13236_v54  ;;  %v13314_v46 = vld [vmem:[%s17134_s9 + $0x41c] ss:$56 sps:$4 sm:$0xff]   ;;  %v13309_v54 = vld [vmem:[%s17134_s9 + $0x400] ss:$56 sps:$4 sm:$0xff]  }
 0x5fe   : > { %9177 = vmatpush1.bf16.msra.mxu0 %v13231_v55  ;;  %v13312_v55 = vld [vmem:[%s17134_s9 + $0x418] ss:$56 sps:$4 sm:$0xff]  }
 0x5ff   : > { %9396 = vmatpush1.bf16.msra.mxu1 %v13234_v56  ;;  %9178 = vmatprep.subr.bf16.mxu0 %v13239_v57  ;;  %v13317_v56 = vld [vmem:[%s17134_s9 + $0x474] ss:$56 sps:$4 sm:$0xff]  }
 0x600   : > { %9397 = vmatprep.subr.bf16.mxu1 %v13242_v58  ;;  %v13320_v57 = vld [vmem:[%s17134_s9 + $0x48c] ss:$56 sps:$4 sm:$0xff]   ;;  %v13315_v58 = vld [vmem:[%s17134_s9 + $0x470] ss:$56 sps:$4 sm:$0xff]  }
 0x602   : > { %9179 = vmatpush1.bf16.msra.mxu0 %v13237_v6  ;;  %v13318_v6 = vld [vmem:[%s17134_s9 + $0x488] ss:$56 sps:$4 sm:$0xff]  }
 0x603   : > { %9398 = vmatpush1.bf16.msra.mxu1 %v13240_v59  ;;  %9180 = vmatprep.subr.bf16.mxu0 %v13245_v60  ;;  %v13323_v59 = vld [vmem:[%s17134_s9 + $0x4e4] ss:$56 sps:$4 sm:$0xff]  }
 0x604   : > { %9399 = vmatprep.subr.bf16.mxu1 %v13248_v35  ;;  %v13326_v60 = vld [vmem:[%s17134_s9 + $0x4fc] ss:$56 sps:$4 sm:$0xff]   ;;  %v13321_v35 = vld [vmem:[%s17134_s9 + $0x4e0] ss:$56 sps:$4 sm:$0xff]  }
 0x606   : > { %9181 = vmatpush1.bf16.msra.mxu0 %v13243_v7  ;;  %v13324_v7 = vld [vmem:[%s17134_s9 + $0x4f8] ss:$56 sps:$4 sm:$0xff]  }
 0x607   : > { %9400 = vmatpush1.bf16.msra.mxu1 %v13246_v9  ;;  %9182 = vmatprep.subr.bf16.mxu0 %v13251_v0  ;;  %v13329_v9 = vld [vmem:[%s17134_s9 + $0x24] ss:$56 sps:$4 sm:$0xff]   ;;  %v13327_v0 = vld [vmem:[%s17134_s9 + $0x20] ss:$56 sps:$4 sm:$0xff]  }
 0x608   : > { %9401 = vmatprep.subr.bf16.mxu1 %v13254_v10  ;;  %v13332_v10 = vld [vmem:[%s17134_s9 + $0x94] ss:$56 sps:$4 sm:$0xff]  }
 0x60a   : > { %9183 = vmatpush1.bf16.msra.mxu0 %v13249_v12  ;;  %v13330_v12 = vld [vmem:[%s17134_s9 + $0x90] ss:$56 sps:$4 sm:$0xff]  }
 0x60b   : > { %9402 = vmatpush1.bf16.msra.mxu1 %v13252_v13  ;;  %9306 = vmatprep.subr.bf16.mxu0 %v13257_v2  ;;  %v13335_v13 = vld [vmem:[%s17134_s9 + $0x104] ss:$56 sps:$4 sm:$0xff]   ;;  %v13333_v2 = vld [vmem:[%s17134_s9 + $0x100] ss:$56 sps:$4 sm:$0xff]  }
 0x60c   : > { %9525 = vmatprep.subr.bf16.mxu1 %v13260_v15  ;;  %v13338_v15 = vld [vmem:[%s17134_s9 + $0x174] ss:$56 sps:$4 sm:$0xff]  }
 0x60d   : > { %9193 = vmatmul.mubr.bf16.vlgmr.msra.gmra.mrb[32].mxu0 %v15234_v62 }
 0x60e   : > { %9412 = vmatmul.mubr.bf16.vlgmr.msra.gmra.mrb[64].mxu1 %v15234_v62  ;;  %11452 = vmatprep.mubr.msk.bf16.mxu0 %vm4770_vm0, %v15255_v40 }
 0x60f   : > { %9307 = vmatpush1.bf16.msra.mxu0 %v13255_v34  ;;  %11464 = vmatprep.mubr.msk.bf16.mxu1 %vm4770_vm0, %v15255_v40  ;;  %v13336_v34 = vld [vmem:[%s17134_s9 + $0x170] ss:$56 sps:$4 sm:$0xff]  }
 0x610   : > { %9526 = vmatpush1.bf16.msra.mxu1 %v13258_v14  ;;  %9308 = vmatprep.subr.bf16.mxu0 %v13263_v17  ;;  %v13341_v14 = vld [vmem:[%s17134_s9 + $0x1e4] ss:$56 sps:$4 sm:$0xff]   ;;  %v13339_v17 = vld [vmem:[%s17134_s9 + $0x1e0] ss:$56 sps:$4 sm:$0xff]  }
 0x611   : > { %9527 = vmatprep.subr.bf16.mxu1 %v13266_v22  ;;  %v13344_v22 = vld [vmem:[%s17134_s9 + $0x254] ss:$56 sps:$4 sm:$0xff]  }
 0x613   : > { %9309 = vmatpush1.bf16.msra.mxu0 %v13261_v23  ;;  %v13342_v23 = vld [vmem:[%s17134_s9 + $0x250] ss:$56 sps:$4 sm:$0xff]  }
 0x614   : > { %9528 = vmatpush1.bf16.msra.mxu1 %v13264_v61  ;;  %9310 = vmatprep.subr.bf16.mxu0 %v13269_v25  ;;  %v13347_v61 = vld [vmem:[%s17134_s9 + $0x2c4] ss:$56 sps:$4 sm:$0xff]   ;;  %v13345_v25 = vld [vmem:[%s17134_s9 + $0x2c0] ss:$56 sps:$4 sm:$0xff]  }
 0x615   : > { %9203 = vmatmul.mubr.bf16.gmra.mrb[36].mxu0 %v15251_v37  ;;  %9529 = vmatprep.subr.bf16.mxu1 %v13272_v8  ;;  %v13350_v8 = vld [vmem:[%s17134_s9 + $0x334] ss:$56 sps:$4 sm:$0xff]  }
 0x616   : > { %9422 = vmatmul.mubr.bf16.gmra.mrb[68].mxu1 %v15251_v37  ;;  %11453 = vmatprep.mubr.msk.bf16.mxu0 %vm4770_vm0, %v15273_v20 }
 0x617   : > { %9311 = vmatpush1.bf16.msra.mxu0 %v13267_v45  ;;  %11465 = vmatprep.mubr.msk.bf16.mxu1 %vm4770_vm0, %v15273_v20  ;;  %v13348_v45 = vld [vmem:[%s17134_s9 + $0x330] ss:$56 sps:$4 sm:$0xff]  }
 0x618   : > { %9530 = vmatpush1.bf16.msra.mxu1 %v13270_v30  ;;  %9312 = vmatprep.subr.bf16.mxu0 %v13275_v32  ;;  %v13353_v30 = vld [vmem:[%s17134_s9 + $0x3a4] ss:$56 sps:$4 sm:$0xff]   ;;  %v13351_v32 = vld [vmem:[%s17134_s9 + $0x3a0] ss:$56 sps:$4 sm:$0xff]  }
 0x619   : > { %9531 = vmatprep.subr.bf16.mxu1 %v13278_v24  ;;  %v13356_v24 = vld [vmem:[%s17134_s9 + $0x414] ss:$56 sps:$4 sm:$0xff]  }
 0x61b   : > { %9313 = vmatpush1.bf16.msra.mxu0 %v13273_v26  ;;  %v13354_v26 = vld [vmem:[%s17134_s9 + $0x410] ss:$56 sps:$4 sm:$0xff]  }
 0x61c   : > { %9532 = vmatpush1.bf16.msra.mxu1 %v13276_v36  ;;  %9314 = vmatprep.subr.bf16.mxu0 %v13281_v33  ;;  %v13359_v36 = vld [vmem:[%s17134_s9 + $0x484] ss:$56 sps:$4 sm:$0xff]   ;;  %v13357_v33 = vld [vmem:[%s17134_s9 + $0x480] ss:$56 sps:$4 sm:$0xff]  }
 0x61d   : > { %9213 = vmatmul.mubr.bf16.gmra.mrb[40].mxu0 %v15269_v16  ;;  %9533 = vmatprep.subr.bf16.mxu1 %v13284_v63  ;;  %v13362_v63 = vld [vmem:[%s17134_s9 + $0x4f4] ss:$56 sps:$4 sm:$0xff]  }
 0x61e   : > { %9432 = vmatmul.mubr.bf16.gmra.mrb[72].mxu1 %v15269_v16  ;;  %11454 = vmatprep.mubr.msk.bf16.mxu0 %vm4770_vm0, %v15291_v5 }
 0x61f   : > { %9315 = vmatpush1.bf16.msra.mxu0 %v13279_v41  ;;  %11466 = vmatprep.mubr.msk.bf16.mxu1 %vm4770_vm0, %v15291_v5  ;;  %v13360_v41 = vld [vmem:[%s17134_s9 + $0x4f0] ss:$56 sps:$4 sm:$0xff]  }
 0x620   : > { %9534 = vmatpush1.bf16.msra.mxu1 %v13282_v21  ;;  %9316 = vmatprep.subr.bf16.mxu0 %v13287_v42  ;;  %v13365_v21 = vld [vmem:[%s17134_s9 + $0x34] ss:$56 sps:$4 sm:$0xff]   ;;  %v13363_v42 = vld [vmem:[%s17134_s9 + $0x30] ss:$56 sps:$4 sm:$0xff]  }
 0x621   : > { %9535 = vmatprep.subr.bf16.mxu1 %v13290_v51  ;;  %v13368_v51 = vld [vmem:[%s17134_s9 + $0xa4] ss:$56 sps:$4 sm:$0xff]  }
 0x623   : > { %9317 = vmatpush1.bf16.msra.mxu0 %v13285_v4  ;;  %v13366_v4 = vld [vmem:[%s17134_s9 + $0xa0] ss:$56 sps:$4 sm:$0xff]  }
 0x624   : > { %9536 = vmatpush1.bf16.msra.mxu1 %v13288_v11  ;;  %9318 = vmatprep.subr.bf16.mxu0 %v13293_v39  ;;  %v13371_v11 = vld [vmem:[%s17134_s9 + $0x114] ss:$56 sps:$4 sm:$0xff]   ;;  %v13369_v39 = vld [vmem:[%s17134_s9 + $0x110] ss:$56 sps:$4 sm:$0xff]  }
 0x625   : > { %9223 = vmatmul.mubr.bf16.gmra.mrb[44].mxu0 %v15287_v3  ;;  %9537 = vmatprep.subr.bf16.mxu1 %v13296_v43  ;;  %v13374_v43 = vld [vmem:[%s17134_s9 + $0x184] ss:$56 sps:$4 sm:$0xff]  }
 0x626   : > { %9442 = vmatmul.mubr.bf16.gmra.mrb[76].mxu1 %v15287_v3  ;;  %11459 = vmatprep.mubr.msk.bf16.mxu0 %vm4770_vm0, %v15238_v1 }
 0x627   : > { %9319 = vmatpush1.bf16.msra.mxu0 %v13291_v19  ;;  %11471 = vmatprep.mubr.msk.bf16.mxu1 %vm4770_vm0, %v15238_v1  ;;  %v13372_v19 = vld [vmem:[%s17134_s9 + $0x180] ss:$56 sps:$4 sm:$0xff]  }
 0x628   : > { %9538 = vmatpush1.bf16.msra.mxu1 %v13294_v44  ;;  %9320 = vmatprep.subr.bf16.mxu0 %v13299_v49  ;;  %v13377_v44 = vld [vmem:[%s17134_s9 + $0x1f4] ss:$56 sps:$4 sm:$0xff]   ;;  %v13375_v49 = vld [vmem:[%s17134_s9 + $0x1f0] ss:$56 sps:$4 sm:$0xff]  }
 0x629   : > { %9539 = vmatprep.subr.bf16.mxu1 %v13302_v18  ;;  %v13380_v18 = vld [vmem:[%s17134_s9 + $0x264] ss:$56 sps:$4 sm:$0xff]  }
 0x62b   : > { %9321 = vmatpush1.bf16.msra.mxu0 %v13297_v48  ;;  %v13378_v48 = vld [vmem:[%s17134_s9 + $0x260] ss:$56 sps:$4 sm:$0xff]  }
 0x62c   : > { %9540 = vmatpush1.bf16.msra.mxu1 %v13300_v50  ;;  %9322 = vmatprep.subr.bf16.mxu0 %v13305_v29  ;;  %v13383_v50 = vld [vmem:[%s17134_s9 + $0x2d4] ss:$56 sps:$4 sm:$0xff]   ;;  %v13381_v29 = vld [vmem:[%s17134_s9 + $0x2d0] ss:$56 sps:$4 sm:$0xff]  }
 0x62d   : > { %9541 = vmatprep.subr.bf16.mxu1 %v13308_v47  ;;  %v13386_v47 = vld [vmem:[%s17134_s9 + $0x344] ss:$56 sps:$4 sm:$0xff]  }
 0x62f   : > { %9323 = vmatpush1.bf16.msra.mxu0 %v13303_v38  ;;  %v13384_v38 = vld [vmem:[%s17134_s9 + $0x340] ss:$56 sps:$4 sm:$0xff]  }
 0x630   : > { %9542 = vmatpush1.bf16.msra.mxu1 %v13306_v52  ;;  %9324 = vmatprep.subr.bf16.mxu0 %v13311_v53  ;;  %v13389_v52 = vld [vmem:[%s17134_s9 + $0x3b4] ss:$56 sps:$4 sm:$0xff]   ;;  %v13387_v53 = vld [vmem:[%s17134_s9 + $0x3b0] ss:$56 sps:$4 sm:$0xff]  }
 0x631   : > { %9543 = vmatprep.subr.bf16.mxu1 %v13314_v46  ;;  %v13392_v46 = vld [vmem:[%s17134_s9 + $0x424] ss:$56 sps:$4 sm:$0xff]  }
 0x633   : > { %9325 = vmatpush1.bf16.msra.mxu0 %v13309_v54  ;;  %v13395_v54 = vld [vmem:[%s17134_s9 + $0x494] ss:$56 sps:$4 sm:$0xff]  }
 0x634   : > { %9544 = vmatpush1.bf16.msra.mxu1 %v13312_v55  ;;  %9326 = vmatprep.subr.bf16.mxu0 %v13317_v56  ;;  %v13393_v55 = vld [vmem:[%s17134_s9 + $0x490] ss:$56 sps:$4 sm:$0xff]   ;;  %v13398_v56 = vld [vmem:[%s17134_s9 + $0x504] ss:$56 sps:$4 sm:$0xff]  }
 0x635   : > { %9545 = vmatprep.subr.bf16.mxu1 %v13320_v57  ;;  %v13396_v57 = vld [vmem:[%s17134_s9 + $0x500] ss:$56 sps:$4 sm:$0xff]  }
 0x637   : > { %9327 = vmatpush1.bf16.msra.mxu0 %v13315_v58  ;;  %v9685_v58 = vsub.s32 2, %v15200_v27 }
 0x638   : > { %9546 = vmatpush1.bf16.msra.mxu1 %v13318_v6  ;;  %9328 = vmatprep.subr.bf16.mxu0 %v13323_v59  ;;  %v16654_v6 = vld [vmem:[%s17136_s11] sm:$0xff]  ;;  %v9689_v59 = vsub.s32 3, %v15200_v27 }
 0x639   : > { %9547 = vmatprep.subr.bf16.mxu1 %v13326_v60 }
 0x63b   : > { %9329 = vmatpush1.bf16.msra.mxu0 %v13321_v35 }
 0x63c   : > { %9548 = vmatpush1.bf16.msra.mxu1 %v13324_v7  ;;  %9452 = vmatprep.subr.bf16.mxu0 %v13329_v9  ;;  %v9860_v7 = vld [vmem:[%s13858_s20 + $0x18] sm:$0xff] }
 0x63e   : > { %9339 = vmatmul.mubr.bf16.vlgmr.msra.gmra.mrb[48].mxu0 %v15234_v62 }
 0x63f   : > { %9558 = vmatmul.mubr.bf16.vlgmr.msra.gmra.mrb[80].mxu1 %v15234_v62  ;;  %11460 = vmatprep.mubr.msk.bf16.mxu0 %vm4770_vm0, %v15255_v40 }
 0x640   : > { %9453 = vmatpush1.bf16.msra.mxu0 %v13327_v0  ;;  %11472 = vmatprep.mubr.msk.bf16.mxu1 %vm4770_vm0, %v15255_v40 }
 0x641   : > { %9454 = vmatprep.subr.bf16.mxu0 %v13332_v10  ;;  %v9873_v10 = vld [vmem:[%s13858_s20 + $0x80] sm:$0xff] }
 0x644   : > { %9455 = vmatpush1.bf16.msra.mxu0 %v13330_v12 }
 0x645   : > { %9456 = vmatprep.subr.bf16.mxu0 %v13335_v13 }
 0x646   : > { %9349 = vmatmul.mubr.bf16.gmra.mrb[52].mxu0 %v15251_v37 }
 0x647   : > { %9568 = vmatmul.mubr.bf16.gmra.mrb[84].mxu1 %v15251_v37  ;;  %11461 = vmatprep.mubr.msk.bf16.mxu0 %vm4770_vm0, %v15273_v20 }
 0x648   : > { %9457 = vmatpush1.bf16.msra.mxu0 %v13333_v2  ;;  %11473 = vmatprep.mubr.msk.bf16.mxu1 %vm4770_vm0, %v15273_v20  ;;  %v9874_v2 = vld [vmem:[%s13858_s20 + $0x88] sm:$0xff] }
 0x649   : > { %9458 = vmatprep.subr.bf16.mxu0 %v13338_v15 }
 0x64c   : > { %9459 = vmatpush1.bf16.msra.mxu0 %v13336_v34 }
 0x64d   : > { %9460 = vmatprep.subr.bf16.mxu0 %v13341_v14 }
 0x64e   : > { %9359 = vmatmul.mubr.bf16.gmra.mrb[56].mxu0 %v15269_v16 }
 0x64f   : > { %9578 = vmatmul.mubr.bf16.gmra.mrb[88].mxu1 %v15269_v16  ;;  %11462 = vmatprep.mubr.msk.bf16.mxu0 %vm4770_vm0, %v15291_v5 }
 0x650   : > { %9461 = vmatpush1.bf16.msra.mxu0 %v13339_v17  ;;  %11474 = vmatprep.mubr.msk.bf16.mxu1 %vm4770_vm0, %v15291_v5 }
 0x651   : > { %9462 = vmatprep.subr.bf16.mxu0 %v13344_v22 }
 0x654   : > { %9463 = vmatpush1.bf16.msra.mxu0 %v13342_v23 }
 0x655   : > { %9464 = vmatprep.subr.bf16.mxu0 %v13347_v61 }
 0x656   : > { %9369 = vmatmul.mubr.bf16.gmra.mrb[60].mxu0 %v15287_v3 }
 0x657   : > { %9588 = vmatmul.mubr.bf16.gmra.mrb[92].mxu1 %v15287_v3  ;;  %11467 = vmatprep.mubr.msk.bf16.mxu0 %vm4770_vm0, %v15238_v1 }
 0x658   : > { %9465 = vmatpush1.bf16.msra.mxu0 %v13345_v25 }
 0x659   : > { %9466 = vmatprep.subr.bf16.mxu0 %v13350_v8  ;;  %v9887_v8 = vld [vmem:[%s13858_s20 + $0xf0] sm:$0xff] }
 0x65c   : > { %9467 = vmatpush1.bf16.msra.mxu0 %v13348_v45 }
 0x65d   : > { %9468 = vmatprep.subr.bf16.mxu0 %v13353_v30 }
 0x660   : > { %9469 = vmatpush1.bf16.msra.mxu0 %v13351_v32  ;;  %v9888_v32 = vld [vmem:[%s13858_s20 + $0xf8] sm:$0xff] }
 0x661   : > { %9470 = vmatprep.subr.bf16.mxu0 %v13356_v24 }
 0x664   : > { %9471 = vmatpush1.bf16.msra.mxu0 %v13354_v26 }
 0x665   : > { %9472 = vmatprep.subr.bf16.mxu0 %v13359_v36  ;;  %v9901_v36 = vld [vmem:[%s13858_s20 + $0x160] sm:$0xff] }
 0x668   : > { %9473 = vmatpush1.bf16.msra.mxu0 %v13357_v33 }
 0x669   : > { %9474 = vmatprep.subr.bf16.mxu0 %v13362_v63 }
 0x66c   : > { %9475 = vmatpush1.bf16.msra.mxu0 %v13360_v41  ;;  %v9902_v41 = vld [vmem:[%s13858_s20 + $0x168] sm:$0xff] }
 0x66d   : > { %9598 = vmatprep.subr.bf16.mxu0 %v13365_v21 }
 0x66f   : > { %9485 = vmatmul.mubr.bf16.vlgmr.msra.gmra.mrb[64].mxu0 %v15234_v62 }
 0x670   : > { %11468 = vmatprep.mubr.msk.bf16.mxu0 %vm4770_vm0, %v15255_v40  ;;  %9599 = vmatpush1.bf16.msra.mxu0 %v13363_v42 }
 0x671   : > { %9600 = vmatprep.subr.bf16.mxu0 %v13368_v51 }
 0x674   : > { %9601 = vmatpush1.bf16.msra.mxu0 %v13366_v4 }
 0x675   : > { %9602 = vmatprep.subr.bf16.mxu0 %v13371_v11 }
 0x677   : > { %9495 = vmatmul.mubr.bf16.gmra.mrb[68].mxu0 %v15251_v37 }
 0x678   : > { %11469 = vmatprep.mubr.msk.bf16.mxu0 %vm4770_vm0, %v15273_v20  ;;  %9603 = vmatpush1.bf16.msra.mxu0 %v13369_v39 }
 0x679   : > { %9604 = vmatprep.subr.bf16.mxu0 %v13374_v43 }
 0x67c   : > { %9605 = vmatpush1.bf16.msra.mxu0 %v13372_v19 }
 0x67d   : > { %9606 = vmatprep.subr.bf16.mxu0 %v13377_v44 }
 0x67f   : > { %9505 = vmatmul.mubr.bf16.gmra.mrb[72].mxu0 %v15269_v16 }
 0x680   : > { %11470 = vmatprep.mubr.msk.bf16.mxu0 %vm4770_vm0, %v15291_v5  ;;  %9607 = vmatpush1.bf16.msra.mxu0 %v13375_v49  ;;  %v9915_v49 = vld [vmem:[%s13858_s20 + $0x1d0] sm:$0xff] }
 0x681   : > { %9608 = vmatprep.subr.bf16.mxu0 %v13380_v18 }
 0x684   : > { %9609 = vmatpush1.bf16.msra.mxu0 %v13378_v48 }
 0x685   : > { %9610 = vmatprep.subr.bf16.mxu0 %v13383_v50  ;;  %v9916_v50 = vld [vmem:[%s13858_s20 + $0x1d8] sm:$0xff] }
 0x687   : > { %9515 = vmatmul.mubr.bf16.gmra.mrb[76].mxu0 %v15287_v3 }
 0x688   : > { %9611 = vmatpush1.bf16.msra.mxu0 %v13381_v29  ;;  %11475 = vmatprep.mubr.msk.bf16.mxu0 %vm4770_vm0, %v15238_v1  ;;  %v13390_v1 = vld [vmem:[%s17134_s9 + $0x420] ss:$56 sps:$4 sm:$0xff]  }
 0x689   : > { %9612 = vmatprep.subr.bf16.mxu0 %v13386_v47 }
 0x68c   : > { %9613 = vmatpush1.bf16.msra.mxu0 %v13384_v38  ;;  %v9929_v38 = vld [vmem:[%s13858_s20 + $0x240] sm:$0xff] }
 0x68d   : > { %9614 = vmatprep.subr.bf16.mxu0 %v13389_v52 }
 0x690   : > { %9615 = vmatpush1.bf16.msra.mxu0 %v13387_v53 }
 0x691   : > { %9616 = vmatprep.subr.bf16.mxu0 %v13392_v46 }
 0x694   : > { %9617 = vmatpush1.bf16.msra.mxu0 %v13390_v1  ;;  %v9930_v1 = vld [vmem:[%s13858_s20 + $0x248] sm:$0xff] }
 0x695   : > { %9618 = vmatprep.subr.bf16.mxu0 %v13395_v54 }
 0x698   : > { %9619 = vmatpush1.bf16.msra.mxu0 %v13393_v55 }
 0x699   : > { %9620 = vmatprep.subr.bf16.mxu0 %v13398_v56 }
 0x69c   : > { %9621 = vmatpush1.bf16.msra.mxu0 %v13396_v57 }
 0x69f   : > { %9631 = vmatmul.mubr.bf16.vlgmr.msra.gmra.mrb[80].mxu0 %v15234_v62  ;;  %v16661_v62 = vrot.slane %v16654_v6, %v9685_v58 }
 0x6a0   : > { %11476 = vmatprep.mubr.msk.bf16.mxu0 %vm4770_vm0, %v15255_v40 }
 0x6a7   : > { %9641 = vmatmul.mubr.bf16.gmra.mrb[84].mxu0 %v15251_v37  ;;  %v16666_v37 = vrot.slane %v16654_v6, %v9689_v59 }
 0x6a8   : > { %11477 = vmatprep.mubr.msk.bf16.mxu0 %vm4770_vm0, %v15273_v20  ;;  %v9859_v20 = vld [vmem:[%s13858_s20 + $0x10] sm:$0xff] }
 0x6af   : > { %9651 = vmatmul.mubr.bf16.gmra.mrb[88].mxu0 %v15269_v16 }
 0x6b0   : > { %11478 = vmatprep.mubr.msk.bf16.mxu0 %vm4770_vm0, %v15291_v5  ;;  %v9267_v40 = vpop.f32.mrb[48].mxu1 }
 0x6b1   : > { %v9747_v60 = vadd.f32 %v16661_v62, %v9267_v40  ;;  %v9269_v35 = vpop.f32.mrb[49].mxu1 }
 0x6b2   : > { %v9748_v9 = vadd.f32 %v16666_v37, %v9269_v35  ;;  %v9271_v0 = vpop.f32.mrb[50].mxu1 }
 0x6b3   : > { %v9971_v12 = vadd.f32 %v9859_v20, %v9747_v60  ;;  %v9761_v13 = vadd.f32 %v16661_v62, %v9271_v0  ;;  %v9273_v16 = vpop.f32.mrb[51].mxu1 }
 0x6b4   : > { %v9972_v15 = vadd.f32 %v9860_v7, %v9748_v9  ;;  %v9762_v5 = vadd.f32 %v16666_v37, %v9273_v16  ;;  %v9943_v9 = vld [vmem:[%s13858_s20 + $0x2b0] sm:$0xff] }
 0x6b5   : > { %v10083_v34 = vmax.f32 %v9971_v12, 0.0  ;;  %v9985_v14 = vadd.f32 %v9873_v10, %v9761_v13  ;;  %v9944_v12 = vld [vmem:[%s13858_s20 + $0x2b8] sm:$0xff] }
 0x6b6   : > { %v10084_v17 = vmax.f32 %v9972_v15, 0.0  ;;  %v9986_v22 = vadd.f32 %v9874_v2, %v9762_v5  ;;  %v9957_v2 = vld [vmem:[%s13858_s20 + $0x320] sm:$0xff] }
 0x6b7   : > { %10195 = vst [vmem:[%s16681_s19 + $0x10] sm:$0xff] %v10083_v34  ;;  %v10097_v23 = vmax.f32 %v9985_v14, 0.0  ;;  %9661 = vmatmul.mubr.bf16.gmra.mrb[92].mxu0 %v15287_v3  ;;  %v9958_v14 = vld [vmem:[%s13858_s20 + $0x328] sm:$0xff] }
 0x6b8   : > { %10196 = vst [vmem:[%s16681_s19 + $0x18] sm:$0xff] %v10084_v17  ;;  %v10098_v61 = vmax.f32 %v9986_v22, 0.0  ;;  %v9277_v25 = vpop.f32.mrb[52].mxu1 }
 0x6b9   : > { %10209 = vst [vmem:[%s16681_s19 + $0x80] sm:$0xff] %v10097_v23  ;;  %v9775_v45 = vadd.f32 %v16661_v62, %v9277_v25  ;;  %v9279_v30 = vpop.f32.mrb[53].mxu1 }
 0x6ba   : > { %10210 = vst [vmem:[%s16681_s19 + $0x88] sm:$0xff] %v10098_v61  ;;  %v9776_v24 = vadd.f32 %v16666_v37, %v9279_v30  ;;  %v9281_v26 = vpop.f32.mrb[54].mxu1 }
 0x6bb   : > { %v9999_v33 = vadd.f32 %v9887_v8, %v9775_v45  ;;  %v9789_v3 = vadd.f32 %v16661_v62, %v9281_v26  ;;  %v9283_v63 = vpop.f32.mrb[55].mxu1  ;;  %v16735_v26 = vrot.slane %v16654_v6, %v15212_v31 }
 0x6bc   : > { %v10000_v21 = vadd.f32 %v9888_v32, %v9776_v24  ;;  %v9790_v42 = vadd.f32 %v16666_v37, %v9283_v63  ;;  %v9705_v32 = vsub.s32 7, %v15200_v27 }
 0x6bd   : > { %v10111_v51 = vmax.f32 %v9999_v33, 0.0  ;;  %v10013_v4 = vadd.f32 %v9901_v36, %v9789_v3  ;;  %v9857_v3 = vld [vmem:[%s13858_s20] sm:$0xff] }
 0x6be   : > { %v10112_v11 = vmax.f32 %v10000_v21, 0.0  ;;  %v10014_v39 = vadd.f32 %v9902_v41, %v9790_v42  ;;  %v16738_v36 = vrot.slane %v16654_v6, %v9705_v32  ;;  %v9863_v21 = vld [vmem:[%s13858_s20 + $0x30] sm:$0xff] }
 0x6bf   : > { %10223 = vst [vmem:[%s16681_s19 + $0xf0] sm:$0xff] %v10111_v51  ;;  %v10125_v43 = vmax.f32 %v10013_v4, 0.0  ;;  %v9858_v51 = vld [vmem:[%s13858_s20 + $0x8] sm:$0xff] }
 0x6c0   : > { %10224 = vst [vmem:[%s16681_s19 + $0xf8] sm:$0xff] %v10112_v11  ;;  %v10126_v19 = vmax.f32 %v10014_v39, 0.0  ;;  %v9287_v44 = vpop.f32.mrb[56].mxu1 }
 0x6c1   : > { %10237 = vst [vmem:[%s16681_s19 + $0x160] sm:$0xff] %v10125_v43  ;;  %v9803_v18 = vadd.f32 %v16661_v62, %v9287_v44  ;;  %v9289_v48 = vpop.f32.mrb[57].mxu1  ;;  %v9864_v43 = vld [vmem:[%s13858_s20 + $0x38] sm:$0xff]  ;;  %v9871_v44 = vld [vmem:[%s13858_s20 + $0x70] sm:$0xff] }
 0x6c2   : > { %10238 = vst [vmem:[%s16681_s19 + $0x168] sm:$0xff] %v10126_v19  ;;  %v9804_v29 = vadd.f32 %v16666_v37, %v9289_v48  ;;  %v9291_v47 = vpop.f32.mrb[58].mxu1 }
 0x6c3   : > { %v10027_v52 = vadd.f32 %v9915_v49, %v9803_v18  ;;  %v9817_v53 = vadd.f32 %v16661_v62, %v9291_v47  ;;  %v9293_v46 = vpop.f32.mrb[59].mxu1 }
 0x6c4   : > { %v10028_v54 = vadd.f32 %v9916_v50, %v9804_v29  ;;  %v9818_v55 = vadd.f32 %v16666_v37, %v9293_v46  ;;  %v9877_v29 = vld [vmem:[%s13858_s20 + $0xa0] sm:$0xff] }
 0x6c5   : > { %v10139_v56 = vmax.f32 %v10027_v52, 0.0  ;;  %v10041_v57 = vadd.f32 %v9929_v38, %v9817_v53  ;;  %v9872_v38 = vld [vmem:[%s13858_s20 + $0x78] sm:$0xff] }
 0x6c6   : > { %v10140_v40 = vmax.f32 %v10028_v54, 0.0  ;;  %v10042_v20 = vadd.f32 %v9930_v1, %v9818_v55  ;;  %v9878_v55 = vld [vmem:[%s13858_s20 + $0xa8] sm:$0xff] }
 0x6c7   : > { %10251 = vst [vmem:[%s16681_s19 + $0x1d0] sm:$0xff] %v10139_v56  ;;  %v10153_v60 = vmax.f32 %v10041_v57, 0.0 }
 0x6c8   : > { %10252 = vst [vmem:[%s16681_s19 + $0x1d8] sm:$0xff] %v10140_v40  ;;  %v10154_v35 = vmax.f32 %v10042_v20, 0.0  ;;  %v9297_v7 = vpop.f32.mrb[60].mxu1 }
 0x6c9   : > { %10265 = vst [vmem:[%s16681_s19 + $0x240] sm:$0xff] %v10153_v60  ;;  %v9831_v0 = vadd.f32 %v16661_v62, %v9297_v7  ;;  %v9299_v10 = vpop.f32.mrb[61].mxu1 }
 0x6ca   : > { %10266 = vst [vmem:[%s16681_s19 + $0x248] sm:$0xff] %v10154_v35  ;;  %v9832_v13 = vadd.f32 %v16666_v37, %v9299_v10  ;;  %v9301_v16 = vpop.f32.mrb[62].mxu1 }
 0x6cb   : > { %v10055_v15 = vadd.f32 %v9943_v9, %v9831_v0  ;;  %v9845_v5 = vadd.f32 %v16661_v62, %v9301_v16  ;;  %v9303_v34 = vpop.f32.mrb[63].mxu1  ;;  %v9701_v62 = vsub.s32 6, %v15200_v27 }
 0x6cc   : > { %v10056_v17 = vadd.f32 %v9944_v12, %v9832_v13  ;;  %v9846_v22 = vadd.f32 %v16666_v37, %v9303_v34  ;;  %v16728_v37 = vrot.slane %v16654_v6, %v15203_v28 }
 0x6cd   : > { %v10167_v23 = vmax.f32 %v10055_v15, 0.0  ;;  %v10069_v61 = vadd.f32 %v9957_v2, %v9845_v5  ;;  %v16731_v24 = vrot.slane %v16654_v6, %v9701_v62  ;;  %v9885_v15 = vld [vmem:[%s13858_s20 + $0xe0] sm:$0xff]  ;;  %v9899_v62 = vld [vmem:[%s13858_s20 + $0x150] sm:$0xff] }
 0x6ce   : > { %v10168_v25 = vmax.f32 %v10056_v17, 0.0  ;;  %v10070_v8 = vadd.f32 %v9958_v14, %v9846_v22  ;;  %v9891_v17 = vld [vmem:[%s13858_s20 + $0x110] sm:$0xff] }
 0x6cf   : > { %10279 = vst [vmem:[%s16681_s19 + $0x2b0] sm:$0xff] %v10167_v23  ;;  %v10181_v45 = vmax.f32 %v10069_v61, 0.0  ;;  %v9886_v23 = vld [vmem:[%s13858_s20 + $0xe8] sm:$0xff] }
 0x6d0   : > { %10280 = vst [vmem:[%s16681_s19 + $0x2b8] sm:$0xff] %v10168_v25  ;;  %v10182_v30 = vmax.f32 %v10070_v8, 0.0 }
 0x6d1   : > { %10293 = vst [vmem:[%s16681_s19 + $0x320] sm:$0xff] %v10181_v45  ;;  %v9892_v45 = vld [vmem:[%s13858_s20 + $0x118] sm:$0xff] }
 0x6d2   : > { %10294 = vst [vmem:[%s16681_s19 + $0x328] sm:$0xff] %v10182_v30 }
 0x6e0   : > { %v9194_v33 = vpop.f32.mrb[32].mxu0 }
 0x6e1   : > { %v9745_v63 = vadd.f32 %v16728_v37, %v9194_v33  ;;  %v9413_v41 = vpop.f32.mrb[64].mxu1  ;;  %v9196_v42 = vpop.f32.mrb[33].mxu0 }
 0x6e2   : > { %v9751_v4 = vadd.f32 %v16731_v24, %v9413_v41  ;;  %v9746_v11 = vadd.f32 %v16735_v26, %v9196_v42  ;;  %v9415_v39 = vpop.f32.mrb[65].mxu1  ;;  %v9198_v19 = vpop.f32.mrb[34].mxu0  ;;  %v9905_v41 = vld [vmem:[%s13858_s20 + $0x180] sm:$0xff]  ;;  %v9900_v42 = vld [vmem:[%s13858_s20 + $0x158] sm:$0xff] }
 0x6e3   : > { %v9969_v49 = vadd.f32 %v9857_v3, %v9745_v63  ;;  %v9752_v18 = vadd.f32 %v16738_v36, %v9415_v39  ;;  %v9759_v48 = vadd.f32 %v16728_v37, %v9198_v19  ;;  %v9417_v50 = vpop.f32.mrb[66].mxu1  ;;  %v9200_v47 = vpop.f32.mrb[35].mxu0  ;;  %v9906_v19 = vld [vmem:[%s13858_s20 + $0x188] sm:$0xff] }
 0x6e4   : > { %v9975_v52 = vadd.f32 %v9863_v21, %v9751_v4  ;;  %v9970_v53 = vadd.f32 %v9858_v51, %v9746_v11  ;;  %v9765_v46 = vadd.f32 %v16731_v24, %v9417_v50  ;;  %v9760_v1 = vadd.f32 %v16735_v26, %v9200_v47  ;;  %v9419_v54 = vpop.f32.mrb[67].mxu1 }
 0x6e5   : > { %v10081_v56 = vmax.f32 %v9969_v49, 0.0  ;;  %v9976_v57 = vadd.f32 %v9864_v43, %v9752_v18  ;;  %v9983_v40 = vadd.f32 %v9871_v44, %v9759_v48  ;;  %v9766_v20 = vadd.f32 %v16738_v36, %v9419_v54 }
 0x6e6   : > { %v10087_v60 = vmax.f32 %v9975_v52, 0.0  ;;  %v10082_v35 = vmax.f32 %v9970_v53, 0.0  ;;  %v9989_v7 = vadd.f32 %v9877_v29, %v9765_v46  ;;  %v9984_v9 = vadd.f32 %v9872_v38, %v9760_v1 }
 0x6e7   : > { %10193 = vst [vmem:[%s16681_s19] sm:$0xff] %v10081_v56  ;;  %v10088_v0 = vmax.f32 %v9976_v57, 0.0  ;;  %v10095_v10 = vmax.f32 %v9983_v40, 0.0  ;;  %v9990_v12 = vadd.f32 %v9878_v55, %v9766_v20  ;;  %v9913_v56 = vld [vmem:[%s13858_s20 + $0x1c0] sm:$0xff] }
 0x6e8   : > { %10199 = vst [vmem:[%s16681_s19 + $0x30] sm:$0xff] %v10087_v60  ;;  %10194 = vst [vmem:[%s16681_s19 + $0x8] sm:$0xff] %v10082_v35  ;;  %v10101_v13 = vmax.f32 %v9989_v7, 0.0  ;;  %v10096_v16 = vmax.f32 %v9984_v9, 0.0  ;;  %v9204_v2 = vpop.f32.mrb[36].mxu0  ;;  %v9919_v60 = vld [vmem:[%s13858_s20 + $0x1f0] sm:$0xff] }
 0x6e9   : > { %10200 = vst [vmem:[%s16681_s19 + $0x38] sm:$0xff] %v10088_v0  ;;  %10207 = vst [vmem:[%s16681_s19 + $0x70] sm:$0xff] %v10095_v10  ;;  %v10102_v5 = vmax.f32 %v9990_v12, 0.0  ;;  %v9773_v34 = vadd.f32 %v16728_v37, %v9204_v2  ;;  %v9423_v14 = vpop.f32.mrb[68].mxu1  ;;  %v9206_v22 = vpop.f32.mrb[37].mxu0  ;;  %v9914_v7 = vld [vmem:[%s13858_s20 + $0x1c8] sm:$0xff] }
 0x6ea   : > { %10213 = vst [vmem:[%s16681_s19 + $0xa0] sm:$0xff] %v10101_v13  ;;  %10208 = vst [vmem:[%s16681_s19 + $0x78] sm:$0xff] %v10096_v16  ;;  %v9779_v61 = vadd.f32 %v16731_v24, %v9423_v14  ;;  %v9774_v25 = vadd.f32 %v16735_v26, %v9206_v22  ;;  %v9425_v8 = vpop.f32.mrb[69].mxu1  ;;  %v9208_v30 = vpop.f32.mrb[38].mxu0  ;;  %v9920_v12 = vld [vmem:[%s13858_s20 + $0x1f8] sm:$0xff]  ;;  %v9927_v16 = vld [vmem:[%s13858_s20 + $0x230] sm:$0xff] }
 0x6eb   : > { %10214 = vst [vmem:[%s16681_s19 + $0xa8] sm:$0xff] %v10102_v5  ;;  %v9997_v32 = vadd.f32 %v9885_v15, %v9773_v34  ;;  %v9780_v33 = vadd.f32 %v16738_v36, %v9425_v8  ;;  %v9787_v3 = vadd.f32 %v16728_v37, %v9208_v30  ;;  %v9427_v63 = vpop.f32.mrb[70].mxu1  ;;  %v9210_v21 = vpop.f32.mrb[39].mxu0  ;;  %v9933_v14 = vld [vmem:[%s13858_s20 + $0x260] sm:$0xff]  ;;  %v9928_v22 = vld [vmem:[%s13858_s20 + $0x238] sm:$0xff]  ;;  %v9934_v30 = vld [vmem:[%s13858_s20 + $0x268] sm:$0xff] }
 0x6ec   : > { %v10003_v51 = vadd.f32 %v9891_v17, %v9779_v61  ;;  %v9998_v4 = vadd.f32 %v9886_v23, %v9774_v25  ;;  %v9793_v11 = vadd.f32 %v16731_v24, %v9427_v63  ;;  %v9788_v39 = vadd.f32 %v16735_v26, %v9210_v21  ;;  %v9429_v43 = vpop.f32.mrb[71].mxu1 }
 0x6ed   : > { %v10109_v44 = vmax.f32 %v9997_v32, 0.0  ;;  %v10004_v49 = vadd.f32 %v9892_v45, %v9780_v33  ;;  %v10011_v18 = vadd.f32 %v9899_v62, %v9787_v3  ;;  %v9794_v48 = vadd.f32 %v16738_v36, %v9429_v43 }
 0x6ee   : > { %v10115_v50 = vmax.f32 %v10003_v51, 0.0  ;;  %v10110_v29 = vmax.f32 %v9998_v4, 0.0  ;;  %v10017_v47 = vadd.f32 %v9905_v41, %v9793_v11  ;;  %v10012_v38 = vadd.f32 %v9900_v42, %v9788_v39 }
 0x6ef   : > { %10221 = vst [vmem:[%s16681_s19 + $0xe0] sm:$0xff] %v10109_v44  ;;  %v10116_v52 = vmax.f32 %v10004_v49, 0.0  ;;  %v10123_v53 = vmax.f32 %v10011_v18, 0.0  ;;  %v10018_v46 = vadd.f32 %v9906_v19, %v9794_v48  ;;  %v9941_v44 = vld [vmem:[%s13858_s20 + $0x2a0] sm:$0xff] }
 0x6f0   : > { %10227 = vst [vmem:[%s16681_s19 + $0x110] sm:$0xff] %v10115_v50  ;;  %10222 = vst [vmem:[%s16681_s19 + $0xe8] sm:$0xff] %v10110_v29  ;;  %v10129_v1 = vmax.f32 %v10017_v47, 0.0  ;;  %v10124_v54 = vmax.f32 %v10012_v38, 0.0  ;;  %v9214_v55 = vpop.f32.mrb[40].mxu0  ;;  %v9947_v50 = vld [vmem:[%s13858_s20 + $0x2d0] sm:$0xff] }
 0x6f1   : > { %10228 = vst [vmem:[%s16681_s19 + $0x118] sm:$0xff] %v10116_v52  ;;  %10235 = vst [vmem:[%s16681_s19 + $0x150] sm:$0xff] %v10123_v53  ;;  %v10130_v57 = vmax.f32 %v10018_v46, 0.0  ;;  %v9801_v40 = vadd.f32 %v16728_v37, %v9214_v55  ;;  %v9433_v20 = vpop.f32.mrb[72].mxu1  ;;  %v9216_v35 = vpop.f32.mrb[41].mxu0  ;;  %v9942_v47 = vld [vmem:[%s13858_s20 + $0x2a8] sm:$0xff] }
 0x6f2   : > { %10241 = vst [vmem:[%s16681_s19 + $0x180] sm:$0xff] %v10129_v1  ;;  %10236 = vst [vmem:[%s16681_s19 + $0x158] sm:$0xff] %v10124_v54  ;;  %v9807_v9 = vadd.f32 %v16731_v24, %v9433_v20  ;;  %v9802_v0 = vadd.f32 %v16735_v26, %v9216_v35  ;;  %v9435_v10 = vpop.f32.mrb[73].mxu1  ;;  %v9218_v13 = vpop.f32.mrb[42].mxu0  ;;  %v9948_v46 = vld [vmem:[%s13858_s20 + $0x2d8] sm:$0xff]  ;;  %v9955_v54 = vld [vmem:[%s13858_s20 + $0x310] sm:$0xff] }
 0x6f3   : > { %10242 = vst [vmem:[%s16681_s19 + $0x188] sm:$0xff] %v10130_v57  ;;  %v10025_v2 = vadd.f32 %v9913_v56, %v9801_v40  ;;  %v9808_v15 = vadd.f32 %v16738_v36, %v9435_v10  ;;  %v9815_v5 = vadd.f32 %v16728_v37, %v9218_v13  ;;  %v9437_v34 = vpop.f32.mrb[74].mxu1  ;;  %v9220_v17 = vpop.f32.mrb[43].mxu0  ;;  %v9961_v20 = vld [vmem:[%s13858_s20 + $0x340] sm:$0xff]  ;;  %v9956_v35 = vld [vmem:[%s13858_s20 + $0x318] sm:$0xff]  ;;  %v9962_v13 = vld [vmem:[%s13858_s20 + $0x348] sm:$0xff] }
 0x6f4   : > { %v10031_v23 = vadd.f32 %v9919_v60, %v9807_v9  ;;  %v10026_v61 = vadd.f32 %v9914_v7, %v9802_v0  ;;  %v9821_v25 = vadd.f32 %v16731_v24, %v9437_v34  ;;  %v9816_v8 = vadd.f32 %v16735_v26, %v9220_v17  ;;  %v9439_v45 = vpop.f32.mrb[75].mxu1 }
 0x6f5   : > { %v10137_v62 = vmax.f32 %v10025_v2, 0.0  ;;  %v10032_v32 = vadd.f32 %v9920_v12, %v9808_v15  ;;  %v10039_v33 = vadd.f32 %v9927_v16, %v9815_v5  ;;  %v9822_v3 = vadd.f32 %v16738_v36, %v9439_v45  ;;  %v16841_v45 = vld [vmem:[%s17136_s11 + $0x8] sm:$0x3f] }
 0x6f6   : > { %v10143_v63 = vmax.f32 %v10031_v23, 0.0  ;;  %v10138_v41 = vmax.f32 %v10026_v61, 0.0  ;;  %v10045_v21 = vadd.f32 %v9933_v14, %v9821_v25  ;;  %v10040_v42 = vadd.f32 %v9928_v22, %v9816_v8 }
 0x6f7   : > { %10249 = vst [vmem:[%s16681_s19 + $0x1c0] sm:$0xff] %v10137_v62  ;;  %v10144_v51 = vmax.f32 %v10032_v32, 0.0  ;;  %v10151_v4 = vmax.f32 %v10039_v33, 0.0  ;;  %v10046_v11 = vadd.f32 %v9934_v30, %v9822_v3  ;;  %v9693_v25 = vsub.s32 4, %v15200_v27 }
 0x6f8   : > { %10255 = vst [vmem:[%s16681_s19 + $0x1f0] sm:$0xff] %v10143_v63  ;;  %10250 = vst [vmem:[%s16681_s19 + $0x1c8] sm:$0xff] %v10138_v41  ;;  %v10157_v39 = vmax.f32 %v10045_v21, 0.0  ;;  %v10152_v43 = vmax.f32 %v10040_v42, 0.0  ;;  %v9224_v19 = vpop.f32.mrb[44].mxu0  ;;  %v9697_v8 = vsub.s32 5, %v15200_v27  ;;  %v16851_v62 = vrot.slane %v16841_v45, %v9685_v58 }
 0x6f9   : > { %10256 = vst [vmem:[%s16681_s19 + $0x1f8] sm:$0xff] %v10144_v51  ;;  %10263 = vst [vmem:[%s16681_s19 + $0x230] sm:$0xff] %v10151_v4  ;;  %v10158_v49 = vmax.f32 %v10046_v11, 0.0  ;;  %v9829_v18 = vadd.f32 %v16728_v37, %v9224_v19  ;;  %v9443_v48 = vpop.f32.mrb[76].mxu1  ;;  %v9226_v29 = vpop.f32.mrb[45].mxu0  ;;  %v16846_v30 = vrot.slane %v16654_v6, %v9693_v25  ;;  %v16861_v33 = vrot.slane %v16841_v45, %v9689_v59  ;;  %v9861_v63 = vld [vmem:[%s13858_s20 + $0x20] sm:$0xff] }
 0x6fa   : > { %10269 = vst [vmem:[%s16681_s19 + $0x260] sm:$0xff] %v10157_v39  ;;  %10264 = vst [vmem:[%s16681_s19 + $0x238] sm:$0xff] %v10152_v43  ;;  %v9835_v38 = vadd.f32 %v16731_v24, %v9443_v48  ;;  %v9830_v52 = vadd.f32 %v16735_v26, %v9226_v29  ;;  %v9445_v53 = vpop.f32.mrb[77].mxu1  ;;  %v9228_v1 = vpop.f32.mrb[46].mxu0  ;;  %v16856_v32 = vrot.slane %v16654_v6, %v9697_v8  ;;  %v9867_v42 = vld [vmem:[%s13858_s20 + $0x50] sm:$0xff]  ;;  %v9862_v51 = vld [vmem:[%s13858_s20 + $0x28] sm:$0xff] }
 0x6fb   : > { %10270 = vst [vmem:[%s16681_s19 + $0x268] sm:$0xff] %v10158_v49  ;;  %v10053_v55 = vadd.f32 %v9941_v44, %v9829_v18  ;;  %v9836_v56 = vadd.f32 %v16738_v36, %v9445_v53  ;;  %v9843_v57 = vadd.f32 %v16728_v37, %v9228_v1  ;;  %v9447_v40 = vpop.f32.mrb[78].mxu1  ;;  %v9230_v60 = vpop.f32.mrb[47].mxu0  ;;  %v9868_v39 = vld [vmem:[%s13858_s20 + $0x58] sm:$0xff]  ;;  %v9875_v59 = vld [vmem:[%s13858_s20 + $0x90] sm:$0xff]  ;;  %v9881_v48 = vld [vmem:[%s13858_s20 + $0xc0] sm:$0xff] }
 0x6fc   : > { %v10059_v7 = vadd.f32 %v9947_v50, %v9835_v38  ;;  %v10054_v9 = vadd.f32 %v9942_v47, %v9830_v52  ;;  %v9849_v0 = vadd.f32 %v16731_v24, %v9447_v40  ;;  %v9844_v10 = vadd.f32 %v16735_v26, %v9230_v60  ;;  %v9449_v12 = vpop.f32.mrb[79].mxu1  ;;  %v9876_v29 = vld [vmem:[%s13858_s20 + $0x98] sm:$0xff]  ;;  %v9882_v1 = vld [vmem:[%s13858_s20 + $0xc8] sm:$0xff] }
 0x6fd   : > { %v10165_v16 = vmax.f32 %v10053_v55, 0.0  ;;  %v10060_v2 = vadd.f32 %v9948_v46, %v9836_v56  ;;  %v10067_v37 = vadd.f32 %v9955_v54, %v9843_v57  ;;  %v9850_v15 = vadd.f32 %v16738_v36, %v9449_v12 }
 0x6fe   : > { %v10171_v5 = vmax.f32 %v10059_v7, 0.0  ;;  %v10166_v34 = vmax.f32 %v10054_v9, 0.0  ;;  %v10073_v14 = vadd.f32 %v9961_v20, %v9849_v0  ;;  %v10068_v24 = vadd.f32 %v9956_v35, %v9844_v10 }
 0x6ff   : > { %10277 = vst [vmem:[%s16681_s19 + $0x2a0] sm:$0xff] %v10165_v16  ;;  %v10172_v17 = vmax.f32 %v10060_v2, 0.0  ;;  %v10179_v26 = vmax.f32 %v10067_v37, 0.0  ;;  %v10074_v22 = vadd.f32 %v9962_v13, %v9850_v15  ;;  %v9889_v16 = vld [vmem:[%s13858_s20 + $0x100] sm:$0xff] }
 0x700   : > { %10283 = vst [vmem:[%s16681_s19 + $0x2d0] sm:$0xff] %v10171_v5  ;;  %10278 = vst [vmem:[%s16681_s19 + $0x2a8] sm:$0xff] %v10166_v34  ;;  %v10185_v23 = vmax.f32 %v10073_v14, 0.0  ;;  %v10180_v61 = vmax.f32 %v10068_v24, 0.0  ;;  %v9895_v5 = vld [vmem:[%s13858_s20 + $0x130] sm:$0xff]  ;;  %v9890_v14 = vld [vmem:[%s13858_s20 + $0x108] sm:$0xff] }
 0x701   : > { %10284 = vst [vmem:[%s16681_s19 + $0x2d8] sm:$0xff] %v10172_v17  ;;  %10291 = vst [vmem:[%s16681_s19 + $0x310] sm:$0xff] %v10179_v26  ;;  %v10186_v36 = vmax.f32 %v10074_v22, 0.0  ;;  %v9896_v22 = vld [vmem:[%s13858_s20 + $0x138] sm:$0xff] }
 0x702   : > { %10297 = vst [vmem:[%s16681_s19 + $0x340] sm:$0xff] %v10185_v23  ;;  %10292 = vst [vmem:[%s16681_s19 + $0x318] sm:$0xff] %v10180_v61  ;;  %v9903_v61 = vld [vmem:[%s13858_s20 + $0x170] sm:$0xff] }
 0x703   : > { %10298 = vst [vmem:[%s16681_s19 + $0x348] sm:$0xff] %v10186_v36 }
 0x711   : > { %v9340_v3 = vpop.f32.mrb[48].mxu0 }
 0x712   : > { %v9749_v41 = vadd.f32 %v16846_v30, %v9340_v3  ;;  %v9559_v21 = vpop.f32.mrb[80].mxu1  ;;  %v9342_v58 = vpop.f32.mrb[49].mxu0 }
 0x713   : > { %v9755_v4 = vadd.f32 %v16851_v62, %v9559_v21  ;;  %v9750_v6 = vadd.f32 %v16856_v32, %v9342_v58  ;;  %v9561_v11 = vpop.f32.mrb[81].mxu1  ;;  %v9344_v43 = vpop.f32.mrb[50].mxu0  ;;  %v9909_v21 = vld [vmem:[%s13858_s20 + $0x1a0] sm:$0xff]  ;;  %v9904_v58 = vld [vmem:[%s13858_s20 + $0x178] sm:$0xff] }
 0x714   : > { %v9973_v19 = vadd.f32 %v9861_v63, %v9749_v41  ;;  %v9756_v44 = vadd.f32 %v16861_v33, %v9561_v11  ;;  %v9763_v49 = vadd.f32 %v16846_v30, %v9344_v43  ;;  %v9563_v18 = vpop.f32.mrb[82].mxu1  ;;  %v9346_v50 = vpop.f32.mrb[51].mxu0  ;;  %v9910_v43 = vld [vmem:[%s13858_s20 + $0x1a8] sm:$0xff] }
 0x715   : > { %v9979_v47 = vadd.f32 %v9867_v42, %v9755_v4  ;;  %v9974_v38 = vadd.f32 %v9862_v51, %v9750_v6  ;;  %v9769_v52 = vadd.f32 %v16851_v62, %v9563_v18  ;;  %v9764_v53 = vadd.f32 %v16856_v32, %v9346_v50  ;;  %v9565_v46 = vpop.f32.mrb[83].mxu1 }
 0x716   : > { %v10085_v54 = vmax.f32 %v9973_v19, 0.0  ;;  %v9980_v55 = vadd.f32 %v9868_v39, %v9756_v44  ;;  %v9987_v56 = vadd.f32 %v9875_v59, %v9763_v49  ;;  %v9770_v57 = vadd.f32 %v16861_v33, %v9565_v46 }
 0x717   : > { %v10091_v40 = vmax.f32 %v9979_v47, 0.0  ;;  %v10086_v20 = vmax.f32 %v9974_v38, 0.0  ;;  %v9993_v60 = vadd.f32 %v9881_v48, %v9769_v52  ;;  %v9988_v35 = vadd.f32 %v9876_v29, %v9764_v53 }
 0x718   : > { %10197 = vst [vmem:[%s16681_s19 + $0x20] sm:$0xff] %v10085_v54  ;;  %v10092_v7 = vmax.f32 %v9980_v55, 0.0  ;;  %v10099_v9 = vmax.f32 %v9987_v56, 0.0  ;;  %v9994_v0 = vadd.f32 %v9882_v1, %v9770_v57  ;;  %v9917_v54 = vld [vmem:[%s13858_s20 + $0x1e0] sm:$0xff] }
 0x719   : > { %10203 = vst [vmem:[%s16681_s19 + $0x50] sm:$0xff] %v10091_v40  ;;  %10198 = vst [vmem:[%s16681_s19 + $0x28] sm:$0xff] %v10086_v20  ;;  %v10105_v10 = vmax.f32 %v9993_v60, 0.0  ;;  %v10100_v12 = vmax.f32 %v9988_v35, 0.0  ;;  %v9350_v13 = vpop.f32.mrb[52].mxu0  ;;  %v9923_v40 = vld [vmem:[%s13858_s20 + $0x210] sm:$0xff] }
 0x71a   : > { %10204 = vst [vmem:[%s16681_s19 + $0x58] sm:$0xff] %v10092_v7  ;;  %10211 = vst [vmem:[%s16681_s19 + $0x90] sm:$0xff] %v10099_v9  ;;  %v10106_v2 = vmax.f32 %v9994_v0, 0.0  ;;  %v9777_v37 = vadd.f32 %v16846_v30, %v9350_v13  ;;  %v9569_v15 = vpop.f32.mrb[84].mxu1  ;;  %v9352_v34 = vpop.f32.mrb[53].mxu0  ;;  %v9918_v60 = vld [vmem:[%s13858_s20 + $0x1e8] sm:$0xff] }
 0x71b   : > { %10217 = vst [vmem:[%s16681_s19 + $0xc0] sm:$0xff] %v10105_v10  ;;  %10212 = vst [vmem:[%s16681_s19 + $0x98] sm:$0xff] %v10100_v12  ;;  %v9783_v24 = vadd.f32 %v16851_v62, %v9569_v15  ;;  %v9778_v17 = vadd.f32 %v16856_v32, %v9352_v34  ;;  %v9571_v26 = vpop.f32.mrb[85].mxu1  ;;  %v9354_v23 = vpop.f32.mrb[54].mxu0  ;;  %v9924_v0 = vld [vmem:[%s13858_s20 + $0x218] sm:$0xff]  ;;  %v9931_v12 = vld [vmem:[%s13858_s20 + $0x250] sm:$0xff] }
 0x71c   : > { %10218 = vst [vmem:[%s16681_s19 + $0xc8] sm:$0xff] %v10106_v2  ;;  %v10001_v36 = vadd.f32 %v9889_v16, %v9777_v37  ;;  %v9784_v3 = vadd.f32 %v16861_v33, %v9571_v26  ;;  %v9791_v63 = vadd.f32 %v16846_v30, %v9354_v23  ;;  %v9573_v41 = vpop.f32.mrb[86].mxu1  ;;  %v9356_v42 = vpop.f32.mrb[55].mxu0  ;;  %v9937_v15 = vld [vmem:[%s13858_s20 + $0x280] sm:$0xff]  ;;  %v9932_v34 = vld [vmem:[%s13858_s20 + $0x258] sm:$0xff]  ;;  %v9938_v23 = vld [vmem:[%s13858_s20 + $0x288] sm:$0xff] }
 0x71d   : > { %v10007_v51 = vadd.f32 %v9895_v5, %v9783_v24  ;;  %v10002_v4 = vadd.f32 %v9890_v14, %v9778_v17  ;;  %v9797_v6 = vadd.f32 %v16851_v62, %v9573_v41  ;;  %v9792_v11 = vadd.f32 %v16856_v32, %v9356_v42  ;;  %v9575_v39 = vpop.f32.mrb[87].mxu1 }
 0x71e   : > { %v10113_v59 = vmax.f32 %v10001_v36, 0.0  ;;  %v10008_v19 = vadd.f32 %v9896_v22, %v9784_v3  ;;  %v10015_v44 = vadd.f32 %v9903_v61, %v9791_v63  ;;  %v9798_v49 = vadd.f32 %v16861_v33, %v9575_v39 }
 0x71f   : > { %v10119_v18 = vmax.f32 %v10007_v51, 0.0  ;;  %v10114_v48 = vmax.f32 %v10002_v4, 0.0  ;;  %v10021_v50 = vadd.f32 %v9909_v21, %v9797_v6  ;;  %v10016_v29 = vadd.f32 %v9904_v58, %v9792_v11 }
 0x720   : > { %10225 = vst [vmem:[%s16681_s19 + $0x100] sm:$0xff] %v10113_v59  ;;  %v10120_v47 = vmax.f32 %v10008_v19, 0.0  ;;  %v10127_v38 = vmax.f32 %v10015_v44, 0.0  ;;  %v10022_v52 = vadd.f32 %v9910_v43, %v9798_v49  ;;  %v9945_v59 = vld [vmem:[%s13858_s20 + $0x2c0] sm:$0xff] }
 0x721   : > { %10231 = vst [vmem:[%s16681_s19 + $0x130] sm:$0xff] %v10119_v18  ;;  %10226 = vst [vmem:[%s16681_s19 + $0x108] sm:$0xff] %v10114_v48  ;;  %v10133_v53 = vmax.f32 %v10021_v50, 0.0  ;;  %v10128_v46 = vmax.f32 %v10016_v29, 0.0  ;;  %v9360_v1 = vpop.f32.mrb[56].mxu0  ;;  %v9951_v18 = vld [vmem:[%s13858_s20 + $0x2f0] sm:$0xff] }
 0x722   : > { %10232 = vst [vmem:[%s16681_s19 + $0x138] sm:$0xff] %v10120_v47  ;;  %10239 = vst [vmem:[%s16681_s19 + $0x170] sm:$0xff] %v10127_v38  ;;  %v10134_v55 = vmax.f32 %v10022_v52, 0.0  ;;  %v9805_v56 = vadd.f32 %v16846_v30, %v9360_v1  ;;  %v9579_v57 = vpop.f32.mrb[88].mxu1  ;;  %v9362_v20 = vpop.f32.mrb[57].mxu0  ;;  %v9946_v50 = vld [vmem:[%s13858_s20 + $0x2c8] sm:$0xff] }
 0x723   : > { %10245 = vst [vmem:[%s16681_s19 + $0x1a0] sm:$0xff] %v10133_v53  ;;  %10240 = vst [vmem:[%s16681_s19 + $0x178] sm:$0xff] %v10128_v46  ;;  %v9811_v35 = vadd.f32 %v16851_v62, %v9579_v57  ;;  %v9806_v7 = vadd.f32 %v16856_v32, %v9362_v20  ;;  %v9581_v9 = vpop.f32.mrb[89].mxu1  ;;  %v9364_v10 = vpop.f32.mrb[58].mxu0  ;;  %v9952_v52 = vld [vmem:[%s13858_s20 + $0x2f8] sm:$0xff]  ;;  %v9959_v46 = vld [vmem:[%s13858_s20 + $0x330] sm:$0xff] }
 0x724   : > { %10246 = vst [vmem:[%s16681_s19 + $0x1a8] sm:$0xff] %v10134_v55  ;;  %v10029_v13 = vadd.f32 %v9917_v54, %v9805_v56  ;;  %v9812_v16 = vadd.f32 %v16861_v33, %v9581_v9  ;;  %v9819_v2 = vadd.f32 %v16846_v30, %v9364_v10  ;;  %v9583_v37 = vpop.f32.mrb[90].mxu1  ;;  %v9366_v5 = vpop.f32.mrb[59].mxu0  ;;  %v9965_v57 = vld [vmem:[%s13858_s20 + $0x360] sm:$0xff]  ;;  %v9960_v20 = vld [vmem:[%s13858_s20 + $0x338] sm:$0xff]  ;;  %v9966_v10 = vld [vmem:[%s13858_s20 + $0x368] sm:$0xff] }
 0x725   : > { %v10035_v14 = vadd.f32 %v9923_v40, %v9811_v35  ;;  %v10030_v24 = vadd.f32 %v9918_v60, %v9806_v7  ;;  %v9825_v17 = vadd.f32 %v16851_v62, %v9583_v37  ;;  %v9820_v26 = vadd.f32 %v16856_v32, %v9366_v5  ;;  %v9585_v22 = vpop.f32.mrb[91].mxu1 }
 0x726   : > { %v10141_v61 = vmax.f32 %v10029_v13, 0.0  ;;  %v10036_v36 = vadd.f32 %v9924_v0, %v9812_v16  ;;  %v10043_v3 = vadd.f32 %v9931_v12, %v9819_v2  ;;  %v9826_v63 = vadd.f32 %v16861_v33, %v9585_v22 }
 0x727   : > { %v10147_v41 = vmax.f32 %v10035_v14, 0.0  ;;  %v10142_v21 = vmax.f32 %v10030_v24, 0.0  ;;  %v10049_v42 = vadd.f32 %v9937_v15, %v9825_v17  ;;  %v10044_v58 = vadd.f32 %v9932_v34, %v9820_v26 }
 0x728   : > { %10253 = vst [vmem:[%s16681_s19 + $0x1e0] sm:$0xff] %v10141_v61  ;;  %v10148_v51 = vmax.f32 %v10036_v36, 0.0  ;;  %v10155_v4 = vmax.f32 %v10043_v3, 0.0  ;;  %v10050_v6 = vadd.f32 %v9938_v23, %v9826_v63  ;;  %v16961_v17 = vrot.slane %v16841_v45, %v15203_v28  ;;  %v9865_v23 = vld [vmem:[%s13858_s20 + $0x40] sm:$0xff]  ;;  %v9866_v3 = vld [vmem:[%s13858_s20 + $0x48] sm:$0xff] }
 0x729   : > { %10259 = vst [vmem:[%s16681_s19 + $0x210] sm:$0xff] %v10147_v41  ;;  %10254 = vst [vmem:[%s16681_s19 + $0x1e8] sm:$0xff] %v10142_v21  ;;  %v10161_v11 = vmax.f32 %v10049_v42, 0.0  ;;  %v10156_v39 = vmax.f32 %v10044_v58, 0.0  ;;  %v9370_v43 = vpop.f32.mrb[60].mxu0  ;;  %v16965_v26 = vrot.slane %v16841_v45, %v15212_v31  ;;  %v9879_v21 = vld [vmem:[%s13858_s20 + $0xb0] sm:$0xff] }
 0x72a   : > { %10260 = vst [vmem:[%s16681_s19 + $0x218] sm:$0xff] %v10148_v51  ;;  %10267 = vst [vmem:[%s16681_s19 + $0x250] sm:$0xff] %v10155_v4  ;;  %v10162_v19 = vmax.f32 %v10050_v6, 0.0  ;;  %v9833_v44 = vadd.f32 %v16846_v30, %v9370_v43  ;;  %v9589_v49 = vpop.f32.mrb[92].mxu1  ;;  %v9372_v48 = vpop.f32.mrb[61].mxu0  ;;  %v9880_v31 = vld [vmem:[%s13858_s20 + $0xb8] sm:$0xff] }
 0x72b   : > { %10273 = vst [vmem:[%s16681_s19 + $0x280] sm:$0xff] %v10161_v11  ;;  %10268 = vst [vmem:[%s16681_s19 + $0x258] sm:$0xff] %v10156_v39  ;;  %v9839_v29 = vadd.f32 %v16851_v62, %v9589_v49  ;;  %v9834_v47 = vadd.f32 %v16856_v32, %v9372_v48  ;;  %v9591_v38 = vpop.f32.mrb[93].mxu1  ;;  %v9374_v53 = vpop.f32.mrb[62].mxu0  ;;  %v9893_v49 = vld [vmem:[%s13858_s20 + $0x120] sm:$0xff] }
 0x72c   : > { %10274 = vst [vmem:[%s16681_s19 + $0x288] sm:$0xff] %v10162_v19  ;;  %v10057_v1 = vadd.f32 %v9945_v59, %v9833_v44  ;;  %v9840_v54 = vadd.f32 %v16861_v33, %v9591_v38  ;;  %v9847_v55 = vadd.f32 %v16846_v30, %v9374_v53  ;;  %v9593_v56 = vpop.f32.mrb[94].mxu1  ;;  %v9376_v40 = vpop.f32.mrb[63].mxu0  ;;  %v9907_v38 = vld [vmem:[%s13858_s20 + $0x190] sm:$0xff] }
 0x72d   : > { %v10063_v60 = vadd.f32 %v9951_v18, %v9839_v29  ;;  %v10058_v35 = vadd.f32 %v9946_v50, %v9834_v47  ;;  %v9853_v7 = vadd.f32 %v16851_v62, %v9593_v56  ;;  %v9848_v9 = vadd.f32 %v16856_v32, %v9376_v40  ;;  %v9595_v0 = vpop.f32.mrb[95].mxu1  ;;  %v9894_v50 = vld [vmem:[%s13858_s20 + $0x128] sm:$0xff] }
 0x72e   : > { %v10169_v12 = vmax.f32 %v10057_v1, 0.0  ;;  %v10064_v13 = vadd.f32 %v9952_v52, %v9840_v54  ;;  %v10071_v30 = vadd.f32 %v9959_v46, %v9847_v55  ;;  %v9854_v16 = vadd.f32 %v16861_v33, %v9595_v0  ;;  %v9908_v1 = vld [vmem:[%s13858_s20 + $0x198] sm:$0xff] }
 0x72f   : > { %v10175_v2 = vmax.f32 %v10063_v60, 0.0  ;;  %v10170_v37 = vmax.f32 %v10058_v35, 0.0  ;;  %v10077_v15 = vadd.f32 %v9965_v57, %v9853_v7  ;;  %v10072_v62 = vadd.f32 %v9960_v20, %v9848_v9  ;;  %v9921_v9 = vld [vmem:[%s13858_s20 + $0x200] sm:$0xff] }
 0x730   : > { %10281 = vst [vmem:[%s16681_s19 + $0x2c0] sm:$0xff] %v10169_v12  ;;  %v10176_v5 = vmax.f32 %v10064_v13, 0.0  ;;  %v10183_v32 = vmax.f32 %v10071_v30, 0.0  ;;  %v10078_v34 = vadd.f32 %v9966_v10, %v9854_v16  ;;  %v9922_v12 = vld [vmem:[%s13858_s20 + $0x208] sm:$0xff]  ;;  %v9935_v16 = vld [vmem:[%s13858_s20 + $0x270] sm:$0xff] }
 0x731   : > { %10287 = vst [vmem:[%s16681_s19 + $0x2f0] sm:$0xff] %v10175_v2  ;;  %10282 = vst [vmem:[%s16681_s19 + $0x2c8] sm:$0xff] %v10170_v37  ;;  %v10189_v14 = vmax.f32 %v10077_v15, 0.0  ;;  %v10184_v24 = vmax.f32 %v10072_v62, 0.0  ;;  %v9936_v62 = vld [vmem:[%s13858_s20 + $0x278] sm:$0xff] }
 0x732   : > { %10288 = vst [vmem:[%s16681_s19 + $0x2f8] sm:$0xff] %v10176_v5  ;;  %10295 = vst [vmem:[%s16681_s19 + $0x330] sm:$0xff] %v10183_v32  ;;  %v10190_v33 = vmax.f32 %v10078_v34, 0.0 }
 0x733   : > { %10301 = vst [vmem:[%s16681_s19 + $0x360] sm:$0xff] %v10189_v14  ;;  %10296 = vst [vmem:[%s16681_s19 + $0x338] sm:$0xff] %v10184_v24 }
 0x734   : > { %10302 = vst [vmem:[%s16681_s19 + $0x368] sm:$0xff] %v10190_v33 }
 0x742   : > { %v9486_v22 = vpop.f32.mrb[64].mxu0 }
 0x743   : > { %v9753_v61 = vadd.f32 %v16961_v17, %v9486_v22  ;;  %v9488_v36 = vpop.f32.mrb[65].mxu0 }
 0x744   : > { %v9754_v63 = vadd.f32 %v16965_v26, %v9488_v36  ;;  %v9490_v41 = vpop.f32.mrb[66].mxu0  ;;  %v9949_v36 = vld [vmem:[%s13858_s20 + $0x2e0] sm:$0xff] }
 0x745   : > { %v9977_v42 = vadd.f32 %v9865_v23, %v9753_v61  ;;  %v9767_v28 = vadd.f32 %v16961_v17, %v9490_v41  ;;  %v9492_v58 = vpop.f32.mrb[67].mxu0  ;;  %v9950_v41 = vld [vmem:[%s13858_s20 + $0x2e8] sm:$0xff] }
 0x746   : > { %v9978_v51 = vadd.f32 %v9866_v3, %v9754_v63  ;;  %v9768_v4 = vadd.f32 %v16965_v26, %v9492_v58 }
 0x747   : > { %v10089_v6 = vmax.f32 %v9977_v42, 0.0  ;;  %v9991_v11 = vadd.f32 %v9879_v21, %v9767_v28  ;;  %v9963_v28 = vld [vmem:[%s13858_s20 + $0x350] sm:$0xff] }
 0x748   : > { %v10090_v39 = vmax.f32 %v9978_v51, 0.0  ;;  %v9992_v43 = vadd.f32 %v9880_v31, %v9768_v4  ;;  %v9964_v4 = vld [vmem:[%s13858_s20 + $0x358] sm:$0xff] }
 0x749   : > { %10201 = vst [vmem:[%s16681_s19 + $0x40] sm:$0xff] %v10089_v6  ;;  %v10103_v59 = vmax.f32 %v9991_v11, 0.0 }
 0x74a   : > { %10202 = vst [vmem:[%s16681_s19 + $0x48] sm:$0xff] %v10090_v39  ;;  %v10104_v19 = vmax.f32 %v9992_v43, 0.0  ;;  %v9496_v44 = vpop.f32.mrb[68].mxu0 }
 0x74b   : > { %10215 = vst [vmem:[%s16681_s19 + $0xb0] sm:$0xff] %v10103_v59  ;;  %v9781_v18 = vadd.f32 %v16961_v17, %v9496_v44  ;;  %v9498_v48 = vpop.f32.mrb[69].mxu0 }
 0x74c   : > { %10216 = vst [vmem:[%s16681_s19 + $0xb8] sm:$0xff] %v10104_v19  ;;  %v9782_v29 = vadd.f32 %v16965_v26, %v9498_v48  ;;  %v9500_v47 = vpop.f32.mrb[70].mxu0  ;;  %v9869_v48 = vld [vmem:[%s13858_s20 + $0x60] sm:$0xff] }
 0x74d   : > { %v10005_v52 = vadd.f32 %v9893_v49, %v9781_v18  ;;  %v9795_v53 = vadd.f32 %v16961_v17, %v9500_v47  ;;  %v9502_v46 = vpop.f32.mrb[71].mxu0  ;;  %v9870_v47 = vld [vmem:[%s13858_s20 + $0x68] sm:$0xff] }
 0x74e   : > { %v10006_v54 = vadd.f32 %v9894_v50, %v9782_v29  ;;  %v9796_v55 = vadd.f32 %v16965_v26, %v9502_v46 }
 0x74f   : > { %v10117_v56 = vmax.f32 %v10005_v52, 0.0  ;;  %v10019_v57 = vadd.f32 %v9907_v38, %v9795_v53  ;;  %v9883_v53 = vld [vmem:[%s13858_s20 + $0xd0] sm:$0xff] }
 0x750   : > { %v10118_v40 = vmax.f32 %v10006_v54, 0.0  ;;  %v10020_v20 = vadd.f32 %v9908_v1, %v9796_v55 }
 0x751   : > { %10229 = vst [vmem:[%s16681_s19 + $0x120] sm:$0xff] %v10117_v56  ;;  %v10131_v60 = vmax.f32 %v10019_v57, 0.0 }
 0x752   : > { %10230 = vst [vmem:[%s16681_s19 + $0x128] sm:$0xff] %v10118_v40  ;;  %v10132_v35 = vmax.f32 %v10020_v20, 0.0  ;;  %v9506_v7 = vpop.f32.mrb[72].mxu0 }
 0x753   : > { %10243 = vst [vmem:[%s16681_s19 + $0x190] sm:$0xff] %v10131_v60  ;;  %v9809_v0 = vadd.f32 %v16961_v17, %v9506_v7  ;;  %v9508_v10 = vpop.f32.mrb[73].mxu0 }
 0x754   : > { %10244 = vst [vmem:[%s16681_s19 + $0x198] sm:$0xff] %v10132_v35  ;;  %v9810_v13 = vadd.f32 %v16965_v26, %v9508_v10  ;;  %v9510_v30 = vpop.f32.mrb[74].mxu0  ;;  %v9897_v35 = vld [vmem:[%s13858_s20 + $0x140] sm:$0xff] }
 0x755   : > { %v10033_v2 = vadd.f32 %v9921_v9, %v9809_v0  ;;  %v9823_v37 = vadd.f32 %v16961_v17, %v9510_v30  ;;  %v9512_v15 = vpop.f32.mrb[75].mxu0  ;;  %v9898_v0 = vld [vmem:[%s13858_s20 + $0x148] sm:$0xff] }
 0x756   : > { %v10034_v5 = vadd.f32 %v9922_v12, %v9810_v13  ;;  %v9824_v32 = vadd.f32 %v16965_v26, %v9512_v15  ;;  %v9911_v13 = vld [vmem:[%s13858_s20 + $0x1b0] sm:$0xff] }
 0x757   : > { %v10145_v34 = vmax.f32 %v10033_v2, 0.0  ;;  %v10047_v14 = vadd.f32 %v9935_v16, %v9823_v37  ;;  %v9912_v37 = vld [vmem:[%s13858_s20 + $0x1b8] sm:$0xff] }
 0x758   : > { %v10146_v24 = vmax.f32 %v10034_v5, 0.0  ;;  %v10048_v33 = vadd.f32 %v9936_v62, %v9824_v32 }
 0x759   : > { %10257 = vst [vmem:[%s16681_s19 + $0x200] sm:$0xff] %v10145_v34  ;;  %v10159_v22 = vmax.f32 %v10047_v14, 0.0 }
 0x75a   : > { %10258 = vst [vmem:[%s16681_s19 + $0x208] sm:$0xff] %v10146_v24  ;;  %v10160_v23 = vmax.f32 %v10048_v33, 0.0  ;;  %v9516_v61 = vpop.f32.mrb[76].mxu0 }
 0x75b   : > { %10271 = vst [vmem:[%s16681_s19 + $0x270] sm:$0xff] %v10159_v22  ;;  %v9837_v3 = vadd.f32 %v16961_v17, %v9516_v61  ;;  %v9518_v63 = vpop.f32.mrb[77].mxu0 }
 0x75c   : > { %10272 = vst [vmem:[%s16681_s19 + $0x278] sm:$0xff] %v10160_v23  ;;  %v9838_v21 = vadd.f32 %v16965_v26, %v9518_v63  ;;  %v9520_v42 = vpop.f32.mrb[78].mxu0  ;;  %v9925_v23 = vld [vmem:[%s13858_s20 + $0x220] sm:$0xff] }
 0x75d   : > { %v10061_v58 = vadd.f32 %v9949_v36, %v9837_v3  ;;  %v9851_v31 = vadd.f32 %v16961_v17, %v9520_v42  ;;  %v9522_v51 = vpop.f32.mrb[79].mxu0  ;;  %v17018_v17 = vrot.slane %v16841_v45, %v9693_v25  ;;  %v9926_v3 = vld [vmem:[%s13858_s20 + $0x228] sm:$0xff] }
 0x75e   : > { %v10062_v6 = vadd.f32 %v9950_v41, %v9838_v21  ;;  %v9852_v11 = vadd.f32 %v16965_v26, %v9522_v51  ;;  %v17023_v26 = vrot.slane %v16841_v45, %v9697_v8  ;;  %v9884_v8 = vld [vmem:[%s13858_s20 + $0xd8] sm:$0xff]  ;;  %v9939_v21 = vld [vmem:[%s13858_s20 + $0x290] sm:$0xff] }
 0x75f   : > { %v10173_v39 = vmax.f32 %v10061_v58, 0.0  ;;  %v10075_v43 = vadd.f32 %v9963_v28, %v9851_v31  ;;  %v9940_v31 = vld [vmem:[%s13858_s20 + $0x298] sm:$0xff] }
 0x760   : > { %v10174_v59 = vmax.f32 %v10062_v6, 0.0  ;;  %v10076_v19 = vadd.f32 %v9964_v4, %v9852_v11 }
 0x761   : > { %10285 = vst [vmem:[%s16681_s19 + $0x2e0] sm:$0xff] %v10173_v39  ;;  %v10187_v44 = vmax.f32 %v10075_v43, 0.0 }
 0x762   : > { %10286 = vst [vmem:[%s16681_s19 + $0x2e8] sm:$0xff] %v10174_v59  ;;  %v10188_v49 = vmax.f32 %v10076_v19, 0.0 }
 0x763   : > { %10299 = vst [vmem:[%s16681_s19 + $0x350] sm:$0xff] %v10187_v44 }
 0x764   : > { %10300 = vst [vmem:[%s16681_s19 + $0x358] sm:$0xff] %v10188_v49  ;;  %v9953_v49 = vld [vmem:[%s13858_s20 + $0x300] sm:$0xff] }
 0x772   : > { %v9632_v18 = vpop.f32.mrb[80].mxu0 }
 0x773   : > { %v9757_v50 = vadd.f32 %v17018_v17, %v9632_v18  ;;  %v9634_v29 = vpop.f32.mrb[81].mxu0 }
 0x774   : > { %v9758_v38 = vadd.f32 %v17023_v26, %v9634_v29  ;;  %v9636_v52 = vpop.f32.mrb[82].mxu0 }
 0x775   : > { %v9981_v25 = vadd.f32 %v9869_v48, %v9757_v50  ;;  %v9771_v27 = vadd.f32 %v17018_v17, %v9636_v52  ;;  %v9638_v46 = vpop.f32.mrb[83].mxu0  ;;  %v9954_v50 = vld [vmem:[%s13858_s20 + $0x308] sm:$0xff] }
 0x776   : > { %v9982_v45 = vadd.f32 %v9870_v47, %v9758_v38  ;;  %v9772_v1 = vadd.f32 %v17023_v26, %v9638_v46  ;;  %v9967_v38 = vld [vmem:[%s13858_s20 + $0x370] sm:$0xff] }
 0x777   : > { %v10093_v54 = vmax.f32 %v9981_v25, 0.0  ;;  %v9995_v55 = vadd.f32 %v9883_v53, %v9771_v27  ;;  %v9968_v27 = vld [vmem:[%s13858_s20 + $0x378] sm:$0xff]  ;;  %s13455_s20 = scalar_lea.vmem %s17078_s14, 14336 }
 0x778   : > { %v10094_v56 = vmax.f32 %v9982_v45, 0.0  ;;  %v9996_v57 = vadd.f32 %v9884_v8, %v9772_v1  ;;  %p13456_p10 = scmp.ne.s32.totalorder %s17078_s14, %s13455_s20  ;;  %p13463_p7 = scmp.lt.s32.totalorder %s13461_s15, %s13455_s20 }
 0x779   : > { %10205 = vst [vmem:[%s16681_s19 + $0x60] sm:$0xff] %v10093_v54  ;;  %v10107_v40 = vmax.f32 %v9995_v55, 0.0 }
 0x77a   : > { %10206 = vst [vmem:[%s16681_s19 + $0x68] sm:$0xff] %v10094_v56  ;;  %v10108_v20 = vmax.f32 %v9996_v57, 0.0  ;;  %v9642_v60 = vpop.f32.mrb[84].mxu0  ;;  %p13457_p2 = pnand %p13456_p10, %p17162_p1  ;;  %p13464_p8 = por %p13463_p7, %p13462_p4 }
 0x77b   : > { %10219 = vst [vmem:[%s16681_s19 + $0xd0] sm:$0xff] %v10107_v40  ;;  %v9785_v7 = vadd.f32 %v17018_v17, %v9642_v60  ;;  %v9644_v9 = vpop.f32.mrb[85].mxu0 }
 0x77c   : > { %10220 = vst [vmem:[%s16681_s19 + $0xd8] sm:$0xff] %v10108_v20  ;;  %v9786_v10 = vadd.f32 %v17023_v26, %v9644_v9  ;;  %v9646_v12 = vpop.f32.mrb[86].mxu0  ;;  %p13458_p3 = pneg %p13457_p2 }
 0x77d   : > { %v10009_v30 = vadd.f32 %v9897_v35, %v9785_v7  ;;  %v9799_v16 = vadd.f32 %v17018_v17, %v9646_v12  ;;  %v9648_v2 = vpop.f32.mrb[87].mxu0 }
 0x77e   : > { %v10010_v15 = vadd.f32 %v9898_v0, %v9786_v10  ;;  %v9800_v62 = vadd.f32 %v17023_v26, %v9648_v2  ;;  %p13465_p11 = pnand %p13464_p8, %p13458_p3 }
 0x77f   : > { %v10121_v5 = vmax.f32 %v10009_v30, 0.0  ;;  %v10023_v32 = vadd.f32 %v9911_v13, %v9799_v16 }
 0x780   : > { %v10122_v34 = vmax.f32 %v10010_v15, 0.0  ;;  %v10024_v14 = vadd.f32 %v9912_v37, %v9800_v62 }
 0x781   : > { %10233 = vst [vmem:[%s16681_s19 + $0x140] sm:$0xff] %v10121_v5  ;;  %v10135_v24 = vmax.f32 %v10023_v32, 0.0 }
 0x782   : > { %10234 = vst [vmem:[%s16681_s19 + $0x148] sm:$0xff] %v10122_v34  ;;  %v10136_v33 = vmax.f32 %v10024_v14, 0.0  ;;  %v9652_v22 = vpop.f32.mrb[88].mxu0 }
 0x783   : > { %10247 = vst [vmem:[%s16681_s19 + $0x1b0] sm:$0xff] %v10135_v24  ;;  %v9813_v61 = vadd.f32 %v17018_v17, %v9652_v22  ;;  %v9654_v36 = vpop.f32.mrb[89].mxu0 }
 0x784   : > { %10248 = vst [vmem:[%s16681_s19 + $0x1b8] sm:$0xff] %v10136_v33  ;;  %v9814_v63 = vadd.f32 %v17023_v26, %v9654_v36  ;;  %v9656_v41 = vpop.f32.mrb[90].mxu0 }
 0x785   : > { %v10037_v42 = vadd.f32 %v9925_v23, %v9813_v61  ;;  %v9827_v28 = vadd.f32 %v17018_v17, %v9656_v41  ;;  %v9658_v58 = vpop.f32.mrb[91].mxu0 }
 0x786   : > { %v10038_v51 = vadd.f32 %v9926_v3, %v9814_v63  ;;  %v9828_v4 = vadd.f32 %v17023_v26, %v9658_v58 }
 0x787   : > { %v10149_v6 = vmax.f32 %v10037_v42, 0.0  ;;  %v10051_v11 = vadd.f32 %v9939_v21, %v9827_v28 }
 0x788   : > { %v10150_v39 = vmax.f32 %v10038_v51, 0.0  ;;  %v10052_v43 = vadd.f32 %v9940_v31, %v9828_v4 }
 0x789   : > { %10261 = vst [vmem:[%s16681_s19 + $0x220] sm:$0xff] %v10149_v6  ;;  %v10163_v59 = vmax.f32 %v10051_v11, 0.0 }
 0x78a   : > { %10262 = vst [vmem:[%s16681_s19 + $0x228] sm:$0xff] %v10150_v39  ;;  %v10164_v19 = vmax.f32 %v10052_v43, 0.0  ;;  %v9662_v44 = vpop.f32.mrb[92].mxu0 }
 0x78b   : > { %10275 = vst [vmem:[%s16681_s19 + $0x290] sm:$0xff] %v10163_v59  ;;  %v9841_v18 = vadd.f32 %v17018_v17, %v9662_v44  ;;  %v9664_v48 = vpop.f32.mrb[93].mxu0 }
 0x78c   : > { %10276 = vst [vmem:[%s16681_s19 + $0x298] sm:$0xff] %v10164_v19  ;;  %v9842_v29 = vadd.f32 %v17023_v26, %v9664_v48  ;;  %v9666_v47 = vpop.f32.mrb[94].mxu0 }
 0x78d   : > { %v10065_v52 = vadd.f32 %v9953_v49, %v9841_v18  ;;  %v9855_v53 = vadd.f32 %v17018_v17, %v9666_v47  ;;  %v9668_v25 = vpop.f32.mrb[95].mxu0 }
 0x78e   : > { %v10066_v46 = vadd.f32 %v9954_v50, %v9842_v29  ;;  %v9856_v8 = vadd.f32 %v17023_v26, %v9668_v25 }
 0x78f   : > { %v10177_v45 = vmax.f32 %v10065_v52, 0.0  ;;  %v10079_v1 = vadd.f32 %v9967_v38, %v9855_v53 }
 0x790   : > { %v10178_v54 = vmax.f32 %v10066_v46, 0.0  ;;  %v10080_v55 = vadd.f32 %v9968_v27, %v9856_v8 }
 0x791   : > { %10289 = vst [vmem:[%s16681_s19 + $0x300] sm:$0xff] %v10177_v45  ;;  %v10191_v56 = vmax.f32 %v10079_v1, 0.0 }
 0x792   : > { %10290 = vst [vmem:[%s16681_s19 + $0x308] sm:$0xff] %v10178_v54  ;;  %v10192_v17 = vmax.f32 %v10080_v55, 0.0 }
 0x793   : > { %10303 = vst [vmem:[%s16681_s19 + $0x370] sm:$0xff] %v10191_v56 }
 0x794   : > { %10304 = vst [vmem:[%s16681_s19 + $0x378] sm:$0xff] %v10192_v17 }
 0x795   : > { %13468 = shalt.err (!%p13465_p11)
}
 0x796   : > { %s13469_s28 = scalar_lea.hbm %s17075_s26, 14336  ;;  %s13473_s19 = scalar_lea.hbm %s17137_s12, 28672 }
 0x797   : > { %p13470_p13 = scmp.ne.s32.totalorder %s17075_s26, %s13469_s28  ;;  %p13474_p6 = scmp.lt.u32.totalorder %s17075_s26, %s17137_s12 }
 0x798   : > { %p13475_p9 = scmp.lt.u32.totalorder %s13473_s19, %s13469_s28  ;;  %p13477_p10 = scmp.lt.u32.totalorder %s13469_s28, %s17075_s26 }
 0x799   : > { %p13471_p5 = pnand %p13470_p13, %p17162_p1 }
 0x79a   : > { %p13476_p12 = por %p13475_p9, %p13474_p6 }
 0x79b   : > { %p13472_p0 = pneg %p13471_p5 }
 0x79c   : > { %p13478_p2 = por %p13477_p10, %p13476_p12 }
 0x79e   : > { %p13479_p3 = pnand %p13478_p2, %p13472_p0 }
 0x7a0   : > { %13482 = shalt.err (!%p13479_p3)
}
 0x7a1   : > { %s13534_s24 = smov 1792   ;;  %s13535_s18 = smov 112  }
 0x7a2   : > { %11949 = dma.vmem_to_hbm [thread:$0]  (%p17162_p1), %s17078_s14, 14336, %s17075_s26, %s17084_s25, %s13534_s24, %s13534_s24, %s13535_s18  }
 0x7a3 PF: > { %s17163_s30 = sld [smem:[#allocation14_spill]]  ;;  %s17164_s20 = sld [smem:[#allocation12_spill]] }
 0x7a4   : > { %s17165_s23 = sld [smem:[#allocation17_spill]] }
 0x7a9   : > { %p11966_p4 = scmp.ge.s32.totalorder %s17163_s30, 2  ;;  %s10334_s27 = sand.u32 1, %s17164_s20  }
 0x7aa   : > { %p17166_p7 = scmp.ne.s32.totalorder %s17165_s23, 0  ;;  %s10335_s15 = scalar_lea.sflag [#allocation5], %s10334_s27 }
 0x7ac   : > { %p11959_p8 = pnand %p11966_p4, %p17166_p7 }
 0x7ae   : > { %13508 = dma.done.wait (!%p11959_p8), %s10335_s15, 14336  }
 0x7af   : > { %13510 = vsyncadd (!%p11959_p8), %s10335_s15, 4294952960  ;;  %s17167_s24 = sld [smem:[#allocation15_spill]]  ;;  %s17168_s28 = sld [smem:[#allocation13_spill]] }
 0x7b0   : > { %s17169_s23 = sld [smem:[#allocation16_spill]]  ;;  %s17170_s21 = smov %s13517_s22 }
 0x7b5   : > { %p24_p11 = scmp.ge.s32.totalorder %s17167_s24, 4   ;;  %s17171_s22 = smov %s17168_s28 }
 0x7b7   :  { %26 = sbr.rel (!%p24_p11) target bundleno = 5 (0x5), region = 116 }
 0x7be   :  { %10340 = vsyncpa [#allocation4], 1 }
 0x7bf   :  { %10342 = vsyncpa [#allocation4 + $0x1], 1 }
 0x7c0   :  { %10343 = vsyncpa [#allocation7], 1 }
 0x7c1   :  { %10344 = vsyncpa [#allocation5], 1 }
 0x7c2   :  { %10346 = vsyncpa [#allocation5 + $0x1], 1 }

</bundles_post_ra>
